<compile_context>
chip_gen: v5e
topology: v5e:2x2
jax: 0.10.0
libtpu: 0.0.40
codegen_flags: <defaults>
</compile_context>

<pallas_src>
import math

import numpy as np
import jax
import jax.numpy as jnp
from jax.experimental import pallas as pl
from jax.experimental.pallas import tpu as pltpu


# ----------------------------------------------------------------------------
# In-kernel GELU (exact, erf-based -- matches torch.nn.GELU() to ~1.5e-7).
# Built only from ops that lower in Mosaic (mul/add/div/abs/exp/where).
# ----------------------------------------------------------------------------
def _gelu_exact(x):
    z = x * 0.7071067811865476
    az = jnp.abs(z)
    t = 1.0 / (1.0 + 0.3275911 * az)
    poly = ((((1.061405429 * t - 1.453152027) * t + 1.421413741) * t
             - 0.284496736) * t + 0.254829592) * t
    erf_abs = 1.0 - poly * jnp.exp(-az * az)
    erf = jnp.where(z < 0.0, -erf_abs, erf_abs)
    return 0.5 * x * (1.0 + erf)


# ----------------------------------------------------------------------------
# Host-side (precomputed once) operand builders.
# ----------------------------------------------------------------------------
def _bilinear_matrix(out_size, in_size):
    # torch F.interpolate(mode='bilinear', align_corners=False) 2-tap rule.
    scale = in_size / out_size
    o = np.arange(out_size, dtype=np.float64)
    src = np.maximum((o + 0.5) * scale - 0.5, 0.0)
    i0 = np.minimum(np.floor(src).astype(np.int64), in_size - 1)
    i1 = np.minimum(i0 + 1, in_size - 1)
    frac = src - i0
    m = np.zeros((out_size, in_size), np.float64)
    m[np.arange(out_size), i0] += 1.0 - frac
    m[np.arange(out_size), i1] += frac
    return m.astype(np.float32)


def _conv_strip_matrix(w_hwio, wg):
    # Block-Toeplitz strip: one matmul computes a Wg-wide strip of the 3x3 conv
    # directly in "row form" (rows = h, lanes = w*Cout + co).  Column order is
    # (dy, w_local, dx, c) with co = c*4 + 2*dy + dx (torch PixelShuffle order)
    # so the shuffle reduces to two contiguous lane slices afterwards.
    _, _, cin, cout = w_hwio.shape
    cn = cout // 4
    m = np.zeros((3 * (wg + 2) * cin, wg * cout), np.float32)
    for ky in range(3):
        for kx in range(3):
            for wl in range(wg):
                r0 = (ky * (wg + 2) + (wl + kx)) * cin
                for dy in range(2):
                    for dx in range(2):
                        for c in range(cn):
                            co = c * 4 + dy * 2 + dx
                            col = dy * (wg * 2 * cn) + wl * (2 * cn) + dx * cn + c
                            m[r0:r0 + cin, col] = w_hwio[ky, kx, :, co]
    return m


def _conv_strip_bias(b, wg):
    cout = b.shape[0]
    cn = cout // 4
    br = np.zeros((1, wg * cout), np.float32)
    for wl in range(wg):
        for dy in range(2):
            for dx in range(2):
                for c in range(cn):
                    co = c * 4 + dy * 2 + dx
                    br[0, dy * (wg * 2 * cn) + wl * (2 * cn) + dx * cn + c] = b[co]
    return br


def _row_tap_matrix(h):
    # [[row y-1 (zero top)], [identity], [row y+1 (zero bottom)]] : (3h, h)
    t = np.zeros((3 * h, h), np.float32)
    for r in range(1, h):
        t[r, r - 1] = 1.0            # ky = 0 tap
    for r in range(h):
        t[h + r, r] = 1.0            # ky = 1 (center)
    for r in range(h - 1):
        t[2 * h + r, r + 1] = 1.0    # ky = 2 tap
    return t


def _interleave_tap_matrices(h_half):
    # Q_dy: (3*2*h_half, h_half).  Maps the dy plane of the previous
    # PixelShuffle (a_dy, h_half rows) straight to the stacked 3 row-taps
    # (y-1, y, y+1, zero boundary rows) of the interleaved 2*h_half-row image:
    #     taps = Q_0 @ a0 + Q_1 @ a1
    # i.e. the row interleave is folded into the next stage's row shift.
    h = 2 * h_half
    q = np.zeros((2, 3 * h, h_half), np.float32)
    for y in range(h):
        q[y % 2, h + y, y // 2] = 1.0                      # center tap
        if y >= 1:
            q[(y - 1) % 2, y, (y - 1) // 2] = 1.0          # y-1 tap
        if y + 1 < h:
            q[(y + 1) % 2, 2 * h + y, (y + 1) // 2] = 1.0  # y+1 tap
    return q


# ----------------------------------------------------------------------------
# Parameters (synthetic, deterministic, PyTorch-default-style init).
# Conv weights stored as (3, 3, Cin, Cout) (HWIO); fixup_w as (Cin, Cout).
# ----------------------------------------------------------------------------
def init_params(key, dim):
    chans = [(dim, dim // 2 * 4), (dim // 2, dim // 4 * 4),
             (dim // 4, dim // 8 * 4), (dim // 8, dim // 16 * 4)]
    params = {"convs": []}
    for i, (cin, cout) in enumerate(chans):
        kw, kb = jax.random.split(jax.random.fold_in(key, i))
        bound = 1.0 / math.sqrt(cin * 9)
        w = jax.random.uniform(kw, (3, 3, cin, cout), jnp.float32, -bound, bound)
        b = jax.random.uniform(kb, (cout,), jnp.float32, -bound, bound)
        params["convs"].append((w, b))
    c = dim // 16
    kw, kb = jax.random.split(jax.random.fold_in(key, 100))
    bound = 1.0 / math.sqrt(c)
    params["fixup_w"] = jax.random.uniform(kw, (c, c), jnp.float32, -bound, bound)
    params["fixup_b"] = jax.random.uniform(kb, (c,), jnp.float32, -bound, bound)
    return params


# ----------------------------------------------------------------------------
# Build the fused forward (one pallas_call for the whole module).
# ----------------------------------------------------------------------------
def build_upsampler(params, batch, h0, w0, original_shape):
    dim = int(params["convs"][0][0].shape[2])
    hout, wout = original_shape

    operands = []

    def add(arr):
        operands.append(jnp.asarray(np.ascontiguousarray(arr), jnp.float32))
        return len(operands) - 1

    # ---- per-stage static config + precomputed operands --------------------
    stage_cfg = []          # (H, W, Cin, Cout, Wg, tap_idxs, m_idx, b_idx)
    h, w, cin = h0, w0, dim
    for i, (wk, bk) in enumerate(params["convs"]):
        cout = int(wk.shape[3])
        # strip width: ~256 output lanes per conv matmul, must divide W
        wg = min(max(1, 256 // cout), w)
        while w % wg:
            wg -= 1
        if i == 0:
            taps = [add(_row_tap_matrix(h))]
        else:
            q = _interleave_tap_matrices(h // 2)
            taps = [add(q[0]), add(q[1])]
        m_idx = add(_conv_strip_matrix(np.asarray(wk), wg))
        b_idx = add(_conv_strip_bias(np.asarray(bk), wg))
        stage_cfg.append((h, w, cin, cout, wg, taps, m_idx, b_idx))
        h, w, cin = 2 * h, 2 * w, cout // 4

    cf = cin                      # final channel count (dim // 16)
    hin, win = h, w               # spatial size after the 4 shuffles

    # Row interp fused with the last PixelShuffle row interleave:
    #   Ry @ (P0 @ a0 + P1 @ a1) = (Ry @ P0) @ a0 + (Ry @ P1) @ a1,
    # with (Ry @ P_dy)[:, r] = Ry[:, 2r + dy].
    ry = _bilinear_matrix(hout, hin)                    # (Hout, Hin)
    ryp0_idx = add(ry[:, 0::2])                         # (Hout, Hin/2)
    ryp1_idx = add(ry[:, 1::2])
    # Column interp with the 1x1 fixup conv and the "*0.1 + residual" folded
    # in, zero-padded to a 128-multiple lane width for unmasked stores.
    rx = _bilinear_matrix(wout, win)                    # (Wout, Win)
    mix = np.eye(cf, dtype=np.float32) + 0.1 * np.asarray(params["fixup_w"], np.float32)
    rxc = np.kron(rx.T.astype(np.float32), mix)         # (Win*cf, Wout*cf)
    out_lanes = ((wout * cf + 127) // 128) * 128
    rxc_pad = np.zeros((win * cf, out_lanes), np.float32)
    rxc_pad[:, :wout * cf] = rxc
    rxc_idx = add(rxc_pad)
    brow = np.zeros((1, out_lanes), np.float32)
    brow[0, :wout * cf] = np.tile(0.1 * np.asarray(params["fixup_b"], np.float32), wout)
    brow_idx = add(brow)

    # ---- the fused kernel (one grid step = one batch element) --------------
    def kernel(*refs):
        x_ref = refs[0]
        o_ref = refs[-1]

        def op(idx):
            return refs[1 + idx]

        f32 = jnp.float32
        slabs = [x_ref[0]]                                   # (H, W*Cin) row form
        for (sh, sw, scin, scout, swg, taps, m_idx, b_idx) in stage_cfg:
            # Stacked 3-row-tap slab (rows y-1 / y / y+1, zero boundary rows),
            # built straight from the carried dy=0 / dy=1 planes of the
            # previous PixelShuffle (row interleave folded into the taps).
            r = jnp.dot(op(taps[0])[...], slabs[0], preferred_element_type=f32)
            for t_idx, sl in zip(taps[1:], slabs[1:]):
                r = r + jnp.dot(op(t_idx)[...], sl, preferred_element_type=f32)
            # one-pixel zero padding along W (lanes), shared by all 3 taps
            zpad = jnp.zeros((3 * sh, scin), f32)
            rp = jnp.concatenate([zpad, r, zpad], axis=1)    # (3H, (W+2)*Cin)

            mmat = op(m_idx)[...]
            bias = op(b_idx)[...]
            groups = sw // swg
            half = swg * scout // 2
            h0s, h1s = [], []
            for g in range(groups):
                lo = g * swg * scin
                hi = lo + (swg + 2) * scin
                bg = jnp.concatenate([rp[0:sh, lo:hi],
                                      rp[sh:2 * sh, lo:hi],
                                      rp[2 * sh:3 * sh, lo:hi]], axis=1)
                yg = jnp.dot(bg, mmat, preferred_element_type=f32) + bias
                yg = _gelu_exact(yg)
                h0s.append(yg[:, :half])     # dy = 0 plane of this strip
                h1s.append(yg[:, half:])     # dy = 1 plane
            a0 = h0s[0] if groups == 1 else jnp.concatenate(h0s, axis=1)
            a1 = h1s[0] if groups == 1 else jnp.concatenate(h1s, axis=1)
            slabs = [a0, a1]

        # Bilinear resize + fixup (1x1 conv * 0.1 + residual): three matmuls.
        # TODO(synk): nn.Dropout2d(0.2) is treated as eval-mode identity.
        t = (jnp.dot(op(ryp0_idx)[...], slabs[0], preferred_element_type=f32)
             + jnp.dot(op(ryp1_idx)[...], slabs[1], preferred_element_type=f32))
        out = (jnp.dot(t, op(rxc_idx)[...], preferred_element_type=f32)
               + op(brow_idx)[...])
        o_ref[0] = out

    in_specs = [pl.BlockSpec((1, h0, w0 * dim), lambda n: (n, 0, 0))]
    for oprnd in operands:
        in_specs.append(pl.BlockSpec(oprnd.shape, lambda n, nd=oprnd.ndim: (0,) * nd))
    out_specs = pl.BlockSpec((1, hout, out_lanes), lambda n: (n, 0, 0))

    fused = pl.pallas_call(
        kernel,
        out_shape=jax.ShapeDtypeStruct((batch, hout, out_lanes), jnp.float32),
        grid=(batch,),
        in_specs=in_specs,
        out_specs=out_specs,
        compiler_params=pltpu.CompilerParams(
            dimension_semantics=("parallel",)),
    )

    @jax.jit
    def forward(x_nchw):
        # NCHW -> row form (N, H, W*C)
        xr = jnp.transpose(x_nchw, (0, 2, 3, 1)).astype(jnp.float32)
        xr = xr.reshape(batch, h0, w0 * dim)
        out = fused(xr, *operands)                        # (N, Hout, out_lanes)
        out = out[:, :, :wout * cf].reshape(batch, hout, wout, cf)
        return jnp.transpose(out, (0, 3, 1, 2))           # back to NCHW

    return forward


if __name__ == "__main__":
    dim = 32
    n, h, w = 2, 6, 8                  # x: (N, dim, H, W); 4x PixelShuffle -> (96, 128)
    original_shape = (100, 120)

    key = jax.random.PRNGKey(0)
    params = init_params(key, dim)
    x = jax.random.normal(jax.random.fold_in(key, 999), (n, dim, h, w), jnp.float32)

    forward = build_upsampler(params, n, h, w, original_shape)
    out = jax.block_until_ready(forward(x))

    assert out.shape == (n, dim // 16, original_shape[0], original_shape[1]), out.shape
    assert bool(jnp.all(jnp.isfinite(out)))
    print("KERNEL_OK")
</pallas_src>

<mosaic_0001>
module attributes {stable_mosaic.version = 11 : i64} {
  func.func @kernel(%arg0: i32, %arg1: memref<1x6x256xf32, #tpu.memory_space<vmem>>, %arg2: memref<18x6xf32, #tpu.memory_space<vmem>>, %arg3: memref<576x256xf32, #tpu.memory_space<vmem>>, %arg4: memref<1x256xf32, #tpu.memory_space<vmem>>, %arg5: memref<36x6xf32, #tpu.memory_space<vmem>>, %arg6: memref<36x6xf32, #tpu.memory_space<vmem>>, %arg7: memref<480x256xf32, #tpu.memory_space<vmem>>, %arg8: memref<1x256xf32, #tpu.memory_space<vmem>>, %arg9: memref<72x12xf32, #tpu.memory_space<vmem>>, %arg10: memref<72x12xf32, #tpu.memory_space<vmem>>, %arg11: memref<432x256xf32, #tpu.memory_space<vmem>>, %arg12: memref<1x256xf32, #tpu.memory_space<vmem>>, %arg13: memref<144x24xf32, #tpu.memory_space<vmem>>, %arg14: memref<144x24xf32, #tpu.memory_space<vmem>>, %arg15: memref<408x256xf32, #tpu.memory_space<vmem>>, %arg16: memref<1x256xf32, #tpu.memory_space<vmem>>, %arg17: memref<100x48xf32, #tpu.memory_space<vmem>>, %arg18: memref<100x48xf32, #tpu.memory_space<vmem>>, %arg19: memref<256x256xf32, #tpu.memory_space<vmem>>, %arg20: memref<1x256xf32, #tpu.memory_space<vmem>>, %arg21: memref<1x100x256xf32, #tpu.memory_space<vmem>>) attributes {dimension_semantics = [#tpu.dimension_semantics<parallel>], iteration_bounds = array<i64: 2>, scalar_prefetch = 0 : i64, scratch_operands = 0 : i64, tpu.core_type = #tpu.core_type<tc>, window_params = [{transform_indices = @transform_0, window_bounds = array<i64: 1, 6, 256>}, {pipeline_mode = #tpu.pipeline_mode<synchronous>, transform_indices = @transform_1, window_bounds = array<i64: 18, 6>}, {pipeline_mode = #tpu.pipeline_mode<synchronous>, transform_indices = @transform_2, window_bounds = array<i64: 576, 256>}, {pipeline_mode = #tpu.pipeline_mode<synchronous>, transform_indices = @transform_3, window_bounds = array<i64: 1, 256>}, {pipeline_mode = #tpu.pipeline_mode<synchronous>, transform_indices = @transform_4, window_bounds = array<i64: 36, 6>}, {pipeline_mode = #tpu.pipeline_mode<synchronous>, transform_indices = @transform_5, window_bounds = array<i64: 36, 6>}, {pipeline_mode = #tpu.pipeline_mode<synchronous>, transform_indices = @transform_6, window_bounds = array<i64: 480, 256>}, {pipeline_mode = #tpu.pipeline_mode<synchronous>, transform_indices = @transform_7, window_bounds = array<i64: 1, 256>}, {pipeline_mode = #tpu.pipeline_mode<synchronous>, transform_indices = @transform_8, window_bounds = array<i64: 72, 12>}, {pipeline_mode = #tpu.pipeline_mode<synchronous>, transform_indices = @transform_9, window_bounds = array<i64: 72, 12>}, {pipeline_mode = #tpu.pipeline_mode<synchronous>, transform_indices = @transform_10, window_bounds = array<i64: 432, 256>}, {pipeline_mode = #tpu.pipeline_mode<synchronous>, transform_indices = @transform_11, window_bounds = array<i64: 1, 256>}, {pipeline_mode = #tpu.pipeline_mode<synchronous>, transform_indices = @transform_12, window_bounds = array<i64: 144, 24>}, {pipeline_mode = #tpu.pipeline_mode<synchronous>, transform_indices = @transform_13, window_bounds = array<i64: 144, 24>}, {pipeline_mode = #tpu.pipeline_mode<synchronous>, transform_indices = @transform_14, window_bounds = array<i64: 408, 256>}, {pipeline_mode = #tpu.pipeline_mode<synchronous>, transform_indices = @transform_15, window_bounds = array<i64: 1, 256>}, {pipeline_mode = #tpu.pipeline_mode<synchronous>, transform_indices = @transform_16, window_bounds = array<i64: 100, 48>}, {pipeline_mode = #tpu.pipeline_mode<synchronous>, transform_indices = @transform_17, window_bounds = array<i64: 100, 48>}, {pipeline_mode = #tpu.pipeline_mode<synchronous>, transform_indices = @transform_18, window_bounds = array<i64: 256, 256>}, {pipeline_mode = #tpu.pipeline_mode<synchronous>, transform_indices = @transform_19, window_bounds = array<i64: 1, 256>}, {transform_indices = @transform_20, window_bounds = array<i64: 1, 100, 256>}]} {
    %c0 = arith.constant 0 : index
    %c0_0 = arith.constant 0 : index
    %c0_1 = arith.constant 0 : index
    %0 = vector.load %arg1[%c0, %c0_0, %c0_1] : memref<1x6x256xf32, #tpu.memory_space<vmem>>, vector<1x6x256xf32>
    %1 = vector.shape_cast %0 : vector<1x6x256xf32> to vector<6x256xf32>
    %c0_2 = arith.constant 0 : index
    %c0_3 = arith.constant 0 : index
    %2 = vector.load %arg2[%c0_2, %c0_3] : memref<18x6xf32, #tpu.memory_space<vmem>>, vector<18x6xf32>
    %cst = arith.constant dense<0.000000e+00> : vector<18x256xf32>
    %3 = tpu.matmul %2, %1, %cst {dimension_numbers = #tpu.dot_dimension_numbers<[1], [0], [0], [1], [0, 0, 1, 1], [], []>} : vector<18x6xf32>, vector<6x256xf32>, vector<18x256xf32> -> vector<18x256xf32>
    %cst_4 = arith.constant 0.000000e+00 : f32
    %4 = vector.broadcast %cst_4 : f32 to vector<18x32xf32>
    %5 = tpu.concatenate %4, %3, %4 in 1 : vector<18x32xf32>, vector<18x256xf32>, vector<18x32xf32> -> vector<18x320xf32>
    %c0_5 = arith.constant 0 : index
    %c0_6 = arith.constant 0 : index
    %6 = vector.load %arg3[%c0_5, %c0_6] : memref<576x256xf32, #tpu.memory_space<vmem>>, vector<576x256xf32>
    %c0_7 = arith.constant 0 : index
    %c0_8 = arith.constant 0 : index
    %7 = vector.load %arg4[%c0_7, %c0_8] : memref<1x256xf32, #tpu.memory_space<vmem>>, vector<1x256xf32>
    %8 = vector.extract_strided_slice %5 {offsets = [0, 0], sizes = [6, 192], strides = [1, 1]} : vector<18x320xf32> to vector<6x192xf32>
    %9 = vector.extract_strided_slice %5 {offsets = [6, 0], sizes = [6, 192], strides = [1, 1]} : vector<18x320xf32> to vector<6x192xf32>
    %10 = vector.extract_strided_slice %5 {offsets = [12, 0], sizes = [6, 192], strides = [1, 1]} : vector<18x320xf32> to vector<6x192xf32>
    %11 = tpu.concatenate %8, %9, %10 in 1 : vector<6x192xf32>, vector<6x192xf32>, vector<6x192xf32> -> vector<6x576xf32>
    %cst_9 = arith.constant dense<0.000000e+00> : vector<6x256xf32>
    %12 = tpu.matmul %11, %6, %cst_9 {dimension_numbers = #tpu.dot_dimension_numbers<[1], [0], [0], [1], [0, 0, 1, 1], [], []>} : vector<6x576xf32>, vector<576x256xf32>, vector<6x256xf32> -> vector<6x256xf32>
    %13 = vector.broadcast %7 : vector<1x256xf32> to vector<6x256xf32>
    %14 = arith.addf %12, %13 : vector<6x256xf32>
    %cst_10 = arith.constant 0.707106769 : f32
    %15 = vector.broadcast %cst_10 : f32 to vector<6x256xf32>
    %16 = arith.mulf %14, %15 : vector<6x256xf32>
    %17 = math.absf %16 : vector<6x256xf32>
    %cst_11 = arith.constant 0.327591091 : f32
    %18 = vector.broadcast %cst_11 : f32 to vector<6x256xf32>
    %19 = arith.mulf %18, %17 : vector<6x256xf32>
    %cst_12 = arith.constant 1.000000e+00 : f32
    %20 = vector.broadcast %cst_12 : f32 to vector<6x256xf32>
    %21 = arith.addf %20, %19 : vector<6x256xf32>
    %cst_13 = arith.constant 1.000000e+00 : f32
    %22 = vector.broadcast %cst_13 : f32 to vector<6x256xf32>
    %23 = arith.divf %22, %21 : vector<6x256xf32>
    %cst_14 = arith.constant 1.06140542 : f32
    %24 = vector.broadcast %cst_14 : f32 to vector<6x256xf32>
    %25 = arith.mulf %24, %23 : vector<6x256xf32>
    %cst_15 = arith.constant 1.45315206 : f32
    %26 = vector.broadcast %cst_15 : f32 to vector<6x256xf32>
    %27 = arith.subf %25, %26 : vector<6x256xf32>
    %28 = arith.mulf %27, %23 : vector<6x256xf32>
    %cst_16 = arith.constant 1.42141378 : f32
    %29 = vector.broadcast %cst_16 : f32 to vector<6x256xf32>
    %30 = arith.addf %28, %29 : vector<6x256xf32>
    %31 = arith.mulf %30, %23 : vector<6x256xf32>
    %cst_17 = arith.constant 0.284496725 : f32
    %32 = vector.broadcast %cst_17 : f32 to vector<6x256xf32>
    %33 = arith.subf %31, %32 : vector<6x256xf32>
    %34 = arith.mulf %33, %23 : vector<6x256xf32>
    %cst_18 = arith.constant 0.254829586 : f32
    %35 = vector.broadcast %cst_18 : f32 to vector<6x256xf32>
    %36 = arith.addf %34, %35 : vector<6x256xf32>
    %37 = arith.mulf %36, %23 : vector<6x256xf32>
    %cst_19 = arith.constant 0.000000e+00 : f32
    %38 = vector.broadcast %cst_19 : f32 to vector<6x256xf32>
    %39 = arith.subf %38, %17 : vector<6x256xf32>
    %40 = arith.mulf %39, %17 : vector<6x256xf32>
    %41 = math.exp %40 : vector<6x256xf32>
    %42 = arith.mulf %37, %41 : vector<6x256xf32>
    %cst_20 = arith.constant 1.000000e+00 : f32
    %43 = vector.broadcast %cst_20 : f32 to vector<6x256xf32>
    %44 = arith.subf %43, %42 : vector<6x256xf32>
    %cst_21 = arith.constant 0.000000e+00 : f32
    %45 = vector.broadcast %cst_21 : f32 to vector<6x256xf32>
    %46 = arith.cmpf olt, %16, %45 : vector<6x256xf32>
    %cst_22 = arith.constant 0.000000e+00 : f32
    %47 = vector.broadcast %cst_22 : f32 to vector<6x256xf32>
    %48 = arith.subf %47, %44 : vector<6x256xf32>
    %49 = arith.select %46, %48, %44 : vector<6x256xi1>, vector<6x256xf32>
    %cst_23 = arith.constant 5.000000e-01 : f32
    %50 = vector.broadcast %cst_23 : f32 to vector<6x256xf32>
    %51 = arith.mulf %50, %14 : vector<6x256xf32>
    %cst_24 = arith.constant 1.000000e+00 : f32
    %52 = vector.broadcast %cst_24 : f32 to vector<6x256xf32>
    %53 = arith.addf %52, %49 : vector<6x256xf32>
    %54 = arith.mulf %51, %53 : vector<6x256xf32>
    %55 = vector.extract_strided_slice %54 {offsets = [0, 0], sizes = [6, 128], strides = [1, 1]} : vector<6x256xf32> to vector<6x128xf32>
    %56 = vector.extract_strided_slice %54 {offsets = [0, 128], sizes = [6, 128], strides = [1, 1]} : vector<6x256xf32> to vector<6x128xf32>
    %57 = vector.extract_strided_slice %5 {offsets = [0, 128], sizes = [6, 192], strides = [1, 1]} : vector<18x320xf32> to vector<6x192xf32>
    %58 = vector.extract_strided_slice %5 {offsets = [6, 128], sizes = [6, 192], strides = [1, 1]} : vector<18x320xf32> to vector<6x192xf32>
    %59 = vector.extract_strided_slice %5 {offsets = [12, 128], sizes = [6, 192], strides = [1, 1]} : vector<18x320xf32> to vector<6x192xf32>
    %60 = tpu.concatenate %57, %58, %59 in 1 : vector<6x192xf32>, vector<6x192xf32>, vector<6x192xf32> -> vector<6x576xf32>
    %cst_25 = arith.constant dense<0.000000e+00> : vector<6x256xf32>
    %61 = tpu.matmul %60, %6, %cst_25 {dimension_numbers = #tpu.dot_dimension_numbers<[1], [0], [0], [1], [0, 0, 1, 1], [], []>} : vector<6x576xf32>, vector<576x256xf32>, vector<6x256xf32> -> vector<6x256xf32>
    %62 = vector.broadcast %7 : vector<1x256xf32> to vector<6x256xf32>
    %63 = arith.addf %61, %62 : vector<6x256xf32>
    %cst_26 = arith.constant 0.707106769 : f32
    %64 = vector.broadcast %cst_26 : f32 to vector<6x256xf32>
    %65 = arith.mulf %63, %64 : vector<6x256xf32>
    %66 = math.absf %65 : vector<6x256xf32>
    %cst_27 = arith.constant 0.327591091 : f32
    %67 = vector.broadcast %cst_27 : f32 to vector<6x256xf32>
    %68 = arith.mulf %67, %66 : vector<6x256xf32>
    %cst_28 = arith.constant 1.000000e+00 : f32
    %69 = vector.broadcast %cst_28 : f32 to vector<6x256xf32>
    %70 = arith.addf %69, %68 : vector<6x256xf32>
    %cst_29 = arith.constant 1.000000e+00 : f32
    %71 = vector.broadcast %cst_29 : f32 to vector<6x256xf32>
    %72 = arith.divf %71, %70 : vector<6x256xf32>
    %cst_30 = arith.constant 1.06140542 : f32
    %73 = vector.broadcast %cst_30 : f32 to vector<6x256xf32>
    %74 = arith.mulf %73, %72 : vector<6x256xf32>
    %cst_31 = arith.constant 1.45315206 : f32
    %75 = vector.broadcast %cst_31 : f32 to vector<6x256xf32>
    %76 = arith.subf %74, %75 : vector<6x256xf32>
    %77 = arith.mulf %76, %72 : vector<6x256xf32>
    %cst_32 = arith.constant 1.42141378 : f32
    %78 = vector.broadcast %cst_32 : f32 to vector<6x256xf32>
    %79 = arith.addf %77, %78 : vector<6x256xf32>
    %80 = arith.mulf %79, %72 : vector<6x256xf32>
    %cst_33 = arith.constant 0.284496725 : f32
    %81 = vector.broadcast %cst_33 : f32 to vector<6x256xf32>
    %82 = arith.subf %80, %81 : vector<6x256xf32>
    %83 = arith.mulf %82, %72 : vector<6x256xf32>
    %cst_34 = arith.constant 0.254829586 : f32
    %84 = vector.broadcast %cst_34 : f32 to vector<6x256xf32>
    %85 = arith.addf %83, %84 : vector<6x256xf32>
    %86 = arith.mulf %85, %72 : vector<6x256xf32>
    %cst_35 = arith.constant 0.000000e+00 : f32
    %87 = vector.broadcast %cst_35 : f32 to vector<6x256xf32>
    %88 = arith.subf %87, %66 : vector<6x256xf32>
    %89 = arith.mulf %88, %66 : vector<6x256xf32>
    %90 = math.exp %89 : vector<6x256xf32>
    %91 = arith.mulf %86, %90 : vector<6x256xf32>
    %cst_36 = arith.constant 1.000000e+00 : f32
    %92 = vector.broadcast %cst_36 : f32 to vector<6x256xf32>
    %93 = arith.subf %92, %91 : vector<6x256xf32>
    %cst_37 = arith.constant 0.000000e+00 : f32
    %94 = vector.broadcast %cst_37 : f32 to vector<6x256xf32>
    %95 = arith.cmpf olt, %65, %94 : vector<6x256xf32>
    %cst_38 = arith.constant 0.000000e+00 : f32
    %96 = vector.broadcast %cst_38 : f32 to vector<6x256xf32>
    %97 = arith.subf %96, %93 : vector<6x256xf32>
    %98 = arith.select %95, %97, %93 : vector<6x256xi1>, vector<6x256xf32>
    %cst_39 = arith.constant 5.000000e-01 : f32
    %99 = vector.broadcast %cst_39 : f32 to vector<6x256xf32>
    %100 = arith.mulf %99, %63 : vector<6x256xf32>
    %cst_40 = arith.constant 1.000000e+00 : f32
    %101 = vector.broadcast %cst_40 : f32 to vector<6x256xf32>
    %102 = arith.addf %101, %98 : vector<6x256xf32>
    %103 = arith.mulf %100, %102 : vector<6x256xf32>
    %104 = vector.extract_strided_slice %103 {offsets = [0, 0], sizes = [6, 128], strides = [1, 1]} : vector<6x256xf32> to vector<6x128xf32>
    %105 = vector.extract_strided_slice %103 {offsets = [0, 128], sizes = [6, 128], strides = [1, 1]} : vector<6x256xf32> to vector<6x128xf32>
    %106 = tpu.concatenate %55, %104 in 1 : vector<6x128xf32>, vector<6x128xf32> -> vector<6x256xf32>
    %107 = tpu.concatenate %56, %105 in 1 : vector<6x128xf32>, vector<6x128xf32> -> vector<6x256xf32>
    %c0_41 = arith.constant 0 : index
    %c0_42 = arith.constant 0 : index
    %108 = vector.load %arg5[%c0_41, %c0_42] : memref<36x6xf32, #tpu.memory_space<vmem>>, vector<36x6xf32>
    %cst_43 = arith.constant dense<0.000000e+00> : vector<36x256xf32>
    %109 = tpu.matmul %108, %106, %cst_43 {dimension_numbers = #tpu.dot_dimension_numbers<[1], [0], [0], [1], [0, 0, 1, 1], [], []>} : vector<36x6xf32>, vector<6x256xf32>, vector<36x256xf32> -> vector<36x256xf32>
    %c0_44 = arith.constant 0 : index
    %c0_45 = arith.constant 0 : index
    %110 = vector.load %arg6[%c0_44, %c0_45] : memref<36x6xf32, #tpu.memory_space<vmem>>, vector<36x6xf32>
    %cst_46 = arith.constant dense<0.000000e+00> : vector<36x256xf32>
    %111 = tpu.matmul %110, %107, %cst_46 {dimension_numbers = #tpu.dot_dimension_numbers<[1], [0], [0], [1], [0, 0, 1, 1], [], []>} : vector<36x6xf32>, vector<6x256xf32>, vector<36x256xf32> -> vector<36x256xf32>
    %112 = arith.addf %109, %111 : vector<36x256xf32>
    %cst_47 = arith.constant 0.000000e+00 : f32
    %113 = vector.broadcast %cst_47 : f32 to vector<36x16xf32>
    %114 = tpu.concatenate %113, %112, %113 in 1 : vector<36x16xf32>, vector<36x256xf32>, vector<36x16xf32> -> vector<36x288xf32>
    %c0_48 = arith.constant 0 : index
    %c0_49 = arith.constant 0 : index
    %115 = vector.load %arg7[%c0_48, %c0_49] : memref<480x256xf32, #tpu.memory_space<vmem>>, vector<480x256xf32>
    %c0_50 = arith.constant 0 : index
    %c0_51 = arith.constant 0 : index
    %116 = vector.load %arg8[%c0_50, %c0_51] : memref<1x256xf32, #tpu.memory_space<vmem>>, vector<1x256xf32>
    %117 = vector.extract_strided_slice %114 {offsets = [0, 0], sizes = [12, 160], strides = [1, 1]} : vector<36x288xf32> to vector<12x160xf32>
    %118 = vector.extract_strided_slice %114 {offsets = [12, 0], sizes = [12, 160], strides = [1, 1]} : vector<36x288xf32> to vector<12x160xf32>
    %119 = vector.extract_strided_slice %114 {offsets = [24, 0], sizes = [12, 160], strides = [1, 1]} : vector<36x288xf32> to vector<12x160xf32>
    %120 = tpu.concatenate %117, %118, %119 in 1 : vector<12x160xf32>, vector<12x160xf32>, vector<12x160xf32> -> vector<12x480xf32>
    %cst_52 = arith.constant dense<0.000000e+00> : vector<12x256xf32>
    %121 = tpu.matmul %120, %115, %cst_52 {dimension_numbers = #tpu.dot_dimension_numbers<[1], [0], [0], [1], [0, 0, 1, 1], [], []>} : vector<12x480xf32>, vector<480x256xf32>, vector<12x256xf32> -> vector<12x256xf32>
    %122 = vector.broadcast %116 : vector<1x256xf32> to vector<12x256xf32>
    %123 = arith.addf %121, %122 : vector<12x256xf32>
    %cst_53 = arith.constant 0.707106769 : f32
    %124 = vector.broadcast %cst_53 : f32 to vector<12x256xf32>
    %125 = arith.mulf %123, %124 : vector<12x256xf32>
    %126 = math.absf %125 : vector<12x256xf32>
    %cst_54 = arith.constant 0.327591091 : f32
    %127 = vector.broadcast %cst_54 : f32 to vector<12x256xf32>
    %128 = arith.mulf %127, %126 : vector<12x256xf32>
    %cst_55 = arith.constant 1.000000e+00 : f32
    %129 = vector.broadcast %cst_55 : f32 to vector<12x256xf32>
    %130 = arith.addf %129, %128 : vector<12x256xf32>
    %cst_56 = arith.constant 1.000000e+00 : f32
    %131 = vector.broadcast %cst_56 : f32 to vector<12x256xf32>
    %132 = arith.divf %131, %130 : vector<12x256xf32>
    %cst_57 = arith.constant 1.06140542 : f32
    %133 = vector.broadcast %cst_57 : f32 to vector<12x256xf32>
    %134 = arith.mulf %133, %132 : vector<12x256xf32>
    %cst_58 = arith.constant 1.45315206 : f32
    %135 = vector.broadcast %cst_58 : f32 to vector<12x256xf32>
    %136 = arith.subf %134, %135 : vector<12x256xf32>
    %137 = arith.mulf %136, %132 : vector<12x256xf32>
    %cst_59 = arith.constant 1.42141378 : f32
    %138 = vector.broadcast %cst_59 : f32 to vector<12x256xf32>
    %139 = arith.addf %137, %138 : vector<12x256xf32>
    %140 = arith.mulf %139, %132 : vector<12x256xf32>
    %cst_60 = arith.constant 0.284496725 : f32
    %141 = vector.broadcast %cst_60 : f32 to vector<12x256xf32>
    %142 = arith.subf %140, %141 : vector<12x256xf32>
    %143 = arith.mulf %142, %132 : vector<12x256xf32>
    %cst_61 = arith.constant 0.254829586 : f32
    %144 = vector.broadcast %cst_61 : f32 to vector<12x256xf32>
    %145 = arith.addf %143, %144 : vector<12x256xf32>
    %146 = arith.mulf %145, %132 : vector<12x256xf32>
    %cst_62 = arith.constant 0.000000e+00 : f32
    %147 = vector.broadcast %cst_62 : f32 to vector<12x256xf32>
    %148 = arith.subf %147, %126 : vector<12x256xf32>
    %149 = arith.mulf %148, %126 : vector<12x256xf32>
    %150 = math.exp %149 : vector<12x256xf32>
    %151 = arith.mulf %146, %150 : vector<12x256xf32>
    %cst_63 = arith.constant 1.000000e+00 : f32
    %152 = vector.broadcast %cst_63 : f32 to vector<12x256xf32>
    %153 = arith.subf %152, %151 : vector<12x256xf32>
    %cst_64 = arith.constant 0.000000e+00 : f32
    %154 = vector.broadcast %cst_64 : f32 to vector<12x256xf32>
    %155 = arith.cmpf olt, %125, %154 : vector<12x256xf32>
    %cst_65 = arith.constant 0.000000e+00 : f32
    %156 = vector.broadcast %cst_65 : f32 to vector<12x256xf32>
    %157 = arith.subf %156, %153 : vector<12x256xf32>
    %158 = arith.select %155, %157, %153 : vector<12x256xi1>, vector<12x256xf32>
    %cst_66 = arith.constant 5.000000e-01 : f32
    %159 = vector.broadcast %cst_66 : f32 to vector<12x256xf32>
    %160 = arith.mulf %159, %123 : vector<12x256xf32>
    %cst_67 = arith.constant 1.000000e+00 : f32
    %161 = vector.broadcast %cst_67 : f32 to vector<12x256xf32>
    %162 = arith.addf %161, %158 : vector<12x256xf32>
    %163 = arith.mulf %160, %162 : vector<12x256xf32>
    %164 = vector.extract_strided_slice %163 {offsets = [0, 0], sizes = [12, 128], strides = [1, 1]} : vector<12x256xf32> to vector<12x128xf32>
    %165 = vector.extract_strided_slice %163 {offsets = [0, 128], sizes = [12, 128], strides = [1, 1]} : vector<12x256xf32> to vector<12x128xf32>
    %166 = vector.extract_strided_slice %114 {offsets = [0, 128], sizes = [12, 160], strides = [1, 1]} : vector<36x288xf32> to vector<12x160xf32>
    %167 = vector.extract_strided_slice %114 {offsets = [12, 128], sizes = [12, 160], strides = [1, 1]} : vector<36x288xf32> to vector<12x160xf32>
    %168 = vector.extract_strided_slice %114 {offsets = [24, 128], sizes = [12, 160], strides = [1, 1]} : vector<36x288xf32> to vector<12x160xf32>
    %169 = tpu.concatenate %166, %167, %168 in 1 : vector<12x160xf32>, vector<12x160xf32>, vector<12x160xf32> -> vector<12x480xf32>
    %cst_68 = arith.constant dense<0.000000e+00> : vector<12x256xf32>
    %170 = tpu.matmul %169, %115, %cst_68 {dimension_numbers = #tpu.dot_dimension_numbers<[1], [0], [0], [1], [0, 0, 1, 1], [], []>} : vector<12x480xf32>, vector<480x256xf32>, vector<12x256xf32> -> vector<12x256xf32>
    %171 = vector.broadcast %116 : vector<1x256xf32> to vector<12x256xf32>
    %172 = arith.addf %170, %171 : vector<12x256xf32>
    %cst_69 = arith.constant 0.707106769 : f32
    %173 = vector.broadcast %cst_69 : f32 to vector<12x256xf32>
    %174 = arith.mulf %172, %173 : vector<12x256xf32>
    %175 = math.absf %174 : vector<12x256xf32>
    %cst_70 = arith.constant 0.327591091 : f32
    %176 = vector.broadcast %cst_70 : f32 to vector<12x256xf32>
    %177 = arith.mulf %176, %175 : vector<12x256xf32>
    %cst_71 = arith.constant 1.000000e+00 : f32
    %178 = vector.broadcast %cst_71 : f32 to vector<12x256xf32>
    %179 = arith.addf %178, %177 : vector<12x256xf32>
    %cst_72 = arith.constant 1.000000e+00 : f32
    %180 = vector.broadcast %cst_72 : f32 to vector<12x256xf32>
    %181 = arith.divf %180, %179 : vector<12x256xf32>
    %cst_73 = arith.constant 1.06140542 : f32
    %182 = vector.broadcast %cst_73 : f32 to vector<12x256xf32>
    %183 = arith.mulf %182, %181 : vector<12x256xf32>
    %cst_74 = arith.constant 1.45315206 : f32
    %184 = vector.broadcast %cst_74 : f32 to vector<12x256xf32>
    %185 = arith.subf %183, %184 : vector<12x256xf32>
    %186 = arith.mulf %185, %181 : vector<12x256xf32>
    %cst_75 = arith.constant 1.42141378 : f32
    %187 = vector.broadcast %cst_75 : f32 to vector<12x256xf32>
    %188 = arith.addf %186, %187 : vector<12x256xf32>
    %189 = arith.mulf %188, %181 : vector<12x256xf32>
    %cst_76 = arith.constant 0.284496725 : f32
    %190 = vector.broadcast %cst_76 : f32 to vector<12x256xf32>
    %191 = arith.subf %189, %190 : vector<12x256xf32>
    %192 = arith.mulf %191, %181 : vector<12x256xf32>
    %cst_77 = arith.constant 0.254829586 : f32
    %193 = vector.broadcast %cst_77 : f32 to vector<12x256xf32>
    %194 = arith.addf %192, %193 : vector<12x256xf32>
    %195 = arith.mulf %194, %181 : vector<12x256xf32>
    %cst_78 = arith.constant 0.000000e+00 : f32
    %196 = vector.broadcast %cst_78 : f32 to vector<12x256xf32>
    %197 = arith.subf %196, %175 : vector<12x256xf32>
    %198 = arith.mulf %197, %175 : vector<12x256xf32>
    %199 = math.exp %198 : vector<12x256xf32>
    %200 = arith.mulf %195, %199 : vector<12x256xf32>
    %cst_79 = arith.constant 1.000000e+00 : f32
    %201 = vector.broadcast %cst_79 : f32 to vector<12x256xf32>
    %202 = arith.subf %201, %200 : vector<12x256xf32>
    %cst_80 = arith.constant 0.000000e+00 : f32
    %203 = vector.broadcast %cst_80 : f32 to vector<12x256xf32>
    %204 = arith.cmpf olt, %174, %203 : vector<12x256xf32>
    %cst_81 = arith.constant 0.000000e+00 : f32
    %205 = vector.broadcast %cst_81 : f32 to vector<12x256xf32>
    %206 = arith.subf %205, %202 : vector<12x256xf32>
    %207 = arith.select %204, %206, %202 : vector<12x256xi1>, vector<12x256xf32>
    %cst_82 = arith.constant 5.000000e-01 : f32
    %208 = vector.broadcast %cst_82 : f32 to vector<12x256xf32>
    %209 = arith.mulf %208, %172 : vector<12x256xf32>
    %cst_83 = arith.constant 1.000000e+00 : f32
    %210 = vector.broadcast %cst_83 : f32 to vector<12x256xf32>
    %211 = arith.addf %210, %207 : vector<12x256xf32>
    %212 = arith.mulf %209, %211 : vector<12x256xf32>
    %213 = vector.extract_strided_slice %212 {offsets = [0, 0], sizes = [12, 128], strides = [1, 1]} : vector<12x256xf32> to vector<12x128xf32>
    %214 = vector.extract_strided_slice %212 {offsets = [0, 128], sizes = [12, 128], strides = [1, 1]} : vector<12x256xf32> to vector<12x128xf32>
    %215 = tpu.concatenate %164, %213 in 1 : vector<12x128xf32>, vector<12x128xf32> -> vector<12x256xf32>
    %216 = tpu.concatenate %165, %214 in 1 : vector<12x128xf32>, vector<12x128xf32> -> vector<12x256xf32>
    %c0_84 = arith.constant 0 : index
    %c0_85 = arith.constant 0 : index
    %217 = vector.load %arg9[%c0_84, %c0_85] : memref<72x12xf32, #tpu.memory_space<vmem>>, vector<72x12xf32>
    %cst_86 = arith.constant dense<0.000000e+00> : vector<72x256xf32>
    %218 = tpu.matmul %217, %215, %cst_86 {dimension_numbers = #tpu.dot_dimension_numbers<[1], [0], [0], [1], [0, 0, 1, 1], [], []>} : vector<72x12xf32>, vector<12x256xf32>, vector<72x256xf32> -> vector<72x256xf32>
    %c0_87 = arith.constant 0 : index
    %c0_88 = arith.constant 0 : index
    %219 = vector.load %arg10[%c0_87, %c0_88] : memref<72x12xf32, #tpu.memory_space<vmem>>, vector<72x12xf32>
    %cst_89 = arith.constant dense<0.000000e+00> : vector<72x256xf32>
    %220 = tpu.matmul %219, %216, %cst_89 {dimension_numbers = #tpu.dot_dimension_numbers<[1], [0], [0], [1], [0, 0, 1, 1], [], []>} : vector<72x12xf32>, vector<12x256xf32>, vector<72x256xf32> -> vector<72x256xf32>
    %221 = arith.addf %218, %220 : vector<72x256xf32>
    %cst_90 = arith.constant 0.000000e+00 : f32
    %222 = vector.broadcast %cst_90 : f32 to vector<72x8xf32>
    %223 = tpu.concatenate %222, %221, %222 in 1 : vector<72x8xf32>, vector<72x256xf32>, vector<72x8xf32> -> vector<72x272xf32>
    %c0_91 = arith.constant 0 : index
    %c0_92 = arith.constant 0 : index
    %224 = vector.load %arg11[%c0_91, %c0_92] : memref<432x256xf32, #tpu.memory_space<vmem>>, vector<432x256xf32>
    %c0_93 = arith.constant 0 : index
    %c0_94 = arith.constant 0 : index
    %225 = vector.load %arg12[%c0_93, %c0_94] : memref<1x256xf32, #tpu.memory_space<vmem>>, vector<1x256xf32>
    %226 = vector.extract_strided_slice %223 {offsets = [0, 0], sizes = [24, 144], strides = [1, 1]} : vector<72x272xf32> to vector<24x144xf32>
    %227 = vector.extract_strided_slice %223 {offsets = [24, 0], sizes = [24, 144], strides = [1, 1]} : vector<72x272xf32> to vector<24x144xf32>
    %228 = vector.extract_strided_slice %223 {offsets = [48, 0], sizes = [24, 144], strides = [1, 1]} : vector<72x272xf32> to vector<24x144xf32>
    %229 = tpu.concatenate %226, %227, %228 in 1 : vector<24x144xf32>, vector<24x144xf32>, vector<24x144xf32> -> vector<24x432xf32>
    %cst_95 = arith.constant dense<0.000000e+00> : vector<24x256xf32>
    %230 = tpu.matmul %229, %224, %cst_95 {dimension_numbers = #tpu.dot_dimension_numbers<[1], [0], [0], [1], [0, 0, 1, 1], [], []>} : vector<24x432xf32>, vector<432x256xf32>, vector<24x256xf32> -> vector<24x256xf32>
    %231 = vector.broadcast %225 : vector<1x256xf32> to vector<24x256xf32>
    %232 = arith.addf %230, %231 : vector<24x256xf32>
    %cst_96 = arith.constant 0.707106769 : f32
    %233 = vector.broadcast %cst_96 : f32 to vector<24x256xf32>
    %234 = arith.mulf %232, %233 : vector<24x256xf32>
    %235 = math.absf %234 : vector<24x256xf32>
    %cst_97 = arith.constant 0.327591091 : f32
    %236 = vector.broadcast %cst_97 : f32 to vector<24x256xf32>
    %237 = arith.mulf %236, %235 : vector<24x256xf32>
    %cst_98 = arith.constant 1.000000e+00 : f32
    %238 = vector.broadcast %cst_98 : f32 to vector<24x256xf32>
    %239 = arith.addf %238, %237 : vector<24x256xf32>
    %cst_99 = arith.constant 1.000000e+00 : f32
    %240 = vector.broadcast %cst_99 : f32 to vector<24x256xf32>
    %241 = arith.divf %240, %239 : vector<24x256xf32>
    %cst_100 = arith.constant 1.06140542 : f32
    %242 = vector.broadcast %cst_100 : f32 to vector<24x256xf32>
    %243 = arith.mulf %242, %241 : vector<24x256xf32>
    %cst_101 = arith.constant 1.45315206 : f32
    %244 = vector.broadcast %cst_101 : f32 to vector<24x256xf32>
    %245 = arith.subf %243, %244 : vector<24x256xf32>
    %246 = arith.mulf %245, %241 : vector<24x256xf32>
    %cst_102 = arith.constant 1.42141378 : f32
    %247 = vector.broadcast %cst_102 : f32 to vector<24x256xf32>
    %248 = arith.addf %246, %247 : vector<24x256xf32>
    %249 = arith.mulf %248, %241 : vector<24x256xf32>
    %cst_103 = arith.constant 0.284496725 : f32
    %250 = vector.broadcast %cst_103 : f32 to vector<24x256xf32>
    %251 = arith.subf %249, %250 : vector<24x256xf32>
    %252 = arith.mulf %251, %241 : vector<24x256xf32>
    %cst_104 = arith.constant 0.254829586 : f32
    %253 = vector.broadcast %cst_104 : f32 to vector<24x256xf32>
    %254 = arith.addf %252, %253 : vector<24x256xf32>
    %255 = arith.mulf %254, %241 : vector<24x256xf32>
    %cst_105 = arith.constant 0.000000e+00 : f32
    %256 = vector.broadcast %cst_105 : f32 to vector<24x256xf32>
    %257 = arith.subf %256, %235 : vector<24x256xf32>
    %258 = arith.mulf %257, %235 : vector<24x256xf32>
    %259 = math.exp %258 : vector<24x256xf32>
    %260 = arith.mulf %255, %259 : vector<24x256xf32>
    %cst_106 = arith.constant 1.000000e+00 : f32
    %261 = vector.broadcast %cst_106 : f32 to vector<24x256xf32>
    %262 = arith.subf %261, %260 : vector<24x256xf32>
    %cst_107 = arith.constant 0.000000e+00 : f32
    %263 = vector.broadcast %cst_107 : f32 to vector<24x256xf32>
    %264 = arith.cmpf olt, %234, %263 : vector<24x256xf32>
    %cst_108 = arith.constant 0.000000e+00 : f32
    %265 = vector.broadcast %cst_108 : f32 to vector<24x256xf32>
    %266 = arith.subf %265, %262 : vector<24x256xf32>
    %267 = arith.select %264, %266, %262 : vector<24x256xi1>, vector<24x256xf32>
    %cst_109 = arith.constant 5.000000e-01 : f32
    %268 = vector.broadcast %cst_109 : f32 to vector<24x256xf32>
    %269 = arith.mulf %268, %232 : vector<24x256xf32>
    %cst_110 = arith.constant 1.000000e+00 : f32
    %270 = vector.broadcast %cst_110 : f32 to vector<24x256xf32>
    %271 = arith.addf %270, %267 : vector<24x256xf32>
    %272 = arith.mulf %269, %271 : vector<24x256xf32>
    %273 = vector.extract_strided_slice %272 {offsets = [0, 0], sizes = [24, 128], strides = [1, 1]} : vector<24x256xf32> to vector<24x128xf32>
    %274 = vector.extract_strided_slice %272 {offsets = [0, 128], sizes = [24, 128], strides = [1, 1]} : vector<24x256xf32> to vector<24x128xf32>
    %275 = vector.extract_strided_slice %223 {offsets = [0, 128], sizes = [24, 144], strides = [1, 1]} : vector<72x272xf32> to vector<24x144xf32>
    %276 = vector.extract_strided_slice %223 {offsets = [24, 128], sizes = [24, 144], strides = [1, 1]} : vector<72x272xf32> to vector<24x144xf32>
    %277 = vector.extract_strided_slice %223 {offsets = [48, 128], sizes = [24, 144], strides = [1, 1]} : vector<72x272xf32> to vector<24x144xf32>
    %278 = tpu.concatenate %275, %276, %277 in 1 : vector<24x144xf32>, vector<24x144xf32>, vector<24x144xf32> -> vector<24x432xf32>
    %cst_111 = arith.constant dense<0.000000e+00> : vector<24x256xf32>
    %279 = tpu.matmul %278, %224, %cst_111 {dimension_numbers = #tpu.dot_dimension_numbers<[1], [0], [0], [1], [0, 0, 1, 1], [], []>} : vector<24x432xf32>, vector<432x256xf32>, vector<24x256xf32> -> vector<24x256xf32>
    %280 = vector.broadcast %225 : vector<1x256xf32> to vector<24x256xf32>
    %281 = arith.addf %279, %280 : vector<24x256xf32>
    %cst_112 = arith.constant 0.707106769 : f32
    %282 = vector.broadcast %cst_112 : f32 to vector<24x256xf32>
    %283 = arith.mulf %281, %282 : vector<24x256xf32>
    %284 = math.absf %283 : vector<24x256xf32>
    %cst_113 = arith.constant 0.327591091 : f32
    %285 = vector.broadcast %cst_113 : f32 to vector<24x256xf32>
    %286 = arith.mulf %285, %284 : vector<24x256xf32>
    %cst_114 = arith.constant 1.000000e+00 : f32
    %287 = vector.broadcast %cst_114 : f32 to vector<24x256xf32>
    %288 = arith.addf %287, %286 : vector<24x256xf32>
    %cst_115 = arith.constant 1.000000e+00 : f32
    %289 = vector.broadcast %cst_115 : f32 to vector<24x256xf32>
    %290 = arith.divf %289, %288 : vector<24x256xf32>
    %cst_116 = arith.constant 1.06140542 : f32
    %291 = vector.broadcast %cst_116 : f32 to vector<24x256xf32>
    %292 = arith.mulf %291, %290 : vector<24x256xf32>
    %cst_117 = arith.constant 1.45315206 : f32
    %293 = vector.broadcast %cst_117 : f32 to vector<24x256xf32>
    %294 = arith.subf %292, %293 : vector<24x256xf32>
    %295 = arith.mulf %294, %290 : vector<24x256xf32>
    %cst_118 = arith.constant 1.42141378 : f32
    %296 = vector.broadcast %cst_118 : f32 to vector<24x256xf32>
    %297 = arith.addf %295, %296 : vector<24x256xf32>
    %298 = arith.mulf %297, %290 : vector<24x256xf32>
    %cst_119 = arith.constant 0.284496725 : f32
    %299 = vector.broadcast %cst_119 : f32 to vector<24x256xf32>
    %300 = arith.subf %298, %299 : vector<24x256xf32>
    %301 = arith.mulf %300, %290 : vector<24x256xf32>
    %cst_120 = arith.constant 0.254829586 : f32
    %302 = vector.broadcast %cst_120 : f32 to vector<24x256xf32>
    %303 = arith.addf %301, %302 : vector<24x256xf32>
    %304 = arith.mulf %303, %290 : vector<24x256xf32>
    %cst_121 = arith.constant 0.000000e+00 : f32
    %305 = vector.broadcast %cst_121 : f32 to vector<24x256xf32>
    %306 = arith.subf %305, %284 : vector<24x256xf32>
    %307 = arith.mulf %306, %284 : vector<24x256xf32>
    %308 = math.exp %307 : vector<24x256xf32>
    %309 = arith.mulf %304, %308 : vector<24x256xf32>
    %cst_122 = arith.constant 1.000000e+00 : f32
    %310 = vector.broadcast %cst_122 : f32 to vector<24x256xf32>
    %311 = arith.subf %310, %309 : vector<24x256xf32>
    %cst_123 = arith.constant 0.000000e+00 : f32
    %312 = vector.broadcast %cst_123 : f32 to vector<24x256xf32>
    %313 = arith.cmpf olt, %283, %312 : vector<24x256xf32>
    %cst_124 = arith.constant 0.000000e+00 : f32
    %314 = vector.broadcast %cst_124 : f32 to vector<24x256xf32>
    %315 = arith.subf %314, %311 : vector<24x256xf32>
    %316 = arith.select %313, %315, %311 : vector<24x256xi1>, vector<24x256xf32>
    %cst_125 = arith.constant 5.000000e-01 : f32
    %317 = vector.broadcast %cst_125 : f32 to vector<24x256xf32>
    %318 = arith.mulf %317, %281 : vector<24x256xf32>
    %cst_126 = arith.constant 1.000000e+00 : f32
    %319 = vector.broadcast %cst_126 : f32 to vector<24x256xf32>
    %320 = arith.addf %319, %316 : vector<24x256xf32>
    %321 = arith.mulf %318, %320 : vector<24x256xf32>
    %322 = vector.extract_strided_slice %321 {offsets = [0, 0], sizes = [24, 128], strides = [1, 1]} : vector<24x256xf32> to vector<24x128xf32>
    %323 = vector.extract_strided_slice %321 {offsets = [0, 128], sizes = [24, 128], strides = [1, 1]} : vector<24x256xf32> to vector<24x128xf32>
    %324 = tpu.concatenate %273, %322 in 1 : vector<24x128xf32>, vector<24x128xf32> -> vector<24x256xf32>
    %325 = tpu.concatenate %274, %323 in 1 : vector<24x128xf32>, vector<24x128xf32> -> vector<24x256xf32>
    %c0_127 = arith.constant 0 : index
    %c0_128 = arith.constant 0 : index
    %326 = vector.load %arg13[%c0_127, %c0_128] : memref<144x24xf32, #tpu.memory_space<vmem>>, vector<144x24xf32>
    %cst_129 = arith.constant dense<0.000000e+00> : vector<144x256xf32>
    %327 = tpu.matmul %326, %324, %cst_129 {dimension_numbers = #tpu.dot_dimension_numbers<[1], [0], [0], [1], [0, 0, 1, 1], [], []>} : vector<144x24xf32>, vector<24x256xf32>, vector<144x256xf32> -> vector<144x256xf32>
    %c0_130 = arith.constant 0 : index
    %c0_131 = arith.constant 0 : index
    %328 = vector.load %arg14[%c0_130, %c0_131] : memref<144x24xf32, #tpu.memory_space<vmem>>, vector<144x24xf32>
    %cst_132 = arith.constant dense<0.000000e+00> : vector<144x256xf32>
    %329 = tpu.matmul %328, %325, %cst_132 {dimension_numbers = #tpu.dot_dimension_numbers<[1], [0], [0], [1], [0, 0, 1, 1], [], []>} : vector<144x24xf32>, vector<24x256xf32>, vector<144x256xf32> -> vector<144x256xf32>
    %330 = arith.addf %327, %329 : vector<144x256xf32>
    %cst_133 = arith.constant 0.000000e+00 : f32
    %331 = vector.broadcast %cst_133 : f32 to vector<144x4xf32>
    %332 = tpu.concatenate %331, %330, %331 in 1 : vector<144x4xf32>, vector<144x256xf32>, vector<144x4xf32> -> vector<144x264xf32>
    %c0_134 = arith.constant 0 : index
    %c0_135 = arith.constant 0 : index
    %333 = vector.load %arg15[%c0_134, %c0_135] : memref<408x256xf32, #tpu.memory_space<vmem>>, vector<408x256xf32>
    %c0_136 = arith.constant 0 : index
    %c0_137 = arith.constant 0 : index
    %334 = vector.load %arg16[%c0_136, %c0_137] : memref<1x256xf32, #tpu.memory_space<vmem>>, vector<1x256xf32>
    %335 = vector.extract_strided_slice %332 {offsets = [0, 0], sizes = [48, 136], strides = [1, 1]} : vector<144x264xf32> to vector<48x136xf32>
    %336 = vector.extract_strided_slice %332 {offsets = [48, 0], sizes = [48, 136], strides = [1, 1]} : vector<144x264xf32> to vector<48x136xf32>
    %337 = vector.extract_strided_slice %332 {offsets = [96, 0], sizes = [48, 136], strides = [1, 1]} : vector<144x264xf32> to vector<48x136xf32>
    %338 = tpu.concatenate %335, %336, %337 in 1 : vector<48x136xf32>, vector<48x136xf32>, vector<48x136xf32> -> vector<48x408xf32>
    %cst_138 = arith.constant dense<0.000000e+00> : vector<48x256xf32>
    %339 = tpu.matmul %338, %333, %cst_138 {dimension_numbers = #tpu.dot_dimension_numbers<[1], [0], [0], [1], [0, 0, 1, 1], [], []>} : vector<48x408xf32>, vector<408x256xf32>, vector<48x256xf32> -> vector<48x256xf32>
    %340 = vector.broadcast %334 : vector<1x256xf32> to vector<48x256xf32>
    %341 = arith.addf %339, %340 : vector<48x256xf32>
    %cst_139 = arith.constant 0.707106769 : f32
    %342 = vector.broadcast %cst_139 : f32 to vector<48x256xf32>
    %343 = arith.mulf %341, %342 : vector<48x256xf32>
    %344 = math.absf %343 : vector<48x256xf32>
    %cst_140 = arith.constant 0.327591091 : f32
    %345 = vector.broadcast %cst_140 : f32 to vector<48x256xf32>
    %346 = arith.mulf %345, %344 : vector<48x256xf32>
    %cst_141 = arith.constant 1.000000e+00 : f32
    %347 = vector.broadcast %cst_141 : f32 to vector<48x256xf32>
    %348 = arith.addf %347, %346 : vector<48x256xf32>
    %cst_142 = arith.constant 1.000000e+00 : f32
    %349 = vector.broadcast %cst_142 : f32 to vector<48x256xf32>
    %350 = arith.divf %349, %348 : vector<48x256xf32>
    %cst_143 = arith.constant 1.06140542 : f32
    %351 = vector.broadcast %cst_143 : f32 to vector<48x256xf32>
    %352 = arith.mulf %351, %350 : vector<48x256xf32>
    %cst_144 = arith.constant 1.45315206 : f32
    %353 = vector.broadcast %cst_144 : f32 to vector<48x256xf32>
    %354 = arith.subf %352, %353 : vector<48x256xf32>
    %355 = arith.mulf %354, %350 : vector<48x256xf32>
    %cst_145 = arith.constant 1.42141378 : f32
    %356 = vector.broadcast %cst_145 : f32 to vector<48x256xf32>
    %357 = arith.addf %355, %356 : vector<48x256xf32>
    %358 = arith.mulf %357, %350 : vector<48x256xf32>
    %cst_146 = arith.constant 0.284496725 : f32
    %359 = vector.broadcast %cst_146 : f32 to vector<48x256xf32>
    %360 = arith.subf %358, %359 : vector<48x256xf32>
    %361 = arith.mulf %360, %350 : vector<48x256xf32>
    %cst_147 = arith.constant 0.254829586 : f32
    %362 = vector.broadcast %cst_147 : f32 to vector<48x256xf32>
    %363 = arith.addf %361, %362 : vector<48x256xf32>
    %364 = arith.mulf %363, %350 : vector<48x256xf32>
    %cst_148 = arith.constant 0.000000e+00 : f32
    %365 = vector.broadcast %cst_148 : f32 to vector<48x256xf32>
    %366 = arith.subf %365, %344 : vector<48x256xf32>
    %367 = arith.mulf %366, %344 : vector<48x256xf32>
    %368 = math.exp %367 : vector<48x256xf32>
    %369 = arith.mulf %364, %368 : vector<48x256xf32>
    %cst_149 = arith.constant 1.000000e+00 : f32
    %370 = vector.broadcast %cst_149 : f32 to vector<48x256xf32>
    %371 = arith.subf %370, %369 : vector<48x256xf32>
    %cst_150 = arith.constant 0.000000e+00 : f32
    %372 = vector.broadcast %cst_150 : f32 to vector<48x256xf32>
    %373 = arith.cmpf olt, %343, %372 : vector<48x256xf32>
    %cst_151 = arith.constant 0.000000e+00 : f32
    %374 = vector.broadcast %cst_151 : f32 to vector<48x256xf32>
    %375 = arith.subf %374, %371 : vector<48x256xf32>
    %376 = arith.select %373, %375, %371 : vector<48x256xi1>, vector<48x256xf32>
    %cst_152 = arith.constant 5.000000e-01 : f32
    %377 = vector.broadcast %cst_152 : f32 to vector<48x256xf32>
    %378 = arith.mulf %377, %341 : vector<48x256xf32>
    %cst_153 = arith.constant 1.000000e+00 : f32
    %379 = vector.broadcast %cst_153 : f32 to vector<48x256xf32>
    %380 = arith.addf %379, %376 : vector<48x256xf32>
    %381 = arith.mulf %378, %380 : vector<48x256xf32>
    %382 = vector.extract_strided_slice %381 {offsets = [0, 0], sizes = [48, 128], strides = [1, 1]} : vector<48x256xf32> to vector<48x128xf32>
    %383 = vector.extract_strided_slice %381 {offsets = [0, 128], sizes = [48, 128], strides = [1, 1]} : vector<48x256xf32> to vector<48x128xf32>
    %384 = vector.extract_strided_slice %332 {offsets = [0, 128], sizes = [48, 136], strides = [1, 1]} : vector<144x264xf32> to vector<48x136xf32>
    %385 = vector.extract_strided_slice %332 {offsets = [48, 128], sizes = [48, 136], strides = [1, 1]} : vector<144x264xf32> to vector<48x136xf32>
    %386 = vector.extract_strided_slice %332 {offsets = [96, 128], sizes = [48, 136], strides = [1, 1]} : vector<144x264xf32> to vector<48x136xf32>
    %387 = tpu.concatenate %384, %385, %386 in 1 : vector<48x136xf32>, vector<48x136xf32>, vector<48x136xf32> -> vector<48x408xf32>
    %cst_154 = arith.constant dense<0.000000e+00> : vector<48x256xf32>
    %388 = tpu.matmul %387, %333, %cst_154 {dimension_numbers = #tpu.dot_dimension_numbers<[1], [0], [0], [1], [0, 0, 1, 1], [], []>} : vector<48x408xf32>, vector<408x256xf32>, vector<48x256xf32> -> vector<48x256xf32>
    %389 = vector.broadcast %334 : vector<1x256xf32> to vector<48x256xf32>
    %390 = arith.addf %388, %389 : vector<48x256xf32>
    %cst_155 = arith.constant 0.707106769 : f32
    %391 = vector.broadcast %cst_155 : f32 to vector<48x256xf32>
    %392 = arith.mulf %390, %391 : vector<48x256xf32>
    %393 = math.absf %392 : vector<48x256xf32>
    %cst_156 = arith.constant 0.327591091 : f32
    %394 = vector.broadcast %cst_156 : f32 to vector<48x256xf32>
    %395 = arith.mulf %394, %393 : vector<48x256xf32>
    %cst_157 = arith.constant 1.000000e+00 : f32
    %396 = vector.broadcast %cst_157 : f32 to vector<48x256xf32>
    %397 = arith.addf %396, %395 : vector<48x256xf32>
    %cst_158 = arith.constant 1.000000e+00 : f32
    %398 = vector.broadcast %cst_158 : f32 to vector<48x256xf32>
    %399 = arith.divf %398, %397 : vector<48x256xf32>
    %cst_159 = arith.constant 1.06140542 : f32
    %400 = vector.broadcast %cst_159 : f32 to vector<48x256xf32>
    %401 = arith.mulf %400, %399 : vector<48x256xf32>
    %cst_160 = arith.constant 1.45315206 : f32
    %402 = vector.broadcast %cst_160 : f32 to vector<48x256xf32>
    %403 = arith.subf %401, %402 : vector<48x256xf32>
    %404 = arith.mulf %403, %399 : vector<48x256xf32>
    %cst_161 = arith.constant 1.42141378 : f32
    %405 = vector.broadcast %cst_161 : f32 to vector<48x256xf32>
    %406 = arith.addf %404, %405 : vector<48x256xf32>
    %407 = arith.mulf %406, %399 : vector<48x256xf32>
    %cst_162 = arith.constant 0.284496725 : f32
    %408 = vector.broadcast %cst_162 : f32 to vector<48x256xf32>
    %409 = arith.subf %407, %408 : vector<48x256xf32>
    %410 = arith.mulf %409, %399 : vector<48x256xf32>
    %cst_163 = arith.constant 0.254829586 : f32
    %411 = vector.broadcast %cst_163 : f32 to vector<48x256xf32>
    %412 = arith.addf %410, %411 : vector<48x256xf32>
    %413 = arith.mulf %412, %399 : vector<48x256xf32>
    %cst_164 = arith.constant 0.000000e+00 : f32
    %414 = vector.broadcast %cst_164 : f32 to vector<48x256xf32>
    %415 = arith.subf %414, %393 : vector<48x256xf32>
    %416 = arith.mulf %415, %393 : vector<48x256xf32>
    %417 = math.exp %416 : vector<48x256xf32>
    %418 = arith.mulf %413, %417 : vector<48x256xf32>
    %cst_165 = arith.constant 1.000000e+00 : f32
    %419 = vector.broadcast %cst_165 : f32 to vector<48x256xf32>
    %420 = arith.subf %419, %418 : vector<48x256xf32>
    %cst_166 = arith.constant 0.000000e+00 : f32
    %421 = vector.broadcast %cst_166 : f32 to vector<48x256xf32>
    %422 = arith.cmpf olt, %392, %421 : vector<48x256xf32>
    %cst_167 = arith.constant 0.000000e+00 : f32
    %423 = vector.broadcast %cst_167 : f32 to vector<48x256xf32>
    %424 = arith.subf %423, %420 : vector<48x256xf32>
    %425 = arith.select %422, %424, %420 : vector<48x256xi1>, vector<48x256xf32>
    %cst_168 = arith.constant 5.000000e-01 : f32
    %426 = vector.broadcast %cst_168 : f32 to vector<48x256xf32>
    %427 = arith.mulf %426, %390 : vector<48x256xf32>
    %cst_169 = arith.constant 1.000000e+00 : f32
    %428 = vector.broadcast %cst_169 : f32 to vector<48x256xf32>
    %429 = arith.addf %428, %425 : vector<48x256xf32>
    %430 = arith.mulf %427, %429 : vector<48x256xf32>
    %431 = vector.extract_strided_slice %430 {offsets = [0, 0], sizes = [48, 128], strides = [1, 1]} : vector<48x256xf32> to vector<48x128xf32>
    %432 = vector.extract_strided_slice %430 {offsets = [0, 128], sizes = [48, 128], strides = [1, 1]} : vector<48x256xf32> to vector<48x128xf32>
    %433 = tpu.concatenate %382, %431 in 1 : vector<48x128xf32>, vector<48x128xf32> -> vector<48x256xf32>
    %434 = tpu.concatenate %383, %432 in 1 : vector<48x128xf32>, vector<48x128xf32> -> vector<48x256xf32>
    %c0_170 = arith.constant 0 : index
    %c0_171 = arith.constant 0 : index
    %435 = vector.load %arg17[%c0_170, %c0_171] : memref<100x48xf32, #tpu.memory_space<vmem>>, vector<100x48xf32>
    %cst_172 = arith.constant dense<0.000000e+00> : vector<100x256xf32>
    %436 = tpu.matmul %435, %433, %cst_172 {dimension_numbers = #tpu.dot_dimension_numbers<[1], [0], [0], [1], [0, 0, 1, 1], [], []>} : vector<100x48xf32>, vector<48x256xf32>, vector<100x256xf32> -> vector<100x256xf32>
    %c0_173 = arith.constant 0 : index
    %c0_174 = arith.constant 0 : index
    %437 = vector.load %arg18[%c0_173, %c0_174] : memref<100x48xf32, #tpu.memory_space<vmem>>, vector<100x48xf32>
    %cst_175 = arith.constant dense<0.000000e+00> : vector<100x256xf32>
    %438 = tpu.matmul %437, %434, %cst_175 {dimension_numbers = #tpu.dot_dimension_numbers<[1], [0], [0], [1], [0, 0, 1, 1], [], []>} : vector<100x48xf32>, vector<48x256xf32>, vector<100x256xf32> -> vector<100x256xf32>
    %439 = arith.addf %436, %438 : vector<100x256xf32>
    %c0_176 = arith.constant 0 : index
    %c0_177 = arith.constant 0 : index
    %440 = vector.load %arg19[%c0_176, %c0_177] : memref<256x256xf32, #tpu.memory_space<vmem>>, vector<256x256xf32>
    %cst_178 = arith.constant dense<0.000000e+00> : vector<100x256xf32>
    %441 = tpu.matmul %439, %440, %cst_178 {dimension_numbers = #tpu.dot_dimension_numbers<[1], [0], [0], [1], [0, 0, 1, 1], [], []>} : vector<100x256xf32>, vector<256x256xf32>, vector<100x256xf32> -> vector<100x256xf32>
    %c0_179 = arith.constant 0 : index
    %c0_180 = arith.constant 0 : index
    %442 = vector.load %arg20[%c0_179, %c0_180] : memref<1x256xf32, #tpu.memory_space<vmem>>, vector<1x256xf32>
    %443 = vector.broadcast %442 : vector<1x256xf32> to vector<100x256xf32>
    %444 = arith.addf %441, %443 : vector<100x256xf32>
    %c0_181 = arith.constant 0 : index
    %c0_182 = arith.constant 0 : index
    %c0_183 = arith.constant 0 : index
    %445 = vector.load %arg21[%c0_181, %c0_182, %c0_183] : memref<1x100x256xf32, #tpu.memory_space<vmem>>, vector<1x100x256xf32>
    %446 = vector.shape_cast %445 : vector<1x100x256xf32> to vector<100x256xf32>
    %447 = vector.shape_cast %444 : vector<100x256xf32> to vector<1x100x256xf32>
    tpu.vector_store %arg21[%c0_181, %c0_182, %c0_183], %447 {strides = array<i32>} : memref<1x100x256xf32, #tpu.memory_space<vmem>>, vector<1x100x256xf32>,
    return
  }
  func.func @transform_0(%arg0: i32) -> (i32, i32, i32) {
    %c0_i32 = arith.constant 0 : i32
    %c0_i32_0 = arith.constant 0 : i32
    %c0_i32_1 = arith.constant 0 : i32
    return %arg0, %c0_i32, %c0_i32_0 : i32, i32, i32
  }
  func.func @transform_1(%arg0: i32) -> (i32, i32) {
    %c0_i32 = arith.constant 0 : i32
    %c0_i32_0 = arith.constant 0 : i32
    %c0_i32_1 = arith.constant 0 : i32
    return %c0_i32, %c0_i32_0 : i32, i32
  }
  func.func @transform_2(%arg0: i32) -> (i32, i32) {
    %c0_i32 = arith.constant 0 : i32
    %c0_i32_0 = arith.constant 0 : i32
    %c0_i32_1 = arith.constant 0 : i32
    return %c0_i32, %c0_i32_0 : i32, i32
  }
  func.func @transform_3(%arg0: i32) -> (i32, i32) {
    %c0_i32 = arith.constant 0 : i32
    %c0_i32_0 = arith.constant 0 : i32
    %c0_i32_1 = arith.constant 0 : i32
    return %c0_i32, %c0_i32_0 : i32, i32
  }
  func.func @transform_4(%arg0: i32) -> (i32, i32) {
    %c0_i32 = arith.constant 0 : i32
    %c0_i32_0 = arith.constant 0 : i32
    %c0_i32_1 = arith.constant 0 : i32
    return %c0_i32, %c0_i32_0 : i32, i32
  }
  func.func @transform_5(%arg0: i32) -> (i32, i32) {
    %c0_i32 = arith.constant 0 : i32
    %c0_i32_0 = arith.constant 0 : i32
    %c0_i32_1 = arith.constant 0 : i32
    return %c0_i32, %c0_i32_0 : i32, i32
  }
  func.func @transform_6(%arg0: i32) -> (i32, i32) {
    %c0_i32 = arith.constant 0 : i32
    %c0_i32_0 = arith.constant 0 : i32
    %c0_i32_1 = arith.constant 0 : i32
    return %c0_i32, %c0_i32_0 : i32, i32
  }
  func.func @transform_7(%arg0: i32) -> (i32, i32) {
    %c0_i32 = arith.constant 0 : i32
    %c0_i32_0 = arith.constant 0 : i32
    %c0_i32_1 = arith.constant 0 : i32
    return %c0_i32, %c0_i32_0 : i32, i32
  }
  func.func @transform_8(%arg0: i32) -> (i32, i32) {
    %c0_i32 = arith.constant 0 : i32
    %c0_i32_0 = arith.constant 0 : i32
    %c0_i32_1 = arith.constant 0 : i32
    return %c0_i32, %c0_i32_0 : i32, i32
  }
  func.func @transform_9(%arg0: i32) -> (i32, i32) {
    %c0_i32 = arith.constant 0 : i32
    %c0_i32_0 = arith.constant 0 : i32
    %c0_i32_1 = arith.constant 0 : i32
    return %c0_i32, %c0_i32_0 : i32, i32
  }
  func.func @transform_10(%arg0: i32) -> (i32, i32) {
    %c0_i32 = arith.constant 0 : i32
    %c0_i32_0 = arith.constant 0 : i32
    %c0_i32_1 = arith.constant 0 : i32
    return %c0_i32, %c0_i32_0 : i32, i32
  }
  func.func @transform_11(%arg0: i32) -> (i32, i32) {
    %c0_i32 = arith.constant 0 : i32
    %c0_i32_0 = arith.constant 0 : i32
    %c0_i32_1 = arith.constant 0 : i32
    return %c0_i32, %c0_i32_0 : i32, i32
  }
  func.func @transform_12(%arg0: i32) -> (i32, i32) {
    %c0_i32 = arith.constant 0 : i32
    %c0_i32_0 = arith.constant 0 : i32
    %c0_i32_1 = arith.constant 0 : i32
    return %c0_i32, %c0_i32_0 : i32, i32
  }
  func.func @transform_13(%arg0: i32) -> (i32, i32) {
    %c0_i32 = arith.constant 0 : i32
    %c0_i32_0 = arith.constant 0 : i32
    %c0_i32_1 = arith.constant 0 : i32
    return %c0_i32, %c0_i32_0 : i32, i32
  }
  func.func @transform_14(%arg0: i32) -> (i32, i32) {
    %c0_i32 = arith.constant 0 : i32
    %c0_i32_0 = arith.constant 0 : i32
    %c0_i32_1 = arith.constant 0 : i32
    return %c0_i32, %c0_i32_0 : i32, i32
  }
  func.func @transform_15(%arg0: i32) -> (i32, i32) {
    %c0_i32 = arith.constant 0 : i32
    %c0_i32_0 = arith.constant 0 : i32
    %c0_i32_1 = arith.constant 0 : i32
    return %c0_i32, %c0_i32_0 : i32, i32
  }
  func.func @transform_16(%arg0: i32) -> (i32, i32) {
    %c0_i32 = arith.constant 0 : i32
    %c0_i32_0 = arith.constant 0 : i32
    %c0_i32_1 = arith.constant 0 : i32
    return %c0_i32, %c0_i32_0 : i32, i32
  }
  func.func @transform_17(%arg0: i32) -> (i32, i32) {
    %c0_i32 = arith.constant 0 : i32
    %c0_i32_0 = arith.constant 0 : i32
    %c0_i32_1 = arith.constant 0 : i32
    return %c0_i32, %c0_i32_0 : i32, i32
  }
  func.func @transform_18(%arg0: i32) -> (i32, i32) {
    %c0_i32 = arith.constant 0 : i32
    %c0_i32_0 = arith.constant 0 : i32
    %c0_i32_1 = arith.constant 0 : i32
    return %c0_i32, %c0_i32_0 : i32, i32
  }
  func.func @transform_19(%arg0: i32) -> (i32, i32) {
    %c0_i32 = arith.constant 0 : i32
    %c0_i32_0 = arith.constant 0 : i32
    %c0_i32_1 = arith.constant 0 : i32
    return %c0_i32, %c0_i32_0 : i32, i32
  }
  func.func @transform_20(%arg0: i32) -> (i32, i32, i32) {
    %c0_i32 = arith.constant 0 : i32
    %c0_i32_0 = arith.constant 0 : i32
    %c0_i32_1 = arith.constant 0 : i32
    return %arg0, %c0_i32, %c0_i32_0 : i32, i32, i32
  }
}

</mosaic_0001>

<bundles_post_ra>
// kernel: forward.1
= control target key start
LH: loop header
LB: loop body
LE: loop exit
PB: predicated region body
PF: predicated region fallthrough
CT: control target
= control target key end

     0   :  { %s14824_s0 = inlined_call_operand.vmem [shape: f32[2,6,256], index: 0, kind: input, shape index: {}]   ;;  %s14825_s1 = inlined_call_operand.hbm [shape: f32[18,6], index: 1, kind: input, shape index: {}]   ;;  %s14826_s2 = inlined_call_operand.hbm [shape: f32[576,256], index: 2, kind: input, shape index: {}]   ;;  %s14827_s3 = inlined_call_operand.hbm [shape: f32[1,256], index: 3, kind: input, shape index: {}]   ;;  %s14828_s4 = inlined_call_operand.hbm [shape: f32[36,6], index: 4, kind: input, shape index: {}]   ;;  %s14829_s5 = inlined_call_operand.vmem [shape: f32[36,6], index: 5, kind: input, shape index: {}]   ;;  %s14830_s6 = inlined_call_operand.hbm [shape: f32[480,256], index: 6, kind: input, shape index: {}]   ;;  %s14831_s7 = inlined_call_operand.hbm [shape: f32[1,256], index: 7, kind: input, shape index: {}]   ;;  %s14832_s8 = inlined_call_operand.hbm [shape: f32[72,12], index: 8, kind: input, shape index: {}]   ;;  %s14833_s9 = inlined_call_operand.hbm [shape: f32[72,12], index: 9, kind: input, shape index: {}]   ;;  %s14834_s10 = inlined_call_operand.hbm [shape: f32[432,256], index: 10, kind: input, shape index: {}]   ;;  %s14835_s11 = inlined_call_operand.hbm [shape: f32[1,256], index: 11, kind: input, shape index: {}]   ;;  %s14836_s12 = inlined_call_operand.hbm [shape: f32[144,24], index: 12, kind: input, shape index: {}]   ;;  %s14837_s13 = inlined_call_operand.hbm [shape: f32[144,24], index: 13, kind: input, shape index: {}]   ;;  %s14838_s14 = inlined_call_operand.hbm [shape: f32[408,256], index: 14, kind: input, shape index: {}]   ;;  %s14839_s15 = inlined_call_operand.hbm [shape: f32[1,256], index: 15, kind: input, shape index: {}]   ;;  %s14840_s16 = inlined_call_operand.hbm [shape: f32[100,48], index: 16, kind: input, shape index: {}]   ;;  %s14841_s17 = inlined_call_operand.vmem [shape: f32[100,48], index: 17, kind: input, shape index: {}]   ;;  %s14842_s18 = inlined_call_operand.hbm [shape: f32[256,256], index: 18, kind: input, shape index: {}]   ;;  %s14843_s19 = inlined_call_operand.vmem [shape: f32[1,256], index: 19, kind: input, shape index: {}]   ;;  %s14844_s20 = inlined_call_operand.vmem [shape: f32[2,100,256], index: 20, kind: output, shape index: {}]  }
   0x1   :  { %15143 = sst [smem:[#allocation130_spill]] %s14824_s0 }
   0x2   :  { %15144 = sst [smem:[#allocation131_spill]] %s14825_s1 }
   0x3   :  { %15145 = sst [smem:[#allocation132_spill]] %s14826_s2 }
   0x4   :  { %15146 = sst [smem:[#allocation133_spill]] %s14827_s3 }
   0x5   :  { %15147 = sst [smem:[#allocation134_spill]] %s14828_s4 }
   0x6   :  { %15148 = sst [smem:[#allocation135_spill]] %s14831_s7 }
   0x7   :  { %15149 = sst [smem:[#allocation136_spill]] %s14833_s9 }
   0x8   :  { %15150 = sst [smem:[#allocation137_spill]] %s14841_s17 }
   0x9   :  { %15151 = sst [smem:[#allocation138_spill]] %s14843_s19 }
   0xa   :  { %15152 = sst [smem:[#allocation139_spill]] %s14844_s20 }
   0xb   :  { %25 = vsyncpa [#allocation3], 0 }
   0xc   :  { %26 = vsyncpa [#allocation5], 0 }
   0xd   :  { %27 = vsyncpa [#allocation8], 0 }
   0xe   :  { %28 = vsyncpa [#allocation11], 0 }
   0xf   :  { %29 = vsyncpa [#allocation14], 0 }
  0x10   :  { %30 = vsyncpa [#allocation17], 0 }
  0x11   :  { %31 = vsyncpa [#allocation20], 0 }
  0x12   :  { %32 = vsyncpa [#allocation23], 0 }
  0x13   :  { %33 = vsyncpa [#allocation26], 0  ;;  %s9281_s1 = smov 0  }
  0x14 LB: > { %15153 = sst [smem:[#allocation36_spill]] %s9149_s1  ;;  %s9290_s25 = sadd.s32 4294967295, %s9149_s1   ;;  %s9149_s1 = sphi %s9281_s1, %s39_s1  }
  0x15   : > { %s15154_s24 = sld [smem:[#allocation132_spill]]  ;;  %p7686_p0 = scmp.ge.s32.totalorder %s9149_s1, 1 }
  0x16   : > { %p495_p1 = scmp.lt.s32.totalorder %s9149_s1, 3  ;;  %p8229_p2 = scmp.eq.s32.totalorder %s9290_s25, 0 }
  0x17   : > { %s9151_s26 = smov [#allocation4]   ;;  %s15157_s30 = sld [smem:[#allocation134_spill]] }
  0x18   : > { %p9295_p3 = pnand %p7686_p0, %p495_p1  ;;  %s522_s27 = sshll.u32 %s9151_s26, 4  ;;  %s523_s27 = int_to_ptr.vmem [resolvable:$true] %s522_s27 }
  0x19   : > { %s9152_s21 = smov [#allocation7]   ;;  %s14847_s23 = smov 256  }
  0x1a   : > { %p8180_p4 = pneg %p9295_p3  ;;  %s548_s22 = sshll.u32 %s9152_s21, 4  ;;  %s549_s22 = int_to_ptr.vmem [resolvable:$true] %s548_s22 }
  0x1b   : > { %s520_s2 = sshll.u32 %s15154_s24, 4  ;;  %s14849_s24 = smov 16   ;;  %s521_s2 = int_to_ptr.hbm [resolvable:$true] %s520_s2 }
  0x1c   : > { %p9303_p5 = pnand %p8229_p2, %p8180_p4  ;;  %s15158_s7 = sld [smem:[#allocation135_spill]] }
  0x1d   : > { %s546_s0 = sshll.u32 %s15157_s30, 4  ;;  %s9155_s4 = smov 128   ;;  %s547_s0 = int_to_ptr.hbm [resolvable:$true] %s546_s0 }
  0x1e   : > { %8186 = dma.hbm_to_vmem [thread:$0]  (!%p9303_p5), %s521_s2, 18432, %s523_s27, [#allocation5], %s14847_s23, %s14847_s23, %s14849_s24  }
  0x1f   : > { %s9156_s29 = smov 8   ;;  %s9157_s30 = smov [#allocation10]  }
  0x20   : > { %8192 = dma.hbm_to_vmem [thread:$0]  (!%p9303_p5), %s547_s0, 640, %s549_s22, [#allocation8], %s9155_s4, %s9155_s4, %s9156_s29  }
  0x21   : > { %s580_s21 = sshll.u32 %s9157_s30, 4  ;;  %s15159_s9 = sld [smem:[#allocation136_spill]]  ;;  %s581_s21 = int_to_ptr.vmem [resolvable:$true] %s580_s21 }
  0x22   : > { %s578_s20 = sshll.u32 %s15158_s7, 4  ;;  %s632_s26 = sshll.u32 %s14835_s11, 4  ;;  %s579_s20 = int_to_ptr.hbm [resolvable:$true] %s578_s20  ;;  %s633_s26 = int_to_ptr.hbm [resolvable:$true] %s632_s26 }
  0x23   : > { %8198 = dma.hbm_to_vmem [thread:$0]  (!%p9303_p5), %s579_s20, 32, %s581_s21, [#allocation11]  }
  0x24   : > { %s9158_s23 = smov [#allocation13]   ;;  %s9159_s17 = smov [#allocation16]  }
  0x25   : > { %s605_s24 = sshll.u32 %s9158_s23, 4  ;;  %s634_s19 = sshll.u32 %s9159_s17, 4  ;;  %s606_s24 = int_to_ptr.vmem [resolvable:$true] %s605_s24  ;;  %s635_s19 = int_to_ptr.vmem [resolvable:$true] %s634_s19 }
  0x26   : > { %s657_s20 = sshll.u32 %s14837_s13, 4  ;;  %s686_s21 = sshll.u32 %s14839_s15, 4  ;;  %s658_s20 = int_to_ptr.hbm [resolvable:$true] %s657_s20  ;;  %s687_s21 = int_to_ptr.hbm [resolvable:$true] %s686_s21 }
  0x27   : > { %s603_s2 = sshll.u32 %s15159_s9, 4  ;;  %s9160_s1 = smov [#allocation19]   ;;  %s604_s2 = int_to_ptr.hbm [resolvable:$true] %s603_s2 }
  0x28   : > { %8204 = dma.hbm_to_vmem [thread:$0]  (!%p9303_p5), %s604_s2, 1152, %s606_s24, [#allocation14], %s9155_s4, %s9155_s4, %s9156_s29  }
  0x29   : > { %8210 = dma.hbm_to_vmem [thread:$0]  (!%p9303_p5), %s633_s26, 32, %s635_s19, [#allocation17]  }
  0x2a   : > { %s659_s27 = sshll.u32 %s9160_s1, 4  ;;  %s9161_s24 = smov [#allocation22]   ;;  %s660_s27 = int_to_ptr.vmem [resolvable:$true] %s659_s27 }
  0x2b   : > { %8216 = dma.hbm_to_vmem [thread:$0]  (!%p9303_p5), %s658_s20, 2304, %s660_s27, [#allocation20], %s9155_s4, %s9155_s4, %s9156_s29  }
  0x2c   : > { %s688_s2 = sshll.u32 %s9161_s24, 4  ;;  %s15160_s22 = sld [smem:[#allocation131_spill]]  ;;  %s689_s2 = int_to_ptr.vmem [resolvable:$true] %s688_s2 }
  0x2d   : > { %8222 = dma.hbm_to_vmem [thread:$0]  (!%p9303_p5), %s687_s21, 32, %s689_s2, [#allocation23]  }
  0x2e   : > { %s15161_s23 = sld [smem:[#allocation133_spill]]  ;;  %s9162_s7 = smov [#allocation2]  }
  0x2f   : > { %s508_s9 = sshll.u32 %s9162_s7, 4  ;;  %s9163_s20 = smov [#allocation6]   ;;  %s509_s9 = int_to_ptr.vmem [resolvable:$true] %s508_s9 }
  0x30   : > { %s537_s27 = sshll.u32 %s9163_s20, 4  ;;  %s563_s21 = sshll.u32 %s14830_s6, 4  ;;  %s538_s27 = int_to_ptr.vmem [resolvable:$true] %s537_s27  ;;  %s564_s21 = int_to_ptr.hbm [resolvable:$true] %s563_s21 }
  0x31   : > { %s589_s0 = sshll.u32 %s14832_s8, 4  ;;  %s9165_s30 = smov [#allocation12]   ;;  %s590_s0 = int_to_ptr.hbm [resolvable:$true] %s589_s0 }
  0x32   : > { %s506_s26 = sshll.u32 %s15160_s22, 4  ;;  %s9164_s22 = smov [#allocation9]   ;;  %s507_s26 = int_to_ptr.hbm [resolvable:$true] %s506_s26 }
  0x33   : > { %8183 = dma.hbm_to_vmem [thread:$0]  (!%p9303_p5), %s507_s26, 384, %s509_s9, [#allocation3], %s9155_s4, %s9155_s4, %s9156_s29  }
  0x34   : > { %s535_s1 = sshll.u32 %s15161_s23, 4  ;;  %s565_s19 = sshll.u32 %s9164_s22, 4  ;;  %s536_s1 = int_to_ptr.hbm [resolvable:$true] %s535_s1  ;;  %s566_s19 = int_to_ptr.vmem [resolvable:$true] %s565_s19 }
  0x35   : > { %8189 = dma.hbm_to_vmem [thread:$0]  (!%p9303_p5), %s536_s1, 32, %s538_s27, [#allocation5]  }
  0x36   : > { %s15162_s9 = smov 16   ;;  %s15163_s26 = smov 256  }
  0x37   : > { %8195 = dma.hbm_to_vmem [thread:$0]  (!%p9303_p5), %s564_s21, 15360, %s566_s19, [#allocation8], %s15163_s26, %s15163_s26, %s15162_s9  }
  0x38   : > { %s591_s23 = sshll.u32 %s9165_s30, 4  ;;  %s617_s1 = sshll.u32 %s14834_s10, 4  ;;  %s592_s23 = int_to_ptr.vmem [resolvable:$true] %s591_s23  ;;  %s618_s1 = int_to_ptr.hbm [resolvable:$true] %s617_s1 }
  0x39   : > { %8201 = dma.hbm_to_vmem [thread:$0]  (!%p9303_p5), %s590_s0, 1152, %s592_s23, [#allocation11], %s9155_s4, %s9155_s4, %s9156_s29  }
  0x3a   : > { %s643_s2 = sshll.u32 %s14836_s12, 4  ;;  %s9166_s7 = smov [#allocation15]   ;;  %s644_s2 = int_to_ptr.hbm [resolvable:$true] %s643_s2 }
  0x3b   : > { %s619_s21 = sshll.u32 %s9166_s7, 4  ;;  %s9167_s22 = smov [#allocation18]   ;;  %s620_s21 = int_to_ptr.vmem [resolvable:$true] %s619_s21 }
  0x3c   : > { %8207 = dma.hbm_to_vmem [thread:$0]  (!%p9303_p5), %s618_s1, 13824, %s620_s21, [#allocation14], %s15163_s26, %s15163_s26, %s15162_s9  }
  0x3d   : > { %s645_s19 = sshll.u32 %s9167_s22, 4  ;;  %s671_s0 = sshll.u32 %s14838_s14, 4  ;;  %s646_s19 = int_to_ptr.vmem [resolvable:$true] %s645_s19  ;;  %s672_s0 = int_to_ptr.hbm [resolvable:$true] %s671_s0 }
  0x3e   : > { %8213 = dma.hbm_to_vmem [thread:$0]  (!%p9303_p5), %s644_s2, 2304, %s646_s19, [#allocation17], %s9155_s4, %s9155_s4, %s9156_s29  }
  0x3f   : > { %s697_s27 = sshll.u32 %s14840_s16, 4  ;;  %s9168_s1 = smov [#allocation21]   ;;  %s698_s27 = int_to_ptr.hbm [resolvable:$true] %s697_s27 }
  0x40   : > { %s673_s17 = sshll.u32 %s9168_s1, 4  ;;  %s9169_s7 = smov [#allocation24]   ;;  %s674_s17 = int_to_ptr.vmem [resolvable:$true] %s673_s17 }
  0x41   : > { %8219 = dma.hbm_to_vmem [thread:$0]  (!%p9303_p5), %s672_s0, 13056, %s674_s17, [#allocation20], %s15163_s26, %s15163_s26, %s15162_s9  }
  0x42   : > { %s699_s21 = sshll.u32 %s9169_s7, 4  ;;  %s714_s2 = sshll.u32 %s14842_s18, 4  ;;  %s700_s21 = int_to_ptr.vmem [resolvable:$true] %s699_s21  ;;  %s715_s2 = int_to_ptr.hbm [resolvable:$true] %s714_s2 }
  0x43   : > { %8225 = dma.hbm_to_vmem [thread:$0]  (!%p9303_p5), %s698_s27, 1664, %s700_s21, [#allocation23], %s9155_s4, %s9155_s4, %s9156_s29  }
  0x44   : > { %s9170_s19 = smov [#allocation25]   ;;  %743 = sbr.rel (%p9295_p3) target bundleno = 3344 (0xd10), region = 100 }
  0x45   : > { %s716_s20 = sshll.u32 %s9170_s19, 4  ;;  %s717_s20 = int_to_ptr.vmem [resolvable:$true] %s716_s20 }
  0x46   : > { %8228 = dma.hbm_to_vmem [thread:$0]  (!%p9303_p5), %s715_s2, 8192, %s717_s20, [#allocation26], %s15163_s26, %s15163_s26, %s15162_s9  }
  0x49   : > { %9112 = dma.done.wait (%p8229_p2), [#allocation3], 384  }
  0x4a   : > { %9114 = vsyncadd (%p8229_p2), [#allocation3], 4294966912 }
  0x4b   : > { %9116 = dma.done.wait (%p8229_p2), [#allocation5], 18464  }
  0x4c   : > { %9118 = vsyncadd (%p8229_p2), [#allocation5], 4294948832 }
  0x4d   : > { %9120 = dma.done.wait (%p8229_p2), [#allocation8], 16000  }
  0x4e   : > { %9122 = vsyncadd (%p8229_p2), [#allocation8], 4294951296 }
  0x4f   : > { %9124 = dma.done.wait (%p8229_p2), [#allocation11], 1184  }
  0x50   : > { %9126 = vsyncadd (%p8229_p2), [#allocation11], 4294966112 }
  0x51   : > { %9128 = dma.done.wait (%p8229_p2), [#allocation14], 14976  }
  0x52   : > { %9130 = vsyncadd (%p8229_p2), [#allocation14], 4294952320 }
  0x53   : > { %9132 = dma.done.wait (%p8229_p2), [#allocation17], 2336  }
  0x54   : > { %9134 = vsyncadd (%p8229_p2), [#allocation17], 4294964960 }
  0x55   : > { %9136 = dma.done.wait (%p8229_p2), [#allocation20], 15360  }
  0x56   : > { %9138 = vsyncadd (%p8229_p2), [#allocation20], 4294951936 }
  0x57   : > { %9140 = dma.done.wait (%p8229_p2), [#allocation23], 1696  }
  0x58   : > { %9142 = vsyncadd (%p8229_p2), [#allocation23], 4294965600 }
  0x59   : > { %9144 = dma.done.wait (%p8229_p2), [#allocation26], 8192  }
  0x5a   : > { %9146 = vsyncadd (%p8229_p2), [#allocation26], 4294959104  ;;  %p877_p6 = scmp.lt.s32.totalorder %s9290_s25, 1  ;;  %s15164_s29 = sld [smem:[#allocation130_spill]]  ;;  %vm902_vm0 = vcmask 1045504   ;;  %vm892_vm1 = vcmask 48128  }
  0x5b   : > { %v889_v2 = vld [vmem:[#allocation2] sm:$0xff]  ;;  %v890_v3 = vld [vmem:[#allocation2 + $0x8] sm:$0xff]  ;;  %v891_v4 = vld [vmem:[#allocation2 + $0x10] sm:$0x3]  ;;  %s9171_s26 = smov 32   ;;  %vm979_vm2 = vcmask 261120  }
  0x5c   : > { %s15785_s25 = smov (!%p877_p6, %s9290_s25), 1  ;;  %v9474_v5 = vld [vmem:[#allocation4 + $0xf0] sm:$0xff]  ;;  %v9476_v6 = vld [vmem:[#allocation4 + $0xe0] sm:$0xff]  ;;  %vm9528_vm3 = vmneg %vm979_vm2  ;;  %vm1143_vm4 = vcmask 1041408   ;;  %s9172_s0 = smov 64   ;;  %vm1154_vm5 = vcmask 523264  }
  0x5d   : > { %s8114_s3 = sshll.u32 %s15785_s25, 4  ;;  %1175 = vmatpush.msra.mxu2 %v9474_v5  ;;  %v9479_v7 = vld [vmem:[#allocation4 + $0xd0] sm:$0xff]  ;;  %v9482_v8 = vld [vmem:[#allocation4 + $0xc0] sm:$0xff]  ;;  %vm1159_vm6 = vcmask 1043456   ;;  %s9173_s19 = smov 16  }
  0x5e   : > { %v9485_v9 = vld [vmem:[#allocation4 + $0xb0] sm:$0xff]  ;;  %v9488_v10 = vld [vmem:[#allocation4 + $0xa0] sm:$0xff]  ;;  %s9174_s20 = smov 8   ;;  %s15781_s7 = sld [smem:[#allocation138_spill]] }
  0x5f   : > { %1176 = vmatpush.msra.mxu2 %v9476_v6  ;;  %v9491_v11 = vld [vmem:[#allocation4 + $0x90] sm:$0xff]  ;;  %v9494_v12 = vld [vmem:[#allocation4 + $0x80] sm:$0xff]  ;;  %s8115_s21 = smul.u32 208, %s15785_s25  ;;  %s15782_s2 = sld [smem:[#allocation139_spill]] }
  0x60   : > { %s881_s9 = scalar_lea.vmem %s15164_s29, %s8114_s3  ;;  %v9497_v13 = vld [vmem:[#allocation4 + $0x70] sm:$0xff]  ;;  %v9501_v16 = vld [vmem:[#allocation4 + $0x60] sm:$0xff]  ;;  %s9175_s3 = smov 4  }
  0x61   : > { %v887_v0 = vld [vmem:[%s881_s9] sm:$0x3f]  ;;  %v888_v1 = vld [vmem:[%s881_s9 + $0x8] sm:$0x3f]  ;;  %1177 = vmatpush.msra.mxu2 %v9479_v7  ;;  %v9507_v18 = vld [vmem:[#allocation4 + $0x40] sm:$0xff]  ;;  %s15767_s29 = sld [smem:[#allocation137_spill]] }
  0x62   : > { %7724 = vmatpush.msk.msra.mxu0 %vm902_vm0, %v887_v0  ;;  %7728 = vmatpush.msk.msra.mxu1 %vm902_vm0, %v888_v1  ;;  %v9504_v17 = vld [vmem:[#allocation4 + $0x50] sm:$0xff]  ;;  %v9515_v22 = vld [vmem:[#allocation4 + $0x20] sm:$0xff] }
  0x63   : > { %7725 = vmatmul.msk.f32.vlgmr.msra.gmra.mxu0 %vm892_vm1, %v889_v2  ;;  %7729 = vmatmul.msk.f32.vlgmr.msra.gmra.mxu1 %vm892_vm1, %v889_v2  ;;  %v9510_v19 = vld [vmem:[#allocation4 + $0x30] sm:$0xff]  ;;  %v9521_v24 = vld [vmem:[#allocation4] sm:$0xff] }
  0x64   : > { %1178 = vmatpush.msra.mxu2 %v9482_v8  ;;  %v9518_v23 = vld [vmem:[#allocation4 + $0x10] sm:$0xff]  ;;  %15166 = vst [vmem:[#allocation38_spill] sm:$0xff] %v9521_v24  ;;  %v9536_v29 = vld [vmem:[#allocation4 + $0x1e0] sm:$0xff] }
  0x65   : > { %15165 = vst [vmem:[#allocation37_spill] sm:$0xff] %v9518_v23  ;;  %v9532_v27 = vld [vmem:[#allocation4 + $0x1f0] sm:$0xff]  ;;  %v9542_v31 = vld [vmem:[#allocation4 + $0x2e0] sm:$0xff] }
  0x66   : > { %1179 = vmatpush.msra.mxu2 %v9485_v9  ;;  %v9534_v28 = vld [vmem:[#allocation4 + $0x2f0] sm:$0xff]  ;;  %1195 = vmatpush.msra.mxu3 %v9532_v27  ;;  %v9555_v35 = vld [vmem:[#allocation4 + $0x1c0] sm:$0xff] }
  0x67   : > { %1215 = vmatpush.msrb.mxu0 %v9534_v28  ;;  %v9547_v32 = vld [vmem:[#allocation4 + $0x1d0] sm:$0xff]  ;;  %v9557_v36 = vld [vmem:[#allocation4 + $0x2c0] sm:$0xff] }
  0x68   : > { %1180 = vmatpush.msra.mxu2 %v9488_v10  ;;  %v9549_v33 = vld [vmem:[#allocation4 + $0x2d0] sm:$0xff]  ;;  %1196 = vmatpush.msra.mxu3 %v9536_v29  ;;  %v9560_v37 = vld [vmem:[#allocation4 + $0x3e0] sm:$0xff] }
  0x69   : > { %1216 = vmatpush.msrb.mxu0 %v9542_v31  ;;  %v9553_v34 = vld [vmem:[#allocation4 + $0x3f0] sm:$0xff]  ;;  %v9573_v41 = vld [vmem:[#allocation4 + $0x3c0] sm:$0xff] }
  0x6a   : > { %1181 = vmatpush.msra.mxu2 %v9491_v11  ;;  %1235 = vmatpush.msrb.mxu1 %v9553_v34  ;;  %v9564_v38 = vld [vmem:[#allocation4 + $0x3d0] sm:$0xff]  ;;  %v9575_v42 = vld [vmem:[#allocation4 + $0x1a0] sm:$0xff] }
  0x6b   : > { %7726 = vmatmul.msk.f32.gmra.mxu0 %vm892_vm1, %v890_v3  ;;  %7730 = vmatmul.msk.f32.gmra.mxu1 %vm892_vm1, %v890_v3  ;;  %v9566_v39 = vld [vmem:[#allocation4 + $0x1b0] sm:$0xff]  ;;  %v9577_v43 = vld [vmem:[#allocation4 + $0x2a0] sm:$0xff] }
  0x6c   : > { %1182 = vmatpush.msra.mxu2 %v9494_v12  ;;  %1197 = vmatpush.msra.mxu3 %v9547_v32  ;;  %v9568_v40 = vld [vmem:[#allocation4 + $0x2b0] sm:$0xff]  ;;  %v9591_v48 = vld [vmem:[#allocation4 + $0x3a0] sm:$0xff] }
  0x6d   : > { %1217 = vmatpush.msrb.mxu0 %v9549_v33  ;;  %1236 = vmatpush.msrb.mxu1 %v9560_v37  ;;  %v9582_v45 = vld [vmem:[#allocation4 + $0x3b0] sm:$0xff]  ;;  %v9593_v49 = vld [vmem:[#allocation4 + $0x180] sm:$0xff] }
  0x6e   : > { %1183 = vmatpush.msra.mxu2 %v9497_v13  ;;  %1198 = vmatpush.msra.mxu3 %v9555_v35  ;;  %v9584_v46 = vld [vmem:[#allocation4 + $0x190] sm:$0xff]  ;;  %v9595_v50 = vld [vmem:[#allocation4 + $0x280] sm:$0xff] }
  0x6f   : > { %1218 = vmatpush.msrb.mxu0 %v9557_v36  ;;  %1237 = vmatpush.msrb.mxu1 %v9564_v38  ;;  %v9586_v47 = vld [vmem:[#allocation4 + $0x290] sm:$0xff]  ;;  %v9604_v54 = vld [vmem:[#allocation4 + $0x460] sm:$0xff] }
  0x70   : > { %1184 = vmatpush.msra.mxu2 %v9501_v16  ;;  %1199 = vmatpush.msra.mxu3 %v9566_v39  ;;  %v9598_v51 = vld [vmem:[#allocation4 + $0x470] sm:$0xff]  ;;  %15171 = vst [vmem:[#allocation41_spill] sm:$0xff] %v9604_v54  ;;  %v9619_v59 = vld [vmem:[#allocation4 + $0x380] sm:$0xff] }
  0x71   : > { %1219 = vmatpush.msrb.mxu0 %v9568_v40  ;;  %1238 = vmatpush.msrb.mxu1 %v9573_v41  ;;  %15169 = vst [vmem:[#allocation39_spill] sm:$0xff] %v9598_v51  ;;  %v9602_v53 = vld [vmem:[#allocation4 + $0x390] sm:$0xff]  ;;  %v9630_v63 = vld [vmem:[#allocation4 + $0x160] sm:$0xff] }
  0x72   : > { %1185 = vmatpush.msra.mxu2 %v9504_v17  ;;  %1200 = vmatpush.msra.mxu3 %v9575_v42  ;;  %15170 = vst [vmem:[#allocation40_spill] sm:$0xff] %v9602_v53  ;;  %v9609_v56 = vld [vmem:[#allocation4 + $0x170] sm:$0xff]  ;;  %v9632_v0 = vld [vmem:[#allocation4 + $0x260] sm:$0xff] }
  0x73   : > { %7731 = vmatmul.msk.f32.gmra.mxu1 %vm892_vm1, %v891_v4  ;;  %7727 = vmatmul.msk.f32.gmra.mxu0 %vm892_vm1, %v891_v4  ;;  %v9611_v57 = vld [vmem:[#allocation4 + $0x270] sm:$0xff]  ;;  %15172 = vst [vmem:[#allocation42_spill] sm:$0xff] %v9619_v59  ;;  %v9641_v4 = vld [vmem:[#allocation4 + $0x440] sm:$0xff] }
  0x74   : > { %1186 = vmatpush.msra.mxu2 %v9507_v18  ;;  %1220 = vmatpush.msrb.mxu0 %v9577_v43  ;;  %v9621_v60 = vld [vmem:[#allocation4 + $0x450] sm:$0xff]  ;;  %15176 = vst [vmem:[#allocation46_spill] sm:$0xff] %v9641_v4 }
  0x75   : > { %1239 = vmatpush.msrb.mxu1 %v9582_v45  ;;  %1201 = vmatpush.msra.mxu3 %v9584_v46  ;;  %15173 = vst [vmem:[#allocation43_spill] sm:$0xff] %v9621_v60  ;;  %v9639_v3 = vld [vmem:[#allocation4 + $0x370] sm:$0xff] }
  0x76   : > { %1187 = vmatpush.msra.mxu2 %v9510_v19  ;;  %1221 = vmatpush.msrb.mxu0 %v9586_v47  ;;  %15175 = vst [vmem:[#allocation45_spill] sm:$0xff] %v9639_v3 }
  0x77   : > { %1240 = vmatpush.msrb.mxu1 %v9591_v48  ;;  %1202 = vmatpush.msra.mxu3 %v9593_v49 }
  0x78   : > { %1188 = vmatpush.msra.mxu2 %v9515_v22  ;;  %1222 = vmatpush.msrb.mxu0 %v9595_v50 }
  0x79   : > { %1241 = vmatpush.msrb.mxu1 %v9602_v53  ;;  %1203 = vmatpush.msra.mxu3 %v9609_v56  ;;  %v9677_v53 = vld [vmem:[#allocation4 + $0x130] sm:$0xff] }
  0x7a   : > { %1189 = vmatpush.msra.mxu2 %v9518_v23  ;;  %1223 = vmatpush.msrb.mxu0 %v9611_v57 }
  0x7b   : > { %1242 = vmatpush.msrb.mxu1 %v9619_v59  ;;  %1204 = vmatpush.msra.mxu3 %v9630_v63  ;;  %v9674_v59 = vld [vmem:[#allocation4 + $0x350] sm:$0xff] }
  0x7c   : > { %1190 = vmatpush.msra.mxu2 %v9521_v24  ;;  %1224 = vmatpush.msrb.mxu0 %v9632_v0  ;;  %v9665_v24 = vld [vmem:[#allocation4 + $0x240] sm:$0xff]  ;;  %15179 = vst [vmem:[#allocation49_spill] sm:$0xff] %v9674_v59 }
  0x7d   : > { %1243 = vmatpush.msrb.mxu1 %v9639_v3  ;;  %v9679_v3 = vld [vmem:[#allocation4 + $0x230] sm:$0xff] }
  0x7e   : > { %1263 = vmatpush.msrb.mxu2 %v9598_v51  ;;  %v9663_v51 = vld [vmem:[#allocation4 + $0x140] sm:$0xff] }
  0x80   : > { %1264 = vmatpush.msrb.mxu2 %v9604_v54 }
  0x82   : > { %1265 = vmatpush.msrb.mxu2 %v9621_v60 }
  0x83   : > { %v15269_v26 = vld [vmem:[#allocation49_spill] sm:$0xff] }
  0x84   : > { %1266 = vmatpush.msrb.mxu2 %v9641_v4  ;;  %v9712_v4 = vld [vmem:[#allocation4 + $0x100] sm:$0xff] }
  0xe0   : > { %v926_v14 = vpop.f32.mrf.mxu0  ;;  %v952_v15 = vpop.f32.mrf.mxu1 }
  0xe1   : > { %967 = vrot.lane.b32.xlu0 %v926_v14, %s9171_s26 }
  0xe8   : > { %v929_v20 = vpop.f32.mrf.mxu0  ;;  %v955_v21 = vpop.f32.mrf.mxu1 }
  0xe9   : > { %969 = vrot.lane.b32.xlu0 %v952_v15, %s9171_s26  ;;  %971 = vrot.lane.b32.xlu1 %v929_v20, %s9171_s26 }
  0xf0   : > { %v958_v25 = vpop.f32.mrf.mxu1 }
  0xf1   : > { %977 = vrot.lane.b32.xlu0 %v958_v25, %s9171_s26  ;;  %973 = vrot.lane.b32.xlu1 %v955_v21, %s9171_s26  ;;  %v9649_v21 = vld [vmem:[#allocation4 + $0x150] sm:$0xff] }
  0xf2   : > { %v9651_v25 = vld [vmem:[#allocation4 + $0x250] sm:$0xff]  ;;  %1205 = vmatpush.msra.mxu3 %v9649_v21 }
  0xf3   : > { %1225 = vmatpush.msrb.mxu0 %v9651_v25 }
  0xf4   : > { %1206 = vmatpush.msra.mxu3 %v9663_v51 }
  0xf5   : > { %1226 = vmatpush.msrb.mxu0 %v9665_v24 }
  0xf6   : > { %1207 = vmatpush.msra.mxu3 %v9677_v53 }
  0xf7   : > { %1227 = vmatpush.msrb.mxu0 %v9679_v3 }
 0x153   : > { %v9538_v30 = vpop.permute.xlu0 %967 }
 0x154   : > { %7733 = vmatmul.msk.f32.vlgmr.msra.gmra.mxu2 %vm9528_vm3, %v9538_v30  ;;  %v990_v58 = vsel %vm979_vm2, 0.0, %v9538_v30 }
 0x155   : > { %v1144_v14 = vrot.slane %v990_v58, 6 }
 0x15b   : > { %v972_v44 = vpop.permute.xlu1 %971  ;;  %v970_v52 = vpop.permute.xlu0 %969 }
 0x15c   : > { %v9607_v55 = vsel %vm979_vm2, 0.0, %v972_v44  ;;  %v9625_v61 = vsel %vm979_vm2, %v9538_v30, %v970_v52  ;;  %v9628_v62 = vsel %vm979_vm2, %v970_v52, 0.0 }
 0x15d   : > { %15174 = vst [vmem:[#allocation44_spill] sm:$0xff] %v9628_v62  ;;  %v1145_v1 = vrot.slane %v9607_v55, 6  ;;  %v1147_v52 = vrot.slane %v9625_v61, 6  ;;  %v1457_v54 = vrot.slane %v9628_v62, 6 }
 0x15f   : > { %v1146_v60 = vsel %vm1143_vm4, %v1144_v14, %v1145_v1  ;;  %v9686_v1 = vld [vmem:[#allocation4 + $0x430] sm:$0xff]  ;;  %v9689_v14 = vld [vmem:[#allocation4 + $0x120] sm:$0xff] }
 0x160   : > { %15181 = vst [vmem:[#allocation51_spill] sm:$0xff] %v9686_v1  ;;  %1267 = vmatpush.msrb.mxu2 %v9686_v1  ;;  %1208 = vmatpush.msra.mxu3 %v9689_v14  ;;  %v9720_v1 = vld [vmem:[#allocation4 + $0xf8] sm:$0xff] }
 0x161   : > { %15190 = vst [vmem:[#allocation60_spill] sm:$0xff] %v9720_v1 }
 0x163   : > { %v974_v2 = vpop.permute.xlu1 %973 }
 0x164   : > { %v9644_v15 = vsel %vm979_vm2, %v972_v44, %v974_v2  ;;  %v9647_v20 = vsel %vm979_vm2, %v974_v2, 0.0  ;;  %v9661_v2 = vld [vmem:[#allocation4 + $0x360] sm:$0xff] }
 0x165   : > { %15177 = vst [vmem:[#allocation47_spill] sm:$0xff] %v9647_v20  ;;  %v1148_v58 = vrot.slane %v9644_v15, 6  ;;  %v1458_v44 = vrot.slane %v9647_v20, 6  ;;  %1244 = vmatpush.msrb.mxu1 %v9661_v2 }
 0x166   : > { %15178 = vst [vmem:[#allocation48_spill] sm:$0xff] %v9661_v2  ;;  %v932_v2 = vpop.f32.mrf.mxu0 }
 0x167   : > { %v1459_v62 = vsel %vm1143_vm4, %v1457_v54, %v1458_v44  ;;  %v1149_v20 = vsel %vm1143_vm4, %v1147_v52, %v1148_v58  ;;  %v9684_v54 = vld [vmem:[#allocation4 + $0x340] sm:$0xff]  ;;  %1245 = vmatpush.msrb.mxu1 %v9674_v59  ;;  %v9700_v52 = vld [vmem:[#allocation4 + $0x110] sm:$0xff] }
 0x168   : > { %1460 = vrot.lane.b32.xlu1 %v1459_v62, %s9172_s0  ;;  %v8294_v23 = vpack.i.bf16 %v1149_v20, %v1146_v60  ;;  %15180 = vst [vmem:[#allocation50_spill] sm:$0xff] %v9684_v54  ;;  %v9691_v62 = vld [vmem:[#allocation4 + $0x220] sm:$0xff]  ;;  %v9696_v60 = vld [vmem:[#allocation4 + $0x330] sm:$0xff]  ;;  %1209 = vmatpush.msra.mxu3 %v9700_v52 }
 0x169   : > { %15182 = vst [vmem:[#allocation52_spill] sm:$0xff] %v9691_v62  ;;  %v9698_v20 = vld [vmem:[#allocation4 + $0x420] sm:$0xff]  ;;  %v9702_v58 = vld [vmem:[#allocation4 + $0x210] sm:$0xff]  ;;  %1246 = vmatpush.msrb.mxu1 %v9684_v54  ;;  %1228 = vmatpush.msrb.mxu0 %v9691_v62  ;;  %v9722_v54 = vld [vmem:[#allocation4 + $0x1f8] sm:$0xff] }
 0x16a   : > { %8295 = vrot.lane.b32.xlu2 %v8294_v23, %s9172_s0  ;;  %15183 = vst [vmem:[#allocation53_spill] sm:$0xff] %v9696_v60  ;;  %v9708_v23 = vld [vmem:[#allocation4 + $0x320] sm:$0xff]  ;;  %v9710_v44 = vld [vmem:[#allocation4 + $0x410] sm:$0xff]  ;;  %1268 = vmatpush.msrb.mxu2 %v9698_v20 }
 0x16b   : > { %15184 = vst [vmem:[#allocation54_spill] sm:$0xff] %v9698_v20  ;;  %v9714_v59 = vld [vmem:[#allocation4 + $0x200] sm:$0xff]  ;;  %1247 = vmatpush.msrb.mxu1 %v9696_v60  ;;  %1229 = vmatpush.msrb.mxu0 %v9702_v58  ;;  %v9725_v62 = vld [vmem:[#allocation4 + $0x310] sm:$0xff]  ;;  %v9730_v20 = vld [vmem:[#allocation4 + $0xe8] sm:$0xff] }
 0x16c   : > { %15185 = vst [vmem:[#allocation55_spill] sm:$0xff] %v9700_v52  ;;  %1269 = vmatpush.msrb.mxu2 %v9710_v44  ;;  %1210 = vmatpush.msra.mxu3 %v9712_v4  ;;  %v9732_v60 = vld [vmem:[#allocation4 + $0x400] sm:$0xff] }
 0x16d   : > { %15186 = vst [vmem:[#allocation56_spill] sm:$0xff] %v9702_v58  ;;  %1248 = vmatpush.msrb.mxu1 %v9708_v23  ;;  %1230 = vmatpush.msrb.mxu0 %v9714_v59  ;;  %v9736_v58 = vld [vmem:[#allocation4 + $0x1e8] sm:$0xff]  ;;  %v9738_v52 = vld [vmem:[#allocation4 + $0x300] sm:$0xff] }
 0x16e   : > { %15187 = vst [vmem:[#allocation57_spill] sm:$0xff] %v9708_v23  ;;  %1275 = vmatpush.msrb.mxu3 %v9720_v1  ;;  %v9741_v23 = vld [vmem:[#allocation4 + $0xd8] sm:$0xff]  ;;  %1270 = vmatpush.msrb.mxu2 %v9732_v60  ;;  %v9753_v1 = vld [vmem:[#allocation4 + $0xc8] sm:$0xff] }
 0x16f   : > { %15188 = vst [vmem:[#allocation58_spill] sm:$0xff] %v9710_v44  ;;  %1295 = vmatpush.msra.mxu0 %v9722_v54  ;;  %1249 = vmatpush.msrb.mxu1 %v9725_v62  ;;  %v9744_v44 = vld [vmem:[#allocation4 + $0x2f8] sm:$0xff] }
 0x170   : > { %15189 = vst [vmem:[#allocation59_spill] sm:$0xff] %v9714_v59  ;;  %1276 = vmatpush.msrb.mxu3 %v9730_v20  ;;  %v9747_v59 = vld [vmem:[#allocation4 + $0x1d8] sm:$0xff] }
 0x171   : > { %15191 = vst [vmem:[#allocation61_spill] sm:$0xff] %v9722_v54  ;;  %1296 = vmatpush.msra.mxu0 %v9736_v58  ;;  %1250 = vmatpush.msrb.mxu1 %v9738_v52  ;;  %v9756_v54 = vld [vmem:[#allocation4 + $0x2e8] sm:$0xff] }
 0x172   : > { %15192 = vst [vmem:[#allocation62_spill] sm:$0xff] %v9725_v62  ;;  %975 = vrot.lane.b32.xlu2 %v932_v2, %s9171_s26  ;;  %v9750_v2 = vld [vmem:[#allocation4 + $0x3f8] sm:$0xff]  ;;  %1277 = vmatpush.msrb.mxu3 %v9741_v23  ;;  %v9759_v62 = vld [vmem:[#allocation4 + $0x1c8] sm:$0xff] }
 0x173   : > { %15193 = vst [vmem:[#allocation63_spill] sm:$0xff] %v9730_v20  ;;  %1315 = vmatpush.msra.mxu1 %v9744_v44  ;;  %v9762_v20 = vld [vmem:[#allocation4 + $0x3e8] sm:$0xff]  ;;  %1297 = vmatpush.msra.mxu0 %v9747_v59 }
 0x174   : > { %15194 = vst [vmem:[#allocation64_spill] sm:$0xff] %v9732_v60  ;;  %v9765_v60 = vld [vmem:[#allocation4 + $0xb8] sm:$0xff]  ;;  %1335 = vmatpush.msra.mxu2 %v9750_v2  ;;  %1278 = vmatpush.msrb.mxu3 %v9753_v1 }
 0x175   : > { %15195 = vst [vmem:[#allocation65_spill] sm:$0xff] %v9736_v58  ;;  %v9768_v58 = vld [vmem:[#allocation4 + $0x2d8] sm:$0xff]  ;;  %1316 = vmatpush.msra.mxu1 %v9756_v54  ;;  %1298 = vmatpush.msra.mxu0 %v9759_v62 }
 0x176   : > { %15196 = vst [vmem:[#allocation66_spill] sm:$0xff] %v9738_v52  ;;  %v9771_v52 = vld [vmem:[#allocation4 + $0x1b8] sm:$0xff]  ;;  %1336 = vmatpush.msra.mxu2 %v9762_v20  ;;  %1279 = vmatpush.msrb.mxu3 %v9765_v60 }
 0x177   : > { %15197 = vst [vmem:[#allocation67_spill] sm:$0xff] %v9741_v23  ;;  %v9774_v23 = vld [vmem:[#allocation4 + $0x3d8] sm:$0xff]  ;;  %1317 = vmatpush.msra.mxu1 %v9768_v58  ;;  %1299 = vmatpush.msra.mxu0 %v9771_v52 }
 0x178   : > { %15198 = vst [vmem:[#allocation68_spill] sm:$0xff] %v9744_v44  ;;  %v9777_v44 = vld [vmem:[#allocation4 + $0xa8] sm:$0xff]  ;;  %1337 = vmatpush.msra.mxu2 %v9774_v23 }
 0x179   : > { %15199 = vst [vmem:[#allocation69_spill] sm:$0xff] %v9747_v59  ;;  %v9780_v59 = vld [vmem:[#allocation4 + $0x2c8] sm:$0xff]  ;;  %1280 = vmatpush.msrb.mxu3 %v9777_v44 }
 0x17a   : > { %15200 = vst [vmem:[#allocation70_spill] sm:$0xff] %v9750_v2  ;;  %v9783_v2 = vld [vmem:[#allocation4 + $0x1a8] sm:$0xff]  ;;  %1318 = vmatpush.msra.mxu1 %v9780_v59 }
 0x17b   : > { %15201 = vst [vmem:[#allocation71_spill] sm:$0xff] %v9753_v1  ;;  %v9786_v1 = vld [vmem:[#allocation4 + $0x3c8] sm:$0xff]  ;;  %1300 = vmatpush.msra.mxu0 %v9783_v2 }
 0x17c   : > { %15202 = vst [vmem:[#allocation72_spill] sm:$0xff] %v9756_v54  ;;  %v9789_v54 = vld [vmem:[#allocation4 + $0x98] sm:$0xff]  ;;  %1338 = vmatpush.msra.mxu2 %v9786_v1 }
 0x17d   : > { %15203 = vst [vmem:[#allocation73_spill] sm:$0xff] %v9759_v62  ;;  %v9792_v62 = vld [vmem:[#allocation4 + $0x2b8] sm:$0xff]  ;;  %1281 = vmatpush.msrb.mxu3 %v9789_v54 }
 0x17e   : > { %15204 = vst [vmem:[#allocation74_spill] sm:$0xff] %v9762_v20  ;;  %v9795_v20 = vld [vmem:[#allocation4 + $0x198] sm:$0xff]  ;;  %1319 = vmatpush.msra.mxu1 %v9792_v62 }
 0x17f   : > { %15205 = vst [vmem:[#allocation75_spill] sm:$0xff] %v9765_v60  ;;  %v9798_v60 = vld [vmem:[#allocation4 + $0x3b8] sm:$0xff]  ;;  %1301 = vmatpush.msra.mxu0 %v9795_v20 }
 0x180   : > { %15206 = vst [vmem:[#allocation76_spill] sm:$0xff] %v9768_v58  ;;  %v9801_v58 = vld [vmem:[#allocation4 + $0x88] sm:$0xff]  ;;  %1339 = vmatpush.msra.mxu2 %v9798_v60 }
 0x181   : > { %15207 = vst [vmem:[#allocation77_spill] sm:$0xff] %v9771_v52  ;;  %v9804_v52 = vld [vmem:[#allocation4 + $0x2a8] sm:$0xff]  ;;  %1282 = vmatpush.msrb.mxu3 %v9801_v58 }
 0x182   : > { %15208 = vst [vmem:[#allocation78_spill] sm:$0xff] %v9774_v23  ;;  %v9807_v23 = vld [vmem:[#allocation4 + $0x188] sm:$0xff]  ;;  %1320 = vmatpush.msra.mxu1 %v9804_v52 }
 0x183   : > { %15209 = vst [vmem:[#allocation79_spill] sm:$0xff] %v9777_v44  ;;  %v9810_v44 = vld [vmem:[#allocation4 + $0x3a8] sm:$0xff]  ;;  %1302 = vmatpush.msra.mxu0 %v9807_v23 }
 0x184   : > { %15210 = vst [vmem:[#allocation80_spill] sm:$0xff] %v9780_v59  ;;  %v9813_v59 = vld [vmem:[#allocation4 + $0x78] sm:$0xff]  ;;  %1340 = vmatpush.msra.mxu2 %v9810_v44 }
 0x185   : > { %15211 = vst [vmem:[#allocation81_spill] sm:$0xff] %v9783_v2  ;;  %v9816_v2 = vld [vmem:[#allocation4 + $0x298] sm:$0xff]  ;;  %1283 = vmatpush.msrb.mxu3 %v9813_v59 }
 0x186   : > { %15212 = vst [vmem:[#allocation82_spill] sm:$0xff] %v9786_v1  ;;  %v9819_v1 = vld [vmem:[#allocation4 + $0x178] sm:$0xff]  ;;  %1321 = vmatpush.msra.mxu1 %v9816_v2 }
 0x187   : > { %15213 = vst [vmem:[#allocation83_spill] sm:$0xff] %v9789_v54  ;;  %v9822_v54 = vld [vmem:[#allocation4 + $0x398] sm:$0xff]  ;;  %1303 = vmatpush.msra.mxu0 %v9819_v1 }
 0x188   : > { %15214 = vst [vmem:[#allocation84_spill] sm:$0xff] %v9792_v62  ;;  %v9825_v62 = vld [vmem:[#allocation4 + $0x68] sm:$0xff]  ;;  %1341 = vmatpush.msra.mxu2 %v9822_v54 }
 0x189   : > { %15215 = vst [vmem:[#allocation85_spill] sm:$0xff] %v9795_v20  ;;  %v9828_v20 = vld [vmem:[#allocation4 + $0x288] sm:$0xff]  ;;  %1284 = vmatpush.msrb.mxu3 %v9825_v62 }
 0x18a   : > { %15216 = vst [vmem:[#allocation86_spill] sm:$0xff] %v9798_v60  ;;  %v9831_v60 = vld [vmem:[#allocation4 + $0x168] sm:$0xff]  ;;  %1322 = vmatpush.msra.mxu1 %v9828_v20 }
 0x18b   : > { %15217 = vst [vmem:[#allocation87_spill] sm:$0xff] %v9801_v58  ;;  %v9834_v58 = vld [vmem:[#allocation4 + $0x388] sm:$0xff]  ;;  %1304 = vmatpush.msra.mxu0 %v9831_v60 }
 0x18c   : > { %15218 = vst [vmem:[#allocation88_spill] sm:$0xff] %v9804_v52  ;;  %v9837_v52 = vld [vmem:[#allocation4 + $0x58] sm:$0xff]  ;;  %1342 = vmatpush.msra.mxu2 %v9834_v58 }
 0x18d   : > { %15219 = vst [vmem:[#allocation89_spill] sm:$0xff] %v9807_v23  ;;  %v9840_v23 = vld [vmem:[#allocation4 + $0x278] sm:$0xff]  ;;  %1285 = vmatpush.msrb.mxu3 %v9837_v52 }
 0x18e   : > { %15220 = vst [vmem:[#allocation90_spill] sm:$0xff] %v9810_v44  ;;  %v9843_v44 = vld [vmem:[#allocation4 + $0x158] sm:$0xff]  ;;  %1323 = vmatpush.msra.mxu1 %v9840_v23 }
 0x18f   : > { %15221 = vst [vmem:[#allocation91_spill] sm:$0xff] %v9813_v59  ;;  %v9846_v59 = vld [vmem:[#allocation4 + $0x378] sm:$0xff]  ;;  %1305 = vmatpush.msra.mxu0 %v9843_v44 }
 0x190   : > { %15222 = vst [vmem:[#allocation92_spill] sm:$0xff] %v9816_v2  ;;  %v9849_v2 = vld [vmem:[#allocation4 + $0x48] sm:$0xff]  ;;  %1343 = vmatpush.msra.mxu2 %v9846_v59 }
 0x191   : > { %15223 = vst [vmem:[#allocation93_spill] sm:$0xff] %v9819_v1  ;;  %v9852_v1 = vld [vmem:[#allocation4 + $0x268] sm:$0xff]  ;;  %1286 = vmatpush.msrb.mxu3 %v9849_v2 }
 0x192   : > { %15224 = vst [vmem:[#allocation94_spill] sm:$0xff] %v9822_v54  ;;  %v9855_v54 = vld [vmem:[#allocation4 + $0x148] sm:$0xff]  ;;  %1324 = vmatpush.msra.mxu1 %v9852_v1 }
 0x193   : > { %15225 = vst [vmem:[#allocation95_spill] sm:$0xff] %v9825_v62  ;;  %v9858_v62 = vld [vmem:[#allocation4 + $0x368] sm:$0xff]  ;;  %1306 = vmatpush.msra.mxu0 %v9855_v54 }
 0x194   : > { %15226 = vst [vmem:[#allocation96_spill] sm:$0xff] %v9828_v20  ;;  %v9861_v20 = vld [vmem:[#allocation4 + $0x38] sm:$0xff]  ;;  %1344 = vmatpush.msra.mxu2 %v9858_v62 }
 0x195   : > { %15227 = vst [vmem:[#allocation97_spill] sm:$0xff] %v9831_v60  ;;  %v9865_v60 = vld [vmem:[#allocation4 + $0x138] sm:$0xff]  ;;  %1287 = vmatpush.msrb.mxu3 %v9861_v20 }
 0x196   : > { %15228 = vst [vmem:[#allocation98_spill] sm:$0xff] %v9834_v58  ;;  %v9869_v58 = vld [vmem:[#allocation4 + $0x28] sm:$0xff]  ;;  %1307 = vmatpush.msra.mxu0 %v9865_v60 }
 0x197   : > { %15229 = vst [vmem:[#allocation99_spill] sm:$0xff] %v9837_v52  ;;  %1288 = vmatpush.msrb.mxu3 %v9869_v58 }
 0x198   : > { %15230 = vst [vmem:[#allocation100_spill] sm:$0xff] %v9840_v23  ;;  %v9873_v23 = vld [vmem:[#allocation4 + $0x128] sm:$0xff] }
 0x199   : > { %15231 = vst [vmem:[#allocation101_spill] sm:$0xff] %v9843_v44  ;;  %1308 = vmatpush.msra.mxu0 %v9873_v23  ;;  %v9944_v44 = vld [vmem:[#allocation4 + $0x448] sm:$0xff] }
 0x19a   : > { %15232 = vst [vmem:[#allocation102_spill] sm:$0xff] %v9846_v59  ;;  %v9878_v59 = vld [vmem:[#allocation4 + $0x18] sm:$0xff] }
 0x19b   : > { %15233 = vst [vmem:[#allocation103_spill] sm:$0xff] %v9849_v2  ;;  %v9880_v2 = vld [vmem:[#allocation4 + $0x118] sm:$0xff]  ;;  %1289 = vmatpush.msrb.mxu3 %v9878_v59 }
 0x19c   : > { %15234 = vst [vmem:[#allocation104_spill] sm:$0xff] %v9852_v1  ;;  %v9882_v1 = vld [vmem:[#allocation4 + $0x258] sm:$0xff]  ;;  %1309 = vmatpush.msra.mxu0 %v9880_v2 }
 0x19d   : > { %15235 = vst [vmem:[#allocation105_spill] sm:$0xff] %v9855_v54  ;;  %v9890_v54 = vld [vmem:[#allocation4 + $0x108] sm:$0xff]  ;;  %1325 = vmatpush.msra.mxu1 %v9882_v1 }
 0x19e   : > { %15236 = vst [vmem:[#allocation106_spill] sm:$0xff] %v9858_v62  ;;  %v9886_v62 = vld [vmem:[#allocation4 + $0x358] sm:$0xff]  ;;  %1310 = vmatpush.msra.mxu0 %v9890_v54 }
 0x19f   : > { %15237 = vst [vmem:[#allocation107_spill] sm:$0xff] %v9861_v20  ;;  %v9888_v20 = vld [vmem:[#allocation4 + $0x8] sm:$0xff]  ;;  %1345 = vmatpush.msra.mxu2 %v9886_v62 }
 0x1a0   : > { %15238 = vst [vmem:[#allocation108_spill] sm:$0xff] %v9865_v60  ;;  %1290 = vmatpush.msrb.mxu3 %v9888_v20  ;;  %v9934_v60 = vld [vmem:[#allocation4 + $0x468] sm:$0xff] }
 0x1a1   : > { %15239 = vst [vmem:[#allocation109_spill] sm:$0xff] %v9869_v58  ;;  %v9898_v58 = vld [vmem:[#allocation4 + $0x348] sm:$0xff] }
 0x1a2   : > { %15240 = vst [vmem:[#allocation110_spill] sm:$0xff] %v9873_v23  ;;  %v9896_v23 = vld [vmem:[#allocation4 + $0x248] sm:$0xff]  ;;  %1346 = vmatpush.msra.mxu2 %v9898_v58 }
 0x1a3   : > { %15241 = vst [vmem:[#allocation111_spill] sm:$0xff] %v9878_v59  ;;  %1326 = vmatpush.msra.mxu1 %v9896_v23  ;;  %v9904_v59 = vld [vmem:[#allocation4 + $0x338] sm:$0xff] }
 0x1a4   : > { %15242 = vst [vmem:[#allocation112_spill] sm:$0xff] %v9880_v2  ;;  %v9902_v2 = vld [vmem:[#allocation4 + $0x238] sm:$0xff]  ;;  %1347 = vmatpush.msra.mxu2 %v9904_v59 }
 0x1a5   : > { %15243 = vst [vmem:[#allocation113_spill] sm:$0xff] %v9882_v1  ;;  %1327 = vmatpush.msra.mxu1 %v9902_v2  ;;  %v9928_v1 = vld [vmem:[#allocation4 + $0x478] sm:$0xff] }
 0x1a6   : > { %15244 = vst [vmem:[#allocation114_spill] sm:$0xff] %v9886_v62  ;;  %v9908_v62 = vld [vmem:[#allocation4 + $0x228] sm:$0xff] }
 0x1a7   : > { %15245 = vst [vmem:[#allocation115_spill] sm:$0xff] %v9888_v20  ;;  %v9910_v20 = vld [vmem:[#allocation4 + $0x328] sm:$0xff]  ;;  %1328 = vmatpush.msra.mxu1 %v9908_v62 }
 0x1a8   : > { %15246 = vst [vmem:[#allocation116_spill] sm:$0xff] %v9890_v54  ;;  %1348 = vmatpush.msra.mxu2 %v9910_v20  ;;  %v9914_v54 = vld [vmem:[#allocation4 + $0x218] sm:$0xff] }
 0x1a9   : > { %15247 = vst [vmem:[#allocation117_spill] sm:$0xff] %v9896_v23  ;;  %v9916_v23 = vld [vmem:[#allocation4 + $0x318] sm:$0xff]  ;;  %1329 = vmatpush.msra.mxu1 %v9914_v54 }
 0x1aa   : > { %15248 = vst [vmem:[#allocation118_spill] sm:$0xff] %v9898_v58  ;;  %1349 = vmatpush.msra.mxu2 %v9916_v23  ;;  %v9920_v58 = vld [vmem:[#allocation4 + $0x208] sm:$0xff] }
 0x1ab   : > { %15249 = vst [vmem:[#allocation119_spill] sm:$0xff] %v9902_v2  ;;  %v9922_v2 = vld [vmem:[#allocation4 + $0x308] sm:$0xff]  ;;  %1330 = vmatpush.msra.mxu1 %v9920_v58 }
 0x1ac   : > { %15250 = vst [vmem:[#allocation120_spill] sm:$0xff] %v9904_v59  ;;  %1350 = vmatpush.msra.mxu2 %v9922_v2 }
 0x1ad   : > { %15251 = vst [vmem:[#allocation121_spill] sm:$0xff] %v9908_v62 }
 0x1ae   : > { %15252 = vst [vmem:[#allocation122_spill] sm:$0xff] %v9910_v20 }
 0x1af   : > { %15253 = vst [vmem:[#allocation123_spill] sm:$0xff] %v9914_v54 }
 0x1b0   : > { %15254 = vst [vmem:[#allocation124_spill] sm:$0xff] %v9916_v23 }
 0x1b1   : > { %15255 = vst [vmem:[#allocation125_spill] sm:$0xff] %v9920_v58 }
 0x1b2   : > { %15256 = vst [vmem:[#allocation126_spill] sm:$0xff] %v9922_v2  ;;  %v9938_v2 = vld [vmem:[#allocation4 + $0x458] sm:$0xff] }
 0x1b3   : > { %15258 = vst [vmem:[#allocation128_spill] sm:$0xff] %v9928_v1 }
 0x1b4   : > { %15259 = vst [vmem:[#allocation129_spill] sm:$0xff] %v9934_v60 }
 0x1c4   : > { %v8296_v59 = vpop.permute.xlu2 %8295 }
 0x1c5   : > { %v9926_v62 = vunpack.i.h.bf16 %v8296_v59  ;;  %v8297_v20 = vunpack.i.l.bf16 %v8296_v59  ;;  %v9942_v59 = vpop.permute.xlu0 %977 }
 0x1c7   : > { %15257 = vst [vmem:[#allocation127_spill] sm:$0xff] %v9926_v62  ;;  %v1167_v54 = vsel %vm1154_vm5, %v9625_v61, %v8297_v20  ;;  %v1155_v23 = vsel %vm1154_vm5, %v8297_v20, %v9926_v62  ;;  %v9953_v62 = vld [vmem:[#allocation4 + $0x438] sm:$0xff] }
 0x1c8   : > { %1211 = vmatmul.f32.vlgmr.msra.gmra.mxu3 %v1167_v54  ;;  %1231 = vmatmul.f32.vlgmr.msrb.gmra.mxu0 %v1155_v23 }
 0x1c9   : > { %1363 = vmatpush.msra.mxu3 %v9928_v1  ;;  %1473 = vmatpush.msrb.mxu0 %v9474_v5  ;;  %v1160_v1 = vrot.slane %v9607_v55, 4 }
 0x1cb   : > { %1364 = vmatpush.msra.mxu3 %v9934_v60  ;;  %1474 = vmatpush.msrb.mxu0 %v9476_v6  ;;  %v1163_v60 = vrot.slane %v9644_v15, 4  ;;  %v9966_v15 = vld [vmem:[#allocation4 + $0x428] sm:$0xff] }
 0x1cc   : > { %v976_v58 = vpop.permute.xlu2 %975 }
 0x1cd   : > { %1365 = vmatpush.msra.mxu3 %v9938_v2  ;;  %1475 = vmatpush.msrb.mxu0 %v9479_v7  ;;  %v982_v20 = vsel %vm979_vm2, %v976_v58, %v9942_v59  ;;  %v992_v5 = vsel %vm979_vm2, 0.0, %v976_v58  ;;  %v15302_v58 = vld [vmem:[#allocation81_spill] sm:$0xff] }
 0x1ce   : > { %v1161_v52 = vrot.slane %v992_v5, 4  ;;  %v1164_v6 = vrot.slane %v982_v20, 4  ;;  %v15305_v20 = vld [vmem:[#allocation83_spill] sm:$0xff]  ;;  %v15306_v5 = vld [vmem:[#allocation85_spill] sm:$0xff] }
 0x1cf   : > { %1366 = vmatpush.msra.mxu3 %v9944_v44  ;;  %1476 = vmatpush.msrb.mxu0 %v9482_v8  ;;  %v9972_v8 = vld [vmem:[#allocation4 + $0x418] sm:$0xff] }
 0x1d0   : > { %7736 = vmatmul.msk.f32.vlgmr.msrb.gmra.mxu3 %vm9528_vm3, %v9538_v30  ;;  %1311 = vmatmul.f32.vlgmr.msra.gmra.mxu0 %v1167_v54  ;;  %v1162_v7 = vsel %vm1159_vm6, %v1160_v1, %v1161_v52  ;;  %v9962_v55 = vsel %vm1159_vm6, %v1163_v60, %v1164_v6  ;;  %v15273_v30 = vld [vmem:[#allocation50_spill] sm:$0xff]  ;;  %v15297_v54 = vld [vmem:[#allocation75_spill] sm:$0xff]  ;;  %v15298_v1 = vld [vmem:[#allocation77_spill] sm:$0xff] }
 0x1d1   : > { %1367 = vmatpush.msra.mxu3 %v9953_v62  ;;  %1477 = vmatpush.msrb.mxu0 %v9485_v9  ;;  %v9978_v9 = vld [vmem:[#allocation4 + $0x408] sm:$0xff]  ;;  %v15300_v60 = vld [vmem:[#allocation74_spill] sm:$0xff]  ;;  %v15307_v6 = vld [vmem:[#allocation80_spill] sm:$0xff] }
 0x1d2   : > { %1251 = vmatmul.f32.vlgmr.msrb.gmra.mxu1 %v1162_v7  ;;  %7734 = vmatmul.msk.f32.vlgmr.msrb.gmra.mxu2 %vm1154_vm5, %v9962_v55  ;;  %v15301_v52 = vld [vmem:[#allocation79_spill] sm:$0xff] }
 0x1d3   : > { %1493 = vmatpush.msrb.mxu1 %v9532_v27  ;;  %1513 = vmatpush.msrb.mxu2 %v9534_v28  ;;  %v15270_v27 = vld [vmem:[#allocation43_spill] sm:$0xff] }
 0x1d4   : > { %1368 = vmatpush.msra.mxu3 %v9966_v15  ;;  %1478 = vmatpush.msrb.mxu0 %v9488_v10  ;;  %v15260_v10 = vld [vmem:[#allocation40_spill] sm:$0xff]  ;;  %v15271_v28 = vld [vmem:[#allocation55_spill] sm:$0xff] }
 0x1d5   : > { %1494 = vmatpush.msrb.mxu1 %v9536_v29  ;;  %1514 = vmatpush.msrb.mxu2 %v9542_v31  ;;  %v15272_v29 = vld [vmem:[#allocation56_spill] sm:$0xff]  ;;  %v15274_v31 = vld [vmem:[#allocation46_spill] sm:$0xff] }
 0x1d6   : > { %1369 = vmatpush.msra.mxu3 %v9972_v8  ;;  %1479 = vmatpush.msrb.mxu0 %v9491_v11  ;;  %v15261_v11 = vld [vmem:[#allocation37_spill] sm:$0xff] }
 0x1d7   : > { %1495 = vmatpush.msrb.mxu1 %v9547_v32  ;;  %1515 = vmatpush.msrb.mxu2 %v9549_v33  ;;  %v15275_v32 = vld [vmem:[#allocation59_spill] sm:$0xff]  ;;  %v995_v33 = vsel %vm979_vm2, %v9942_v59, 0.0  ;;  %v15304_v59 = vld [vmem:[#allocation78_spill] sm:$0xff] }
 0x1d8   : > { %1370 = vmatpush.msra.mxu3 %v9978_v9  ;;  %1480 = vmatpush.msrb.mxu0 %v9494_v12  ;;  %v15262_v12 = vld [vmem:[#allocation42_spill] sm:$0xff] }
 0x1d9   : > { %1496 = vmatpush.msrb.mxu1 %v9555_v35  ;;  %1516 = vmatpush.msrb.mxu2 %v9557_v36  ;;  %v15277_v36 = vld [vmem:[#allocation53_spill] sm:$0xff] }
 0x1da   : > { %1533 = vmatpush.msrb.mxu3 %v9553_v34  ;;  %1481 = vmatpush.msrb.mxu0 %v9497_v13  ;;  %v15263_v13 = vld [vmem:[#allocation38_spill] sm:$0xff]  ;;  %v15276_v34 = vld [vmem:[#allocation127_spill] sm:$0xff] }
 0x1db   : > { %7737 = vmatmul.msk.f32.vlgmr.msra.gmra.mxu3 %vm1154_vm5, %v9962_v55  ;;  %1331 = vmatmul.f32.vlgmr.msra.gmra.mxu1 %v1155_v23  ;;  %v15303_v23 = vld [vmem:[#allocation76_spill] sm:$0xff] }
 0x1dc   : > { %1351 = vmatmul.f32.vlgmr.msra.gmra.mxu2 %v1162_v7  ;;  %1497 = vmatpush.msrb.mxu1 %v9566_v39  ;;  %v15308_v7 = vld [vmem:[#allocation82_spill] sm:$0xff] }
 0x1dd   : > { %1517 = vmatpush.msrb.mxu2 %v9568_v40  ;;  %1534 = vmatpush.msrb.mxu3 %v9560_v37  ;;  %v15278_v37 = vld [vmem:[#allocation51_spill] sm:$0xff]  ;;  %v15280_v40 = vld [vmem:[#allocation60_spill] sm:$0xff] }
 0x1de   : > { %1482 = vmatpush.msrb.mxu0 %v9501_v16  ;;  %1498 = vmatpush.msrb.mxu1 %v9575_v42  ;;  %v15264_v16 = vld [vmem:[#allocation45_spill] sm:$0xff]  ;;  %v1467_v42 = vrot.slane %v995_v33, 4 }
 0x1df   : > { %1518 = vmatpush.msrb.mxu2 %v9577_v43  ;;  %1535 = vmatpush.msrb.mxu3 %v9564_v38  ;;  %v15279_v38 = vld [vmem:[#allocation44_spill] sm:$0xff]  ;;  %v15282_v43 = vld [vmem:[#allocation47_spill] sm:$0xff]  ;;  %v15326_v33 = vld [vmem:[#allocation105_spill] sm:$0xff] }
 0x1e0   : > { %1483 = vmatpush.msrb.mxu0 %v9504_v17  ;;  %1499 = vmatpush.msrb.mxu1 %v9584_v46  ;;  %v15265_v17 = vld [vmem:[#allocation39_spill] sm:$0xff]  ;;  %v10050_v39 = vsel %vm1154_vm5, %v15279_v38, %v15276_v34  ;;  %v15283_v46 = vld [vmem:[#allocation57_spill] sm:$0xff]  ;;  %v15330_v38 = vld [vmem:[#allocation108_spill] sm:$0xff] }
 0x1e1   : > { %1519 = vmatpush.msrb.mxu2 %v9586_v47  ;;  %1536 = vmatpush.msrb.mxu3 %v9573_v41  ;;  %v15281_v41 = vld [vmem:[#allocation61_spill] sm:$0xff]  ;;  %v15284_v47 = vld [vmem:[#allocation54_spill] sm:$0xff] }
 0x1e2   : > { %1484 = vmatpush.msrb.mxu0 %v9507_v18  ;;  %1500 = vmatpush.msrb.mxu1 %v9593_v49  ;;  %v15266_v18 = vld [vmem:[#allocation48_spill] sm:$0xff]  ;;  %v15286_v49 = vld [vmem:[#allocation65_spill] sm:$0xff] }
 0x1e3   : > { %1520 = vmatpush.msrb.mxu2 %v9595_v50  ;;  %1537 = vmatpush.msrb.mxu3 %v9582_v45  ;;  %v1466_v45 = vrot.slane %v15282_v43, 4  ;;  %v15287_v50 = vld [vmem:[#allocation62_spill] sm:$0xff] }
 0x1e4   : > { %1485 = vmatpush.msrb.mxu0 %v9510_v19  ;;  %1501 = vmatpush.msrb.mxu1 %v9609_v56  ;;  %v15267_v19 = vld [vmem:[#allocation41_spill] sm:$0xff]  ;;  %v15334_v43 = vld [vmem:[#allocation110_spill] sm:$0xff] }
 0x1e5   : > { %1521 = vmatpush.msrb.mxu2 %v9611_v57  ;;  %1538 = vmatpush.msrb.mxu3 %v9591_v48  ;;  %v15285_v48 = vld [vmem:[#allocation63_spill] sm:$0xff]  ;;  %v15290_v56 = vld [vmem:[#allocation69_spill] sm:$0xff]  ;;  %v15291_v57 = vld [vmem:[#allocation66_spill] sm:$0xff] }
 0x1e6   : > { %1486 = vmatpush.msrb.mxu0 %v9515_v22  ;;  %1502 = vmatpush.msrb.mxu1 %v9630_v63  ;;  %v15268_v22 = vld [vmem:[#allocation52_spill] sm:$0xff] }
 0x1e7   : > { %1522 = vmatpush.msrb.mxu2 %v9632_v0  ;;  %1539 = vmatpush.msrb.mxu3 %v15260_v10  ;;  %v15292_v63 = vld [vmem:[#allocation64_spill] sm:$0xff]  ;;  %v10068_v0 = vsel %vm1159_vm6, %v1466_v45, %v1467_v42  ;;  %v15309_v10 = vld [vmem:[#allocation87_spill] sm:$0xff]  ;;  %v15333_v42 = vld [vmem:[#allocation109_spill] sm:$0xff] }
 0x1e8   : > { %1487 = vmatpush.msrb.mxu0 %v15261_v11  ;;  %1503 = vmatpush.msrb.mxu1 %v9649_v21  ;;  %v15295_v21 = vld [vmem:[#allocation68_spill] sm:$0xff]  ;;  %v15310_v11 = vld [vmem:[#allocation89_spill] sm:$0xff] }
 0x1e9   : > { %1523 = vmatpush.msrb.mxu2 %v9651_v25  ;;  %1540 = vmatpush.msrb.mxu3 %v15262_v12  ;;  %v15296_v25 = vld [vmem:[#allocation70_spill] sm:$0xff]  ;;  %v15311_v12 = vld [vmem:[#allocation84_spill] sm:$0xff]  ;;  %v15335_v45 = vld [vmem:[#allocation113_spill] sm:$0xff] }
 0x1ea   : > { %1488 = vmatpush.msrb.mxu0 %v15263_v13  ;;  %1504 = vmatpush.msrb.mxu1 %v9663_v51  ;;  %v15288_v51 = vld [vmem:[#allocation58_spill] sm:$0xff] }
 0x1eb   : > { %1489 = vmatmul.f32.vlgmr.msrb.gmra.mxu0 %v9625_v61  ;;  %1524 = vmatpush.msrb.mxu2 %v9665_v24  ;;  %v1461_v24 = vpop.permute.xlu1 %1460  ;;  %v15312_v13 = vld [vmem:[#allocation86_spill] sm:$0xff] }
 0x1ec   : > { %1541 = vmatpush.msrb.mxu3 %v15264_v16  ;;  %1561 = vmatpush.msra.mxu0 %v15265_v17  ;;  %v10043_v35 = vsel %vm1154_vm5, %v15276_v34, %v1461_v24  ;;  %v15313_v16 = vld [vmem:[#allocation91_spill] sm:$0xff]  ;;  %v15314_v17 = vld [vmem:[#allocation93_spill] sm:$0xff]  ;;  %v15320_v24 = vld [vmem:[#allocation94_spill] sm:$0xff] }
 0x1ed   : > { %1505 = vmatpush.msrb.mxu1 %v9677_v53  ;;  %1525 = vmatpush.msrb.mxu2 %v9679_v3  ;;  %v15289_v53 = vld [vmem:[#allocation67_spill] sm:$0xff]  ;;  %v15327_v34 = vld [vmem:[#allocation100_spill] sm:$0xff] }
 0x1ee   : > { %1542 = vmatpush.msrb.mxu3 %v15266_v18  ;;  %1562 = vmatpush.msra.mxu0 %v15267_v19  ;;  %v15293_v3 = vld [vmem:[#allocation71_spill] sm:$0xff]  ;;  %v15315_v18 = vld [vmem:[#allocation88_spill] sm:$0xff]  ;;  %v15316_v19 = vld [vmem:[#allocation90_spill] sm:$0xff] }
 0x1ef   : > { %1506 = vmatpush.msrb.mxu1 %v9689_v14  ;;  %1526 = vmatpush.msrb.mxu2 %v15268_v22  ;;  %v15299_v14 = vld [vmem:[#allocation72_spill] sm:$0xff]  ;;  %v15317_v22 = vld [vmem:[#allocation95_spill] sm:$0xff] }
 0x1f0   : > { %1543 = vmatpush.msrb.mxu3 %v15269_v26  ;;  %1563 = vmatpush.msra.mxu0 %v15270_v27  ;;  %v15318_v26 = vld [vmem:[#allocation97_spill] sm:$0xff]  ;;  %v15319_v27 = vld [vmem:[#allocation92_spill] sm:$0xff] }
 0x1f1   : > { %1507 = vmatpush.msrb.mxu1 %v15271_v28  ;;  %1527 = vmatpush.msrb.mxu2 %v15272_v29  ;;  %v15321_v28 = vld [vmem:[#allocation99_spill] sm:$0xff]  ;;  %v15322_v29 = vld [vmem:[#allocation101_spill] sm:$0xff] }
 0x1f2   : > { %1544 = vmatpush.msrb.mxu3 %v15273_v30  ;;  %1564 = vmatpush.msra.mxu0 %v15274_v31  ;;  %v15323_v30 = vld [vmem:[#allocation96_spill] sm:$0xff]  ;;  %v15324_v31 = vld [vmem:[#allocation98_spill] sm:$0xff] }
 0x1f3   : > { %1508 = vmatpush.msrb.mxu1 %v9712_v4  ;;  %1528 = vmatpush.msrb.mxu2 %v15275_v32  ;;  %v15294_v4 = vld [vmem:[#allocation73_spill] sm:$0xff]  ;;  %v15325_v32 = vld [vmem:[#allocation103_spill] sm:$0xff] }
 0x1f4   : > { %1545 = vmatpush.msrb.mxu3 %v15277_v36  ;;  %1565 = vmatpush.msra.mxu0 %v15278_v37  ;;  %v15328_v36 = vld [vmem:[#allocation102_spill] sm:$0xff]  ;;  %v15329_v37 = vld [vmem:[#allocation107_spill] sm:$0xff] }
 0x1f5   : > { %1509 = vmatmul.f32.vlgmr.msrb.gmra.mxu1 %v10050_v39  ;;  %1529 = vmatmul.f32.vlgmr.msrb.gmra.mxu2 %v10043_v35 }
 0x1f6   : > { %1573 = vmatpush.msra.mxu1 %v15280_v40  ;;  %1593 = vmatpush.msra.mxu2 %v15281_v41  ;;  %v15331_v40 = vld [vmem:[#allocation104_spill] sm:$0xff]  ;;  %v15332_v41 = vld [vmem:[#allocation106_spill] sm:$0xff] }
 0x1f7   : > { %1546 = vmatpush.msrb.mxu3 %v15283_v46  ;;  %1566 = vmatpush.msra.mxu0 %v15284_v47  ;;  %v15336_v46 = vld [vmem:[#allocation114_spill] sm:$0xff]  ;;  %v15337_v47 = vld [vmem:[#allocation111_spill] sm:$0xff] }
 0x1f8   : > { %1574 = vmatpush.msra.mxu1 %v15285_v48  ;;  %1594 = vmatpush.msra.mxu2 %v15286_v49  ;;  %v15338_v48 = vld [vmem:[#allocation112_spill] sm:$0xff]  ;;  %v15339_v49 = vld [vmem:[#allocation117_spill] sm:$0xff] }
 0x1f9   : > { %1547 = vmatpush.msrb.mxu3 %v15287_v50  ;;  %1567 = vmatpush.msra.mxu0 %v15288_v51  ;;  %v15340_v50 = vld [vmem:[#allocation118_spill] sm:$0xff]  ;;  %v15341_v51 = vld [vmem:[#allocation115_spill] sm:$0xff] }
 0x1fa   : > { %1575 = vmatpush.msra.mxu1 %v15289_v53  ;;  %1595 = vmatpush.msra.mxu2 %v15290_v56  ;;  %v15342_v53 = vld [vmem:[#allocation116_spill] sm:$0xff]  ;;  %v15343_v56 = vld [vmem:[#allocation119_spill] sm:$0xff] }
 0x1fb   : > { %1548 = vmatpush.msrb.mxu3 %v15291_v57  ;;  %1568 = vmatpush.msra.mxu0 %v15292_v63  ;;  %v15344_v57 = vld [vmem:[#allocation120_spill] sm:$0xff] }
 0x1fc   : > { %1549 = vmatmul.f32.vlgmr.msrb.gmra.mxu3 %v9962_v55  ;;  %7742 = vmatmul.msk.f32.vlgmr.msra.gmra.mxu0 %vm1154_vm5, %v10068_v0  ;;  %v15345_v63 = vld [vmem:[#allocation128_spill] sm:$0xff] }
 0x1fd   : > { %1576 = vmatpush.msra.mxu1 %v15293_v3  ;;  %1596 = vmatpush.msra.mxu2 %v15294_v4  ;;  %v15346_v3 = vld [vmem:[#allocation121_spill] sm:$0xff]  ;;  %v15347_v4 = vld [vmem:[#allocation122_spill] sm:$0xff] }
 0x1fe   : > { %1613 = vmatpush.msra.mxu3 %v15295_v21  ;;  %1633 = vmatpush.msrb.mxu0 %v15296_v25  ;;  %v15348_v21 = vld [vmem:[#allocation129_spill] sm:$0xff]  ;;  %v15349_v25 = vld [vmem:[#allocation123_spill] sm:$0xff] }
 0x1ff   : > { %1577 = vmatpush.msra.mxu1 %v15297_v54  ;;  %1597 = vmatpush.msra.mxu2 %v15298_v1  ;;  %v15350_v54 = vld [vmem:[#allocation124_spill] sm:$0xff]  ;;  %v15351_v1 = vld [vmem:[#allocation125_spill] sm:$0xff] }
 0x200   : > { %1614 = vmatpush.msra.mxu3 %v15299_v14  ;;  %1634 = vmatpush.msrb.mxu0 %v15300_v60  ;;  %v15352_v14 = vld [vmem:[#allocation126_spill] sm:$0xff] }
 0x201   : > { %1578 = vmatpush.msra.mxu1 %v15301_v52  ;;  %1598 = vmatpush.msra.mxu2 %v15302_v58 }
 0x202   : > { %1615 = vmatpush.msra.mxu3 %v15303_v23  ;;  %1635 = vmatpush.msrb.mxu0 %v15304_v59 }
 0x203   : > { %1579 = vmatpush.msra.mxu1 %v15305_v20  ;;  %1599 = vmatpush.msra.mxu2 %v15306_v5 }
 0x204   : > { %1616 = vmatpush.msra.mxu3 %v15307_v6  ;;  %1636 = vmatpush.msrb.mxu0 %v15308_v7 }
 0x205   : > { %1580 = vmatpush.msra.mxu1 %v15309_v10  ;;  %1600 = vmatpush.msra.mxu2 %v15310_v11 }
 0x206   : > { %1617 = vmatpush.msra.mxu3 %v15311_v12  ;;  %1637 = vmatpush.msrb.mxu0 %v15312_v13 }
 0x207   : > { %1581 = vmatpush.msra.mxu1 %v15313_v16  ;;  %1601 = vmatpush.msra.mxu2 %v15314_v17 }
 0x208   : > { %1618 = vmatpush.msra.mxu3 %v15315_v18  ;;  %1638 = vmatpush.msrb.mxu0 %v15316_v19 }
 0x209   : > { %1582 = vmatpush.msra.mxu1 %v15317_v22  ;;  %1602 = vmatpush.msra.mxu2 %v15318_v26 }
 0x20a   : > { %1619 = vmatpush.msra.mxu3 %v15319_v27  ;;  %1639 = vmatpush.msrb.mxu0 %v15320_v24 }
 0x20b   : > { %1583 = vmatpush.msra.mxu1 %v15321_v28  ;;  %1603 = vmatpush.msra.mxu2 %v15322_v29 }
 0x20c   : > { %1620 = vmatpush.msra.mxu3 %v15323_v30  ;;  %1640 = vmatpush.msrb.mxu0 %v15324_v31 }
 0x20d   : > { %1584 = vmatpush.msra.mxu1 %v15325_v32  ;;  %1604 = vmatpush.msra.mxu2 %v15326_v33 }
 0x20e   : > { %1621 = vmatpush.msra.mxu3 %v15327_v34  ;;  %1641 = vmatpush.msrb.mxu0 %v15328_v36 }
 0x20f   : > { %1585 = vmatpush.msra.mxu1 %v15329_v37  ;;  %1605 = vmatpush.msra.mxu2 %v15330_v38 }
 0x210   : > { %1622 = vmatpush.msra.mxu3 %v15331_v40  ;;  %1642 = vmatpush.msrb.mxu0 %v15332_v41 }
 0x211   : > { %1586 = vmatpush.msra.mxu1 %v15333_v42  ;;  %1606 = vmatpush.msra.mxu2 %v15334_v43 }
 0x212   : > { %1623 = vmatpush.msra.mxu3 %v15335_v45  ;;  %1643 = vmatpush.msrb.mxu0 %v15336_v46 }
 0x213   : > { %1587 = vmatpush.msra.mxu1 %v15337_v47  ;;  %1607 = vmatpush.msra.mxu2 %v15338_v48 }
 0x214   : > { %1624 = vmatpush.msra.mxu3 %v15339_v49  ;;  %1644 = vmatpush.msrb.mxu0 %v15340_v50 }
 0x215   : > { %1588 = vmatpush.msra.mxu1 %v15341_v51  ;;  %1608 = vmatpush.msra.mxu2 %v15342_v53 }
 0x216   : > { %1625 = vmatpush.msra.mxu3 %v15343_v56  ;;  %1645 = vmatpush.msrb.mxu0 %v15344_v57 }
 0x217   : > { %1589 = vmatmul.f32.vlgmr.msra.gmra.mxu1 %v9625_v61  ;;  %1609 = vmatmul.f32.vlgmr.msra.gmra.mxu2 %v10050_v39  ;;  %v10145_v61 = vld [vmem:[#allocation6] sm:$0x3] }
 0x218   : > { %1661 = vmatpush.msrb.mxu1 %v15345_v63  ;;  %1626 = vmatpush.msra.mxu3 %v15346_v3 }
 0x219   : > { %1646 = vmatpush.msrb.mxu0 %v15347_v4 }
 0x21a   : > { %1662 = vmatpush.msrb.mxu1 %v15348_v21  ;;  %1627 = vmatpush.msra.mxu3 %v15349_v25 }
 0x21b   : > { %1647 = vmatpush.msrb.mxu0 %v15350_v54 }
 0x21c   : > { %1663 = vmatpush.msrb.mxu1 %v9938_v2  ;;  %1628 = vmatpush.msra.mxu3 %v15351_v1  ;;  %v1169_v2 = vperm.slane %v10145_v61, 0 }
 0x21d   : > { %1648 = vmatpush.msrb.mxu0 %v15352_v14  ;;  %1629 = vmatmul.f32.vlgmr.msra.gmra.mxu3 %v10043_v35  ;;  %v1192_v35 = vpop.f32.mrf.mxu2 }
 0x21e   : > { %1649 = vmatmul.f32.vlgmr.msrb.gmra.mxu0 %v9962_v55  ;;  %1664 = vmatpush.msrb.mxu1 %v9944_v44  ;;  %v1193_v55 = vadd.f32 %v1192_v35, %v1169_v2 }
 0x220   : > { %1665 = vmatpush.msrb.mxu1 %v9953_v62 }
 0x222   : > { %1666 = vmatpush.msrb.mxu1 %v9966_v15 }
 0x224   : > { %1667 = vmatpush.msrb.mxu1 %v9972_v8  ;;  %v1170_v8 = vperm.slane %v10145_v61, 1 }
 0x226   : > { %1668 = vmatpush.msrb.mxu1 %v9978_v9 }
 0x227   : > { %7743 = vmatmul.msk.f32.vlgmr.msrb.gmra.mxu1 %vm1154_vm5, %v10068_v0 }
 0x245   : > { %v1232_v62 = vpop.f32.mrf.mxu0 }
 0x24b   : > { %v1212_v44 = vpop.f32.mrf.mxu3 }
 0x24c   : > { %v1213_v39 = vadd.f32 %v1212_v44, %v1193_v55 }
 0x24d   : > { %v1312_v20 = vpop.f32.mrf.mxu0 }
 0x24e   : > { %v1233_v60 = vadd.f32 %v1232_v62, %v1213_v39 }
 0x24f   : > { %v1252_v15 = vpop.f32.mrf.mxu1 }
 0x250   : > { %v1253_v52 = vadd.f32 %v1252_v15, %v1233_v60 }
 0x253   : > { %v1292_v9 = vpop.f32.mrf.mxu3 }
 0x254   : > { %v1293_v0 = vadd.f32 %v1292_v9, %v1170_v8 }
 0x255   : > { %v1272_v58 = vpop.f32.mrf.mxu2 }
 0x256   : > { %v10151_v23 = vadd.f32 %v1272_v58, %v1253_v52  ;;  %v1313_v6 = vadd.f32 %v1312_v20, %v1293_v0 }
 0x258   : > { %v10156_v59 = vmul.f32 0.70710677, %v10151_v23  ;;  %v1332_v10 = vpop.f32.mrf.mxu1 }
 0x259   : > { %v1333_v12 = vadd.f32 %v1332_v10, %v1313_v6 }
 0x25a   : > { %v1377_v5 = vand.u32 2147483647, %v10156_v59  ;;  %vm1443_vm15 = vcmp.lt.f32.partialorder %v10156_v59, 0.0 }
 0x25c   : > { %v1379_v7 = vmul.f32 0.3275911, %v1377_v5  ;;  %v1431_v38 = vsub.f32 0.0, %v1377_v5 }
 0x25e   : > { %v1381_v11 = vadd.f32 1.0, %v1379_v7  ;;  %v1372_v17 = vpop.f32.mrf.mxu3  ;;  %v1433_v43 = vmul.f32 %v1431_v38, %v1377_v5 }
 0x25f   : > { %v1352_v13 = vpop.f32.mrf.mxu2 }
 0x260   : > { %8419 = vrcp.f32 %v1381_v11  ;;  %v1353_v16 = vadd.f32 %v1352_v13, %v1333_v12  ;;  %v1394_v29 = vand.u32 2147483648, %v1381_v11  ;;  %v1392_v31 = vand.u32 2147483647, %v1381_v11 }
 0x261   : > { %vm1388_vm8 = vweird.f32 %v1381_v11  ;;  %v1435_v51 = vmul.f32 1.442695, %v1433_v43 }
 0x262   : > { %v10159_v18 = vadd.f32 %v1372_v17, %v1353_v16  ;;  %v1395_v34 = vor.u32 1.1754944e-38, %v1394_v29  ;;  %vm1393_vm10 = vcmp.eq.f32.partialorder %v1392_v31, 8.507059e+37 }
 0x264   : > { %v10162_v19 = vmul.f32 0.70710677, %v10159_v18 }
 0x266   : > { %v8420_v22 = vpop.eup %8419  ;;  %v1378_v27 = vand.u32 2147483647, %v10162_v19  ;;  %vm1444_vm3 = vcmp.lt.f32.partialorder %v10162_v19, 0.0 }
 0x267   : > { %v1384_v26 = vmul.f32 %v8420_v22, %v1381_v11  ;;  %vm1389_vm7 = vweird.f32 %v8420_v22 }
 0x268   : > { %v1380_v28 = vmul.f32 0.3275911, %v1378_v27  ;;  %vm1390_vm9 = vmor %vm1388_vm8, %vm1389_vm7  ;;  %v1490_v50 = vpop.f32.mrf.mxu0  ;;  %v1432_v44 = vsub.f32 0.0, %v1378_v27 }
 0x269   : > { %v1385_v24 = vsub.f32 1.0, %v1384_v26  ;;  %v1491_v4 = vadd.f32 %v1490_v50, %v1169_v2 }
 0x26a   : > { %v1382_v32 = vadd.f32 1.0, %v1380_v28  ;;  %v1434_v0 = vmul.f32 %v1432_v44, %v1378_v27  ;;  %v1449_v28 = vmul.f32 0.5, %v10151_v23  ;;  %v1450_v23 = vmul.f32 0.5, %v10159_v18 }
 0x26b   : > { %v1386_v30 = vmul.f32 %v8420_v22, %v1385_v24 }
 0x26c   : > { %8421 = vrcp.f32 %v1382_v32  ;;  %v1409_v49 = vand.u32 2147483648, %v1382_v32  ;;  %v1407_v56 = vand.u32 2147483647, %v1382_v32  ;;  %vm1403_vm12 = vweird.f32 %v1382_v32 }
 0x26d   : > { %v1387_v33 = vadd.f32 %v8420_v22, %v1386_v30  ;;  %8423 = vpow2.f32 %v1435_v51  ;;  %v1437_v13 = vmul.f32 1.442695, %v1434_v0 }
 0x26e   : > { %v1410_v25 = vor.u32 1.1754944e-38, %v1409_v49  ;;  %vm1408_vm14 = vcmp.eq.f32.partialorder %v1407_v56, 8.507059e+37 }
 0x26f   : > { %v1391_v36 = vsel %vm1390_vm9, %v8420_v22, %v1387_v33  ;;  %8425 = vpow2.f32 %v1437_v13 }
 0x270   : > { %v1396_v37 = vsel %vm1393_vm10, %v1395_v34, %v1391_v36 }
 0x271   : > { %v1413_v40 = vmul.f32 1.0614054, %v1396_v37 }
 0x272   : > { %v8422_v41 = vpop.eup %8421  ;;  %v1510_v63 = vpop.f32.mrf.mxu1 }
 0x273   : > { %v7738_v42 = vadd.f32 -1.4531521, %v1413_v40  ;;  %v1399_v45 = vmul.f32 %v8422_v41, %v1382_v32  ;;  %vm1404_vm11 = vweird.f32 %v8422_v41  ;;  %v1511_v14 = vadd.f32 %v1510_v63, %v1491_v4  ;;  %v8424_v20 = vpop.eup %8423 }
 0x274   : > { %vm1405_vm13 = vmor %vm1403_vm12, %vm1404_vm11 }
 0x275   : > { %v1417_v46 = vmul.f32 %v7738_v42, %v1396_v37  ;;  %v1400_v47 = vsub.f32 1.0, %v1399_v45  ;;  %v8426_v36 = vpop.eup %8425 }
 0x277   : > { %v1419_v48 = vadd.f32 1.4214138, %v1417_v46  ;;  %v1401_v53 = vmul.f32 %v8422_v41, %v1400_v47 }
 0x278   : > { %v1530_v54 = vpop.f32.mrf.mxu2 }
 0x279   : > { %v1421_v57 = vmul.f32 %v1419_v48, %v1396_v37  ;;  %v1402_v3 = vadd.f32 %v8422_v41, %v1401_v53  ;;  %v1531_v62 = vadd.f32 %v1530_v54, %v1511_v14  ;;  %v1570_v2 = vpop.f32.mrf.mxu0 }
 0x27b   : > { %v7740_v21 = vadd.f32 -0.28449672, %v1421_v57  ;;  %v1406_v1 = vsel %vm1405_vm13, %v8422_v41, %v1402_v3 }
 0x27c   : > { %v1411_v55 = vsel %vm1408_vm14, %v1410_v25, %v1406_v1 }
 0x27d   : > { %v1425_v35 = vmul.f32 %v7740_v21, %v1396_v37  ;;  %v1414_v39 = vmul.f32 1.0614054, %v1411_v55 }
 0x27f   : > { %v1427_v60 = vadd.f32 0.2548296, %v1425_v35  ;;  %v1550_v15 = vpop.f32.mrf.mxu3  ;;  %v7739_v52 = vadd.f32 -1.4531521, %v1414_v39 }
 0x280   : > { %v1551_v9 = vadd.f32 %v1550_v15, %v1531_v62 }
 0x281   : > { %v1429_v58 = vmul.f32 %v1427_v60, %v1396_v37  ;;  %v1418_v5 = vmul.f32 %v7739_v52, %v1411_v55 }
 0x282   : > { %v10167_v6 = vadd.f32 %v1570_v2, %v1551_v9 }
 0x283   : > { %v1439_v7 = vmul.f32 %v8424_v20, %v1429_v58  ;;  %v1420_v10 = vadd.f32 1.4214138, %v1418_v5 }
 0x284   : > { %v10170_v11 = vmul.f32 0.70710677, %v10167_v6 }
 0x285   : > { %v1441_v12 = vsub.f32 1.0, %v1439_v7  ;;  %v1422_v16 = vmul.f32 %v1420_v10, %v1411_v55 }
 0x286   : > { %v1675_v17 = vand.u32 2147483647, %v10170_v11  ;;  %vm1741_vm10 = vcmp.lt.f32.partialorder %v10170_v11, 0.0  ;;  %v1753_v11 = vld [vmem:[#allocation7] sm:$0xff] }
 0x287   : > { %v1445_v22 = vsub.f32 0.0, %v1441_v12  ;;  %v7741_v26 = vadd.f32 -0.28449672, %v1422_v16 }
 0x288   : > { %v1677_v27 = vmul.f32 0.3275911, %v1675_v17  ;;  %v1729_v57 = vsub.f32 0.0, %v1675_v17 }
 0x289   : > { %v1447_v24 = vsel %vm1443_vm15, %v1445_v22, %v1441_v12  ;;  %v1426_v30 = vmul.f32 %v7741_v26, %v1411_v55 }
 0x28a   : > { %v1451_v29 = vadd.f32 1.0, %v1447_v24  ;;  %v1679_v31 = vadd.f32 1.0, %v1677_v27  ;;  %v1731_v25 = vmul.f32 %v1729_v57, %v1675_v17  ;;  %v1747_v17 = vmul.f32 0.5, %v10167_v6  ;;  %v1758_v27 = vld [vmem:[%s14829_s5] sm:$0xff] }
 0x28b   : > { %v1428_v33 = vadd.f32 0.2548296, %v1426_v30 }
 0x28c   : > { %v1453_v32 = vmul.f32 %v1451_v29, %v1449_v28  ;;  %8427 = vrcp.f32 %v1679_v31  ;;  %v1692_v45 = vand.u32 2147483648, %v1679_v31  ;;  %v1690_v48 = vand.u32 2147483647, %v1679_v31 }
 0x28d   : > { %v1430_v34 = vmul.f32 %v1428_v33, %v1411_v55  ;;  %vm1686_vm7 = vweird.f32 %v1679_v31  ;;  %v1733_v39 = vmul.f32 1.442695, %v1731_v25  ;;  %v1759_v33 = vld [vmem:[%s14829_s5 + $0x8] sm:$0xff] }
 0x28e   : > { %7760 = vmatpush.msk.msra.mxu0 %vm902_vm0, %v1453_v32  ;;  %v1693_v51 = vor.u32 1.1754944e-38, %v1692_v45  ;;  %vm1691_vm9 = vcmp.eq.f32.partialorder %v1690_v48, 8.507059e+37 }
 0x28f   : > { %v1440_v37 = vmul.f32 %v8426_v36, %v1430_v34  ;;  %8429 = vpow2.f32 %v1733_v39  ;;  %7761 = vmatmul.msk.f32.vlgmr.msra.gmra.mxu0 %vm892_vm1, %v1753_v11 }
 0x291   : > { %v1442_v40 = vsub.f32 1.0, %v1440_v37 }
 0x292   : > { %v8428_v38 = vpop.eup %8427 }
 0x293   : > { %v1682_v59 = vmul.f32 %v8428_v38, %v1679_v31  ;;  %v1446_v41 = vsub.f32 0.0, %v1442_v40  ;;  %vm1687_vm4 = vweird.f32 %v8428_v38 }
 0x294   : > { %vm1688_vm8 = vmor %vm1686_vm7, %vm1687_vm4  ;;  %v1590_v53 = vpop.f32.mrf.mxu1 }
 0x295   : > { %v1683_v42 = vsub.f32 1.0, %v1682_v59  ;;  %v1448_v43 = vsel %vm1444_vm3, %v1446_v41, %v1442_v40  ;;  %v1591_v18 = vadd.f32 %v1590_v53, %v1170_v8  ;;  %v8430_v5 = vpop.eup %8429  ;;  %v1754_v40 = vld [vmem:[#allocation7 + $0x8] sm:$0xff]  ;;  %vm2157_vm3 = vcmask 785408  }
 0x296   : > { %v1452_v46 = vadd.f32 1.0, %v1448_v43  ;;  %v1760_v43 = vld [vmem:[%s14829_s5 + $0x10] sm:$0xff] }
 0x297   : > { %v1684_v47 = vmul.f32 %v8428_v38, %v1683_v42  ;;  %7762 = vmatmul.msk.f32.gmra.mxu0 %vm892_vm1, %v1754_v40 }
 0x298   : > { %v1454_v49 = vmul.f32 %v1452_v46, %v1450_v23 }
 0x299   : > { %v1685_v50 = vadd.f32 %v8428_v38, %v1684_v47  ;;  %v1755_v47 = vld [vmem:[#allocation7 + $0x10] sm:$0xff] }
 0x29a   : > { %7748 = vmatpush.msk.msrb.mxu2 %vm902_vm0, %v1454_v49  ;;  %v1610_v63 = vpop.f32.mrf.mxu2 }
 0x29b   : > { %v1689_v56 = vsel %vm1688_vm8, %v8428_v38, %v1685_v50  ;;  %v1611_v21 = vadd.f32 %v1610_v63, %v1591_v18  ;;  %v1650_v35 = vpop.f32.mrf.mxu0  ;;  %7749 = vmatmul.msk.f32.vlgmr.msrb.gmra.mxu2 %vm892_vm1, %v1758_v27  ;;  %v1761_v50 = vld [vmem:[%s14829_s5 + $0x18] sm:$0xff] }
 0x29c   : > { %v1694_v19 = vsel %vm1691_vm9, %v1693_v51, %v1689_v56 }
 0x29d   : > { %v1711_v3 = vmul.f32 1.0614054, %v1694_v19 }
 0x29f   : > { %v7744_v4 = vadd.f32 -1.4531521, %v1711_v3  ;;  %7763 = vmatmul.msk.f32.gmra.mxu0 %vm892_vm1, %v1755_v47  ;;  %v1762_v3 = vld [vmem:[%s14829_s5 + $0x20] sm:$0xf] }
 0x2a0   : > { %v1630_v54 = vpop.f32.mrf.mxu3 }
 0x2a1   : > { %v1715_v1 = vmul.f32 %v7744_v4, %v1694_v19  ;;  %v1631_v14 = vadd.f32 %v1630_v54, %v1611_v21  ;;  %v1757_v54 = vld [vmem:[#allocation7 + $0x20] sm:$0xf] }
 0x2a3   : > { %v1717_v55 = vadd.f32 1.4214138, %v1715_v1  ;;  %v1651_v44 = vadd.f32 %v1650_v35, %v1631_v14  ;;  %7750 = vmatmul.msk.f32.gmra.mxu2 %vm892_vm1, %v1759_v33 }
 0x2a4   : > { %v1670_v62 = vpop.f32.mrf.mxu1 }
 0x2a5   : > { %v1719_v60 = vmul.f32 %v1717_v55, %v1694_v19  ;;  %v10181_v15 = vadd.f32 %v1670_v62, %v1651_v44 }
 0x2a7   : > { %v7746_v52 = vadd.f32 -0.28449672, %v1719_v60  ;;  %v10184_v9 = vmul.f32 0.70710677, %v10181_v15  ;;  %v1748_v21 = vmul.f32 0.5, %v10181_v15 }
 0x2a9   : > { %v1723_v61 = vmul.f32 %v7746_v52, %v1694_v19  ;;  %v1676_v8 = vand.u32 2147483647, %v10184_v9  ;;  %vm1742_vm15 = vcmp.lt.f32.partialorder %v10184_v9, 0.0 }
 0x2ab   : > { %v1725_v58 = vadd.f32 0.2548296, %v1723_v61  ;;  %v1678_v0 = vmul.f32 0.3275911, %v1676_v8  ;;  %v1730_v37 = vsub.f32 0.0, %v1676_v8  ;;  %7751 = vmatmul.msk.f32.gmra.mxu2 %vm892_vm1, %v1760_v43 }
 0x2ad   : > { %v1727_v2 = vmul.f32 %v1725_v58, %v1694_v19  ;;  %v1680_v20 = vadd.f32 1.0, %v1678_v0  ;;  %v1732_v41 = vmul.f32 %v1730_v37, %v1676_v8  ;;  %v1756_v19 = vld [vmem:[#allocation7 + $0x18] sm:$0xff] }
 0x2ae   : > { %7764 = vmatmul.msk.f32.gmra.mxu0 %vm892_vm1, %v1756_v19  ;;  %v10254_v37 = vld [vmem:[#allocation9 + $0x90] sm:$0xff] }
 0x2af   : > { %v1737_v7 = vmul.f32 %v8430_v5, %v1727_v2  ;;  %8431 = vrcp.f32 %v1680_v20  ;;  %v1707_v29 = vand.u32 2147483648, %v1680_v20  ;;  %v1705_v31 = vand.u32 2147483647, %v1680_v20 }
 0x2b0   : > { %vm1701_vm12 = vweird.f32 %v1680_v20  ;;  %v1735_v45 = vmul.f32 1.442695, %v1732_v41  ;;  %v10266_v41 = vld [vmem:[#allocation9 + $0x50] sm:$0xff] }
 0x2b1   : > { %v1739_v10 = vsub.f32 1.0, %v1737_v7  ;;  %v1708_v6 = vor.u32 1.1754944e-38, %v1707_v29  ;;  %vm1706_vm14 = vcmp.eq.f32.partialorder %v1705_v31, 8.507059e+37  ;;  %v10234_v29 = vld [vmem:[#allocation9 + $0xf0] sm:$0xff]  ;;  %15353 = vst [vmem:[#allocation40_spill] sm:$0xff] %v10266_v41 }
 0x2b2   : > { %8433 = vpow2.f32 %v1735_v45  ;;  %2162 = vmatpush.msra.mxu2 %v10234_v29 }
 0x2b3   : > { %v1743_v12 = vsub.f32 0.0, %v1739_v10  ;;  %7752 = vmatmul.msk.f32.gmra.mxu2 %vm892_vm1, %v1761_v50 }
 0x2b5   : > { %v8432_v13 = vpop.eup %8431  ;;  %v1745_v16 = vsel %vm1741_vm10, %v1743_v12, %v1739_v10 }
 0x2b6   : > { %v1749_v22 = vadd.f32 1.0, %v1745_v16  ;;  %v1697_v26 = vmul.f32 %v8432_v13, %v1680_v20  ;;  %vm1702_vm11 = vweird.f32 %v8432_v13  ;;  %7765 = vmatmul.msk.f32.gmra.mxu0 %vm892_vm1, %v1757_v54 }
 0x2b7   : > { %vm1703_vm13 = vmor %vm1701_vm12, %vm1702_vm11 }
 0x2b8   : > { %v1751_v24 = vmul.f32 %v1749_v22, %v1747_v17  ;;  %v1698_v28 = vsub.f32 1.0, %v1697_v26  ;;  %v8434_v56 = vpop.eup %8433 }
 0x2ba   : > { %v1699_v30 = vmul.f32 %v8432_v13, %v1698_v28  ;;  %7766 = vmatpush.msk.msra.mxu1 %vm902_vm0, %v1751_v24 }
 0x2bb   : > { %7767 = vmatmul.msk.f32.vlgmr.msra.gmra.mxu1 %vm892_vm1, %v1753_v11  ;;  %7753 = vmatmul.msk.f32.gmra.mxu2 %vm892_vm1, %v1762_v3 }
 0x2bc   : > { %v1700_v32 = vadd.f32 %v8432_v13, %v1699_v30 }
 0x2be   : > { %v1704_v34 = vsel %vm1703_vm13, %v8432_v13, %v1700_v32  ;;  %v10237_v32 = vld [vmem:[#allocation9 + $0xe0] sm:$0xff] }
 0x2bf   : > { %v1709_v36 = vsel %vm1706_vm14, %v1708_v6, %v1704_v34  ;;  %v10241_v6 = vld [vmem:[#allocation9 + $0xd0] sm:$0xff]  ;;  %2163 = vmatpush.msra.mxu2 %v10237_v32 }
 0x2c0   : > { %v1712_v38 = vmul.f32 1.0614054, %v1709_v36  ;;  %v10248_v34 = vld [vmem:[#allocation9 + $0xb0] sm:$0xff] }
 0x2c1   : > { %2164 = vmatpush.msra.mxu2 %v10241_v6 }
 0x2c2   : > { %v7745_v59 = vadd.f32 -1.4531521, %v1712_v38  ;;  %v10258_v38 = vld [vmem:[#allocation9 + $0x80] sm:$0xff] }
 0x2c3   : > { %7768 = vmatmul.msk.f32.gmra.mxu1 %vm892_vm1, %v1754_v40  ;;  %v10261_v40 = vld [vmem:[#allocation9 + $0x70] sm:$0xff] }
 0x2c4   : > { %v1716_v42 = vmul.f32 %v7745_v59, %v1709_v36  ;;  %v10263_v59 = vld [vmem:[#allocation9 + $0x60] sm:$0xff] }
 0x2c6   : > { %v1718_v23 = vadd.f32 1.4214138, %v1716_v42  ;;  %v10269_v42 = vld [vmem:[#allocation9 + $0x40] sm:$0xff] }
 0x2c7   : > { %15354 = vst [vmem:[#allocation37_spill] sm:$0xff] %v10269_v42 }
 0x2c8   : > { %v1720_v46 = vmul.f32 %v1718_v23, %v1709_v36 }
 0x2ca   : > { %v7747_v48 = vadd.f32 -0.28449672, %v1720_v46  ;;  %v10280_v46 = vld [vmem:[#allocation9 + $0x30] sm:$0xff] }
 0x2cb   : > { %7769 = vmatmul.msk.f32.gmra.mxu1 %vm892_vm1, %v1755_v47  ;;  %15355 = vst [vmem:[#allocation42_spill] sm:$0xff] %v10280_v46  ;;  %v10283_v47 = vld [vmem:[#allocation9 + $0x20] sm:$0xff] }
 0x2cc   : > { %v1724_v49 = vmul.f32 %v7747_v48, %v1709_v36  ;;  %15356 = vst [vmem:[#allocation38_spill] sm:$0xff] %v10283_v47  ;;  %v10286_v48 = vld [vmem:[#allocation9 + $0x10] sm:$0xff] }
 0x2cd   : > { %15357 = vst [vmem:[#allocation45_spill] sm:$0xff] %v10286_v48 }
 0x2ce   : > { %v1726_v51 = vadd.f32 0.2548296, %v1724_v49  ;;  %v10289_v49 = vld [vmem:[#allocation9] sm:$0xff] }
 0x2cf   : > { %15358 = vst [vmem:[#allocation39_spill] sm:$0xff] %v10289_v49 }
 0x2d0   : > { %v1728_v53 = vmul.f32 %v1726_v51, %v1709_v36  ;;  %v10251_v36 = vld [vmem:[#allocation9 + $0xa0] sm:$0xff]  ;;  %v10294_v51 = vld [vmem:[#allocation9 + $0xe8] sm:$0xff] }
 0x2d2   : > { %v1738_v57 = vmul.f32 %v8434_v56, %v1728_v53  ;;  %v10297_v53 = vld [vmem:[#allocation9 + $0xd8] sm:$0xff]  ;;  %v10301_v56 = vld [vmem:[#allocation9 + $0xc8] sm:$0xff] }
 0x2d3   : > { %7770 = vmatmul.msk.f32.gmra.mxu1 %vm892_vm1, %v1756_v19  ;;  %v10303_v19 = vld [vmem:[#allocation9 + $0xb8] sm:$0xff] }
 0x2d4   : > { %v1740_v63 = vsub.f32 1.0, %v1738_v57  ;;  %v10306_v57 = vld [vmem:[#allocation9 + $0xa8] sm:$0xff] }
 0x2d5   : > { %15359 = vst [vmem:[#allocation48_spill] sm:$0xff] %v10306_v57 }
 0x2d6   : > { %v1744_v18 = vsub.f32 0.0, %v1740_v63 }
 0x2d8   : > { %v1746_v4 = vsel %vm1742_vm15, %v1744_v18, %v1740_v63  ;;  %v10309_v63 = vld [vmem:[#allocation9 + $0x98] sm:$0xff] }
 0x2d9   : > { %v1750_v25 = vadd.f32 1.0, %v1746_v4  ;;  %15360 = vst [vmem:[#allocation41_spill] sm:$0xff] %v10309_v63  ;;  %v10316_v18 = vld [vmem:[#allocation9 + $0x78] sm:$0xff]  ;;  %v10318_v4 = vld [vmem:[#allocation9 + $0x68] sm:$0xff] }
 0x2da   : > { %15362 = vst [vmem:[#allocation49_spill] sm:$0xff] %v10316_v18 }
 0x2db   : > { %v1752_v1 = vmul.f32 %v1750_v25, %v1748_v21  ;;  %7771 = vmatmul.msk.f32.gmra.mxu1 %vm892_vm1, %v1757_v54  ;;  %15363 = vst [vmem:[#allocation43_spill] sm:$0xff] %v10318_v4  ;;  %v10321_v21 = vld [vmem:[#allocation9 + $0x58] sm:$0xff]  ;;  %v10325_v25 = vld [vmem:[#allocation9 + $0x48] sm:$0xff] }
 0x2dc   : > { %15364 = vst [vmem:[#allocation55_spill] sm:$0xff] %v10321_v21  ;;  %v10328_v54 = vld [vmem:[#allocation9 + $0x38] sm:$0xff] }
 0x2dd   : > { %7754 = vmatpush.msk.msrb.mxu3 %vm902_vm0, %v1752_v1  ;;  %vm1963_vm0 = vcmask 130048   ;;  %15365 = vst [vmem:[#allocation56_spill] sm:$0xff] %v10325_v25 }
 0x2de   : > { %7755 = vmatmul.msk.f32.vlgmr.msrb.gmra.mxu3 %vm892_vm1, %v1758_v27  ;;  %15366 = vst [vmem:[#allocation50_spill] sm:$0xff] %v10328_v54 }
 0x2e6   : > { %7756 = vmatmul.msk.f32.gmra.mxu3 %vm892_vm1, %v1759_v33  ;;  %v10245_v33 = vld [vmem:[#allocation9 + $0xc0] sm:$0xff] }
 0x2e7   : > { %2165 = vmatpush.msra.mxu2 %v10245_v33 }
 0x2e9   : > { %2166 = vmatpush.msra.mxu2 %v10248_v34 }
 0x2eb   : > { %2167 = vmatpush.msra.mxu2 %v10251_v36 }
 0x2ed   : > { %2168 = vmatpush.msra.mxu2 %v10254_v37 }
 0x2ee   : > { %7757 = vmatmul.msk.f32.gmra.mxu3 %vm892_vm1, %v1760_v43 }
 0x2ef   : > { %2169 = vmatpush.msra.mxu2 %v10258_v38 }
 0x2f1   : > { %2170 = vmatpush.msra.mxu2 %v10261_v40 }
 0x2f3   : > { %2171 = vmatpush.msra.mxu2 %v10263_v59 }
 0x2f5   : > { %2172 = vmatpush.msra.mxu2 %v10266_v41 }
 0x2f6   : > { %7758 = vmatmul.msk.f32.gmra.mxu3 %vm892_vm1, %v1761_v50  ;;  %v10292_v50 = vld [vmem:[#allocation9 + $0xf8] sm:$0xff] }
 0x2f7   : > { %2173 = vmatpush.msra.mxu2 %v10269_v42 }
 0x2f9   : > { %2174 = vmatpush.msra.mxu2 %v10280_v46  ;;  %v10571_v46 = vld [vmem:[#allocation9 + $0x378] sm:$0xff] }
 0x2fb   : > { %2175 = vmatpush.msra.mxu2 %v10283_v47  ;;  %v10518_v47 = vld [vmem:[#allocation9 + $0x188] sm:$0xff] }
 0x2fc   : > { %15379 = vst [vmem:[#allocation54_spill] sm:$0xff] %v10518_v47 }
 0x2fd   : > { %2176 = vmatpush.msra.mxu2 %v10286_v48  ;;  %v10496_v48 = vld [vmem:[#allocation9 + $0x200] sm:$0xff] }
 0x2fe   : > { %7759 = vmatmul.msk.f32.gmra.mxu3 %vm892_vm1, %v1762_v3  ;;  %v10313_v3 = vld [vmem:[#allocation9 + $0x88] sm:$0xff]  ;;  %vm10366_vm1 = vmneg %vm1963_vm0 }
 0x2ff   : > { %2177 = vmatpush.msra.mxu2 %v10289_v49  ;;  %15361 = vst [vmem:[#allocation52_spill] sm:$0xff] %v10313_v3  ;;  %v10481_v49 = vld [vmem:[#allocation9 + $0x1d8] sm:$0xff] }
 0x300   : > { %15374 = vst [vmem:[#allocation44_spill] sm:$0xff] %v10481_v49 }
 0x301   : > { %2254 = vmatpush.msrb.mxu2 %v10292_v50 }
 0x303   : > { %2255 = vmatpush.msrb.mxu2 %v10294_v51 }
 0x305   : > { %2256 = vmatpush.msrb.mxu2 %v10297_v53 }
 0x307   : > { %2257 = vmatpush.msrb.mxu2 %v10301_v56 }
 0x309   : > { %2258 = vmatpush.msrb.mxu2 %v10303_v19 }
 0x30b   : > { %2259 = vmatpush.msrb.mxu2 %v10306_v57 }
 0x30c   : > { %v1886_v14 = vpop.f32.mrf.mxu0 }
 0x30d   : > { %2260 = vmatpush.msrb.mxu2 %v10309_v63 }
 0x30f   : > { %2261 = vmatpush.msrb.mxu2 %v10313_v3  ;;  %v10583_v3 = vld [vmem:[#allocation9 + $0x338] sm:$0xff] }
 0x310   : > { %15389 = vst [vmem:[#allocation73_spill] sm:$0xff] %v10583_v3 }
 0x311   : > { %2262 = vmatpush.msrb.mxu2 %v10316_v18  ;;  %v2076_v18 = vld [vmem:[#allocation9 + $0x2a8] sm:$0xff] }
 0x313   : > { %2263 = vmatpush.msrb.mxu2 %v10318_v4  ;;  %v10505_v4 = vld [vmem:[#allocation9 + $0x330] sm:$0xff] }
 0x314   : > { %v1889_v55 = vpop.f32.mrf.mxu0 }
 0x315   : > { %2264 = vmatpush.msrb.mxu2 %v10321_v21  ;;  %v10483_v21 = vld [vmem:[#allocation9 + $0x210] sm:$0xff] }
 0x317   : > { %2265 = vmatpush.msrb.mxu2 %v10325_v25  ;;  %v10479_v25 = vld [vmem:[#allocation9 + $0x350] sm:$0xff] }
 0x319   : > { %2266 = vmatpush.msrb.mxu2 %v10328_v54  ;;  %v10472_v54 = vld [vmem:[#allocation9 + $0x1e8] sm:$0xff] }
 0x31a   : > { %15373 = vst [vmem:[#allocation51_spill] sm:$0xff] %v10472_v54 }
 0x31c   : > { %v1892_v62 = vpop.f32.mrf.mxu0 }
 0x31e   : > { %v1801_v35 = vpop.f32.mrf.mxu2 }
 0x31f   : > { %v1887_v30 = vadd.f32 %v1886_v14, %v1801_v35  ;;  %v10330_v14 = vld [vmem:[#allocation9 + $0x28] sm:$0xff] }
 0x320   : > { %15367 = vst [vmem:[#allocation46_spill] sm:$0xff] %v10330_v14  ;;  %2267 = vmatpush.msrb.mxu2 %v10330_v14  ;;  %v10469_v14 = vld [vmem:[#allocation9 + $0x360] sm:$0xff] }
 0x326   : > { %v1804_v44 = vpop.f32.mrf.mxu2 }
 0x327   : > { %v1890_v39 = vadd.f32 %v1889_v55, %v1804_v44  ;;  %v10333_v44 = vld [vmem:[#allocation9 + $0x18] sm:$0xff] }
 0x328   : > { %15368 = vst [vmem:[#allocation59_spill] sm:$0xff] %v10333_v44  ;;  %2268 = vmatpush.msrb.mxu2 %v10333_v44  ;;  %v10465_v44 = vld [vmem:[#allocation9 + $0x230] sm:$0xff] }
 0x329   : > { %1947 = vrot.lane.b32.xlu2 %v1890_v39, %s9173_s19 }
 0x32b   : > { %v1895_v52 = vpop.f32.mrf.mxu0 }
 0x32e   : > { %v1807_v60 = vpop.f32.mrf.mxu2 }
 0x32f   : > { %v1893_v0 = vadd.f32 %v1892_v62, %v1807_v60  ;;  %v10337_v62 = vld [vmem:[#allocation9 + $0x8] sm:$0xff] }
 0x330   : > { %15369 = vst [vmem:[#allocation127_spill] sm:$0xff] %v10337_v62  ;;  %2269 = vmatpush.msrb.mxu2 %v10337_v62  ;;  %v10460_v62 = vld [vmem:[#allocation9 + $0x370] sm:$0xff] }
 0x333   : > { %v1898_v16 = vpop.f32.mrf.mxu0 }
 0x336   : > { %v1810_v15 = vpop.f32.mrf.mxu2 }
 0x337   : > { %v1896_v9 = vadd.f32 %v1895_v52, %v1810_v15 }
 0x338   : > { %v1918_v61 = vpop.f32.mrf.mxu1 }
 0x339   : > { %1955 = vrot.lane.b32.xlu2 %v1896_v9, %s9173_s19 }
 0x33e   : > { %v1813_v13 = vpop.f32.mrf.mxu2 }
 0x33f   : > { %v1899_v22 = vadd.f32 %v1898_v16, %v1813_v13 }
 0x340   : > { %v1921_v58 = vpop.f32.mrf.mxu1 }
 0x348   : > { %v1924_v7 = vpop.f32.mrf.mxu1 }
 0x350   : > { %v1927_v17 = vpop.f32.mrf.mxu1 }
 0x358   : > { %v1930_v24 = vpop.f32.mrf.mxu1 }
 0x361   : > { %v1833_v8 = vpop.f32.mrf.mxu3 }
 0x362   : > { %v1919_v31 = vadd.f32 %v1918_v61, %v1833_v8  ;;  %v2053_v8 = vld [vmem:[#allocation9 + $0x1f0] sm:$0xff] }
 0x363   : > { %2185 = vmatpush.msra.mxu3 %v2053_v8 }
 0x369   : > { %v1836_v2 = vpop.f32.mrf.mxu3 }
 0x36a   : > { %v1922_v20 = vadd.f32 %v1921_v58, %v1836_v2  ;;  %v2051_v58 = vld [vmem:[#allocation9 + $0x1e0] sm:$0xff] }
 0x36b   : > { %2186 = vmatpush.msra.mxu3 %v2051_v58 }
 0x36c   : > { %v8299_v5 = vpack.i.bf16 %v1893_v0, %v1922_v20 }
 0x36e   : > { %8300 = vrot.lane.b32.xlu0 %v8299_v5, %s9173_s19 }
 0x371   : > { %v1839_v10 = vpop.f32.mrf.mxu3 }
 0x372   : > { %v1925_v12 = vadd.f32 %v1924_v7, %v1839_v10 }
 0x374   : > { %1953 = vrot.lane.b32.xlu1 %v1925_v12, %s9173_s19 }
 0x379   : > { %v1842_v26 = vpop.f32.mrf.mxu3 }
 0x37a   : > { %v1928_v27 = vadd.f32 %v1927_v17, %v1842_v26  ;;  %v2047_v26 = vld [vmem:[#allocation9 + $0x1c0] sm:$0xff] }
 0x37c   : > { %1959 = vrot.lane.b32.xlu1 %v1899_v22, %s9173_s19  ;;  %1957 = vrot.lane.b32.xlu0 %v1928_v27, %s9173_s19  ;;  %v2049_v22 = vld [vmem:[#allocation9 + $0x1d0] sm:$0xff] }
 0x37d   : > { %v10357_v27 = vld [vmem:[#allocation9 + $0x2f0] sm:$0xff]  ;;  %2187 = vmatpush.msra.mxu3 %v2049_v22 }
 0x37e   : > { %2208 = vmatpush.msrb.mxu0 %v10357_v27 }
 0x37f   : > { %2188 = vmatpush.msra.mxu3 %v2047_v26 }
 0x381   : > { %v1845_v28 = vpop.f32.mrf.mxu3 }
 0x382   : > { %v1931_v11 = vadd.f32 %v1930_v24, %v1845_v28  ;;  %v10360_v24 = vld [vmem:[#allocation9 + $0x2e0] sm:$0xff] }
 0x383   : > { %v10273_v43 = vpop.permute.xlu2 %1947  ;;  %2209 = vmatpush.msrb.mxu0 %v10360_v24 }
 0x384   : > { %1945 = vrot.lane.b32.xlu1 %v1919_v31, %s9173_s19  ;;  %1943 = vrot.lane.b32.xlu0 %v1887_v30, %s9173_s19  ;;  %v1982_v60 = vsel %vm1963_vm0, 0.0, %v10273_v43  ;;  %v2045_v30 = vld [vmem:[#allocation9 + $0x1b0] sm:$0xff] }
 0x385   : > { %1961 = vrot.lane.b32.xlu2 %v1931_v11, %s9173_s19  ;;  %v2114_v0 = vrot.slane %v1982_v60, 4  ;;  %v10363_v11 = vld [vmem:[#allocation9 + $0x2d0] sm:$0xff]  ;;  %2189 = vmatpush.msra.mxu3 %v2045_v30 }
 0x386   : > { %v10375_v60 = vld [vmem:[#allocation9 + $0x190] sm:$0xff]  ;;  %2210 = vmatpush.msrb.mxu0 %v10363_v11 }
 0x393   : > { %v10275_v23 = vpop.permute.xlu2 %1955 }
 0x394   : > { %v1984_v45 = vsel %vm1963_vm0, 0.0, %v10275_v23 }
 0x395   : > { %2136 = vrot.lane.b32.xlu0 %v1984_v45, %s9172_s0  ;;  %v2043_v45 = vld [vmem:[#allocation9 + $0x1a0] sm:$0xff] }
 0x396   : > { %2190 = vmatpush.msra.mxu3 %v2043_v45 }
 0x398   : > { %2191 = vmatpush.msra.mxu3 %v10375_v60 }
 0x3df   : > { %v1962_v28 = vpop.permute.xlu2 %1961 }
 0x3e0   : > { %v8301_v1 = vpop.permute.xlu0 %8300 }
 0x3e1   : > { %v8303_v35 = vunpack.i.h.bf16 %v8301_v1  ;;  %v8302_v55 = vunpack.i.l.bf16 %v8301_v1 }
 0x3e3   : > { %v1983_v39 = vsel %vm1963_vm0, 0.0, %v8303_v35  ;;  %v10343_v15 = vsel %vm1963_vm0, %v10273_v43, %v8302_v55 }
 0x3e4   : > { %v2115_v52 = vrot.slane %v1983_v39, 4  ;;  %v2117_v20 = vrot.slane %v10343_v15, 4 }
 0x3e6   : > { %v1954_v9 = vpop.permute.xlu1 %1953  ;;  %v2116_v5 = vsel %vm1159_vm6, %v2114_v0, %v2115_v52 }
 0x3e7   : > { %v1966_v61 = vsel %vm1963_vm0, %v8303_v35, %v1954_v9  ;;  %v1988_v1 = vsel %vm1963_vm0, %v1954_v9, 0.0 }
 0x3e8   : > { %v2118_v2 = vrot.slane %v1966_v61, 4  ;;  %v10381_v61 = vsel %vm1963_vm0, %v8302_v55, 0.0  ;;  %v2509_v0 = vrot.slane %v1988_v1, 4  ;;  %v10425_v1 = vld [vmem:[#allocation9 + $0x270] sm:$0xff] }
 0x3e9   : > { %v2508_v55 = vrot.slane %v10381_v61, 4 }
 0x3ea   : > { %v2119_v7 = vsel %vm1159_vm6, %v2117_v20, %v2118_v2  ;;  %v8309_v31 = vpack.i.bf16 %v2118_v2, %v2115_v52  ;;  %v10378_v52 = vld [vmem:[#allocation9 + $0x2c0] sm:$0xff]  ;;  %v10389_v20 = vld [vmem:[#allocation9 + $0x2b0] sm:$0xff] }
 0x3eb   : > { %v8304_v10 = vpack.i.bf16 %v2119_v7, %v2116_v5  ;;  %v2039_v2 = vld [vmem:[#allocation9 + $0x180] sm:$0xff]  ;;  %2211 = vmatpush.msrb.mxu0 %v10378_v52  ;;  %v10394_v5 = vld [vmem:[#allocation9 + $0x170] sm:$0xff] }
 0x3ec   : > { %v10396_v7 = vld [vmem:[#allocation9 + $0x3b0] sm:$0xff]  ;;  %2192 = vmatpush.msra.mxu3 %v2039_v2 }
 0x3ed   : > { %8305 = vrot.lane.b32.xlu2 %v8304_v10, %s9171_s26  ;;  %2212 = vmatpush.msrb.mxu0 %v10389_v20  ;;  %v10399_v10 = vld [vmem:[#allocation9 + $0x2a0] sm:$0xff] }
 0x3ee   : > { %v1960_v12 = vpop.permute.xlu1 %1959  ;;  %v1958_v13 = vpop.permute.xlu0 %1957  ;;  %2235 = vmatpush.msrb.mxu1 %v10396_v7  ;;  %2193 = vmatpush.msra.mxu3 %v10394_v5 }
 0x3ef   : > { %v1967_v16 = vsel %vm1963_vm0, %v10275_v23, %v1958_v13  ;;  %v1985_v17 = vsel %vm1963_vm0, 0.0, %v1960_v12  ;;  %v1968_v35 = vsel %vm1963_vm0, %v1960_v12, %v1962_v28  ;;  %v1989_v9 = vsel %vm1963_vm0, %v1958_v13, 0.0  ;;  %v10402_v13 = vld [vmem:[#allocation9 + $0x160] sm:$0xff]  ;;  %2213 = vmatpush.msrb.mxu0 %v10399_v10  ;;  %v10509_v23 = vld [vmem:[#allocation9 + $0x1a8] sm:$0xff] }
 0x3f0   : > { %2138 = vrot.lane.b32.xlu1 %v1967_v16, %s9172_s0  ;;  %2140 = vrot.lane.b32.xlu0 %v1985_v17, %s9172_s0  ;;  %v2510_v12 = vsel %vm1159_vm6, %v2508_v55, %v2509_v0  ;;  %v10407_v16 = vld [vmem:[#allocation9 + $0x290] sm:$0xff]  ;;  %v10418_v17 = vld [vmem:[#allocation9 + $0x3a0] sm:$0xff]  ;;  %15377 = vst [vmem:[#allocation47_spill] sm:$0xff] %v10509_v23 }
 0x3f1   : > { %2194 = vmatpush.msra.mxu3 %v10402_v13  ;;  %2214 = vmatpush.msrb.mxu0 %v10407_v16  ;;  %v10437_v55 = vld [vmem:[#allocation9 + $0x120] sm:$0xff] }
 0x3f2   : > { %2236 = vmatpush.msrb.mxu1 %v10418_v17 }
 0x3f5   : > { %8310 = vrot.lane.b32.xlu2 %v8309_v31, %s9171_s26  ;;  %v10421_v31 = vld [vmem:[#allocation9 + $0x140] sm:$0xff] }
 0x3f6   : > { %v10373_v39 = vpop.permute.xlu0 %1943 }
 0x3f7   : > { %7773 = vmatmul.msk.f32.vlgmr.msra.gmra.mxu2 %vm10366_vm1, %v10373_v39 }
 0x3f8   : > { %2142 = vrot.lane.b32.xlu1 %v1968_v35, %s9172_s0  ;;  %2523 = vrot.lane.b32.xlu0 %v1989_v9, %s9172_s0  ;;  %v1990_v35 = vsel %vm1963_vm0, %v1962_v28, 0.0  ;;  %v10430_v9 = vld [vmem:[#allocation9 + $0x130] sm:$0xff] }
 0x3f9   : > { %2562 = vmatpush.msra.mxu2 %v2053_v8  ;;  %v10409_v8 = vld [vmem:[#allocation9 + $0x150] sm:$0xff] }
 0x3fa   : > { %2195 = vmatpush.msra.mxu3 %v10409_v8  ;;  %v10445_v28 = vld [vmem:[#allocation9 + $0x110] sm:$0xff] }
 0x3fb   : > { %2563 = vmatpush.msra.mxu2 %v2051_v58  ;;  %v10416_v58 = vld [vmem:[#allocation9 + $0x280] sm:$0xff] }
 0x3fc   : > { %2215 = vmatpush.msrb.mxu0 %v10416_v58  ;;  %2196 = vmatpush.msra.mxu3 %v10421_v31 }
 0x3fd   : > { %2511 = vrot.lane.b32.xlu2 %v2510_v12, %s9171_s26  ;;  %2564 = vmatpush.msra.mxu2 %v2049_v22  ;;  %v10427_v22 = vld [vmem:[#allocation9 + $0x390] sm:$0xff]  ;;  %v10448_v12 = vld [vmem:[#allocation9 + $0x380] sm:$0xff] }
 0x3fe   : > { %2216 = vmatpush.msrb.mxu0 %v10425_v1  ;;  %2237 = vmatpush.msrb.mxu1 %v10427_v22 }
 0x3ff   : > { %7775 = vmatmul.msk.f32.gmra.mxu2 %vm10366_vm1, %v10273_v43  ;;  %2197 = vmatpush.msra.mxu3 %v10430_v9 }
 0x400   : > { %2513 = vrot.lane.b32.xlu1 %v2509_v0, %s9171_s26  ;;  %2565 = vmatpush.msra.mxu2 %v2047_v26  ;;  %v10435_v0 = vld [vmem:[#allocation9 + $0x260] sm:$0xff]  ;;  %v10443_v26 = vld [vmem:[#allocation9 + $0x250] sm:$0xff] }
 0x401   : > { %2217 = vmatpush.msrb.mxu0 %v10435_v0  ;;  %2198 = vmatpush.msra.mxu3 %v10437_v55 }
 0x402   : > { %2566 = vmatpush.msra.mxu2 %v2045_v30  ;;  %v10454_v30 = vld [vmem:[#allocation9 + $0x240] sm:$0xff]  ;;  %2238 = vmatpush.msrb.mxu1 %v10448_v12 }
 0x403   : > { %2218 = vmatpush.msrb.mxu0 %v10443_v26  ;;  %2199 = vmatpush.msra.mxu3 %v10445_v28 }
 0x404   : > { %2567 = vmatpush.msra.mxu2 %v2043_v45  ;;  %v10463_v45 = vld [vmem:[#allocation9 + $0x1f8] sm:$0xff]  ;;  %2239 = vmatpush.msrb.mxu1 %v10460_v62 }
 0x405   : > { %2525 = vrot.lane.b32.xlu2 %v1990_v35, %s9172_s0  ;;  %v10456_v35 = vld [vmem:[#allocation9 + $0x100] sm:$0xff]  ;;  %15372 = vst [vmem:[#allocation53_spill] sm:$0xff] %v10463_v45  ;;  %2219 = vmatpush.msrb.mxu0 %v10454_v30 }
 0x406   : > { %2568 = vmatpush.msra.mxu2 %v10375_v60  ;;  %2200 = vmatpush.msra.mxu3 %v10456_v35  ;;  %v10474_v60 = vld [vmem:[#allocation9 + $0x220] sm:$0xff] }
 0x407   : > { %7779 = vmatmul.msk.f32.vlgmr.msrb.gmra.mxu2 %vm10366_vm1, %v10373_v39  ;;  %2220 = vmatpush.msrb.mxu0 %v10465_v44  ;;  %v2137_v41 = vpop.permute.xlu0 %2136 }
 0x408   : > { %2569 = vmatpush.msra.mxu2 %v2039_v2  ;;  %2277 = vmatpush.msrb.mxu3 %v10463_v45  ;;  %v10489_v2 = vld [vmem:[#allocation9 + $0x340] sm:$0xff]  ;;  %v10494_v45 = vld [vmem:[#allocation9 + $0x1c8] sm:$0xff] }
 0x409   : > { %2240 = vmatpush.msrb.mxu1 %v10469_v14  ;;  %2221 = vmatpush.msrb.mxu0 %v10474_v60  ;;  %15375 = vst [vmem:[#allocation60_spill] sm:$0xff] %v10494_v45 }
 0x40a   : > { %2570 = vmatpush.msra.mxu2 %v10394_v5  ;;  %2278 = vmatpush.msrb.mxu3 %v10472_v54  ;;  %v2086_v5 = vld [vmem:[#allocation9 + $0x2f8] sm:$0xff] }
 0x40b   : > { %2241 = vmatpush.msrb.mxu1 %v10479_v25  ;;  %2222 = vmatpush.msrb.mxu0 %v10483_v21  ;;  %v10501_v54 = vld [vmem:[#allocation9 + $0x1b8] sm:$0xff] }
 0x40c   : > { %2279 = vmatpush.msrb.mxu3 %v10481_v49  ;;  %15376 = vst [vmem:[#allocation61_spill] sm:$0xff] %v10501_v54  ;;  %2571 = vmatpush.msra.mxu2 %v10402_v13  ;;  %v2082_v49 = vld [vmem:[#allocation9 + $0x2d8] sm:$0xff] }
 0x40d   : > { %2242 = vmatpush.msrb.mxu1 %v10489_v2  ;;  %2223 = vmatpush.msrb.mxu0 %v10496_v48  ;;  %v10514_v13 = vld [vmem:[#allocation9 + $0x198] sm:$0xff] }
 0x40e   : > { %2280 = vmatpush.msrb.mxu3 %v10494_v45  ;;  %2572 = vmatpush.msra.mxu2 %v10409_v8  ;;  %15378 = vst [vmem:[#allocation57_spill] sm:$0xff] %v10514_v13  ;;  %v2080_v45 = vld [vmem:[#allocation9 + $0x2c8] sm:$0xff]  ;;  %v2078_v8 = vld [vmem:[#allocation9 + $0x2b8] sm:$0xff] }
 0x40f   : > { %7781 = vmatmul.msk.f32.gmra.mxu2 %vm10366_vm1, %v10273_v43  ;;  %v2084_v43 = vld [vmem:[#allocation9 + $0x2e8] sm:$0xff]  ;;  %2300 = vmatpush.msra.mxu0 %v2086_v5 }
 0x410   : > { %2281 = vmatpush.msrb.mxu3 %v10501_v54  ;;  %2243 = vmatpush.msrb.mxu1 %v10505_v4  ;;  %v10522_v54 = vld [vmem:[#allocation9 + $0x178] sm:$0xff] }
 0x411   : > { %2301 = vmatpush.msra.mxu0 %v2084_v43  ;;  %2573 = vmatpush.msra.mxu2 %v10421_v31  ;;  %15380 = vst [vmem:[#allocation63_spill] sm:$0xff] %v10522_v54  ;;  %v10526_v31 = vld [vmem:[#allocation9 + $0x168] sm:$0xff] }
 0x412   : > { %2282 = vmatpush.msrb.mxu3 %v10509_v23  ;;  %15381 = vst [vmem:[#allocation65_spill] sm:$0xff] %v10526_v31  ;;  %v2074_v23 = vld [vmem:[#allocation9 + $0x298] sm:$0xff] }
 0x413   : > { %2302 = vmatpush.msra.mxu0 %v2082_v49  ;;  %2574 = vmatpush.msra.mxu2 %v10430_v9  ;;  %v10530_v9 = vld [vmem:[#allocation9 + $0x158] sm:$0xff] }
 0x414   : > { %2283 = vmatpush.msrb.mxu3 %v10514_v13  ;;  %15382 = vst [vmem:[#allocation62_spill] sm:$0xff] %v10530_v9  ;;  %v2072_v13 = vld [vmem:[#allocation9 + $0x288] sm:$0xff] }
 0x415   : > { %2303 = vmatpush.msra.mxu0 %v2080_v45  ;;  %2575 = vmatpush.msra.mxu2 %v10437_v55  ;;  %v10534_v55 = vld [vmem:[#allocation9 + $0x148] sm:$0xff] }
 0x416   : > { %2284 = vmatpush.msrb.mxu3 %v10518_v47  ;;  %15383 = vst [vmem:[#allocation58_spill] sm:$0xff] %v10534_v55  ;;  %v2070_v47 = vld [vmem:[#allocation9 + $0x278] sm:$0xff] }
 0x417   : > { %2304 = vmatpush.msra.mxu0 %v2078_v8  ;;  %2576 = vmatpush.msra.mxu2 %v10445_v28  ;;  %v10537_v28 = vld [vmem:[#allocation9 + $0x138] sm:$0xff] }
 0x418   : > { %2285 = vmatpush.msrb.mxu3 %v10522_v54  ;;  %15384 = vst [vmem:[#allocation67_spill] sm:$0xff] %v10537_v28  ;;  %v10540_v54 = vld [vmem:[#allocation9 + $0x128] sm:$0xff] }
 0x419   : > { %2305 = vmatpush.msra.mxu0 %v2076_v18  ;;  %2577 = vmatpush.msra.mxu2 %v10456_v35  ;;  %15385 = vst [vmem:[#allocation69_spill] sm:$0xff] %v10540_v54  ;;  %v10544_v35 = vld [vmem:[#allocation9 + $0x320] sm:$0xff] }
 0x41a   : > { %2286 = vmatpush.msrb.mxu3 %v10526_v31  ;;  %2244 = vmatpush.msrb.mxu1 %v10544_v35  ;;  %v2056_v31 = vld [vmem:[#allocation9 + $0x208] sm:$0xff] }
 0x41b   : > { %2677 = vmatpush.msrb.mxu2 %v2086_v5  ;;  %2306 = vmatpush.msra.mxu0 %v2074_v23  ;;  %v10546_v5 = vld [vmem:[#allocation9 + $0x118] sm:$0xff] }
 0x41c   : > { %2287 = vmatpush.msrb.mxu3 %v10530_v9  ;;  %15386 = vst [vmem:[#allocation66_spill] sm:$0xff] %v10546_v5  ;;  %v10568_v9 = vld [vmem:[#allocation9 + $0x388] sm:$0xff] }
 0x41d   : > { %2678 = vmatpush.msrb.mxu2 %v2084_v43  ;;  %2307 = vmatpush.msra.mxu0 %v2072_v13  ;;  %v2068_v43 = vld [vmem:[#allocation9 + $0x268] sm:$0xff] }
 0x41e   : > { %2288 = vmatpush.msrb.mxu3 %v10534_v55  ;;  %v10552_v55 = vld [vmem:[#allocation9 + $0x108] sm:$0xff] }
 0x41f   : > { %2679 = vmatpush.msrb.mxu2 %v2082_v49  ;;  %2308 = vmatpush.msra.mxu0 %v2070_v47  ;;  %v10550_v49 = vld [vmem:[#allocation9 + $0x310] sm:$0xff]  ;;  %15387 = vst [vmem:[#allocation64_spill] sm:$0xff] %v10552_v55 }
 0x420   : > { %2289 = vmatpush.msrb.mxu3 %v10537_v28  ;;  %2245 = vmatpush.msrb.mxu1 %v10550_v49  ;;  %v10562_v28 = vld [vmem:[#allocation9 + $0x3a8] sm:$0xff] }
 0x421   : > { %2680 = vmatpush.msrb.mxu2 %v2080_v45  ;;  %2309 = vmatpush.msra.mxu0 %v2068_v43  ;;  %v2066_v45 = vld [vmem:[#allocation9 + $0x258] sm:$0xff] }
 0x422   : > { %2290 = vmatpush.msrb.mxu3 %v10540_v54  ;;  %v2064_v54 = vld [vmem:[#allocation9 + $0x248] sm:$0xff] }
 0x423   : > { %2681 = vmatpush.msrb.mxu2 %v2078_v8  ;;  %2310 = vmatpush.msra.mxu0 %v2066_v45  ;;  %v10556_v8 = vld [vmem:[#allocation9 + $0x300] sm:$0xff] }
 0x424   : > { %2291 = vmatpush.msrb.mxu3 %v10546_v5  ;;  %2246 = vmatpush.msrb.mxu1 %v10556_v8  ;;  %v2062_v5 = vld [vmem:[#allocation9 + $0x238] sm:$0xff] }
 0x425   : > { %2682 = vmatpush.msrb.mxu2 %v2076_v18  ;;  %v10558_v18 = vld [vmem:[#allocation9 + $0x3b8] sm:$0xff]  ;;  %2311 = vmatpush.msra.mxu0 %v2064_v54 }
 0x426   : > { %2292 = vmatpush.msrb.mxu3 %v10552_v55  ;;  %2327 = vmatpush.msra.mxu1 %v10558_v18  ;;  %v10565_v55 = vld [vmem:[#allocation9 + $0x398] sm:$0xff] }
 0x427   : > { %2683 = vmatpush.msrb.mxu2 %v2074_v23  ;;  %2312 = vmatpush.msra.mxu0 %v2062_v5  ;;  %v2060_v23 = vld [vmem:[#allocation9 + $0x228] sm:$0xff] }
 0x428   : > { %2328 = vmatpush.msra.mxu1 %v10562_v28 }
 0x429   : > { %2684 = vmatpush.msrb.mxu2 %v2072_v13  ;;  %2313 = vmatpush.msra.mxu0 %v2060_v23  ;;  %v2058_v13 = vld [vmem:[#allocation9 + $0x218] sm:$0xff] }
 0x42a   : > { %2329 = vmatpush.msra.mxu1 %v10565_v55 }
 0x42b   : > { %2685 = vmatpush.msrb.mxu2 %v2070_v47  ;;  %2314 = vmatpush.msra.mxu0 %v2058_v13  ;;  %v10574_v47 = vld [vmem:[#allocation9 + $0x368] sm:$0xff] }
 0x42c   : > { %2330 = vmatpush.msra.mxu1 %v10568_v9 }
 0x42d   : > { %2686 = vmatpush.msrb.mxu2 %v2068_v43  ;;  %2315 = vmatpush.msra.mxu0 %v2056_v31  ;;  %v10577_v43 = vld [vmem:[#allocation9 + $0x358] sm:$0xff] }
 0x42e   : > { %2331 = vmatpush.msra.mxu1 %v10571_v46 }
 0x42f   : > { %2687 = vmatpush.msrb.mxu2 %v2066_v45  ;;  %v10580_v45 = vld [vmem:[#allocation9 + $0x348] sm:$0xff] }
 0x430   : > { %2332 = vmatpush.msra.mxu1 %v10574_v47  ;;  %15388 = vst [vmem:[#allocation71_spill] sm:$0xff] %v10580_v45 }
 0x431   : > { %2688 = vmatpush.msrb.mxu2 %v2064_v54  ;;  %v10586_v54 = vld [vmem:[#allocation9 + $0x328] sm:$0xff] }
 0x432   : > { %2333 = vmatpush.msra.mxu1 %v10577_v43  ;;  %15390 = vst [vmem:[#allocation68_spill] sm:$0xff] %v10586_v54 }
 0x433   : > { %2689 = vmatpush.msrb.mxu2 %v2062_v5  ;;  %v10589_v5 = vld [vmem:[#allocation9 + $0x318] sm:$0xff] }
 0x434   : > { %2334 = vmatpush.msra.mxu1 %v10580_v45  ;;  %15391 = vst [vmem:[#allocation70_spill] sm:$0xff] %v10589_v5 }
 0x435   : > { %2690 = vmatpush.msrb.mxu2 %v2060_v23  ;;  %v10592_v23 = vld [vmem:[#allocation9 + $0x308] sm:$0xff] }
 0x436   : > { %2335 = vmatpush.msra.mxu1 %v10583_v3  ;;  %15392 = vst [vmem:[#allocation75_spill] sm:$0xff] %v10592_v23 }
 0x437   : > { %2691 = vmatpush.msrb.mxu2 %v2058_v13  ;;  %v1946_v13 = vpop.permute.xlu1 %1945 }
 0x438   : > { %2336 = vmatpush.msra.mxu1 %v10586_v54  ;;  %v10598_v3 = vsel %vm1963_vm0, %v10373_v39, %v1946_v13 }
 0x439   : > { %2692 = vmatpush.msrb.mxu2 %v2056_v31  ;;  %v1986_v31 = vsel %vm1963_vm0, %v1946_v13, 0.0  ;;  %v2111_v13 = vld [vmem:[#allocation10] sm:$0x3] }
 0x43a   : > { %2337 = vmatpush.msra.mxu1 %v10589_v5 }
 0x43c   : > { %2338 = vmatpush.msra.mxu1 %v10592_v23 }
 0x447   : > { %v8306_v42 = vpop.permute.xlu2 %8305 }
 0x448   : > { %v8308_v63 = vunpack.i.h.bf16 %v8306_v42  ;;  %v8307_v45 = vunpack.i.l.bf16 %v8306_v42 }
 0x44a   : > { %v2128_v54 = vsel %vm979_vm2, %v8307_v45, %v8308_v63  ;;  %v2148_v5 = vsel %vm979_vm2, %v10598_v3, %v8307_v45  ;;  %v10604_v57 = vsel %vm979_vm2, %v1986_v31, %v8308_v63  ;;  %v10732_v31 = vperm.slane %v2111_v13, 0 }
 0x44b   : > { %v2150_v23 = vsel %vm1154_vm5, %v2128_v54, %v2137_v41  ;;  %2201 = vmatmul.f32.vlgmr.msra.gmra.mxu3 %v2148_v5  ;;  %2578 = vmatmul.f32.vlgmr.msra.gmra.mxu2 %v10604_v57  ;;  %v15427_v54 = vld [vmem:[#allocation67_spill] sm:$0xff] }
 0x44c   : > { %2585 = vmatpush.msra.mxu3 %v10357_v27  ;;  %2224 = vmatmul.f32.vlgmr.msrb.gmra.mxu0 %v2150_v23 }
 0x44d   : > { %2612 = vmatpush.msrb.mxu0 %v10396_v7 }
 0x44e   : > { %2586 = vmatpush.msra.mxu3 %v10360_v24 }
 0x44f   : > { %v8311_v42 = vpop.permute.xlu2 %8310  ;;  %2613 = vmatpush.msrb.mxu0 %v10418_v17  ;;  %v15410_v17 = vld [vmem:[#allocation56_spill] sm:$0xff] }
 0x450   : > { %v10612_v39 = vunpack.i.h.bf16 %v8311_v42  ;;  %v8312_v45 = vunpack.i.l.bf16 %v8311_v42  ;;  %2587 = vmatpush.msra.mxu3 %v10363_v11 }
 0x451   : > { %2614 = vmatpush.msrb.mxu0 %v10427_v22 }
 0x452   : > { %2588 = vmatpush.msra.mxu3 %v10378_v52  ;;  %v2149_v27 = vsel %vm979_vm2, %v10343_v15, %v8312_v45  ;;  %v10622_v7 = vsel %vm979_vm2, %v10381_v61, %v10612_v39  ;;  %v2129_v11 = vsel %vm979_vm2, %v8312_v45, %v10612_v39 }
 0x453   : > { %2204 = vmatmul.f32.gmra.mxu3 %v2149_v27  ;;  %2581 = vmatmul.f32.gmra.mxu2 %v10622_v7 }
 0x454   : > { %2589 = vmatpush.msra.mxu3 %v10389_v20  ;;  %2615 = vmatpush.msrb.mxu0 %v10448_v12  ;;  %v15407_v20 = vld [vmem:[#allocation75_spill] sm:$0xff]  ;;  %v15414_v12 = vld [vmem:[#allocation46_spill] sm:$0xff] }
 0x456   : > { %2590 = vmatpush.msra.mxu3 %v10399_v10  ;;  %2616 = vmatpush.msrb.mxu0 %v10460_v62  ;;  %v15408_v10 = vld [vmem:[#allocation55_spill] sm:$0xff] }
 0x457   : > { %v2512_v24 = vpop.permute.xlu2 %2511 }
 0x458   : > { %2591 = vmatpush.msra.mxu3 %v10407_v16  ;;  %2617 = vmatpush.msrb.mxu0 %v10469_v14  ;;  %v2515_v14 = vsel %vm979_vm2, %v8308_v63, %v2512_v24 }
 0x45a   : > { %2592 = vmatpush.msra.mxu3 %v10416_v58  ;;  %2618 = vmatpush.msrb.mxu0 %v10479_v25  ;;  %v15409_v58 = vld [vmem:[#allocation39_spill] sm:$0xff] }
 0x45b   : > { %2293 = vmatmul.f32.vlgmr.msrb.gmra.mxu3 %v2148_v5  ;;  %v15428_v5 = vld [vmem:[#allocation69_spill] sm:$0xff] }
 0x45c   : > { %2593 = vmatpush.msra.mxu3 %v10425_v1  ;;  %2619 = vmatpush.msrb.mxu0 %v10489_v2  ;;  %v15411_v1 = vld [vmem:[#allocation53_spill] sm:$0xff]  ;;  %v15417_v2 = vld [vmem:[#allocation60_spill] sm:$0xff] }
 0x45e   : > { %2594 = vmatpush.msra.mxu3 %v10435_v0  ;;  %2620 = vmatpush.msrb.mxu0 %v10505_v4  ;;  %v15412_v0 = vld [vmem:[#allocation50_spill] sm:$0xff] }
 0x45f   : > { %v2526_v16 = vpop.permute.xlu2 %2525 }
 0x460   : > { %2595 = vmatpush.msra.mxu3 %v10443_v26  ;;  %2621 = vmatpush.msrb.mxu0 %v10544_v35  ;;  %v15413_v26 = vld [vmem:[#allocation51_spill] sm:$0xff]  ;;  %v15421_v35 = vld [vmem:[#allocation57_spill] sm:$0xff] }
 0x462   : > { %2596 = vmatpush.msra.mxu3 %v10454_v30  ;;  %v2139_v62 = vpop.permute.xlu1 %2138  ;;  %v2141_v25 = vpop.permute.xlu0 %2140  ;;  %2622 = vmatpush.msrb.mxu0 %v10550_v49  ;;  %v15415_v30 = vld [vmem:[#allocation44_spill] sm:$0xff]  ;;  %v15422_v49 = vld [vmem:[#allocation54_spill] sm:$0xff] }
 0x463   : > { %v2144_v52 = vsel %vm1154_vm5, %v2137_v41, %v2139_v62  ;;  %2296 = vmatmul.f32.gmra.mxu3 %v2149_v27  ;;  %v2151_v4 = vsel %vm1154_vm5, %v2129_v11, %v2141_v25  ;;  %v2533_v61 = vsel %vm1154_vm5, %v2515_v14, %v2139_v62 }
 0x464   : > { %2597 = vmatpush.msra.mxu3 %v10465_v44  ;;  %2227 = vmatmul.f32.gmra.mxu0 %v2151_v4  ;;  %v15406_v44 = vld [vmem:[#allocation45_spill] sm:$0xff] }
 0x465   : > { %7776 = vmatmul.msk.f32.vlgmr.msrb.gmra.mxu1 %vm2157_vm3, %v2144_v52  ;;  %2693 = vmatmul.f32.vlgmr.msrb.gmra.mxu2 %v2533_v61 }
 0x466   : > { %2539 = vmatpush.msrb.mxu1 %v10234_v29  ;;  %2598 = vmatpush.msra.mxu3 %v10474_v60  ;;  %v15416_v60 = vld [vmem:[#allocation59_spill] sm:$0xff] }
 0x467   : > { %2623 = vmatpush.msrb.mxu0 %v10556_v8  ;;  %v15423_v8 = vld [vmem:[#allocation63_spill] sm:$0xff] }
 0x468   : > { %2540 = vmatpush.msrb.mxu1 %v10237_v32  ;;  %2599 = vmatpush.msra.mxu3 %v10483_v21  ;;  %v15405_v21 = vld [vmem:[#allocation43_spill] sm:$0xff] }
 0x46a   : > { %2541 = vmatpush.msrb.mxu1 %v10241_v6  ;;  %2600 = vmatpush.msra.mxu3 %v10496_v48  ;;  %v2143_v41 = vpop.permute.xlu1 %2142 }
 0x46b   : > { %v2145_v63 = vsel %vm1154_vm5, %v2141_v25, %v2143_v41  ;;  %2601 = vmatmul.f32.vlgmr.msra.gmra.mxu3 %v2533_v61  ;;  %v2528_v22 = vsel %vm1154_vm5, %v2143_v41, %v2526_v16 }
 0x46c   : > { %2704 = vmatpush.msrb.mxu3 %v10558_v18  ;;  %2542 = vmatpush.msrb.mxu1 %v10245_v33  ;;  %v15393_v33 = vld [vmem:[#allocation48_spill] sm:$0xff]  ;;  %v15424_v18 = vld [vmem:[#allocation65_spill] sm:$0xff] }
 0x46d   : > { %7777 = vmatmul.msk.f32.gmra.mxu1 %vm2157_vm3, %v2145_v63  ;;  %2316 = vmatmul.f32.vlgmr.msra.gmra.mxu0 %v2150_v23  ;;  %v15430_v23 = vld [vmem:[#allocation64_spill] sm:$0xff] }
 0x46e   : > { %2543 = vmatpush.msrb.mxu1 %v10248_v34  ;;  %2705 = vmatpush.msrb.mxu3 %v10562_v28  ;;  %v2524_v34 = vpop.permute.xlu0 %2523  ;;  %v15420_v28 = vld [vmem:[#allocation47_spill] sm:$0xff] }
 0x46f   : > { %2631 = vmatpush.msra.mxu0 %v10292_v50  ;;  %v2527_v48 = vsel %vm1154_vm5, %v2139_v62, %v2524_v34  ;;  %v15399_v50 = vld [vmem:[#allocation52_spill] sm:$0xff] }
 0x470   : > { %2544 = vmatpush.msrb.mxu1 %v10251_v36  ;;  %2706 = vmatpush.msrb.mxu3 %v10565_v55  ;;  %v15394_v36 = vld [vmem:[#allocation40_spill] sm:$0xff]  ;;  %v15419_v55 = vld [vmem:[#allocation61_spill] sm:$0xff] }
 0x471   : > { %2632 = vmatpush.msra.mxu0 %v10294_v51  ;;  %v15401_v51 = vld [vmem:[#allocation68_spill] sm:$0xff] }
 0x472   : > { %2545 = vmatpush.msrb.mxu1 %v10254_v37  ;;  %2707 = vmatpush.msrb.mxu3 %v10568_v9  ;;  %v2514_v29 = vpop.permute.xlu1 %2513  ;;  %v15395_v37 = vld [vmem:[#allocation71_spill] sm:$0xff] }
 0x473   : > { %2633 = vmatpush.msra.mxu0 %v10297_v53  ;;  %v2516_v32 = vsel %vm979_vm2, %v10612_v39, %v2514_v29  ;;  %v15402_v53 = vld [vmem:[#allocation49_spill] sm:$0xff]  ;;  %v15418_v9 = vld [vmem:[#allocation127_spill] sm:$0xff] }
 0x474   : > { %2546 = vmatpush.msrb.mxu1 %v10258_v38  ;;  %2708 = vmatpush.msrb.mxu3 %v10571_v46  ;;  %v2534_v6 = vsel %vm1154_vm5, %v2516_v32, %v2143_v41  ;;  %v15396_v38 = vld [vmem:[#allocation41_spill] sm:$0xff]  ;;  %v10742_v41 = vperm.slane %v2111_v13, 1 }
 0x475   : > { %2634 = vmatpush.msra.mxu0 %v10301_v56  ;;  %7782 = vmatmul.msk.f32.vlgmr.msra.gmra.mxu1 %vm2157_vm3, %v2144_v52  ;;  %v15398_v46 = vld [vmem:[#allocation73_spill] sm:$0xff]  ;;  %v15403_v56 = vld [vmem:[#allocation38_spill] sm:$0xff] }
 0x476   : > { %2319 = vmatmul.f32.gmra.mxu0 %v2151_v4  ;;  %2547 = vmatpush.msrb.mxu1 %v10261_v40  ;;  %v15397_v40 = vld [vmem:[#allocation37_spill] sm:$0xff] }
 0x477   : > { %2709 = vmatpush.msrb.mxu3 %v10574_v47  ;;  %2635 = vmatpush.msra.mxu0 %v10303_v19  ;;  %v15404_v19 = vld [vmem:[#allocation70_spill] sm:$0xff] }
 0x478   : > { %2604 = vmatmul.f32.gmra.mxu3 %v2534_v6  ;;  %2696 = vmatmul.f32.gmra.mxu2 %v2534_v6  ;;  %v15425_v47 = vld [vmem:[#allocation62_spill] sm:$0xff] }
 0x479   : > { %2548 = vmatpush.msrb.mxu1 %v10263_v59  ;;  %2710 = vmatpush.msrb.mxu3 %v10577_v43  ;;  %v15400_v59 = vld [vmem:[#allocation42_spill] sm:$0xff] }
 0x47a   : > { %2636 = vmatpush.msra.mxu0 %v15393_v33  ;;  %v15426_v43 = vld [vmem:[#allocation58_spill] sm:$0xff] }
 0x47b   : > { %2549 = vmatpush.msrb.mxu1 %v15394_v36  ;;  %2711 = vmatpush.msrb.mxu3 %v15395_v37 }
 0x47c   : > { %2637 = vmatpush.msra.mxu0 %v15396_v38 }
 0x47d   : > { %2550 = vmatpush.msrb.mxu1 %v15397_v40  ;;  %2712 = vmatpush.msrb.mxu3 %v15398_v46 }
 0x47e   : > { %2638 = vmatpush.msra.mxu0 %v15399_v50  ;;  %7783 = vmatmul.msk.f32.gmra.mxu1 %vm2157_vm3, %v2145_v63 }
 0x47f   : > { %2551 = vmatpush.msrb.mxu1 %v15400_v59  ;;  %7792 = vmatmul.msk.f32.vlgmr.msrb.gmra.mxu0 %vm2157_vm3, %v2527_v48 }
 0x480   : > { %2713 = vmatpush.msrb.mxu3 %v15401_v51  ;;  %2639 = vmatpush.msra.mxu0 %v15402_v53 }
 0x481   : > { %2552 = vmatpush.msrb.mxu1 %v15403_v56 }
 0x482   : > { %2714 = vmatpush.msrb.mxu3 %v15404_v19  ;;  %2640 = vmatpush.msra.mxu0 %v15405_v21 }
 0x483   : > { %2553 = vmatpush.msrb.mxu1 %v15406_v44 }
 0x484   : > { %2715 = vmatpush.msrb.mxu3 %v15407_v20  ;;  %2641 = vmatpush.msra.mxu0 %v15408_v10 }
 0x485   : > { %7794 = vmatmul.msk.f32.vlgmr.msrb.gmra.mxu3 %vm2157_vm3, %v2527_v48  ;;  %2554 = vmatpush.msrb.mxu1 %v15409_v58 }
 0x486   : > { %2642 = vmatpush.msra.mxu0 %v15410_v17  ;;  %2555 = vmatmul.f32.vlgmr.msrb.gmra.mxu1 %v10598_v3 }
 0x487   : > { %2654 = vmatpush.msra.mxu1 %v15411_v1  ;;  %7793 = vmatmul.msk.f32.gmra.mxu0 %vm2157_vm3, %v2528_v22 }
 0x488   : > { %2643 = vmatpush.msra.mxu0 %v15412_v0 }
 0x489   : > { %2655 = vmatpush.msra.mxu1 %v15413_v26 }
 0x48a   : > { %2644 = vmatpush.msra.mxu0 %v15414_v12 }
 0x48b   : > { %2656 = vmatpush.msra.mxu1 %v15415_v30 }
 0x48c   : > { %2645 = vmatpush.msra.mxu0 %v15416_v60 }
 0x48d   : > { %2657 = vmatpush.msra.mxu1 %v15417_v2  ;;  %7795 = vmatmul.msk.f32.gmra.mxu3 %vm2157_vm3, %v2528_v22 }
 0x48e   : > { %2646 = vmatpush.msra.mxu0 %v15418_v9  ;;  %2558 = vmatmul.f32.gmra.mxu1 %v10343_v15 }
 0x48f   : > { %2658 = vmatpush.msra.mxu1 %v15419_v55  ;;  %2647 = vmatmul.f32.vlgmr.msra.gmra.mxu0 %v10598_v3  ;;  %v15429_v3 = vld [vmem:[#allocation66_spill] sm:$0xff] }
 0x491   : > { %2659 = vmatpush.msra.mxu1 %v15420_v28 }
 0x493   : > { %2660 = vmatpush.msra.mxu1 %v15421_v35 }
 0x495   : > { %2661 = vmatpush.msra.mxu1 %v15422_v49 }
 0x497   : > { %2662 = vmatpush.msra.mxu1 %v15423_v8  ;;  %2650 = vmatmul.f32.gmra.mxu0 %v10343_v15  ;;  %v2179_v15 = vpop.f32.mrf.mxu2 }
 0x498   : > { %v2180_v39 = vadd.f32 %v2179_v15, %v10732_v31 }
 0x499   : > { %2663 = vmatpush.msra.mxu1 %v15424_v18 }
 0x49b   : > { %2664 = vmatpush.msra.mxu1 %v15425_v47 }
 0x49d   : > { %2665 = vmatpush.msra.mxu1 %v15426_v43 }
 0x49f   : > { %2666 = vmatpush.msra.mxu1 %v15427_v54  ;;  %v2182_v24 = vpop.f32.mrf.mxu2 }
 0x4a1   : > { %2667 = vmatpush.msra.mxu1 %v15428_v5 }
 0x4a3   : > { %2668 = vmatpush.msra.mxu1 %v15429_v3 }
 0x4a5   : > { %2669 = vmatpush.msra.mxu1 %v15430_v23 }
 0x4a6   : > { %2670 = vmatmul.f32.vlgmr.msra.gmra.mxu1 %v10604_v57  ;;  %v2183_v57 = vadd.f32 %v2182_v24, %v10732_v31 }
 0x4a7   : > { %v2271_v32 = vpop.f32.mrf.mxu2 }
 0x4a8   : > { %v2272_v37 = vadd.f32 %v2271_v32, %v10742_v41 }
 0x4ae   : > { %2673 = vmatmul.f32.gmra.mxu1 %v10622_v7 }
 0x4af   : > { %v2274_v44 = vpop.f32.mrf.mxu2 }
 0x4b0   : > { %v2275_v17 = vadd.f32 %v2274_v44, %v10742_v41 }
 0x4c9   : > { %v2225_v45 = vpop.f32.mrf.mxu0 }
 0x4ce   : > { %v2202_v42 = vpop.f32.mrf.mxu3 }
 0x4cf   : > { %v2203_v27 = vadd.f32 %v2202_v42, %v2180_v39 }
 0x4d1   : > { %v2226_v14 = vadd.f32 %v2225_v45, %v2203_v27 }
 0x4d6   : > { %v2205_v62 = vpop.f32.mrf.mxu3 }
 0x4d7   : > { %v2206_v4 = vadd.f32 %v2205_v62, %v2183_v57 }
 0x4de   : > { %v2294_v36 = vpop.f32.mrf.mxu3 }
 0x4df   : > { %v2295_v46 = vadd.f32 %v2294_v36, %v2272_v37 }
 0x4e1   : > { %v2228_v52 = vpop.f32.mrf.mxu0 }
 0x4e2   : > { %v2248_v25 = vpop.f32.mrf.mxu1  ;;  %v2229_v63 = vadd.f32 %v2228_v52, %v2206_v4 }
 0x4e3   : > { %v10735_v11 = vadd.f32 %v2248_v25, %v2226_v14 }
 0x4e5   : > { %v10739_v7 = vmul.f32 0.70710677, %v10735_v11 }
 0x4e6   : > { %v2297_v16 = vpop.f32.mrf.mxu3 }
 0x4e7   : > { %v2350_v61 = vand.u32 2147483647, %v10739_v7  ;;  %v2298_v30 = vadd.f32 %v2297_v16, %v2275_v17 }
 0x4e9   : > { %v2354_v29 = vmul.f32 0.3275911, %v2350_v61  ;;  %v2458_v18 = vsub.f32 0.0, %v2350_v61 }
 0x4ea   : > { %v2251_v6 = vpop.f32.mrf.mxu1  ;;  %v2317_v40 = vpop.f32.mrf.mxu0 }
 0x4eb   : > { %v2358_v33 = vadd.f32 1.0, %v2354_v29  ;;  %v10744_v34 = vadd.f32 %v2251_v6, %v2229_v63  ;;  %v2318_v50 = vadd.f32 %v2317_v40, %v2295_v46  ;;  %v2462_v39 = vmul.f32 %v2458_v18, %v2350_v61  ;;  %v2579_v63 = vpop.f32.mrf.mxu2 }
 0x4ed   : > { %8435 = vrcp.f32 %v2358_v33  ;;  %v10748_v38 = vmul.f32 0.70710677, %v10744_v34  ;;  %v2373_v22 = vand.u32 2147483648, %v2358_v33  ;;  %v2371_v12 = vand.u32 2147483647, %v2358_v33 }
 0x4ee   : > { %vm2367_vm4 = vweird.f32 %v2358_v33  ;;  %v2466_v6 = vmul.f32 1.442695, %v2462_v39 }
 0x4ef   : > { %v10751_v48 = vand.u32 2147483647, %v10748_v38  ;;  %v2374_v55 = vor.u32 1.1754944e-38, %v2373_v22  ;;  %vm2372_vm8 = vcmp.eq.f32.partialorder %v2371_v12, 8.507059e+37 }
 0x4f1   : > { %v2356_v59 = vmul.f32 0.3275911, %v10751_v48  ;;  %v2460_v14 = vsub.f32 0.0, %v10751_v48 }
 0x4f2   : > { %v2340_v51 = vpop.f32.mrf.mxu1 }
 0x4f3   : > { %v8436_v53 = vpop.eup %8435  ;;  %v10754_v56 = vadd.f32 %v2340_v51, %v2318_v50  ;;  %v2360_v21 = vadd.f32 1.0, %v2356_v59  ;;  %v2320_v0 = vpop.f32.mrf.mxu0  ;;  %v2464_v46 = vmul.f32 %v2460_v14, %v10751_v48 }
 0x4f4   : > { %v2363_v19 = vmul.f32 %v8436_v53, %v2358_v33  ;;  %vm2368_vm5 = vweird.f32 %v8436_v53  ;;  %v2321_v28 = vadd.f32 %v2320_v0, %v2298_v30 }
 0x4f5   : > { %v10757_v20 = vmul.f32 0.70710677, %v10754_v56  ;;  %8437 = vrcp.f32 %v2360_v21  ;;  %vm2369_vm7 = vmor %vm2367_vm4, %vm2368_vm5  ;;  %v2403_v3 = vand.u32 2147483648, %v2360_v21  ;;  %v2401_v15 = vand.u32 2147483647, %v2360_v21 }
 0x4f6   : > { %v2364_v10 = vsub.f32 1.0, %v2363_v19  ;;  %vm2397_vm10 = vweird.f32 %v2360_v21  ;;  %v2470_v0 = vmul.f32 1.442695, %v2464_v46 }
 0x4f7   : > { %v10760_v58 = vand.u32 2147483647, %v10757_v20  ;;  %v2404_v25 = vor.u32 1.1754944e-38, %v2403_v3  ;;  %vm2402_vm12 = vcmp.eq.f32.partialorder %v2401_v15, 8.507059e+37 }
 0x4f8   : > { %v2365_v1 = vmul.f32 %v8436_v53, %v2364_v10 }
 0x4f9   : > { %v2355_v26 = vmul.f32 0.3275911, %v10760_v58 }
 0x4fa   : > { %v2366_v60 = vadd.f32 %v8436_v53, %v2365_v1 }
 0x4fb   : > { %v10764_v2 = vadd.f32 1.0, %v2355_v26  ;;  %v8438_v9 = vpop.eup %8437  ;;  %v2343_v35 = vpop.f32.mrf.mxu1 }
 0x4fc   : > { %v2370_v49 = vsel %vm2369_vm7, %v8436_v53, %v2366_v60  ;;  %v2393_v8 = vmul.f32 %v8438_v9, %v2360_v21  ;;  %v10767_v47 = vadd.f32 %v2343_v35, %v2321_v28  ;;  %vm2398_vm9 = vweird.f32 %v8438_v9  ;;  %v2625_v50 = vpop.f32.mrf.mxu0  ;;  %v2602_v53 = vpop.f32.mrf.mxu3 }
 0x4fd   : > { %8439 = vrcp.f32 %v10764_v2  ;;  %v10769_v43 = vsel %vm2372_vm8, %v2374_v55, %v2370_v49  ;;  %vm2399_vm11 = vmor %vm2397_vm10, %vm2398_vm9  ;;  %v2388_v21 = vand.u32 2147483648, %v10764_v2  ;;  %v2386_v16 = vand.u32 2147483647, %v10764_v2 }
 0x4fe   : > { %v2394_v54 = vsub.f32 1.0, %v2393_v8  ;;  %v2422_v5 = vmul.f32 1.0614054, %v10769_v43  ;;  %v10773_v23 = vmul.f32 0.70710677, %v10767_v47  ;;  %vm2382_vm14 = vweird.f32 %v10764_v2  ;;  %v2582_v8 = vpop.f32.mrf.mxu2 }
 0x4ff   : > { %v2389_v26 = vor.u32 1.1754944e-38, %v2388_v21  ;;  %vm2387_vm1 = vcmp.eq.f32.partialorder %v2386_v16, 8.507059e+37  ;;  %vm2482_vm8 = vcmp.lt.f32.partialorder %v10739_v7, 0.0  ;;  %vm2484_vm9 = vcmp.lt.f32.partialorder %v10748_v38, 0.0 }
 0x500   : > { %v2395_v13 = vmul.f32 %v8438_v9, %v2394_v54  ;;  %v7784_v42 = vadd.f32 -1.4531521, %v2422_v5  ;;  %v10776_v45 = vand.u32 2147483647, %v10773_v23  ;;  %v2459_v54 = vsub.f32 0.0, %v10760_v58 }
 0x502   : > { %v2396_v24 = vadd.f32 %v8438_v9, %v2395_v13  ;;  %v2430_v62 = vmul.f32 %v7784_v42, %v10769_v43  ;;  %v2357_v57 = vmul.f32 0.3275911, %v10776_v45 }
 0x503   : > { %v8440_v27 = vpop.eup %8439  ;;  %v2556_v4 = vpop.f32.mrf.mxu1 }
 0x504   : > { %v2378_v52 = vmul.f32 %v8440_v27, %v10764_v2  ;;  %v2400_v29 = vsel %vm2399_vm11, %v8438_v9, %v2396_v24  ;;  %v2557_v61 = vadd.f32 %v2556_v4, %v10732_v31  ;;  %v2434_v32 = vadd.f32 1.4214138, %v2430_v62  ;;  %v2605_v24 = vpop.f32.mrf.mxu3 }
 0x505   : > { %v10783_v33 = vsel %vm2402_vm12, %v2404_v25, %v2400_v29  ;;  %v10785_v37 = vadd.f32 1.0, %v2357_v57  ;;  %vm2383_vm13 = vweird.f32 %v8440_v27  ;;  %v2628_v25 = vpop.f32.mrf.mxu0 }
 0x506   : > { %v2379_v36 = vsub.f32 1.0, %v2378_v52  ;;  %v2424_v40 = vmul.f32 1.0614054, %v10783_v33  ;;  %v2580_v59 = vadd.f32 %v2579_v63, %v2557_v61  ;;  %v2438_v51 = vmul.f32 %v2434_v32, %v10769_v43  ;;  %vm2384_vm15 = vmor %vm2382_vm14, %vm2383_vm13 }
 0x507   : > { %8441 = vrcp.f32 %v10785_v37  ;;  %v2416_v13 = vand.u32 2147483647, %v10785_v37  ;;  %v2418_v52 = vand.u32 2147483648, %v10785_v37  ;;  %v2463_v32 = vmul.f32 %v2459_v54, %v10760_v58 }
 0x508   : > { %v2380_v19 = vmul.f32 %v8440_v27, %v2379_v36  ;;  %v7786_v44 = vadd.f32 -1.4531521, %v2424_v40  ;;  %v2603_v10 = vadd.f32 %v2602_v53, %v2580_v59  ;;  %v7788_v17 = vadd.f32 -0.28449672, %v2438_v51 }
 0x509   : > { %8443 = vpow2.f32 %v2466_v6  ;;  %vm2412_vm5 = vweird.f32 %v10785_v37  ;;  %v2419_v59 = vor.u32 1.1754944e-38, %v2418_v52  ;;  %v2461_v51 = vsub.f32 0.0, %v10776_v45 }
 0x50a   : > { %v2381_v1 = vadd.f32 %v8440_v27, %v2380_v19  ;;  %v2432_v48 = vmul.f32 %v7786_v44, %v10783_v33  ;;  %v10795_v22 = vadd.f32 %v2625_v50, %v2603_v10  ;;  %v2446_v30 = vmul.f32 %v7788_v17, %v10769_v43 }
 0x50b   : > { %v2559_v12 = vpop.f32.mrf.mxu1  ;;  %8445 = vpow2.f32 %v2470_v0  ;;  %vm2417_vm7 = vcmp.eq.f32.partialorder %v2416_v13, 8.507059e+37  ;;  %v2496_v13 = vmul.f32 0.5, %v10744_v34  ;;  %vm2901_vm14 = vcmask 97280  }
 0x50c   : > { %v2385_v60 = vsel %vm2384_vm15, %v8440_v27, %v2381_v1  ;;  %v2436_v9 = vadd.f32 1.4214138, %v2432_v48  ;;  %v10799_v55 = vmul.f32 0.70710677, %v10795_v22  ;;  %v2560_v2 = vadd.f32 %v2559_v12, %v10732_v31 }
 0x50d   : > { %v8442_v28 = vpop.eup %8441  ;;  %v2450_v35 = vadd.f32 0.2548296, %v2446_v30  ;;  %v10802_v49 = vsel %vm2387_vm1, %v2389_v26, %v2385_v60  ;;  %v2468_v1 = vmul.f32 1.442695, %v2463_v32  ;;  %v2465_v60 = vmul.f32 %v2461_v51, %v10776_v45 }
 0x50e   : > { %v2440_v18 = vmul.f32 %v2436_v9, %v10783_v33  ;;  %v2408_v5 = vmul.f32 %v8442_v28, %v10785_v37  ;;  %v10808_v3 = vand.u32 2147483647, %v10799_v55  ;;  %v2583_v15 = vadd.f32 %v2582_v8, %v2560_v2  ;;  %v2648_v9 = vpop.f32.mrf.mxu0 }
 0x50f   : > { %v2454_v31 = vmul.f32 %v2450_v35, %v10769_v43  ;;  %v2423_v42 = vmul.f32 1.0614054, %v10802_v49  ;;  %v8444_v39 = vpop.eup %8443  ;;  %vm2413_vm3 = vweird.f32 %v8442_v28  ;;  %vm2483_vm1 = vcmp.lt.f32.partialorder %v10757_v20, 0.0 }
 0x510   : > { %v7790_v27 = vadd.f32 -0.28449672, %v2440_v18  ;;  %v2409_v14 = vsub.f32 1.0, %v2408_v5  ;;  %v2731_v62 = vmul.f32 0.3275911, %v10808_v3  ;;  %v2606_v57 = vadd.f32 %v2605_v24, %v2583_v15  ;;  %vm2414_vm4 = vmor %vm2412_vm5, %vm2413_vm3 }
 0x511   : > { %v2474_v4 = vmul.f32 %v8444_v39, %v2454_v31  ;;  %v7785_v63 = vadd.f32 -1.4531521, %v2423_v42  ;;  %v8446_v19 = vpop.eup %8445  ;;  %v2472_v31 = vmul.f32 1.442695, %v2465_v60 }
 0x512   : > { %v2448_v29 = vmul.f32 %v7790_v27, %v10783_v33  ;;  %v2410_v61 = vmul.f32 %v8442_v28, %v2409_v14  ;;  %v10816_v43 = vadd.f32 1.0, %v2731_v62  ;;  %v10819_v6 = vadd.f32 %v2628_v25, %v2606_v57 }
 0x513   : > { %v2478_v36 = vsub.f32 1.0, %v2474_v4  ;;  %v2431_v40 = vmul.f32 %v7785_v63, %v10802_v49  ;;  %v2649_v62 = vadd.f32 %v2648_v9, %v10742_v41 }
 0x514   : > { %v2452_v46 = vadd.f32 0.2548296, %v2448_v29  ;;  %v2411_v50 = vadd.f32 %v8442_v28, %v2410_v61  ;;  %8447 = vrcp.f32 %v10816_v43  ;;  %v10826_v53 = vmul.f32 0.70710677, %v10819_v6 }
 0x515   : > { %v2435_v44 = vadd.f32 1.4214138, %v2431_v40  ;;  %v2486_v37 = vsub.f32 0.0, %v2478_v36  ;;  %8449 = vpow2.f32 %v2468_v1  ;;  %vm2744_vm11 = vweird.f32 %v10816_v43  ;;  %v2694_v40 = vpop.f32.mrf.mxu2 }
 0x516   : > { %v2456_v58 = vmul.f32 %v2452_v46, %v10783_v33  ;;  %v2415_v21 = vsel %vm2414_vm4, %v8442_v28, %v2411_v50  ;;  %v10832_v16 = vand.u32 2147483647, %v10826_v53  ;;  %v2494_v28 = vmul.f32 0.5, %v10735_v11 }
 0x517   : > { %v10829_v10 = vsel %vm2417_vm7, %v2419_v59, %v2415_v21  ;;  %v2439_v0 = vmul.f32 %v2435_v44, %v10802_v49  ;;  %v2490_v18 = vsel %vm2482_vm8, %v2486_v37, %v2478_v36  ;;  %v2748_v38 = vand.u32 2147483647, %v10816_v43  ;;  %v10859_v59 = vld [vmem:[#allocation12] sm:$0xff]  ;;  %v2651_v21 = vpop.f32.mrf.mxu0 }
 0x518   : > { %v2476_v17 = vmul.f32 %v8446_v19, %v2456_v58  ;;  %v2425_v48 = vmul.f32 1.0614054, %v10829_v10  ;;  %v2733_v26 = vmul.f32 0.3275911, %v10832_v16  ;;  %v2498_v42 = vadd.f32 1.0, %v2490_v18  ;;  %v2717_v19 = vpop.f32.mrf.mxu3 }
 0x519   : > { %v7789_v2 = vadd.f32 -0.28449672, %v2439_v0  ;;  %v2750_v4 = vand.u32 2147483648, %v10816_v43  ;;  %vm2749_vm13 = vcmp.eq.f32.partialorder %v2748_v38, 8.507059e+37  ;;  %v2835_v37 = vsub.f32 0.0, %v10808_v3 }
 0x51a   : > { %v8448_v33 = vpop.eup %8447  ;;  %v2480_v12 = vsub.f32 1.0, %v2476_v17  ;;  %v7787_v30 = vadd.f32 -1.4531521, %v2425_v48  ;;  %v10841_v8 = vadd.f32 1.0, %v2733_v26  ;;  %v2502_v46 = vmul.f32 %v2498_v42, %v2494_v28 }
 0x51b   : > { %v2740_v35 = vmul.f32 %v8448_v33, %v10816_v43  ;;  %v2447_v5 = vmul.f32 %v7789_v2, %v10802_v49  ;;  %vm2745_vm10 = vweird.f32 %v8448_v33  ;;  %v8450_v63 = vpop.eup %8449  ;;  %v2751_v43 = vor.u32 1.1754944e-38, %v2750_v4 }
 0x51c   : > { %v2488_v54 = vsub.f32 0.0, %v2480_v12  ;;  %v2433_v7 = vmul.f32 %v7787_v30, %v10829_v10  ;;  %8451 = vrcp.f32 %v10841_v8  ;;  %vm10854_vm12 = vmor %vm2744_vm11, %vm2745_vm10  ;;  %v2780_v30 = vand.u32 2147483648, %v10841_v8 }
 0x51d   : > { %v2741_v45 = vsub.f32 1.0, %v2740_v35  ;;  %v2451_v27 = vadd.f32 0.2548296, %v2447_v5  ;;  %8453 = vpow2.f32 %v2472_v31  ;;  %v2652_v60 = vadd.f32 %v2651_v21, %v10742_v41  ;;  %v10888_v31 = vld [vmem:[#allocation12 + $0x8] sm:$0xff] }
 0x51e   : > { %v2492_v15 = vsel %vm2484_vm9, %v2488_v54, %v2480_v12  ;;  %v2437_v11 = vadd.f32 1.4214138, %v2433_v7  ;;  %v2778_v12 = vand.u32 2147483647, %v10841_v8  ;;  %vm2774_vm3 = vweird.f32 %v10841_v8 }
 0x51f   : > { %v2500_v39 = vadd.f32 1.0, %v2492_v15  ;;  %v2742_v24 = vmul.f32 %v8448_v33, %v2741_v45  ;;  %v2455_v52 = vmul.f32 %v2451_v27, %v10802_v49  ;;  %v2839_v15 = vmul.f32 %v2835_v37, %v10808_v3  ;;  %v10915_v37 = vld [vmem:[#allocation13] sm:$0xff] }
 0x520   : > { %v2441_v14 = vmul.f32 %v2437_v11, %v10829_v10  ;;  %v2837_v11 = vsub.f32 0.0, %v10832_v16  ;;  %vm2779_vm4 = vcmp.eq.f32.partialorder %v2778_v12, 8.507059e+37  ;;  %vm2485_vm7 = vcmp.lt.f32.partialorder %v10773_v23, 0.0 }
 0x521   : > { %v2504_v34 = vmul.f32 %v2500_v39, %v2496_v13  ;;  %v2743_v57 = vadd.f32 %v8448_v33, %v2742_v24  ;;  %v2475_v50 = vmul.f32 %v8450_v63, %v2455_v52  ;;  %v2720_v52 = vpop.f32.mrf.mxu3  ;;  %v2843_v63 = vmul.f32 1.442695, %v2839_v15 }
 0x522   : > { %v7791_v29 = vadd.f32 -0.28449672, %v2441_v14  ;;  %v8452_v36 = vpop.eup %8451  ;;  %v2497_v14 = vmul.f32 0.5, %v10767_v47 }
 0x523   : > { %v2671_v25 = vpop.f32.mrf.mxu1  ;;  %7824 = vmatpush.msk.msrb.mxu1 %vm1159_vm6, %v2504_v34  ;;  %v2747_v49 = vsel %vm10854_vm12, %v8448_v33, %v2743_v57  ;;  %v2770_v58 = vmul.f32 %v8452_v36, %v10841_v8  ;;  %v2479_v17 = vsub.f32 1.0, %v2475_v50  ;;  %vm2775_vm15 = vweird.f32 %v8452_v36  ;;  %v8454_v9 = vpop.eup %8453 }
 0x524   : > { %v2672_v61 = vadd.f32 %v2671_v25, %v2649_v62  ;;  %v2449_v51 = vmul.f32 %v7791_v29, %v10829_v10  ;;  %v10866_v1 = vsel %vm2749_vm13, %v2751_v43, %v2747_v49  ;;  %vm2776_vm5 = vmor %vm2774_vm3, %vm2775_vm15  ;;  %v2697_v8 = vpop.f32.mrf.mxu2  ;;  %v2495_v49 = vmul.f32 0.5, %v10754_v56 }
 0x525   : > { %3071 = vmatpush.msrb.mxu1 %v2502_v46  ;;  %v2771_v0 = vsub.f32 1.0, %v2770_v58  ;;  %v2799_v33 = vmul.f32 1.0614054, %v10866_v1  ;;  %v2487_v7 = vsub.f32 0.0, %v2479_v17  ;;  %vm2859_vm13 = vcmp.lt.f32.partialorder %v10799_v55, 0.0 }
 0x526   : > { %v2695_v44 = vadd.f32 %v2694_v40, %v2672_v61  ;;  %v2453_v48 = vadd.f32 0.2548296, %v2449_v51  ;;  %7825 = vmatmul.msk.f32.vlgmr.msrb.gmra.mxu1 %vm2901_vm14, %v10859_v59  ;;  %vm2861_vm15 = vcmp.lt.f32.partialorder %v10826_v53, 0.0  ;;  %v2871_v53 = vmul.f32 0.5, %v10795_v22  ;;  %v2895_v22 = vld [vmem:[#allocation13 + $0x18] sm:$0xff] }
 0x527   : > { %v2772_v28 = vmul.f32 %v8452_v36, %v2771_v0  ;;  %v7796_v18 = vadd.f32 -1.4531521, %v2799_v33  ;;  %v2491_v4 = vsel %vm2483_vm1, %v2487_v7, %v2479_v17 }
 0x528   : > { %v10868_v26 = vadd.f32 %v2717_v19, %v2695_v44  ;;  %v2457_v2 = vmul.f32 %v2453_v48, %v10829_v10  ;;  %v2781_v10 = vor.u32 1.1754944e-38, %v2780_v30  ;;  %v2499_v46 = vadd.f32 1.0, %v2491_v4 }
 0x529   : > { %v2773_v13 = vadd.f32 %v8452_v36, %v2772_v28  ;;  %v2807_v42 = vmul.f32 %v7796_v18, %v10866_v1 }
 0x52a   : > { %v10878_v35 = vmul.f32 0.70710677, %v10868_v26  ;;  %v2477_v5 = vmul.f32 %v8454_v9, %v2457_v2  ;;  %v2503_v44 = vmul.f32 %v2499_v46, %v2495_v49  ;;  %v10924_v2 = vld [vmem:[#allocation12 + $0x10] sm:$0xff] }
 0x52b   : > { %v2674_v54 = vpop.f32.mrf.mxu1  ;;  %v2777_v27 = vsel %vm2776_vm5, %v8452_v36, %v2773_v13  ;;  %v2811_v3 = vadd.f32 1.4214138, %v2807_v42  ;;  %v2841_v36 = vmul.f32 %v2837_v11, %v10832_v16 }
 0x52c   : > { %v10883_v45 = vand.u32 2147483647, %v10878_v35  ;;  %v2675_v41 = vadd.f32 %v2674_v54, %v2652_v60  ;;  %v2481_v39 = vsub.f32 1.0, %v2477_v5  ;;  %v2782_v62 = vsel %vm2779_vm4, %v2781_v10, %v2777_v27 }
 0x52d   : > { %v2801_v25 = vmul.f32 1.0614054, %v2782_v62  ;;  %v2815_v47 = vmul.f32 %v2811_v3, %v10866_v1  ;;  %v2847_v16 = vmul.f32 1.442695, %v2841_v36  ;;  %v10937_v3 = vld [vmem:[#allocation12 + $0x18] sm:$0xff]  ;;  %vm2860_vm4 = vcmp.lt.f32.partialorder %v10878_v35, 0.0 }
 0x52e   : > { %v2732_v24 = vmul.f32 0.3275911, %v10883_v45  ;;  %v2698_v38 = vadd.f32 %v2697_v8, %v2675_v41  ;;  %v2489_v34 = vsub.f32 0.0, %v2481_v39  ;;  %7826 = vmatmul.msk.f32.gmra.mxu1 %vm2901_vm14, %v10888_v31  ;;  %v10930_v41 = vld [vmem:[#allocation13 + $0x8] sm:$0xff] }
 0x52f   : > { %v7798_v32 = vadd.f32 -1.4531521, %v2801_v25  ;;  %v7800_v50 = vadd.f32 -0.28449672, %v2815_v47 }
 0x530   : > { %v10893_v57 = vadd.f32 1.0, %v2732_v24  ;;  %v10900_v29 = vadd.f32 %v2720_v52, %v2698_v38  ;;  %v2493_v61 = vsel %vm2485_vm7, %v2489_v34, %v2481_v39  ;;  %v2836_v38 = vsub.f32 0.0, %v10883_v45 }
 0x531   : > { %v2501_v40 = vadd.f32 1.0, %v2493_v61  ;;  %v2809_v23 = vmul.f32 %v7798_v32, %v2782_v62  ;;  %v2823_v19 = vmul.f32 %v7800_v50, %v10866_v1 }
 0x532   : > { %8455 = vrcp.f32 %v10893_v57  ;;  %v10906_v20 = vmul.f32 0.70710677, %v10900_v29  ;;  %v2763_v13 = vand.u32 2147483647, %v10893_v57  ;;  %vm2759_vm9 = vweird.f32 %v10893_v57 }
 0x533   : > { %v2505_v43 = vmul.f32 %v2501_v40, %v2497_v14  ;;  %8457 = vpow2.f32 %v2843_v63  ;;  %v2813_v58 = vadd.f32 1.4214138, %v2809_v23  ;;  %v2827_v17 = vadd.f32 0.2548296, %v2823_v19  ;;  %v10946_v40 = vld [vmem:[#allocation13 + $0x10] sm:$0xff] }
 0x534   : > { %v10910_v51 = vand.u32 2147483647, %v10906_v20  ;;  %8459 = vpow2.f32 %v2847_v16  ;;  %vm2764_vm11 = vcmp.eq.f32.partialorder %v2763_v13, 8.507059e+37  ;;  %v2840_v36 = vmul.f32 %v2836_v38, %v10883_v45  ;;  %v2897_v38 = vld [vmem:[#allocation13 + $0x28] sm:$0xff] }
 0x535   : > { %7804 = vmatpush.msk.msra.mxu3 %vm1159_vm6, %v2505_v43  ;;  %v2817_v56 = vmul.f32 %v2813_v58, %v2782_v62  ;;  %v2831_v12 = vmul.f32 %v2827_v17, %v10866_v1  ;;  %v2765_v1 = vand.u32 2147483648, %v10893_v57  ;;  %v2873_v23 = vmul.f32 0.5, %v10819_v6  ;;  %v10951_v58 = vld [vmem:[#allocation12 + $0x20] sm:$0xff] }
 0x536   : > { %v2734_v21 = vmul.f32 0.3275911, %v10910_v51  ;;  %7827 = vmatmul.msk.f32.gmra.mxu1 %vm2901_vm14, %v10924_v2  ;;  %v2838_v6 = vsub.f32 0.0, %v10910_v51  ;;  %vm2862_vm7 = vcmp.lt.f32.partialorder %v10906_v20, 0.0 }
 0x537   : > { %2950 = vmatpush.msra.mxu3 %v2503_v44  ;;  %v7802_v30 = vadd.f32 -0.28449672, %v2817_v56  ;;  %v2766_v39 = vor.u32 1.1754944e-38, %v2765_v1  ;;  %v2845_v44 = vmul.f32 1.442695, %v2840_v36 }
 0x538   : > { %v8456_v48 = vpop.eup %8455  ;;  %v10918_v33 = vadd.f32 1.0, %v2734_v21  ;;  %7805 = vmatmul.msk.f32.vlgmr.msra.gmra.mxu3 %vm2901_vm14, %v10915_v37 }
 0x539   : > { %v2755_v0 = vmul.f32 %v8456_v48, %v10893_v57  ;;  %v8458_v60 = vpop.eup %8457  ;;  %v2825_v28 = vmul.f32 %v7802_v30, %v2782_v62  ;;  %vm2760_vm8 = vweird.f32 %v8456_v48  ;;  %v2842_v30 = vmul.f32 %v2838_v6, %v10910_v51 }
 0x53a   : > { %8461 = vrcp.f32 %v10918_v33  ;;  %v2851_v18 = vmul.f32 %v8458_v60, %v2831_v12  ;;  %v8460_v10 = vpop.eup %8459  ;;  %vm2761_vm10 = vmor %vm2759_vm9, %vm2760_vm8  ;;  %v2793_v57 = vand.u32 2147483647, %v10918_v33  ;;  %v2795_v4 = vand.u32 2147483648, %v10918_v33 }
 0x53b   : > { %v2756_v9 = vsub.f32 1.0, %v2755_v0  ;;  %v2829_v7 = vadd.f32 0.2548296, %v2825_v28  ;;  %vm2789_vm1 = vweird.f32 %v10918_v33  ;;  %8463 = vpow2.f32 %v2845_v44  ;;  %v2888_v28 = vld [vmem:[#allocation12 + $0x28] sm:$0xff] }
 0x53c   : > { %v2855_v5 = vsub.f32 1.0, %v2851_v18  ;;  %v2796_v55 = vor.u32 1.1754944e-38, %v2795_v4  ;;  %vm2794_vm5 = vcmp.eq.f32.partialorder %v2793_v57, 8.507059e+37  ;;  %v2849_v1 = vmul.f32 1.442695, %v2842_v30 }
 0x53d   : > { %v2757_v54 = vmul.f32 %v8456_v48, %v2756_v9  ;;  %v2833_v11 = vmul.f32 %v2829_v7, %v2782_v62  ;;  %v2874_v57 = vmul.f32 0.5, %v10900_v29  ;;  %v2899_v29 = vld [vmem:[#allocation13 + $0x38] sm:$0xff]  ;;  %vm3412_vm8 = vcmask 392192  }
 0x53e   : > { %v2863_v14 = vsub.f32 0.0, %v2855_v5  ;;  %7828 = vmatmul.msk.f32.gmra.mxu1 %vm2901_vm14, %v10937_v3  ;;  %8465 = vpow2.f32 %v2849_v1 }
 0x53f   : > { %v2758_v15 = vadd.f32 %v8456_v48, %v2757_v54  ;;  %v2853_v27 = vmul.f32 %v8460_v10, %v2833_v11  ;;  %v2896_v10 = vld [vmem:[#allocation13 + $0x20] sm:$0xff] }
 0x540   : > { %v8462_v42 = vpop.eup %8461  ;;  %7806 = vmatmul.msk.f32.gmra.mxu3 %vm2901_vm14, %v10930_v41  ;;  %v2867_v61 = vsel %vm2859_vm13, %v2863_v14, %v2855_v5 }
 0x541   : > { %v2762_v8 = vsel %vm2761_vm10, %v8456_v48, %v2758_v15  ;;  %v2785_v24 = vmul.f32 %v8462_v42, %v10918_v33  ;;  %v2857_v25 = vsub.f32 1.0, %v2853_v27  ;;  %vm2790_vm12 = vweird.f32 %v8462_v42  ;;  %v8464_v13 = vpop.eup %8463 }
 0x542   : > { %v2767_v34 = vsel %vm2764_vm11, %v2766_v39, %v2762_v8  ;;  %vm2791_vm3 = vmor %vm2789_vm1, %vm2790_vm12  ;;  %v2875_v19 = vadd.f32 1.0, %v2867_v61  ;;  %v2898_v61 = vld [vmem:[#allocation13 + $0x30] sm:$0xff] }
 0x543   : > { %v2786_v52 = vsub.f32 1.0, %v2785_v24  ;;  %v2800_v62 = vmul.f32 1.0614054, %v2767_v34  ;;  %v2865_v63 = vsub.f32 0.0, %v2857_v25 }
 0x544   : > { %v2879_v0 = vmul.f32 %v2875_v19, %v2871_v53  ;;  %v8466_v27 = vpop.eup %8465 }
 0x545   : > { %v2787_v47 = vmul.f32 %v8462_v42, %v2786_v52  ;;  %v7797_v32 = vadd.f32 -1.4531521, %v2800_v62  ;;  %v2869_v46 = vsel %vm2861_vm15, %v2865_v63, %v2857_v25  ;;  %v2890_v25 = vld [vmem:[#allocation12 + $0x38] sm:$0xff] }
 0x546   : > { %v2877_v43 = vadd.f32 1.0, %v2869_v46  ;;  %7829 = vmatmul.msk.f32.gmra.mxu1 %vm2901_vm14, %v10951_v58 }
 0x547   : > { %v2788_v50 = vadd.f32 %v8462_v42, %v2787_v47  ;;  %v2808_v49 = vmul.f32 %v7797_v32, %v2767_v34  ;;  %v2891_v32 = vld [vmem:[#allocation12 + $0x40] sm:$0xff] }
 0x548   : > { %7807 = vmatmul.msk.f32.gmra.mxu3 %vm2901_vm14, %v10946_v40  ;;  %v2881_v21 = vmul.f32 %v2877_v43, %v2873_v23 }
 0x549   : > { %v2792_v16 = vsel %vm2791_vm3, %v8462_v42, %v2788_v50  ;;  %v2812_v45 = vadd.f32 1.4214138, %v2808_v49 }
 0x54a   : > { %v2797_v17 = vsel %vm2794_vm5, %v2796_v55, %v2792_v16  ;;  %7834 = vmatpush.msk.msra.mxu2 %vm1159_vm6, %v2881_v21 }
 0x54b   : > { %v2802_v48 = vmul.f32 1.0614054, %v2797_v17  ;;  %v2816_v56 = vmul.f32 %v2812_v45, %v2767_v34 }
 0x54c   : > { %3115 = vmatpush.msra.mxu2 %v2879_v0 }
 0x54d   : > { %v7799_v33 = vadd.f32 -1.4531521, %v2802_v48  ;;  %v7801_v12 = vadd.f32 -0.28449672, %v2816_v56  ;;  %7835 = vmatmul.msk.f32.vlgmr.msra.gmra.mxu2 %vm2901_vm14, %v10859_v59  ;;  %v2889_v59 = vld [vmem:[#allocation12 + $0x30] sm:$0xff] }
 0x54e   : > { %7830 = vmatmul.msk.f32.gmra.mxu1 %vm2901_vm14, %v2888_v28 }
 0x54f   : > { %v2810_v60 = vmul.f32 %v7799_v33, %v2797_v17  ;;  %v2824_v9 = vmul.f32 %v7801_v12, %v2767_v34 }
 0x550   : > { %7808 = vmatmul.msk.f32.gmra.mxu3 %vm2901_vm14, %v2895_v22 }
 0x551   : > { %v2814_v18 = vadd.f32 1.4214138, %v2810_v60  ;;  %v2828_v54 = vadd.f32 0.2548296, %v2824_v9 }
 0x553   : > { %v2818_v7 = vmul.f32 %v2814_v18, %v2797_v17  ;;  %v2832_v5 = vmul.f32 %v2828_v54, %v2767_v34 }
 0x555   : > { %v7803_v15 = vadd.f32 -0.28449672, %v2818_v7  ;;  %v2852_v51 = vmul.f32 %v8464_v13, %v2832_v5  ;;  %7836 = vmatmul.msk.f32.gmra.mxu2 %vm2901_vm14, %v10888_v31 }
 0x556   : > { %7831 = vmatmul.msk.f32.gmra.mxu1 %vm2901_vm14, %v2889_v59 }
 0x557   : > { %v2826_v11 = vmul.f32 %v7803_v15, %v2797_v17  ;;  %v2856_v8 = vsub.f32 1.0, %v2852_v51 }
 0x558   : > { %7809 = vmatmul.msk.f32.gmra.mxu3 %vm2901_vm14, %v2896_v10 }
 0x559   : > { %v2830_v42 = vadd.f32 0.2548296, %v2826_v11  ;;  %v2864_v14 = vsub.f32 0.0, %v2856_v8 }
 0x55b   : > { %v2834_v39 = vmul.f32 %v2830_v42, %v2797_v17  ;;  %v2868_v52 = vsel %vm2860_vm4, %v2864_v14, %v2856_v8  ;;  %v11023_v42 = vld [vmem:[#allocation15 + $0xe0] sm:$0xff]  ;;  %v11027_v8 = vld [vmem:[#allocation15 + $0xd0] sm:$0xff] }
 0x55c   : > { %v2876_v63 = vadd.f32 1.0, %v2868_v52 }
 0x55d   : > { %v2854_v24 = vmul.f32 %v8466_v27, %v2834_v39  ;;  %7837 = vmatmul.msk.f32.gmra.mxu2 %vm2901_vm14, %v10924_v2  ;;  %v2872_v2 = vmul.f32 0.5, %v10868_v26  ;;  %v2900_v26 = vld [vmem:[#allocation13 + $0x40] sm:$0xff]  ;;  %v11030_v39 = vld [vmem:[#allocation15 + $0xc0] sm:$0xff] }
 0x55e   : > { %7832 = vmatmul.msk.f32.gmra.mxu1 %vm2901_vm14, %v2890_v25 }
 0x55f   : > { %v2858_v34 = vsub.f32 1.0, %v2854_v24  ;;  %v2880_v35 = vmul.f32 %v2876_v63, %v2872_v2  ;;  %v11040_v2 = vld [vmem:[#allocation15 + $0xb0] sm:$0xff] }
 0x560   : > { %7810 = vmatmul.msk.f32.gmra.mxu3 %vm2901_vm14, %v2897_v38 }
 0x561   : > { %v2866_v31 = vsub.f32 0.0, %v2858_v34 }
 0x563   : > { %v2870_v62 = vsel %vm2862_vm7, %v2866_v31, %v2858_v34 }
 0x564   : > { %v2878_v4 = vadd.f32 1.0, %v2870_v62 }
 0x565   : > { %7838 = vmatmul.msk.f32.gmra.mxu2 %vm2901_vm14, %v10937_v3 }
 0x566   : > { %v2882_v47 = vmul.f32 %v2878_v4, %v2874_v57  ;;  %7833 = vmatmul.msk.f32.gmra.mxu1 %vm2901_vm14, %v2891_v32 }
 0x568   : > { %7814 = vmatpush.msk.msrb.mxu0 %vm1159_vm6, %v2882_v47  ;;  %7811 = vmatmul.msk.f32.gmra.mxu3 %vm2901_vm14, %v2898_v61  ;;  %vm3198_vm6 = vcmask 64512  }
 0x56a   : > { %2994 = vmatpush.msrb.mxu0 %v2880_v35  ;;  %v11042_v35 = vld [vmem:[#allocation15 + $0xa0] sm:$0xff] }
 0x56b   : > { %7815 = vmatmul.msk.f32.vlgmr.msrb.gmra.mxu0 %vm2901_vm14, %v10915_v37 }
 0x56d   : > { %7839 = vmatmul.msk.f32.gmra.mxu2 %vm2901_vm14, %v10951_v58 }
 0x570   : > { %7812 = vmatmul.msk.f32.gmra.mxu3 %vm2901_vm14, %v2899_v29 }
 0x573   : > { %7816 = vmatmul.msk.f32.gmra.mxu0 %vm2901_vm14, %v10930_v41 }
 0x575   : > { %7840 = vmatmul.msk.f32.gmra.mxu2 %vm2901_vm14, %v2888_v28 }
 0x578   : > { %7813 = vmatmul.msk.f32.gmra.mxu3 %vm2901_vm14, %v2900_v26 }
 0x57b   : > { %7817 = vmatmul.msk.f32.gmra.mxu0 %vm2901_vm14, %v10946_v40 }
 0x57d   : > { %7841 = vmatmul.msk.f32.gmra.mxu2 %vm2901_vm14, %v2889_v59  ;;  %v11021_v59 = vld [vmem:[#allocation15 + $0xf0] sm:$0xff] }
 0x57e   : > { %3419 = vmatpush.msrb.mxu3 %v11021_v59 }
 0x580   : > { %3420 = vmatpush.msrb.mxu3 %v11023_v42 }
 0x582   : > { %3421 = vmatpush.msrb.mxu3 %v11027_v8 }
 0x583   : > { %7818 = vmatmul.msk.f32.gmra.mxu0 %vm2901_vm14, %v2895_v22 }
 0x584   : > { %3422 = vmatpush.msrb.mxu3 %v11030_v39 }
 0x585   : > { %7842 = vmatmul.msk.f32.gmra.mxu2 %vm2901_vm14, %v2890_v25 }
 0x586   : > { %3423 = vmatpush.msrb.mxu3 %v11040_v2 }
 0x588   : > { %3424 = vmatpush.msrb.mxu3 %v11042_v35 }
 0x58b   : > { %7819 = vmatmul.msk.f32.gmra.mxu0 %vm2901_vm14, %v2896_v10 }
 0x58d   : > { %7843 = vmatmul.msk.f32.gmra.mxu2 %vm2901_vm14, %v2891_v32  ;;  %v11045_v32 = vld [vmem:[#allocation15 + $0x90] sm:$0xff] }
 0x58e   : > { %3425 = vmatpush.msrb.mxu3 %v11045_v32 }
 0x593   : > { %7820 = vmatmul.msk.f32.gmra.mxu0 %vm2901_vm14, %v2897_v38 }
 0x59b   : > { %7821 = vmatmul.msk.f32.gmra.mxu0 %vm2901_vm14, %v2898_v61 }
 0x5a3   : > { %7822 = vmatmul.msk.f32.gmra.mxu0 %vm2901_vm14, %v2899_v29  ;;  %v11001_v20 = vpop.f32.mrf.mxu1  ;;  %v11048_v29 = vld [vmem:[#allocation15 + $0x80] sm:$0xff] }
 0x5a4   : > { %3426 = vmatpush.msrb.mxu3 %v11048_v29 }
 0x5ab   : > { %7823 = vmatmul.msk.f32.gmra.mxu0 %vm2901_vm14, %v2900_v26  ;;  %v11004_v37 = vpop.f32.mrf.mxu1  ;;  %v11052_v26 = vld [vmem:[#allocation15 + $0x70] sm:$0xff]  ;;  %vm11092_vm14 = vmneg %vm3198_vm6 }
 0x5ac   : > { %3427 = vmatpush.msrb.mxu3 %v11052_v26 }
 0x5b3   : > { %v11006_v3 = vpop.f32.mrf.mxu1 }
 0x5bb   : > { %v2952_v41 = vpop.f32.mrf.mxu3  ;;  %v3082_v40 = vpop.f32.mrf.mxu1 }
 0x5bc   : > { %v3074_v52 = vadd.f32 %v11001_v20, %v2952_v41  ;;  %v11054_v20 = vld [vmem:[#allocation15 + $0x60] sm:$0xff]  ;;  %v11057_v41 = vld [vmem:[#allocation15 + $0x50] sm:$0xff] }
 0x5bd   : > { %3428 = vmatpush.msrb.mxu3 %v11054_v20 }
 0x5bf   : > { %3429 = vmatpush.msrb.mxu3 %v11057_v41 }
 0x5c3   : > { %v11008_v36 = vpop.f32.mrf.mxu3  ;;  %v3085_v50 = vpop.f32.mrf.mxu1 }
 0x5cb   : > { %v11010_v46 = vpop.f32.mrf.mxu3  ;;  %v3088_v55 = vpop.f32.mrf.mxu1 }
 0x5d0   : > { %v3117_v23 = vpop.f32.mrf.mxu2 }
 0x5d3   : > { %v2961_v49 = vpop.f32.mrf.mxu3  ;;  %v3091_v16 = vpop.f32.mrf.mxu1 }
 0x5d4   : > { %v3083_v28 = vadd.f32 %v3082_v40, %v2961_v49  ;;  %v11060_v40 = vld [vmem:[#allocation15 + $0x40] sm:$0xff] }
 0x5d5   : > { %15433 = vst [vmem:[#allocation77_spill] sm:$0xff] %v11060_v40  ;;  %3430 = vmatpush.msrb.mxu3 %v11060_v40  ;;  %v11066_v49 = vld [vmem:[#allocation15 + $0x20] sm:$0xff]  ;;  %v11322_v40 = vld [vmem:[#allocation15 + $0x68] sm:$0xff] }
 0x5d6   : > { %15435 = vst [vmem:[#allocation74_spill] sm:$0xff] %v11066_v49 }
 0x5d7   : > { %15461 = vst [vmem:[#allocation98_spill] sm:$0xff] %v11322_v40 }
 0x5d8   : > { %v3120_v19 = vpop.f32.mrf.mxu2 }
 0x5db   : > { %v2964_v43 = vpop.f32.mrf.mxu3  ;;  %v3094_v6 = vpop.f32.mrf.mxu1 }
 0x5dc   : > { %v3086_v51 = vadd.f32 %v3085_v50, %v2964_v43  ;;  %v11064_v50 = vld [vmem:[#allocation15 + $0x30] sm:$0xff]  ;;  %v11072_v43 = vld [vmem:[#allocation15] sm:$0xff] }
 0x5dd   : > { %15434 = vst [vmem:[#allocation72_spill] sm:$0xff] %v11064_v50  ;;  %3431 = vmatpush.msrb.mxu3 %v11064_v50  ;;  %v11313_v50 = vld [vmem:[#allocation15 + $0x310] sm:$0xff] }
 0x5de   : > { %15437 = vst [vmem:[#allocation81_spill] sm:$0xff] %v11072_v43 }
 0x5df   : > { %3432 = vmatpush.msrb.mxu3 %v11066_v49 }
 0x5e0   : > { %v11012_v45 = vpop.f32.mrf.mxu2 }
 0x5e3   : > { %v2967_v58 = vpop.f32.mrf.mxu3  ;;  %v3097_v12 = vpop.f32.mrf.mxu1 }
 0x5e4   : > { %v3089_v24 = vadd.f32 %v3088_v55, %v2967_v58 }
 0x5e8   : > { %v2996_v53 = vpop.f32.mrf.mxu0  ;;  %v3126_v56 = vpop.f32.mrf.mxu2 }
 0x5e9   : > { %v3118_v1 = vadd.f32 %v3117_v23, %v2996_v53  ;;  %v11069_v23 = vld [vmem:[#allocation15 + $0x10] sm:$0xff] }
 0x5ea   : > { %15436 = vst [vmem:[#allocation79_spill] sm:$0xff] %v11069_v23  ;;  %3433 = vmatpush.msrb.mxu3 %v11069_v23  ;;  %v11302_v23 = vld [vmem:[#allocation15 + $0x320] sm:$0xff] }
 0x5eb   : > { %v2970_v21 = vpop.f32.mrf.mxu3 }
 0x5ec   : > { %v3092_v44 = vadd.f32 %v3091_v16, %v2970_v21  ;;  %3434 = vmatpush.msrb.mxu3 %v11072_v43  ;;  %v11294_v43 = vld [vmem:[#allocation15 + $0x330] sm:$0xff] }
 0x5ee   : > { %3186 = vrot.lane.b32.xlu0 %v3092_v44, %s9174_s20 }
 0x5f0   : > { %v2999_v17 = vpop.f32.mrf.mxu0  ;;  %v3129_v60 = vpop.f32.mrf.mxu2 }
 0x5f1   : > { %v3121_v18 = vadd.f32 %v3120_v19, %v2999_v17 }
 0x5f3   : > { %v2973_v48 = vpop.f32.mrf.mxu3  ;;  %v8329_v5 = vpack.i.bf16 %v3121_v18, %v3118_v1 }
 0x5f4   : > { %v3095_v0 = vadd.f32 %v3094_v6, %v2973_v48 }
 0x5f6   : > { %3190 = vrot.lane.b32.xlu0 %v3095_v0, %s9174_s20 }
 0x5f8   : > { %v11016_v33 = vpop.f32.mrf.mxu0  ;;  %v3132_v15 = vpop.f32.mrf.mxu2 }
 0x5fb   : > { %v2976_v30 = vpop.f32.mrf.mxu3 }
 0x5fc   : > { %v3098_v22 = vadd.f32 %v3097_v12, %v2976_v30 }
 0x5fe   : > { %3194 = vrot.lane.b32.xlu0 %v3098_v22, %s9174_s20 }
 0x600   : > { %v3005_v9 = vpop.f32.mrf.mxu0  ;;  %v3135_v38 = vpop.f32.mrf.mxu2 }
 0x601   : > { %v3127_v54 = vadd.f32 %v3126_v56, %v3005_v9 }
 0x603   : > { %v8314_v7 = vpack.i.bf16 %v3127_v54, %v3083_v28 }
 0x605   : > { %8315 = vrot.lane.b32.xlu2 %v8314_v7, %s9174_s20 }
 0x606   : > { %8330 = vrot.lane.b32.xlu0 %v8329_v5, %s9174_s20 }
 0x608   : > { %v3008_v13 = vpop.f32.mrf.mxu0  ;;  %v3138_v62 = vpop.f32.mrf.mxu2 }
 0x609   : > { %v3130_v10 = vadd.f32 %v3129_v60, %v3008_v13 }
 0x60b   : > { %v8319_v11 = vpack.i.bf16 %v3130_v10, %v3086_v51 }
 0x60d   : > { %8320 = vrot.lane.b32.xlu2 %v8319_v11, %s9174_s20 }
 0x610   : > { %v3011_v27 = vpop.f32.mrf.mxu0  ;;  %v3141_v63 = vpop.f32.mrf.mxu2 }
 0x611   : > { %v3133_v14 = vadd.f32 %v3132_v15, %v3011_v27  ;;  %v3077_v15 = vadd.f32 %v11004_v37, %v11008_v36  ;;  %v11128_v37 = vld [vmem:[#allocation15 + $0x2e0] sm:$0xff]  ;;  %v11130_v36 = vld [vmem:[#allocation15 + $0x1d0] sm:$0xff] }
 0x613   : > { %v8324_v34 = vpack.i.bf16 %v3133_v14, %v3089_v24  ;;  %v11120_v24 = vld [vmem:[#allocation15 + $0x1f0] sm:$0xff] }
 0x614   : > { %v11122_v14 = vld [vmem:[#allocation15 + $0x2f0] sm:$0xff]  ;;  %3445 = vmatpush.msra.mxu0 %v11120_v24 }
 0x615   : > { %8325 = vrot.lane.b32.xlu2 %v8324_v34, %s9174_s20  ;;  %3471 = vmatpush.msra.mxu1 %v11122_v14  ;;  %v11132_v34 = vld [vmem:[#allocation15 + $0x2d0] sm:$0xff] }
 0x617   : > { %3472 = vmatpush.msra.mxu1 %v11128_v37 }
 0x618   : > { %v3014_v25 = vpop.f32.mrf.mxu0 }
 0x619   : > { %v3136_v31 = vadd.f32 %v3135_v38, %v3014_v25  ;;  %v11124_v38 = vld [vmem:[#allocation15 + $0x1e0] sm:$0xff]  ;;  %3473 = vmatpush.msra.mxu1 %v11132_v34 }
 0x61a   : > { %3446 = vmatpush.msra.mxu0 %v11124_v38 }
 0x61b   : > { %3188 = vrot.lane.b32.xlu1 %v3136_v31, %s9174_s20 }
 0x61c   : > { %3447 = vmatpush.msra.mxu0 %v11130_v36 }
 0x61d   : > { %3162 = vrot.lane.b32.xlu2 %v3074_v52, %s9174_s20  ;;  %v11140_v52 = vld [vmem:[#allocation15 + $0x1c0] sm:$0xff] }
 0x61e   : > { %3448 = vmatpush.msra.mxu0 %v11140_v52 }
 0x620   : > { %v3017_v57 = vpop.f32.mrf.mxu0 }
 0x621   : > { %v3139_v4 = vadd.f32 %v3138_v62, %v3017_v57  ;;  %v11142_v62 = vld [vmem:[#allocation15 + $0x2c0] sm:$0xff] }
 0x622   : > { %3474 = vmatpush.msra.mxu1 %v11142_v62 }
 0x623   : > { %3192 = vrot.lane.b32.xlu1 %v3139_v4, %s9174_s20 }
 0x628   : > { %v3020_v47 = vpop.f32.mrf.mxu0 }
 0x629   : > { %v3142_v61 = vadd.f32 %v3141_v63, %v3020_v47  ;;  %v11146_v63 = vld [vmem:[#allocation15 + $0x1b0] sm:$0xff] }
 0x62a   : > { %3449 = vmatpush.msra.mxu0 %v11146_v63 }
 0x62b   : > { %3196 = vrot.lane.b32.xlu1 %v3142_v61, %s9174_s20 }
 0x65f   : > { %v8316_v55 = vpop.permute.xlu2 %8315 }
 0x660   : > { %v3187_v19 = vpop.permute.xlu0 %3186  ;;  %v8318_v58 = vunpack.i.h.bf16 %v8316_v55  ;;  %v8317_v16 = vunpack.i.l.bf16 %v8316_v55  ;;  %v11152_v55 = vld [vmem:[#allocation15 + $0x2b0] sm:$0xff] }
 0x661   : > { %v3235_v53 = vsel %vm3198_vm6, 0.0, %v3187_v19  ;;  %3475 = vmatpush.msra.mxu1 %v11152_v55 }
 0x662   : > { %3383 = vrot.lane.b32.xlu0 %v3235_v53, %s9171_s26  ;;  %v3232_v21 = vsel %vm3198_vm6, 0.0, %v8317_v16  ;;  %v3202_v44 = vsel %vm3198_vm6, %v8317_v16, %v8318_v58  ;;  %v3241_v7 = vsel %vm3198_vm6, %v8318_v58, 0.0  ;;  %v11160_v58 = vld [vmem:[#allocation15 + $0x2a0] sm:$0xff]  ;;  %v11163_v16 = vld [vmem:[#allocation15 + $0x190] sm:$0xff] }
 0x663   : > { %v8334_v48 = vpack.i.bf16 %v3202_v44, %v3232_v21  ;;  %v11166_v53 = vld [vmem:[#allocation15 + $0x290] sm:$0xff]  ;;  %3476 = vmatpush.msra.mxu1 %v11160_v58  ;;  %v11169_v21 = vld [vmem:[#allocation15 + $0x180] sm:$0xff]  ;;  %v3080_v44 = vadd.f32 %v11006_v3, %v11010_v46 }
 0x664   : > { %v11190_v3 = vld [vmem:[#allocation15 + $0x260] sm:$0xff] }
 0x665   : > { %3477 = vmatpush.msra.mxu1 %v11166_v53 }
 0x667   : > { %v11080_v17 = vpop.permute.xlu2 %8320 }
 0x668   : > { %v3191_v6 = vpop.permute.xlu0 %3190  ;;  %v8323_v10 = vunpack.i.h.bf16 %v11080_v17  ;;  %v8322_v11 = vunpack.i.l.bf16 %v11080_v17  ;;  %v11224_v17 = vld [vmem:[#allocation15 + $0x120] sm:$0xff] }
 0x669   : > { %v3236_v56 = vsel %vm3198_vm6, 0.0, %v3191_v6 }
 0x66a   : > { %8335 = vrot.lane.b32.xlu0 %v8334_v48, %s9173_s19  ;;  %3387 = vrot.lane.b32.xlu1 %v3236_v56, %s9171_s26  ;;  %v3233_v25 = vsel %vm3198_vm6, 0.0, %v8322_v11  ;;  %v3203_v31 = vsel %vm3198_vm6, %v8322_v11, %v8323_v10  ;;  %v11177_v48 = vld [vmem:[#allocation15 + $0x280] sm:$0xff]  ;;  %v11179_v56 = vld [vmem:[#allocation15 + $0x170] sm:$0xff] }
 0x66b   : > { %v8339_v4 = vpack.i.bf16 %v3203_v31, %v3233_v25  ;;  %3478 = vmatpush.msra.mxu1 %v11177_v48  ;;  %v11242_v11 = vld [vmem:[#allocation15 + $0x350] sm:$0xff]  ;;  %v11252_v31 = vld [vmem:[#allocation15 + $0x340] sm:$0xff] }
 0x66c   : > { %3507 = vmatpush.msrb.mxu2 %v11242_v11 }
 0x66e   : > { %3508 = vmatpush.msrb.mxu2 %v11252_v31 }
 0x66f   : > { %v11085_v0 = vpop.permute.xlu2 %8325 }
 0x670   : > { %v3195_v12 = vpop.permute.xlu0 %3194  ;;  %v8328_v30 = vunpack.i.h.bf16 %v11085_v0  ;;  %v8327_v22 = vunpack.i.l.bf16 %v11085_v0  ;;  %v11226_v0 = vld [vmem:[#allocation15 + $0x220] sm:$0xff]  ;;  %3509 = vmatpush.msrb.mxu2 %v11294_v43 }
 0x671   : > { %v3237_v60 = vsel %vm3198_vm6, 0.0, %v3195_v12  ;;  %15444 = vst [vmem:[#allocation80_spill] sm:$0xff] %v11226_v0 }
 0x672   : > { %3391 = vrot.lane.b32.xlu0 %v3237_v60, %s9171_s26  ;;  %v3234_v28 = vsel %vm3198_vm6, 0.0, %v8327_v22  ;;  %v3204_v18 = vsel %vm3198_vm6, %v8327_v22, %v8328_v30  ;;  %v11186_v22 = vld [vmem:[#allocation15 + $0x160] sm:$0xff]  ;;  %v11202_v60 = vld [vmem:[#allocation15 + $0x250] sm:$0xff]  ;;  %3510 = vmatpush.msrb.mxu2 %v11302_v23 }
 0x673   : > { %v8344_v1 = vpack.i.bf16 %v3204_v18, %v3234_v28  ;;  %15441 = vst [vmem:[#allocation78_spill] sm:$0xff] %v11202_v60  ;;  %v11204_v28 = vld [vmem:[#allocation15 + $0x140] sm:$0xff]  ;;  %v3242_v18 = vsel %vm3198_vm6, %v8323_v10, 0.0 }
 0x674   : > { %v11240_v10 = vld [vmem:[#allocation15 + $0x200] sm:$0xff]  ;;  %3511 = vmatpush.msrb.mxu2 %v11313_v50 }
 0x675   : > { %15446 = vst [vmem:[#allocation87_spill] sm:$0xff] %v11240_v10 }
 0x677   : > { %v11100_v54 = vpop.permute.xlu2 %3162 }
 0x678   : > { %15440 = vst [vmem:[#allocation76_spill] sm:$0xff] %v11100_v54  ;;  %7845 = vmatmul.msk.f32.vlgmr.msrb.gmra.mxu3 %vm11092_vm14, %v11100_v54  ;;  %v11250_v25 = vpop.permute.xlu0 %8330 }
 0x67a   : > { %8345 = vrot.lane.b32.xlu0 %v8344_v1, %s9173_s19  ;;  %v3243_v1 = vsel %vm3198_vm6, %v8328_v30, 0.0  ;;  %v11232_v30 = vld [vmem:[#allocation15 + $0x110] sm:$0xff] }
 0x682   : > { %3870 = vrot.lane.b32.xlu0 %v3241_v7, %s9173_s19  ;;  %v11214_v7 = vld [vmem:[#allocation15 + $0x240] sm:$0xff] }
 0x683   : > { %15442 = vst [vmem:[#allocation83_spill] sm:$0xff] %v11214_v7 }
 0x68d   : > { %v11108_v5 = vpop.permute.xlu1 %3188 }
 0x68e   : > { %v3205_v13 = vsel %vm3198_vm6, %v3187_v19, %v11108_v5  ;;  %v11156_v19 = vld [vmem:[#allocation15 + $0x1a0] sm:$0xff]  ;;  %v3244_v46 = vsel %vm3198_vm6, %v11108_v5, 0.0  ;;  %v11218_v5 = vld [vmem:[#allocation15 + $0x130] sm:$0xff] }
 0x68f   : > { %3385 = vrot.lane.b32.xlu1 %v3205_v13, %s9171_s26  ;;  %3450 = vmatpush.msra.mxu0 %v11156_v19  ;;  %v11220_v13 = vld [vmem:[#allocation15 + $0x230] sm:$0xff] }
 0x690   : > { %15443 = vst [vmem:[#allocation85_spill] sm:$0xff] %v11220_v13 }
 0x691   : > { %3451 = vmatpush.msra.mxu0 %v11163_v16 }
 0x693   : > { %3452 = vmatpush.msra.mxu0 %v11169_v21 }
 0x695   : > { %v3193_v51 = vpop.permute.xlu1 %3192  ;;  %3453 = vmatpush.msra.mxu0 %v11179_v56 }
 0x696   : > { %v3206_v27 = vsel %vm3198_vm6, %v3191_v6, %v3193_v51  ;;  %v3124_v6 = vadd.f32 %v11012_v45, %v11016_v33  ;;  %v3245_v45 = vsel %vm3198_vm6, %v3193_v51, 0.0  ;;  %v11200_v33 = vld [vmem:[#allocation15 + $0x150] sm:$0xff]  ;;  %v11236_v51 = vld [vmem:[#allocation15 + $0x100] sm:$0xff] }
 0x697   : > { %3166 = vrot.lane.b32.xlu1 %v3077_v15, %s9174_s20  ;;  %3389 = vrot.lane.b32.xlu2 %v3206_v27, %s9171_s26  ;;  %v11234_v15 = vld [vmem:[#allocation15 + $0x210] sm:$0xff]  ;;  %v11247_v27 = vld [vmem:[#allocation15 + $0xf8] sm:$0xff] }
 0x698   : > { %3454 = vmatpush.msra.mxu0 %v11186_v22  ;;  %15445 = vst [vmem:[#allocation82_spill] sm:$0xff] %v11234_v15  ;;  %3523 = vmatpush.msra.mxu3 %v11247_v27 }
 0x69a   : > { %3455 = vmatpush.msra.mxu0 %v11200_v33 }
 0x69c   : > { %3456 = vmatpush.msra.mxu0 %v11204_v28 }
 0x69d   : > { %v3197_v57 = vpop.permute.xlu1 %3196 }
 0x69e   : > { %v3207_v47 = vsel %vm3198_vm6, %v3195_v12, %v3197_v57  ;;  %v3246_v61 = vsel %vm3198_vm6, %v3197_v57, 0.0  ;;  %v11184_v12 = vld [vmem:[#allocation15 + $0x270] sm:$0xff]  ;;  %3457 = vmatpush.msra.mxu0 %v11218_v5  ;;  %v11254_v57 = vld [vmem:[#allocation15 + $0xe8] sm:$0xff] }
 0x69f   : > { %3393 = vrot.lane.b32.xlu1 %v3207_v47, %s9171_s26  ;;  %8340 = vrot.lane.b32.xlu2 %v8339_v4, %s9173_s19  ;;  %v11256_v4 = vld [vmem:[#allocation15 + $0x2f8] sm:$0xff] }
 0x6a0   : > { %3892 = vrot.lane.b32.xlu0 %v3246_v61, %s9171_s26  ;;  %3479 = vmatpush.msra.mxu1 %v11184_v12  ;;  %15447 = vst [vmem:[#allocation89_spill] sm:$0xff] %v11256_v4  ;;  %v11260_v47 = vld [vmem:[#allocation15 + $0xd8] sm:$0xff]  ;;  %v11262_v61 = vld [vmem:[#allocation15 + $0x2e8] sm:$0xff] }
 0x6a1   : > { %3458 = vmatpush.msra.mxu0 %v11224_v17  ;;  %3524 = vmatpush.msra.mxu3 %v11254_v57  ;;  %15448 = vst [vmem:[#allocation84_spill] sm:$0xff] %v11262_v61 }
 0x6a2   : > { %3480 = vmatpush.msra.mxu1 %v11190_v3 }
 0x6a3   : > { %3459 = vmatpush.msra.mxu0 %v11232_v30  ;;  %3525 = vmatpush.msra.mxu3 %v11260_v47 }
 0x6a4   : > { %3481 = vmatpush.msra.mxu1 %v11202_v60 }
 0x6a5   : > { %3460 = vmatpush.msra.mxu0 %v11236_v51 }
 0x6a6   : > { %3482 = vmatpush.msra.mxu1 %v11214_v7 }
 0x6a7   : > { %3170 = vrot.lane.b32.xlu2 %v3080_v44, %s9174_s20  ;;  %3172 = vrot.lane.b32.xlu1 %v3124_v6, %s9174_s20  ;;  %v11266_v44 = vld [vmem:[#allocation15 + $0xc8] sm:$0xff]  ;;  %v11268_v6 = vld [vmem:[#allocation15 + $0x2d8] sm:$0xff] }
 0x6a8   : > { %3483 = vmatpush.msra.mxu1 %v11220_v13  ;;  %15449 = vst [vmem:[#allocation86_spill] sm:$0xff] %v11268_v6  ;;  %3526 = vmatpush.msra.mxu3 %v11266_v44  ;;  %v8332_v13 = vunpack.i.l.bf16 %v11250_v25 }
 0x6aa   : > { %3484 = vmatpush.msra.mxu1 %v11226_v0  ;;  %v11288_v0 = vld [vmem:[#allocation15 + $0x2a8] sm:$0xff] }
 0x6ab   : > { %15453 = vst [vmem:[#allocation90_spill] sm:$0xff] %v11288_v0 }
 0x6ac   : > { %3485 = vmatpush.msra.mxu1 %v11234_v15  ;;  %v11285_v15 = vld [vmem:[#allocation15 + $0x98] sm:$0xff] }
 0x6ad   : > { %15452 = vst [vmem:[#allocation88_spill] sm:$0xff] %v11285_v15 }
 0x6ae   : > { %3486 = vmatpush.msra.mxu1 %v11240_v10  ;;  %v11283_v10 = vld [vmem:[#allocation15 + $0x2b8] sm:$0xff] }
 0x6af   : > { %3888 = vrot.lane.b32.xlu2 %v3244_v46, %s9171_s26  ;;  %3890 = vrot.lane.b32.xlu1 %v3245_v45, %s9171_s26  ;;  %v11271_v46 = vld [vmem:[#allocation15 + $0xb8] sm:$0xff]  ;;  %v11274_v45 = vld [vmem:[#allocation15 + $0x2c8] sm:$0xff]  ;;  %15451 = vst [vmem:[#allocation93_spill] sm:$0xff] %v11283_v10 }
 0x6b0   : > { %3575 = vmatpush.msrb.mxu1 %v11256_v4  ;;  %15450 = vst [vmem:[#allocation91_spill] sm:$0xff] %v11274_v45  ;;  %3527 = vmatpush.msra.mxu3 %v11271_v46  ;;  %v11311_v4 = vld [vmem:[#allocation15 + $0x1f8] sm:$0xff] }
 0x6b1   : > { %15459 = vst [vmem:[#allocation101_spill] sm:$0xff] %v11311_v4  ;;  %3549 = vmatpush.msrb.mxu0 %v11311_v4  ;;  %v11366_v4 = vld [vmem:[#allocation15 + $0x1c8] sm:$0xff] }
 0x6b2   : > { %3576 = vmatpush.msrb.mxu1 %v11262_v61  ;;  %v11306_v61 = vld [vmem:[#allocation15 + $0x288] sm:$0xff]  ;;  %15472 = vst [vmem:[#allocation113_spill] sm:$0xff] %v11366_v4 }
 0x6b3   : > { %15457 = vst [vmem:[#allocation94_spill] sm:$0xff] %v11306_v61 }
 0x6b4   : > { %3577 = vmatpush.msrb.mxu1 %v11268_v6  ;;  %v11298_v6 = vld [vmem:[#allocation15 + $0x298] sm:$0xff] }
 0x6b5   : > { %15455 = vst [vmem:[#allocation97_spill] sm:$0xff] %v11298_v6 }
 0x6b6   : > { %3578 = vmatpush.msrb.mxu1 %v11274_v45  ;;  %v11296_v45 = vld [vmem:[#allocation15 + $0x88] sm:$0xff] }
 0x6b7   : > { %3872 = vrot.lane.b32.xlu2 %v3242_v18, %s9173_s19  ;;  %3874 = vrot.lane.b32.xlu1 %v3243_v1, %s9173_s19  ;;  %v11281_v1 = vld [vmem:[#allocation15 + $0xa8] sm:$0xff]  ;;  %15454 = vst [vmem:[#allocation95_spill] sm:$0xff] %v11296_v45 }
 0x6b8   : > { %3528 = vmatpush.msra.mxu3 %v11281_v1  ;;  %3579 = vmatpush.msrb.mxu1 %v11283_v10  ;;  %v11304_v10 = vld [vmem:[#allocation15 + $0x78] sm:$0xff] }
 0x6b9   : > { %15456 = vst [vmem:[#allocation92_spill] sm:$0xff] %v11304_v10 }
 0x6ba   : > { %3529 = vmatpush.msra.mxu3 %v11285_v15  ;;  %3580 = vmatpush.msrb.mxu1 %v11288_v0  ;;  %v11317_v15 = vsel %vm3198_vm6, %v11100_v54, %v8332_v13  ;;  %v11332_v54 = vld [vmem:[#allocation15 + $0x278] sm:$0xff] }
 0x6bb   : > { %15460 = vst [vmem:[#allocation96_spill] sm:$0xff] %v11317_v15 }
 0x6bc   : > { %3530 = vmatpush.msra.mxu3 %v11296_v45  ;;  %3581 = vmatpush.msrb.mxu1 %v11298_v6  ;;  %v3238_v45 = vsel %vm3198_vm6, %v8332_v13, 0.0  ;;  %15463 = vst [vmem:[#allocation105_spill] sm:$0xff] %v11332_v54  ;;  %v11334_v13 = vld [vmem:[#allocation15 + $0x1e8] sm:$0xff] }
 0x6bd   : > { %15464 = vst [vmem:[#allocation100_spill] sm:$0xff] %v11334_v13  ;;  %3550 = vmatpush.msrb.mxu0 %v11334_v13  ;;  %v11376_v13 = vld [vmem:[#allocation15 + $0x248] sm:$0xff] }
 0x6be   : > { %3531 = vmatpush.msra.mxu3 %v11304_v10  ;;  %3582 = vmatpush.msrb.mxu1 %v11306_v61  ;;  %v11352_v61 = vld [vmem:[#allocation15 + $0x268] sm:$0xff]  ;;  %15475 = vst [vmem:[#allocation112_spill] sm:$0xff] %v11376_v13 }
 0x6bf   : > { %15467 = vst [vmem:[#allocation108_spill] sm:$0xff] %v11352_v61 }
 0x6c0   : > { %3532 = vmatpush.msra.mxu3 %v11322_v40  ;;  %3583 = vmatpush.msrb.mxu1 %v11332_v54  ;;  %v11372_v54 = vld [vmem:[#allocation15 + $0x38] sm:$0xff] }
 0x6c1   : > { %15474 = vst [vmem:[#allocation111_spill] sm:$0xff] %v11372_v54  ;;  %v11378_v40 = vld [vmem:[#allocation15 + $0x1b8] sm:$0xff] }
 0x6c2   : > { %3584 = vmatpush.msrb.mxu1 %v11352_v61  ;;  %15476 = vst [vmem:[#allocation117_spill] sm:$0xff] %v11378_v40  ;;  %v11384_v61 = vld [vmem:[#allocation15 + $0x28] sm:$0xff] }
 0x6c3   : > { %15478 = vst [vmem:[#allocation115_spill] sm:$0xff] %v11384_v61 }
 0x6d4   : > { %v11277_v18 = vpop.permute.xlu0 %3383 }
 0x6dc   : > { %v8336_v7 = vpop.permute.xlu0 %8335 }
 0x6dd   : > { %v11308_v0 = vunpack.i.h.bf16 %v8336_v7  ;;  %v8337_v49 = vunpack.i.l.bf16 %v8336_v7 }
 0x6df   : > { %15458 = vst [vmem:[#allocation99_spill] sm:$0xff] %v11308_v0  ;;  %v3371_v7 = vsel %vm1963_vm0, %v8337_v49, %v11308_v0  ;;  %v11328_v6 = vsel %vm1963_vm0, %v11317_v15, %v8337_v49  ;;  %v11338_v10 = vsel %vm1963_vm0, %v3238_v45, %v11308_v0  ;;  %v11346_v49 = vld [vmem:[#allocation15 + $0x300] sm:$0xff]  ;;  %v11348_v15 = vld [vmem:[#allocation15 + $0x58] sm:$0xff]  ;;  %v11360_v0 = vld [vmem:[#allocation15 + $0x48] sm:$0xff] }
 0x6e0   : > { %15462 = vst [vmem:[#allocation103_spill] sm:$0xff] %v11328_v6  ;;  %3461 = vmatmul.f32.vlgmr.msra.gmra.mxu0 %v11328_v6  ;;  %v11343_v60 = vsel %vm979_vm2, %v3371_v7, %v11277_v18  ;;  %v11354_v45 = vld [vmem:[#allocation15 + $0x1d8] sm:$0xff]  ;;  %3512 = vmatpush.msrb.mxu2 %v11346_v49  ;;  %v11370_v6 = vld [vmem:[#allocation15 + $0x348] sm:$0xff] }
 0x6e1   : > { %15465 = vst [vmem:[#allocation102_spill] sm:$0xff] %v11338_v10  ;;  %3487 = vmatmul.f32.vlgmr.msra.gmra.mxu1 %v11343_v60  ;;  %v11358_v7 = vld [vmem:[#allocation15 + $0x358] sm:$0xff]  ;;  %3533 = vmatpush.msra.mxu3 %v11348_v15 }
 0x6e2   : > { %15466 = vst [vmem:[#allocation107_spill] sm:$0xff] %v11348_v15  ;;  %v11364_v10 = vld [vmem:[#allocation15 + $0x258] sm:$0xff]  ;;  %3551 = vmatpush.msrb.mxu0 %v11354_v45  ;;  %3611 = vmatpush.msra.mxu2 %v11358_v7 }
 0x6e3   : > { %15468 = vst [vmem:[#allocation104_spill] sm:$0xff] %v11354_v45  ;;  %3534 = vmatpush.msra.mxu3 %v11360_v0  ;;  %3585 = vmatpush.msrb.mxu1 %v11364_v10  ;;  %v11382_v15 = vld [vmem:[#allocation15 + $0x338] sm:$0xff] }
 0x6e4   : > { %15469 = vst [vmem:[#allocation106_spill] sm:$0xff] %v11358_v7  ;;  %3552 = vmatpush.msrb.mxu0 %v11366_v4  ;;  %3612 = vmatpush.msra.mxu2 %v11370_v6  ;;  %v11388_v45 = vld [vmem:[#allocation15 + $0x238] sm:$0xff]  ;;  %v11390_v7 = vld [vmem:[#allocation15 + $0x1a8] sm:$0xff] }
 0x6e5   : > { %15470 = vst [vmem:[#allocation109_spill] sm:$0xff] %v11360_v0  ;;  %3535 = vmatpush.msra.mxu3 %v11372_v54  ;;  %3586 = vmatpush.msrb.mxu1 %v11376_v13  ;;  %v11394_v0 = vld [vmem:[#allocation15 + $0x328] sm:$0xff]  ;;  %v11406_v54 = vld [vmem:[#allocation15 + $0x318] sm:$0xff] }
 0x6e6   : > { %15471 = vst [vmem:[#allocation110_spill] sm:$0xff] %v11364_v10  ;;  %3553 = vmatpush.msrb.mxu0 %v11378_v40  ;;  %v11396_v10 = vld [vmem:[#allocation15 + $0x18] sm:$0xff]  ;;  %3613 = vmatpush.msra.mxu2 %v11382_v15  ;;  %v11400_v4 = vld [vmem:[#allocation15 + $0x228] sm:$0xff] }
 0x6e7   : > { %15473 = vst [vmem:[#allocation114_spill] sm:$0xff] %v11370_v6  ;;  %3536 = vmatpush.msra.mxu3 %v11384_v61  ;;  %v11402_v6 = vld [vmem:[#allocation15 + $0x198] sm:$0xff]  ;;  %3587 = vmatpush.msrb.mxu1 %v11388_v45  ;;  %v11408_v13 = vld [vmem:[#allocation15 + $0x8] sm:$0xff] }
 0x6e8   : > { %15477 = vst [vmem:[#allocation118_spill] sm:$0xff] %v11382_v15  ;;  %3554 = vmatpush.msrb.mxu0 %v11390_v7  ;;  %3614 = vmatpush.msra.mxu2 %v11394_v0  ;;  %v11412_v40 = vld [vmem:[#allocation15 + $0x218] sm:$0xff]  ;;  %v11414_v15 = vld [vmem:[#allocation15 + $0x188] sm:$0xff] }
 0x6e9   : > { %15479 = vst [vmem:[#allocation116_spill] sm:$0xff] %v11388_v45  ;;  %3537 = vmatpush.msra.mxu3 %v11396_v10  ;;  %3588 = vmatpush.msrb.mxu1 %v11400_v4  ;;  %v11418_v61 = vld [vmem:[#allocation15 + $0x308] sm:$0xff] }
 0x6ea   : > { %15480 = vst [vmem:[#allocation119_spill] sm:$0xff] %v11390_v7  ;;  %3555 = vmatpush.msrb.mxu0 %v11402_v6  ;;  %3615 = vmatpush.msra.mxu2 %v11406_v54  ;;  %v11422_v45 = vld [vmem:[#allocation15 + $0x208] sm:$0xff]  ;;  %v11424_v7 = vld [vmem:[#allocation15 + $0x178] sm:$0xff] }
 0x6eb   : > { %15481 = vst [vmem:[#allocation120_spill] sm:$0xff] %v11394_v0  ;;  %3538 = vmatpush.msra.mxu3 %v11408_v13  ;;  %3589 = vmatpush.msrb.mxu1 %v11412_v40  ;;  %v11432_v0 = vpop.permute.xlu0 %3391 }
 0x6ec   : > { %15482 = vst [vmem:[#allocation128_spill] sm:$0xff] %v11396_v10  ;;  %3556 = vmatpush.msrb.mxu0 %v11414_v15  ;;  %3616 = vmatpush.msra.mxu2 %v11418_v61 }
 0x6ed   : > { %15483 = vst [vmem:[#allocation121_spill] sm:$0xff] %v11400_v4  ;;  %3938 = vmatpush.msrb.mxu3 %v11120_v24  ;;  %v11430_v4 = vld [vmem:[#allocation15 + $0x168] sm:$0xff]  ;;  %3590 = vmatpush.msrb.mxu1 %v11422_v45 }
 0x6ee   : > { %15484 = vst [vmem:[#allocation122_spill] sm:$0xff] %v11412_v40  ;;  %3557 = vmatpush.msrb.mxu0 %v11424_v7  ;;  %v11441_v40 = vld [vmem:[#allocation15 + $0x158] sm:$0xff]  ;;  %v11444_v24 = vld [vmem:[#allocation15 + $0x148] sm:$0xff] }
 0x6ef   : > { %15485 = vst [vmem:[#allocation129_spill] sm:$0xff] %v11418_v61  ;;  %3939 = vmatpush.msrb.mxu3 %v11124_v38  ;;  %4000 = vmatpush.msra.mxu1 %v11242_v11  ;;  %v11454_v38 = vld [vmem:[#allocation15 + $0x128] sm:$0xff] }
 0x6f0   : > { %15486 = vst [vmem:[#allocation123_spill] sm:$0xff] %v11422_v45  ;;  %3558 = vmatpush.msrb.mxu0 %v11430_v4  ;;  %v11449_v45 = vld [vmem:[#allocation15 + $0x138] sm:$0xff] }
 0x6f1   : > { %v11434_v10 = vpop.permute.xlu2 %3389  ;;  %3940 = vmatpush.msrb.mxu3 %v11130_v36  ;;  %4001 = vmatpush.msra.mxu1 %v11252_v31  ;;  %v3388_v36 = vpop.permute.xlu1 %3387  ;;  %v15519_v9 = vld [vmem:[#allocation119_spill] sm:$0xff] }
 0x6f2   : > { %3559 = vmatpush.msrb.mxu0 %v11441_v40 }
 0x6f3   : > { %3941 = vmatpush.msrb.mxu3 %v11140_v52  ;;  %4002 = vmatpush.msra.mxu1 %v11294_v43  ;;  %v11461_v52 = vld [vmem:[#allocation15 + $0x118] sm:$0xff]  ;;  %v11464_v43 = vpop.permute.xlu0 %8345 }
 0x6f4   : > { %3560 = vmatpush.msrb.mxu0 %v11444_v24 }
 0x6f5   : > { %3942 = vmatpush.msrb.mxu3 %v11146_v63  ;;  %4003 = vmatpush.msra.mxu1 %v11302_v23  ;;  %v11470_v63 = vld [vmem:[#allocation15 + $0x108] sm:$0xff] }
 0x6f6   : > { %3561 = vmatpush.msrb.mxu0 %v11449_v45 }
 0x6f7   : > { %3943 = vmatpush.msrb.mxu3 %v11156_v19  ;;  %4004 = vmatpush.msra.mxu1 %v11313_v50  ;;  %v11476_v19 = vunpack.i.h.bf16 %v11464_v43  ;;  %v8347_v50 = vunpack.i.l.bf16 %v11464_v43  ;;  %v15511_v43 = vld [vmem:[#allocation90_spill] sm:$0xff] }
 0x6f8   : > { %3562 = vmatpush.msrb.mxu0 %v11454_v38 }
 0x6f9   : > { %v8341_v11 = vpop.permute.xlu2 %8340  ;;  %3944 = vmatpush.msrb.mxu3 %v11163_v16  ;;  %4005 = vmatpush.msra.mxu1 %v11346_v49 }
 0x6fa   : > { %v11458_v31 = vunpack.i.h.bf16 %v8341_v11  ;;  %v8342_v61 = vunpack.i.l.bf16 %v8341_v11  ;;  %3563 = vmatpush.msrb.mxu0 %v11461_v52 }
 0x6fb   : > { %3945 = vmatpush.msrb.mxu3 %v11169_v21  ;;  %v3373_v21 = vsel %vm1963_vm0, %v8347_v50, %v11476_v19 }
 0x6fc   : > { %v3372_v23 = vsel %vm1963_vm0, %v8342_v61, %v11458_v31  ;;  %3564 = vmatpush.msrb.mxu0 %v11470_v63 }
 0x6fd   : > { %v3405_v11 = vsel %vm979_vm2, %v3372_v23, %v3388_v36  ;;  %3946 = vmatpush.msrb.mxu3 %v11179_v56 }
 0x6fe   : > { %3490 = vmatmul.f32.gmra.mxu1 %v3405_v11  ;;  %3964 = vmatpush.msra.mxu0 %v11122_v14  ;;  %v3406_v14 = vsel %vm979_vm2, %v3373_v21, %v11432_v0 }
 0x6ff   : > { %3947 = vmatpush.msrb.mxu3 %v11186_v22  ;;  %v15493_v22 = vld [vmem:[#allocation95_spill] sm:$0xff] }
 0x700   : > { %3965 = vmatpush.msra.mxu0 %v11128_v37  ;;  %v8333_v37 = vunpack.i.h.bf16 %v11250_v25 }
 0x701   : > { %v11483_v16 = vpop.permute.xlu1 %3385  ;;  %v11485_v49 = vpop.permute.xlu2 %3170  ;;  %3948 = vmatpush.msrb.mxu3 %v11200_v33  ;;  %v15495_v33 = vld [vmem:[#allocation84_spill] sm:$0xff] }
 0x702   : > { %v3395_v23 = vsel %vm979_vm2, %v11277_v18, %v11483_v16  ;;  %3966 = vmatpush.msra.mxu0 %v11132_v34  ;;  %v15508_v18 = vld [vmem:[#allocation85_spill] sm:$0xff] }
 0x703   : > { %7850 = vmatmul.msk.f32.vlgmr.msrb.gmra.mxu2 %vm3412_vm8, %v3395_v23  ;;  %3949 = vmatpush.msrb.mxu3 %v11204_v28  ;;  %v15497_v28 = vld [vmem:[#allocation79_spill] sm:$0xff] }
 0x704   : > { %3912 = vmatpush.msrb.mxu2 %v11021_v59  ;;  %3967 = vmatpush.msra.mxu0 %v11142_v62 }
 0x705   : > { %3950 = vmatpush.msrb.mxu3 %v11218_v5  ;;  %v15498_v5 = vld [vmem:[#allocation83_spill] sm:$0xff] }
 0x706   : > { %3493 = vmatmul.f32.gmra.mxu1 %v3406_v14  ;;  %3913 = vmatpush.msrb.mxu2 %v11023_v42  ;;  %v3396_v42 = vsel %vm979_vm2, %v3388_v36, %v11434_v10  ;;  %v15510_v36 = vld [vmem:[#allocation104_spill] sm:$0xff] }
 0x707   : > { %3968 = vmatpush.msra.mxu0 %v11152_v55  ;;  %3951 = vmatpush.msrb.mxu3 %v11224_v17  ;;  %v15487_v55 = vld [vmem:[#allocation78_spill] sm:$0xff] }
 0x708   : > { %3914 = vmatpush.msrb.mxu2 %v11027_v8  ;;  %v15499_v17 = vld [vmem:[#allocation86_spill] sm:$0xff] }
 0x709   : > { %v3167_v56 = vpop.permute.xlu1 %3166  ;;  %v11507_v59 = vpop.permute.xlu2 %3888  ;;  %3969 = vmatpush.msra.mxu0 %v11160_v58  ;;  %3952 = vmatpush.msrb.mxu3 %v11232_v30  ;;  %v15488_v58 = vld [vmem:[#allocation76_spill] sm:$0xff]  ;;  %v15501_v30 = vld [vmem:[#allocation81_spill] sm:$0xff] }
 0x70a   : > { %v11514_v34 = vsel %vm3198_vm6, %v3167_v56, %v8333_v37  ;;  %7847 = vmatmul.msk.f32.gmra.mxu3 %vm11092_vm14, %v3167_v56  ;;  %3915 = vmatpush.msrb.mxu2 %v11030_v39 }
 0x70b   : > { %7851 = vmatmul.msk.f32.gmra.mxu2 %vm3412_vm8, %v3396_v42  ;;  %v11524_v8 = vsel %vm1963_vm0, %v11514_v34, %v8342_v61  ;;  %3970 = vmatpush.msra.mxu0 %v11166_v53  ;;  %v15490_v53 = vld [vmem:[#allocation88_spill] sm:$0xff]  ;;  %v15505_v61 = vld [vmem:[#allocation107_spill] sm:$0xff] }
 0x70c   : > { %3464 = vmatmul.f32.gmra.mxu0 %v11524_v8  ;;  %3916 = vmatpush.msrb.mxu2 %v11040_v2 }
 0x70d   : > { %3953 = vmatpush.msrb.mxu3 %v11236_v51  ;;  %3971 = vmatpush.msra.mxu0 %v11177_v48  ;;  %v15491_v48 = vld [vmem:[#allocation72_spill] sm:$0xff]  ;;  %v15502_v51 = vld [vmem:[#allocation91_spill] sm:$0xff] }
 0x70e   : > { %3591 = vmatmul.f32.vlgmr.msrb.gmra.mxu1 %v11343_v60  ;;  %3917 = vmatpush.msrb.mxu2 %v11042_v35  ;;  %v15496_v60 = vld [vmem:[#allocation92_spill] sm:$0xff] }
 0x70f   : > { %4016 = vmatpush.msrb.mxu1 %v11247_v27  ;;  %3972 = vmatpush.msra.mxu0 %v11184_v12  ;;  %v15492_v12 = vld [vmem:[#allocation89_spill] sm:$0xff]  ;;  %v15503_v27 = vld [vmem:[#allocation103_spill] sm:$0xff] }
 0x710   : > { %3918 = vmatpush.msrb.mxu2 %v11045_v32 }
 0x711   : > { %v11537_v39 = vpop.permute.xlu1 %3393  ;;  %v3873_v62 = vpop.permute.xlu2 %3872  ;;  %4017 = vmatpush.msrb.mxu1 %v11254_v57  ;;  %3973 = vmatpush.msra.mxu0 %v11190_v3  ;;  %v15494_v3 = vld [vmem:[#allocation74_spill] sm:$0xff]  ;;  %v15504_v57 = vld [vmem:[#allocation101_spill] sm:$0xff] }
 0x712   : > { %v3877_v2 = vsel %vm1963_vm0, %v11458_v31, %v3873_v62  ;;  %7849 = vmatmul.msk.f32.gmra.mxu3 %vm11092_vm14, %v11485_v49  ;;  %v3397_v35 = vsel %vm979_vm2, %v11432_v0, %v11537_v39  ;;  %3919 = vmatpush.msrb.mxu2 %v11048_v29  ;;  %v15500_v0 = vld [vmem:[#allocation98_spill] sm:$0xff] }
 0x713   : > { %7852 = vmatmul.msk.f32.gmra.mxu2 %vm3412_vm8, %v3397_v35  ;;  %4018 = vmatpush.msrb.mxu1 %v11260_v47  ;;  %v11554_v32 = vsel %vm979_vm2, %v3877_v2, %v11434_v10  ;;  %v11602_v47 = vsel %vm979_vm2, %v11483_v16, %v11507_v59  ;;  %v15516_v59 = vld [vmem:[#allocation117_spill] sm:$0xff]  ;;  %v15517_v62 = vld [vmem:[#allocation82_spill] sm:$0xff]  ;;  %v15518_v2 = vld [vmem:[#allocation115_spill] sm:$0xff] }
 0x714   : > { %3920 = vmatpush.msrb.mxu2 %v11052_v26  ;;  %3974 = vmatpush.msra.mxu0 %v15487_v55  ;;  %v15523_v55 = vld [vmem:[#allocation105_spill] sm:$0xff] }
 0x715   : > { %4019 = vmatpush.msrb.mxu1 %v11266_v44  ;;  %v15506_v44 = vld [vmem:[#allocation93_spill] sm:$0xff] }
 0x716   : > { %3594 = vmatmul.f32.gmra.mxu1 %v3405_v11  ;;  %3921 = vmatpush.msrb.mxu2 %v11054_v20  ;;  %v15489_v20 = vld [vmem:[#allocation77_spill] sm:$0xff]  ;;  %v15512_v11 = vld [vmem:[#allocation80_spill] sm:$0xff] }
 0x717   : > { %4020 = vmatpush.msrb.mxu1 %v11271_v46  ;;  %3975 = vmatpush.msra.mxu0 %v15498_v5  ;;  %v15507_v46 = vld [vmem:[#allocation100_spill] sm:$0xff] }
 0x718   : > { %3922 = vmatpush.msrb.mxu2 %v11057_v41 }
 0x719   : > { %v11563_v29 = vpop.permute.xlu1 %3172  ;;  %4021 = vmatpush.msrb.mxu1 %v11281_v1  ;;  %3976 = vmatpush.msra.mxu0 %v15508_v18  ;;  %v15509_v1 = vld [vmem:[#allocation109_spill] sm:$0xff] }
 0x71a   : > { %v11570_v26 = vsel %vm3198_vm6, %v11485_v49, %v11563_v29  ;;  %7854 = vmatmul.msk.f32.vlgmr.msra.gmra.mxu3 %vm11092_vm14, %v15488_v58  ;;  %3923 = vmatpush.msrb.mxu2 %v15489_v20  ;;  %v15525_v20 = vld [vmem:[#allocation102_spill] sm:$0xff] }
 0x71b   : > { %7859 = vmatmul.msk.f32.vlgmr.msra.gmra.mxu2 %vm3412_vm8, %v3395_v23  ;;  %v3403_v41 = vsel %vm1963_vm0, %v11570_v26, %v8347_v50  ;;  %4022 = vmatpush.msrb.mxu1 %v15490_v53  ;;  %v15513_v50 = vld [vmem:[#allocation111_spill] sm:$0xff]  ;;  %v3871_v23 = vpop.permute.xlu0 %3870  ;;  %v15526_v53 = vld [vmem:[#allocation96_spill] sm:$0xff] }
 0x71c   : > { %3467 = vmatmul.f32.gmra.mxu0 %v3403_v41  ;;  %3924 = vmatpush.msrb.mxu2 %v15491_v48  ;;  %v15527_v48 = vld [vmem:[#allocation108_spill] sm:$0xff] }
 0x71d   : > { %4068 = vmatpush.msra.mxu3 %v15492_v12  ;;  %4023 = vmatpush.msrb.mxu1 %v15493_v22  ;;  %v15528_v12 = vld [vmem:[#allocation114_spill] sm:$0xff] }
 0x71e   : > { %3597 = vmatmul.f32.gmra.mxu1 %v3406_v14  ;;  %3925 = vmatpush.msrb.mxu2 %v15494_v3  ;;  %v15514_v14 = vld [vmem:[#allocation113_spill] sm:$0xff]  ;;  %v15529_v22 = vld [vmem:[#allocation110_spill] sm:$0xff]  ;;  %v15532_v3 = vld [vmem:[#allocation120_spill] sm:$0xff] }
 0x71f   : > { %4069 = vmatpush.msra.mxu3 %v15495_v33  ;;  %4024 = vmatpush.msrb.mxu1 %v15496_v60  ;;  %v15533_v33 = vld [vmem:[#allocation99_spill] sm:$0xff] }
 0x720   : > { %3926 = vmatpush.msrb.mxu2 %v15497_v28  ;;  %3977 = vmatpush.msra.mxu0 %v15512_v11  ;;  %v15538_v60 = vld [vmem:[#allocation123_spill] sm:$0xff] }
 0x721   : > { %4070 = vmatpush.msra.mxu3 %v15499_v17  ;;  %4025 = vmatpush.msrb.mxu1 %v15500_v0  ;;  %v3891_v21 = vpop.permute.xlu1 %3890 }
 0x722   : > { %7856 = vmatmul.msk.f32.gmra.mxu3 %vm11092_vm14, %v3167_v56  ;;  %3927 = vmatpush.msrb.mxu2 %v15501_v30  ;;  %v15515_v56 = vld [vmem:[#allocation97_spill] sm:$0xff] }
 0x723   : > { %7860 = vmatmul.msk.f32.gmra.mxu2 %vm3412_vm8, %v3396_v42  ;;  %4071 = vmatpush.msra.mxu3 %v15502_v51  ;;  %v11625_v42 = vsel %vm979_vm2, %v11434_v10, %v3891_v21  ;;  %v15524_v10 = vld [vmem:[#allocation106_spill] sm:$0xff]  ;;  %v3893_v58 = vpop.permute.xlu0 %3892 }
 0x724   : > { %3565 = vmatmul.f32.vlgmr.msrb.gmra.mxu0 %v15503_v27  ;;  %4042 = vmatpush.msra.mxu2 %v15504_v57 }
 0x725   : > { %4026 = vmatpush.msrb.mxu1 %v15505_v61  ;;  %4072 = vmatpush.msra.mxu3 %v15506_v44 }
 0x726   : > { %7874 = vmatmul.msk.f32.vlgmr.msra.gmra.mxu1 %vm3412_vm8, %v11602_v47  ;;  %4043 = vmatpush.msra.mxu2 %v15507_v46 }
 0x727   : > { %4027 = vmatpush.msrb.mxu1 %v15509_v1  ;;  %4073 = vmatpush.msra.mxu3 %v15511_v43 }
 0x728   : > { %4044 = vmatpush.msra.mxu2 %v15510_v36  ;;  %3978 = vmatpush.msra.mxu0 %v15517_v62 }
 0x729   : > { %4028 = vmatpush.msrb.mxu1 %v15513_v50  ;;  %4074 = vmatpush.msra.mxu3 %v15515_v56 }
 0x72a   : > { %7858 = vmatmul.msk.f32.gmra.mxu3 %vm11092_vm14, %v11485_v49  ;;  %4045 = vmatpush.msra.mxu2 %v15514_v14  ;;  %v15520_v49 = vld [vmem:[#allocation94_spill] sm:$0xff] }
 0x72b   : > { %7861 = vmatmul.msk.f32.gmra.mxu2 %vm3412_vm8, %v3397_v35  ;;  %4029 = vmatpush.msrb.mxu1 %v15518_v2  ;;  %v15521_v35 = vld [vmem:[#allocation87_spill] sm:$0xff] }
 0x72c   : > { %3568 = vmatmul.f32.gmra.mxu0 %v11524_v8  ;;  %4046 = vmatpush.msra.mxu2 %v15516_v59  ;;  %v15522_v8 = vld [vmem:[#allocation128_spill] sm:$0xff] }
 0x72d   : > { %4075 = vmatpush.msra.mxu3 %v15520_v49  ;;  %3979 = vmatpush.msra.mxu0 %v15521_v35 }
 0x72e   : > { %7875 = vmatmul.msk.f32.gmra.mxu1 %vm3412_vm8, %v11625_v42  ;;  %4047 = vmatpush.msra.mxu2 %v15519_v9 }
 0x72f   : > { %4030 = vmatpush.msrb.mxu1 %v15522_v8  ;;  %4076 = vmatpush.msra.mxu3 %v15523_v55 }
 0x730   : > { %4048 = vmatpush.msra.mxu2 %v11402_v6  ;;  %4104 = vmatpush.msrb.mxu0 %v15524_v10  ;;  %v3896_v6 = vsel %vm979_vm2, %v11537_v39, %v3893_v58 }
 0x731   : > { %4031 = vmatpush.msrb.mxu1 %v11408_v13  ;;  %4077 = vmatpush.msra.mxu3 %v15527_v48  ;;  %v3239_v13 = vsel %vm3198_vm6, %v8333_v37, 0.0  ;;  %v15534_v37 = vld [vmem:[#allocation116_spill] sm:$0xff] }
 0x732   : > { %3954 = vmatmul.f32.vlgmr.msrb.gmra.mxu3 %v15525_v20  ;;  %4049 = vmatpush.msra.mxu2 %v11414_v15  ;;  %v15530_v15 = vld [vmem:[#allocation118_spill] sm:$0xff] }
 0x733   : > { %3928 = vmatmul.f32.vlgmr.msrb.gmra.mxu2 %v15526_v53  ;;  %4105 = vmatpush.msrb.mxu0 %v15528_v12 }
 0x734   : > { %3571 = vmatmul.f32.gmra.mxu0 %v3403_v41  ;;  %4050 = vmatpush.msra.mxu2 %v11424_v7  ;;  %v3901_v7 = vsel %vm1963_vm0, %v3239_v13, %v11458_v31  ;;  %v15531_v41 = vld [vmem:[#allocation112_spill] sm:$0xff]  ;;  %v3240_v31 = vsel %vm3198_vm6, %v11563_v29, 0.0  ;;  %v3436_v29 = vpop.f32.mrf.mxu3 }
 0x735   : > { %4078 = vmatpush.msra.mxu3 %v15529_v22  ;;  %4106 = vmatpush.msrb.mxu0 %v15530_v15 }
 0x736   : > { %7876 = vmatmul.msk.f32.gmra.mxu1 %vm3412_vm8, %v3896_v6  ;;  %4051 = vmatpush.msra.mxu2 %v11430_v4  ;;  %v3876_v4 = vsel %vm1963_vm0, %v15533_v33, %v3871_v23 }
 0x737   : > { %4079 = vmatpush.msra.mxu3 %v15531_v41  ;;  %4107 = vmatpush.msrb.mxu0 %v15532_v3  ;;  %v3903_v25 = vsel %vm979_vm2, %v3876_v4, %v11483_v16  ;;  %v15537_v16 = vld [vmem:[#allocation129_spill] sm:$0xff] }
 0x738   : > { %4052 = vmatpush.msra.mxu2 %v11441_v40  ;;  %v15535_v40 = vld [vmem:[#allocation121_spill] sm:$0xff] }
 0x739   : > { %4080 = vmatpush.msra.mxu3 %v15534_v37  ;;  %4108 = vmatpush.msrb.mxu0 %v11406_v54  ;;  %v3875_v54 = vpop.permute.xlu1 %3874 }
 0x73a   : > { %3957 = vmatmul.f32.gmra.mxu3 %v3901_v7  ;;  %4053 = vmatpush.msra.mxu2 %v11444_v24  ;;  %v15536_v24 = vld [vmem:[#allocation122_spill] sm:$0xff] }
 0x73b   : > { %3931 = vmatmul.f32.gmra.mxu2 %v11514_v34  ;;  %4081 = vmatpush.msra.mxu3 %v15535_v40 }
 0x73c   : > { %3980 = vmatmul.f32.vlgmr.msra.gmra.mxu0 %v3903_v25  ;;  %4054 = vmatpush.msra.mxu2 %v11449_v45  ;;  %v3902_v45 = vsel %vm1963_vm0, %v3240_v31, %v11476_v19 }
 0x73d   : > { %4082 = vmatpush.msra.mxu3 %v15536_v24  ;;  %4109 = vmatpush.msrb.mxu0 %v15537_v16 }
 0x73e   : > { %4032 = vmatmul.f32.vlgmr.msrb.gmra.mxu1 %v15526_v53  ;;  %4055 = vmatpush.msra.mxu2 %v11454_v38  ;;  %v3878_v38 = vsel %vm1963_vm0, %v11476_v19, %v3875_v54  ;;  %v3355_v19 = vld [vmem:[#allocation16] sm:$0x3] }
 0x73f   : > { %4083 = vmatpush.msra.mxu3 %v15538_v60  ;;  %v11734_v24 = vperm.slane %v3355_v19, 1 }
 0x740   : > { %4056 = vmatpush.msra.mxu2 %v11461_v52  ;;  %v3905_v52 = vsel %vm979_vm2, %v3878_v38, %v11537_v39 }
 0x742   : > { %3960 = vmatmul.f32.gmra.mxu3 %v3902_v45  ;;  %4057 = vmatpush.msra.mxu2 %v11470_v63 }
 0x743   : > { %3934 = vmatmul.f32.gmra.mxu2 %v11570_v26 }
 0x744   : > { %3983 = vmatmul.f32.gmra.mxu0 %v11554_v32 }
 0x746   : > { %4035 = vmatmul.f32.gmra.mxu1 %v11514_v34  ;;  %v11695_v34 = vperm.slane %v3355_v19, 0 }
 0x74a   : > { %4084 = vmatmul.f32.vlgmr.msra.gmra.mxu3 %v3903_v25 }
 0x74b   : > { %4058 = vmatmul.f32.vlgmr.msra.gmra.mxu2 %v15525_v20 }
 0x74c   : > { %3986 = vmatmul.f32.gmra.mxu0 %v3905_v52 }
 0x74e   : > { %4038 = vmatmul.f32.gmra.mxu1 %v11570_v26 }
 0x752   : > { %4087 = vmatmul.f32.gmra.mxu3 %v11554_v32  ;;  %v3437_v32 = vadd.f32 %v3436_v29, %v11695_v34 }
 0x753   : > { %4061 = vmatmul.f32.gmra.mxu2 %v3901_v7 }
 0x754   : > { %7877 = vmatmul.msk.f32.vlgmr.msrb.gmra.mxu0 %vm3412_vm8, %v11602_v47 }
 0x75a   : > { %4090 = vmatmul.f32.gmra.mxu3 %v3905_v52 }
 0x75b   : > { %4064 = vmatmul.f32.gmra.mxu2 %v3902_v45 }
 0x75c   : > { %7878 = vmatmul.msk.f32.gmra.mxu0 %vm3412_vm8, %v11625_v42 }
 0x75d   : > { %v3462_v26 = vpop.f32.mrf.mxu0 }
 0x75e   : > { %v3488_v63 = vpop.f32.mrf.mxu1  ;;  %v3463_v28 = vadd.f32 %v3462_v26, %v3437_v32 }
 0x760   : > { %v3489_v17 = vadd.f32 %v3488_v63, %v3463_v28 }
 0x764   : > { %7879 = vmatmul.msk.f32.gmra.mxu0 %vm3412_vm8, %v3896_v6 }
 0x77b   : > { %v3491_v39 = vpop.f32.mrf.mxu1 }
 0x783   : > { %v3494_v5 = vpop.f32.mrf.mxu1 }
 0x786   : > { %v3514_v0 = vpop.f32.mrf.mxu2 }
 0x787   : > { %v11698_v30 = vadd.f32 %v3514_v0, %v3489_v17 }
 0x789   : > { %v11701_v51 = vmul.f32 0.70710677, %v11698_v30  ;;  %v3465_v1 = vpop.f32.mrf.mxu0 }
 0x78b   : > { %v11704_v27 = vand.u32 2147483647, %v11701_v51  ;;  %v11706_v57 = vpop.f32.mrf.mxu1 }
 0x78d   : > { %v3639_v47 = vmul.f32 0.3275911, %v11704_v27  ;;  %v3439_v61 = vpop.f32.mrf.mxu3 }
 0x78e   : > { %v3440_v44 = vadd.f32 %v3439_v61, %v11695_v34  ;;  %v3517_v46 = vpop.f32.mrf.mxu2 }
 0x78f   : > { %v3645_v18 = vadd.f32 1.0, %v3639_v47 }
 0x790   : > { %v3466_v36 = vadd.f32 %v3465_v1, %v3440_v44 }
 0x791   : > { %8467 = vrcp.f32 %v3645_v18  ;;  %v3662_v55 = vand.u32 2147483648, %v3645_v18  ;;  %v3660_v53 = vand.u32 2147483647, %v3645_v18  ;;  %vm3656_vm9 = vweird.f32 %v3645_v18 }
 0x792   : > { %v3492_v43 = vadd.f32 %v3491_v39, %v3466_v36 }
 0x793   : > { %v3595_v50 = vpop.f32.mrf.mxu1  ;;  %v3663_v15 = vor.u32 1.1754944e-38, %v3662_v55  ;;  %vm3661_vm11 = vcmp.eq.f32.partialorder %v3660_v53, 8.507059e+37 }
 0x794   : > { %v11710_v11 = vadd.f32 %v3517_v46, %v3492_v43 }
 0x795   : > { %v3442_v23 = vpop.f32.mrf.mxu3 }
 0x796   : > { %v11713_v21 = vmul.f32 0.70710677, %v11710_v11  ;;  %v3520_v14 = vpop.f32.mrf.mxu2  ;;  %v3443_v62 = vadd.f32 %v3442_v23, %v11695_v34 }
 0x797   : > { %v8468_v56 = vpop.eup %8467 }
 0x798   : > { %v3652_v59 = vmul.f32 %v8468_v56, %v3645_v18  ;;  %v11716_v42 = vand.u32 2147483647, %v11713_v21  ;;  %vm3657_vm2 = vweird.f32 %v8468_v56  ;;  %vm3833_vm14 = vcmp.lt.f32.partialorder %v11713_v21, 0.0 }
 0x799   : > { %v3468_v2 = vpop.f32.mrf.mxu0  ;;  %vm3658_vm10 = vmor %vm3656_vm9, %vm3657_vm2  ;;  %vm3831_vm2 = vcmp.lt.f32.partialorder %v11701_v51, 0.0 }
 0x79a   : > { %v3653_v9 = vsub.f32 1.0, %v3652_v59  ;;  %v3641_v49 = vmul.f32 0.3275911, %v11716_v42  ;;  %v3469_v35 = vadd.f32 %v3468_v2, %v3443_v62 }
 0x79b   : > { %v11720_v6 = vpop.f32.mrf.mxu1 }
 0x79c   : > { %v3654_v8 = vmul.f32 %v8468_v56, %v3653_v9  ;;  %v3647_v10 = vadd.f32 1.0, %v3641_v49  ;;  %v3495_v58 = vadd.f32 %v3494_v5, %v3469_v35  ;;  %v3797_v35 = vsub.f32 0.0, %v11716_v42 }
 0x79d   : > { %v3540_v20 = vpop.f32.mrf.mxu3 }
 0x79e   : > { %8469 = vrcp.f32 %v3647_v10  ;;  %v3618_v48 = vpop.f32.mrf.mxu2  ;;  %v11722_v12 = vadd.f32 %v3520_v14, %v3495_v58  ;;  %v3655_v22 = vadd.f32 %v8468_v56, %v3654_v8  ;;  %v3692_v54 = vand.u32 2147483648, %v3647_v10 }
 0x79f   : > { %v3541_v26 = vadd.f32 %v3540_v20, %v11734_v24  ;;  %v3690_v19 = vand.u32 2147483647, %v3647_v10  ;;  %vm3686_vm13 = vweird.f32 %v3647_v10 }
 0x7a0   : > { %v11725_v13 = vmul.f32 0.70710677, %v11722_v12  ;;  %v3659_v41 = vsel %vm3658_vm10, %v8468_v56, %v3655_v22  ;;  %v3693_v0 = vor.u32 1.1754944e-38, %v3692_v54 }
 0x7a1   : > { %v3566_v7 = vpop.f32.mrf.mxu0  ;;  %v11727_v3 = vsel %vm3661_vm11, %v3663_v15, %v3659_v41  ;;  %vm3691_vm1 = vcmp.eq.f32.partialorder %v3690_v19, 8.507059e+37  ;;  %v3795_v41 = vsub.f32 0.0, %v11704_v27 }
 0x7a2   : > { %v11730_v33 = vand.u32 2147483647, %v11725_v13  ;;  %v3741_v31 = vmul.f32 1.0614054, %v11727_v3  ;;  %v3567_v5 = vadd.f32 %v3566_v7, %v3541_v26  ;;  %vm3835_vm9 = vcmp.lt.f32.partialorder %v11725_v13, 0.0 }
 0x7a3   : > { %v11738_v38 = vpop.f32.mrf.mxu1 }
 0x7a4   : > { %v8470_v4 = vpop.eup %8469  ;;  %v3643_v37 = vmul.f32 0.3275911, %v11730_v33  ;;  %v7862_v29 = vadd.f32 -1.4531521, %v3741_v31  ;;  %v3593_v23 = vadd.f32 %v11706_v57, %v3567_v5 }
 0x7a5   : > { %v3682_v25 = vmul.f32 %v8470_v4, %v3647_v10  ;;  %v3543_v40 = vpop.f32.mrf.mxu3  ;;  %vm3687_vm12 = vweird.f32 %v8470_v4 }
 0x7a6   : > { %v3621_v16 = vpop.f32.mrf.mxu2  ;;  %v11736_v60 = vadd.f32 1.0, %v3643_v37  ;;  %v3544_v52 = vadd.f32 %v3543_v40, %v11734_v24  ;;  %vm3688_vm15 = vmor %vm3686_vm13, %vm3687_vm12  ;;  %v3753_v44 = vmul.f32 %v7862_v29, %v11727_v3  ;;  %v11762_v58 = vadd.f32 %v3618_v48, %v3593_v23 }
 0x7a7   : > { %v3683_v45 = vsub.f32 1.0, %v3682_v25  ;;  %v3799_v29 = vsub.f32 0.0, %v11730_v33 }
 0x7a8   : > { %8471 = vrcp.f32 %v11736_v60  ;;  %v3759_v62 = vadd.f32 1.4214138, %v3753_v44  ;;  %v3722_v10 = vand.u32 2147483648, %v11736_v60  ;;  %v3720_v22 = vand.u32 2147483647, %v11736_v60 }
 0x7a9   : > { %v3684_v63 = vmul.f32 %v8470_v4, %v3683_v45  ;;  %v3569_v39 = vpop.f32.mrf.mxu0  ;;  %vm3716_vm5 = vweird.f32 %v11736_v60  ;;  %v11775_v31 = vmul.f32 0.70710677, %v11762_v58 }
 0x7aa   : > { %v3570_v32 = vadd.f32 %v3569_v39, %v3544_v52  ;;  %v3765_v7 = vmul.f32 %v3759_v62, %v11727_v3  ;;  %v3723_v45 = vor.u32 1.1754944e-38, %v3722_v10  ;;  %vm3721_vm7 = vcmp.eq.f32.partialorder %v3720_v22, 8.507059e+37 }
 0x7ab   : > { %v3685_v28 = vadd.f32 %v8470_v4, %v3684_v63  ;;  %v11755_v9 = vpop.f32.mrf.mxu1 }
 0x7ac   : > { %v3596_v17 = vadd.f32 %v3595_v50, %v3570_v32  ;;  %v7868_v39 = vadd.f32 -0.28449672, %v3765_v7 }
 0x7ad   : > { %v3546_v47 = vpop.f32.mrf.mxu3  ;;  %v3689_v61 = vsel %vm3688_vm15, %v8470_v4, %v3685_v28 }
 0x7ae   : > { %v11744_v46 = vadd.f32 %v3621_v16, %v3596_v17  ;;  %v3624_v18 = vpop.f32.mrf.mxu2  ;;  %v8472_v1 = vpop.eup %8471  ;;  %v11746_v36 = vsel %vm3691_vm1, %v3693_v0, %v3689_v61  ;;  %v3547_v50 = vadd.f32 %v3546_v47, %v11734_v24  ;;  %v3634_v17 = vand.u32 2147483647, %v11775_v31 }
 0x7af   : > { %v3712_v43 = vmul.f32 %v8472_v1, %v11736_v60  ;;  %v3743_v59 = vmul.f32 1.0614054, %v11746_v36  ;;  %vm3717_vm3 = vweird.f32 %v8472_v1  ;;  %v3801_v60 = vmul.f32 %v3795_v41, %v11704_v27 }
 0x7b0   : > { %v11751_v14 = vmul.f32 0.70710677, %v11744_v46  ;;  %vm3718_vm4 = vmor %vm3716_vm5, %vm3717_vm3  ;;  %v3777_v44 = vmul.f32 %v7868_v39, %v11727_v3  ;;  %v3796_v22 = vsub.f32 0.0, %v3634_v17 }
 0x7b1   : > { %v3572_v56 = vpop.f32.mrf.mxu0  ;;  %v3713_v2 = vsub.f32 1.0, %v3712_v43  ;;  %v7864_v55 = vadd.f32 -1.4531521, %v3743_v59 }
 0x7b2   : > { %v3573_v49 = vadd.f32 %v3572_v56, %v3547_v50  ;;  %v11759_v8 = vand.u32 2147483647, %v11751_v14  ;;  %v3805_v56 = vmul.f32 %v3799_v29, %v11730_v33 }
 0x7b3   : > { %v3714_v57 = vmul.f32 %v8472_v1, %v3713_v2  ;;  %v3755_v15 = vmul.f32 %v7864_v55, %v11746_v36  ;;  %v11794_v47 = vpop.f32.mrf.mxu1  ;;  %v3640_v2 = vmul.f32 0.3275911, %v3634_v17  ;;  %v3783_v55 = vadd.f32 0.2548296, %v3777_v44 }
 0x7b4   : > { %v3599_v20 = vadd.f32 %v11720_v6, %v3573_v49  ;;  %v3642_v48 = vmul.f32 0.3275911, %v11759_v8  ;;  %v3803_v6 = vmul.f32 %v3797_v35, %v11716_v42 }
 0x7b5   : > { %v3955_v53 = vpop.f32.mrf.mxu3  ;;  %v3715_v37 = vadd.f32 %v8472_v1, %v3714_v57  ;;  %v3761_v40 = vadd.f32 1.4214138, %v3755_v15  ;;  %v11805_v33 = vadd.f32 1.0, %v3640_v2 }
 0x7b6   : > { %v11769_v4 = vadd.f32 %v3624_v18, %v3599_v20  ;;  %v3929_v25 = vpop.f32.mrf.mxu2  ;;  %v11788_v32 = vadd.f32 1.0, %v3642_v48  ;;  %v3811_v27 = vmul.f32 1.442695, %v3803_v6  ;;  %v3807_v18 = vmul.f32 1.442695, %v3801_v60 }
 0x7b7   : > { %v3719_v52 = vsel %vm3718_vm4, %v8472_v1, %v3715_v37  ;;  %v3767_v63 = vmul.f32 %v3761_v40, %v11746_v36  ;;  %v3930_v19 = vadd.f32 %v3929_v25, %v11695_v34  ;;  %v3815_v20 = vmul.f32 1.442695, %v3805_v56 }
 0x7b8   : > { %v11778_v16 = vmul.f32 0.70710677, %v11769_v4  ;;  %v11786_v26 = vsel %vm3721_vm7, %v3723_v45, %v3719_v52  ;;  %8473 = vrcp.f32 %v11788_v32  ;;  %v3789_v48 = vmul.f32 %v3783_v55, %v11727_v3 }
 0x7b9   : > { %v3981_v54 = vpop.f32.mrf.mxu0  ;;  %v3745_v28 = vmul.f32 1.0614054, %v11786_v26  ;;  %v7870_v5 = vadd.f32 -0.28449672, %v3767_v63  ;;  %v3956_v59 = vadd.f32 %v3955_v53, %v3930_v19  ;;  %vm3701_vm13 = vweird.f32 %v11788_v32 }
 0x7ba   : > { %v11784_v42 = vand.u32 2147483647, %v11778_v16  ;;  %v3707_v21 = vand.u32 2147483648, %v11788_v32  ;;  %vm4396_vm4 = vcmask 195584   ;;  %vm3671_vm7 = vweird.f32 %v11805_v33 }
 0x7bb   : > { %v7866_v23 = vadd.f32 -1.4531521, %v3745_v28  ;;  %v3779_v50 = vmul.f32 %v7870_v5, %v11746_v36  ;;  %v3982_v15 = vadd.f32 %v3981_v54, %v3956_v59  ;;  %v4033_v6 = vpop.f32.mrf.mxu1  ;;  %v3802_v54 = vmul.f32 %v3796_v22, %v3634_v17 }
 0x7bc   : > { %v3644_v0 = vmul.f32 0.3275911, %v11784_v42 }
 0x7bd   : > { %v3958_v61 = vpop.f32.mrf.mxu3  ;;  %v3757_v57 = vmul.f32 %v7866_v23, %v11786_v26  ;;  %v3785_v10 = vadd.f32 0.2548296, %v3779_v50 }
 0x7be   : > { %v11797_v1 = vadd.f32 1.0, %v3644_v0  ;;  %v3932_v43 = vpop.f32.mrf.mxu2  ;;  %v11808_v41 = vpop.eup %8473 }
 0x7bf   : > { %v3933_v62 = vadd.f32 %v3932_v43, %v11695_v34  ;;  %v3763_v7 = vadd.f32 1.4214138, %v3757_v57  ;;  %v3791_v53 = vmul.f32 %v3785_v10, %v11746_v36  ;;  %v11817_v36 = vadd.f32 %v11738_v38, %v3982_v15 }
 0x7c0   : > { %8475 = vrcp.f32 %v11797_v1  ;;  %v3697_v28 = vmul.f32 %v11808_v41, %v11788_v32  ;;  %v11829_v38 = vmul.f32 0.5, %v11698_v30  ;;  %v11839_v43 = vmul.f32 1.442695, %v3802_v54 }
 0x7c1   : > { %8477 = vpow2.f32 %v3811_v27  ;;  %v3959_v49 = vadd.f32 %v3958_v61, %v3933_v62  ;;  %v3984_v35 = vpop.f32.mrf.mxu0  ;;  %v3769_v52 = vmul.f32 %v3763_v7, %v11786_v26  ;;  %v11832_v61 = vmul.f32 0.5, %v11710_v11 }
 0x7c2   : > { %8479 = vpow2.f32 %v3807_v18  ;;  %v11837_v18 = vmul.f32 0.5, %v11722_v12  ;;  %v11843_v23 = vmul.f32 0.70710677, %v11817_v36  ;;  %v3798_v30 = vsub.f32 0.0, %v11759_v8 }
 0x7c3   : > { %v3985_v25 = vadd.f32 %v3984_v35, %v3959_v49  ;;  %8481 = vpow2.f32 %v3815_v20  ;;  %v7872_v29 = vadd.f32 -0.28449672, %v3769_v52  ;;  %v3698_v62 = vsub.f32 1.0, %v3697_v28 }
 0x7c4   : > { %8483 = vrcp.f32 %v11805_v33  ;;  %v4034_v12 = vadd.f32 %v4033_v6, %v11734_v24  ;;  %v3737_v15 = vand.u32 2147483648, %v11797_v1  ;;  %v11863_v7 = vand.u32 2147483647, %v11843_v23 }
 0x7c5   : > { %v3961_v37 = vpop.f32.mrf.mxu3  ;;  %v11824_v0 = vadd.f32 %v11755_v9, %v3985_v25  ;;  %v3735_v25 = vand.u32 2147483647, %v11797_v1  ;;  %vm3731_vm11 = vweird.f32 %v11797_v1  ;;  %vm3702_vm1 = vweird.f32 %v11808_v41 }
 0x7c6   : > { %v11811_v40 = vpop.eup %8475  ;;  %v3935_v45 = vpop.f32.mrf.mxu2  ;;  %v3738_v28 = vor.u32 1.1754944e-38, %v3737_v15  ;;  %vm11915_vm3 = vmor %vm3701_vm13, %vm3702_vm1  ;;  %v3708_v54 = vor.u32 1.1754944e-38, %v3707_v21 }
 0x7c7   : > { %v8478_v63 = vpop.eup %8477  ;;  %v3727_v39 = vmul.f32 %v11811_v40, %v11797_v1  ;;  %v3936_v3 = vadd.f32 %v3935_v45, %v11695_v34  ;;  %v3781_v34 = vmul.f32 %v7872_v29, %v11786_v26  ;;  %v11850_v2 = vmul.f32 0.70710677, %v11824_v0 }
 0x7c8   : > { %v8480_v60 = vpop.eup %8479  ;;  %v3821_v19 = vmul.f32 %v8478_v63, %v3791_v53  ;;  %vm3732_vm10 = vweird.f32 %v11811_v40  ;;  %v3699_v1 = vmul.f32 %v11808_v41, %v3698_v62  ;;  %v4132_v29 = vmul.f32 0.3275911, %v11863_v7 }
 0x7c9   : > { %v3728_v5 = vsub.f32 1.0, %v3727_v39  ;;  %v3987_v17 = vpop.f32.mrf.mxu0  ;;  %v11826_v27 = vmul.f32 %v8480_v60, %v3789_v48  ;;  %v3962_v44 = vadd.f32 %v3961_v37, %v3936_v3  ;;  %v3787_v11 = vadd.f32 0.2548296, %v3781_v34  ;;  %v8482_v59 = vpop.eup %8481  ;;  %vm11877_vm12 = vmor %vm3731_vm11, %vm3732_vm10 }
 0x7ca   : > { %v3827_v56 = vsub.f32 1.0, %v3821_v19  ;;  %v11853_v55 = vpop.eup %8483  ;;  %v4036_v37 = vpop.f32.mrf.mxu1  ;;  %v11875_v45 = vand.u32 2147483647, %v11850_v2  ;;  %vm3736_vm15 = vcmp.eq.f32.partialorder %v3735_v25, 8.507059e+37  ;;  %v3705_v62 = vand.u32 2147483647, %v11788_v32 }
 0x7cb   : > { %v3729_v9 = vmul.f32 %v11811_v40, %v3728_v5  ;;  %v3988_v50 = vadd.f32 %v3987_v17, %v3962_v44  ;;  %v3825_v35 = vsub.f32 1.0, %v11826_v27  ;;  %v3793_v20 = vmul.f32 %v3787_v11, %v11786_v26 }
 0x7cc   : > { %v3839_v26 = vsub.f32 0.0, %v3827_v56  ;;  %v11872_v6 = vmul.f32 %v11853_v55, %v11805_v33  ;;  %v4037_v19 = vadd.f32 %v4036_v37, %v11734_v24  ;;  %v4134_v34 = vmul.f32 0.3275911, %v11875_v45 }
 0x7cd   : > { %v4085_v49 = vpop.f32.mrf.mxu3  ;;  %v11856_v57 = vadd.f32 %v11794_v47, %v3988_v50  ;;  %v3730_v22 = vadd.f32 %v11811_v40, %v3729_v9  ;;  %v3823_v48 = vmul.f32 %v8482_v59, %v3793_v20  ;;  %v3837_v60 = vsub.f32 0.0, %v3825_v35 }
 0x7ce   : > { %v4059_v10 = vpop.f32.mrf.mxu2  ;;  %v3845_v44 = vsel %vm3833_vm14, %v3839_v26, %v3827_v56  ;;  %v3700_v9 = vadd.f32 %v11808_v41, %v3699_v1  ;;  %v11906_v56 = vadd.f32 1.0, %v4132_v29  ;;  %v3804_v26 = vmul.f32 %v3798_v30, %v11759_v8 }
 0x7cf   : > { %v4060_v53 = vadd.f32 %v4059_v10, %v4034_v12  ;;  %v11868_v47 = vmul.f32 0.70710677, %v11856_v57  ;;  %v3829_v39 = vsub.f32 1.0, %v3823_v48  ;;  %v3734_v3 = vsel %vm11877_vm12, %v11811_v40, %v3730_v22 }
 0x7d0   : > { %v11896_v40 = vsel %vm3736_vm15, %v3738_v28, %v3734_v3  ;;  %v3843_v59 = vsel %vm3831_vm2, %v3837_v60, %v3825_v35  ;;  %v3857_v20 = vadd.f32 1.0, %v3845_v44  ;;  %v3800_v35 = vsub.f32 0.0, %v11784_v42 }
 0x7d1   : > { %v4086_v52 = vadd.f32 %v4085_v49, %v4060_v53  ;;  %v4111_v63 = vpop.f32.mrf.mxu0  ;;  %v11889_v5 = vand.u32 2147483647, %v11868_v47  ;;  %v3841_v27 = vsub.f32 0.0, %v3829_v39  ;;  %v3746_v13 = vmul.f32 1.0614054, %v11896_v40 }
 0x7d2   : > { %v11920_v53 = vadd.f32 1.0, %v4134_v34  ;;  %v3855_v37 = vadd.f32 1.0, %v3843_v59  ;;  %v3704_v48 = vsel %vm11915_vm3, %v11808_v41, %v3700_v9  ;;  %v3668_v1 = vsub.f32 1.0, %v11872_v6 }
 0x7d3   : > { %v11891_v17 = vadd.f32 %v4111_v63, %v4086_v52  ;;  %v3847_v11 = vsel %vm3835_vm9, %v3841_v27, %v3829_v39  ;;  %v4136_v22 = vmul.f32 0.3275911, %v11889_v5  ;;  %v4039_v52 = vpop.f32.mrf.mxu1  ;;  %8485 = vrcp.f32 %v11906_v56 }
 0x7d4   : > { %v3859_v10 = vadd.f32 1.0, %v3847_v11  ;;  %v3863_v39 = vmul.f32 %v3857_v20, %v11832_v61  ;;  %vm3706_vm5 = vcmp.eq.f32.partialorder %v3705_v62, 8.507059e+37  ;;  %v7867_v3 = vadd.f32 -1.4531521, %v3746_v13 }
 0x7d5   : > { %v4088_v12 = vpop.f32.mrf.mxu3  ;;  %v11910_v15 = vmul.f32 0.70710677, %v11891_v17  ;;  %v11932_v60 = vadd.f32 1.0, %v4136_v22  ;;  %v11937_v8 = vsel %vm3706_vm5, %v3708_v54, %v3704_v48  ;;  %8487 = vrcp.f32 %v11920_v53 }
 0x7d6   : > { %v4062_v50 = vpop.f32.mrf.mxu2  ;;  %v3865_v32 = vmul.f32 %v3859_v10, %v11837_v18  ;;  %v3806_v18 = vmul.f32 %v3800_v35, %v11784_v42  ;;  %v4040_v30 = vadd.f32 %v4039_v52, %v11734_v24  ;;  %v3861_v6 = vmul.f32 %v3855_v37, %v11829_v38 }
 0x7d7   : > { %v4063_v49 = vadd.f32 %v4062_v50, %v4037_v19  ;;  %v11935_v41 = vand.u32 2147483647, %v11910_v15  ;;  %v11945_v19 = vld [vmem:[#allocation18] sm:$0xff]  ;;  %v3758_v28 = vmul.f32 %v7867_v3, %v11896_v40  ;;  %v3744_v27 = vmul.f32 1.0614054, %v11937_v8 }
 0x7d8   : > { %4660 = vmatpush.msrb.mxu2 %v3865_v32  ;;  %8489 = vpow2.f32 %v11839_v43  ;;  %v11951_v42 = vmul.f32 0.5, %v11744_v46  ;;  %v3669_v24 = vmul.f32 %v11853_v55, %v3668_v1  ;;  %v3813_v50 = vmul.f32 1.442695, %v3804_v26 }
 0x7d9   : > { %v4114_v25 = vpop.f32.mrf.mxu0  ;;  %v4089_v63 = vadd.f32 %v4088_v12, %v4063_v49  ;;  %8491 = vrcp.f32 %v11932_v60  ;;  %v4133_v38 = vmul.f32 0.3275911, %v11935_v41  ;;  %v3764_v34 = vadd.f32 1.4214138, %v3758_v28  ;;  %v11956_v9 = vpop.eup %8485 }
 0x7da   : > { %4661 = vmatpush.msrb.mxu2 %v3863_v39  ;;  %v3817_v11 = vmul.f32 1.442695, %v3806_v18  ;;  %v7865_v46 = vadd.f32 -1.4531521, %v3744_v27  ;;  %v4288_v43 = vsub.f32 0.0, %v11863_v7  ;;  %v11969_v20 = vmul.f32 0.5, %v11769_v4 }
 0x7db   : > { %v11943_v61 = vadd.f32 %v4114_v25, %v4089_v63  ;;  %v3770_v49 = vmul.f32 %v3764_v34, %v11896_v40  ;;  %v11966_v10 = vpop.eup %8487  ;;  %v3670_v13 = vadd.f32 %v11853_v55, %v3669_v24  ;;  %vm3672_vm14 = vweird.f32 %v11853_v55 }
 0x7dc   : > { %4662 = vmatpush.msrb.mxu2 %v3861_v6  ;;  %v3756_v22 = vmul.f32 %v7865_v46, %v11937_v8  ;;  %v4145_v51 = vmul.f32 %v11956_v9, %v11906_v56  ;;  %v11976_v35 = vadd.f32 1.0, %v4133_v38  ;;  %v3675_v37 = vand.u32 2147483647, %v11805_v33  ;;  %vm11995_vm2 = vmor %vm3671_vm7, %vm3672_vm14 }
 0x7dd   : > { %v4091_v59 = vpop.f32.mrf.mxu3  ;;  %7928 = vmatmul.msk.f32.vlgmr.msrb.gmra.mxu2 %vm4396_vm4, %v11945_v19  ;;  %v11963_v21 = vmul.f32 0.70710677, %v11943_v61  ;;  %8493 = vpow2.f32 %v3813_v50  ;;  %v7873_v4 = vadd.f32 -0.28449672, %v3770_v49  ;;  %v3677_v52 = vand.u32 2147483648, %v11805_v33 }
 0x7de   : > { %v4065_v29 = vpop.f32.mrf.mxu2  ;;  %v11981_v48 = vpop.eup %8489  ;;  %v3762_v26 = vadd.f32 1.4214138, %v3756_v22  ;;  %8495 = vpow2.f32 %v3817_v11  ;;  %v4294_v63 = vmul.f32 %v4288_v43, %v11863_v7  ;;  %v4290_v54 = vsub.f32 0.0, %v11875_v45 }
 0x7df   : > { %v4066_v44 = vadd.f32 %v4065_v29, %v4040_v30  ;;  %v11984_v32 = vpop.eup %8491  ;;  %v11989_v1 = vand.u32 2147483647, %v11963_v21  ;;  %v4175_v3 = vmul.f32 %v11966_v10, %v11920_v53  ;;  %v3782_v7 = vmul.f32 %v7873_v4, %v11896_v40 }
 0x7e0   : > { %v3674_v30 = vsel %vm11995_vm2, %v11853_v55, %v3670_v13  ;;  %v4146_v6 = vsub.f32 1.0, %v4145_v51  ;;  %8497 = vrcp.f32 %v11976_v35  ;;  %v3768_v33 = vmul.f32 %v3762_v26, %v11937_v8 }
 0x7e1   : > { %v4117_v62 = vpop.f32.mrf.mxu0  ;;  %v4092_v12 = vadd.f32 %v4091_v59, %v4066_v44  ;;  %v3678_v29 = vor.u32 1.1754944e-38, %v3677_v52  ;;  %v4205_v28 = vmul.f32 %v11984_v32, %v11932_v60  ;;  %v3788_v24 = vadd.f32 0.2548296, %v3782_v7 }
 0x7e2   : > { %vm3676_vm9 = vcmp.eq.f32.partialorder %v3675_v37, 8.507059e+37  ;;  %v4292_v38 = vsub.f32 0.0, %v11889_v5  ;;  %v4135_v44 = vmul.f32 0.3275911, %v11989_v1  ;;  %v7871_v34 = vadd.f32 -0.28449672, %v3768_v33 }
 0x7e3   : > { %v11978_v25 = vadd.f32 %v4117_v62, %v4092_v12  ;;  %v12017_v55 = vsel %vm3676_vm9, %v3678_v29, %v3674_v30  ;;  %v8494_v50 = vpop.eup %8493  ;;  %v4176_v11 = vsub.f32 1.0, %v4175_v3  ;;  %v3794_v62 = vmul.f32 %v3788_v24, %v11896_v40 }
 0x7e4   : > { %v3742_v46 = vmul.f32 1.0614054, %v12017_v55  ;;  %v8496_v43 = vpop.eup %8495  ;;  %vm3836_vm10 = vcmp.lt.f32.partialorder %v11778_v16, 0.0  ;;  %v12023_v12 = vmul.f32 1.442695, %v4294_v63  ;;  %v4215_v49 = vand.u32 2147483648, %v11932_v60 }
 0x7e5   : > { %v12002_v18 = vmul.f32 0.70710677, %v11978_v25  ;;  %v3780_v22 = vmul.f32 %v7871_v34, %v11937_v8  ;;  %v12028_v13 = vmul.f32 %v4290_v54, %v11875_v45  ;;  %v4206_v51 = vsub.f32 1.0, %v4205_v28 }
 0x7e6   : > { %v3824_v4 = vmul.f32 %v8496_v43, %v3794_v62  ;;  %v12032_v26 = vpop.eup %8497  ;;  %v4147_v40 = vmul.f32 %v11956_v9, %v4146_v6  ;;  %v12035_v52 = vadd.f32 1.0, %v4135_v44  ;;  %v7863_v63 = vadd.f32 -1.4531521, %v3742_v46 }
 0x7e7   : > { %v12013_v27 = vand.u32 2147483647, %v12002_v18  ;;  %v3786_v39 = vadd.f32 0.2548296, %v3780_v22  ;;  %v12038_v3 = vmul.f32 %v11966_v10, %v4176_v11  ;;  %v4213_v7 = vand.u32 2147483647, %v11932_v60 }
 0x7e8   : > { %v12042_v45 = vmul.f32 %v4292_v38, %v11889_v5  ;;  %vm3834_vm11 = vcmp.lt.f32.partialorder %v11751_v14, 0.0  ;;  %v12046_v54 = vor.u32 1.1754944e-38, %v4215_v49  ;;  %v3830_v30 = vsub.f32 1.0, %v3824_v4 }
 0x7e9   : > { %v4137_v59 = vmul.f32 0.3275911, %v12013_v27  ;;  %v3792_v6 = vmul.f32 %v3786_v39, %v11937_v8  ;;  %v4153_v33 = vand.u32 2147483647, %v11906_v56  ;;  %v4207_v29 = vmul.f32 %v11984_v32, %v4206_v51 }
 0x7ea   : > { %vm4210_vm12 = vweird.f32 %v11984_v32  ;;  %v3754_v28 = vmul.f32 %v7863_v63, %v12017_v55  ;;  %v4155_v5 = vand.u32 2147483648, %v11906_v56  ;;  %vm4209_vm13 = vweird.f32 %v11932_v60 }
 0x7eb   : > { %v12030_v37 = vadd.f32 1.0, %v4137_v59  ;;  %v12057_v24 = vmul.f32 %v12032_v26, %v11976_v35  ;;  %v3842_v38 = vsub.f32 0.0, %v3830_v30  ;;  %v3822_v8 = vmul.f32 %v8494_v50, %v3792_v6 }
 0x7ec   : > { %v4293_v34 = vsub.f32 0.0, %v12013_v27  ;;  %v3760_v11 = vadd.f32 1.4214138, %v3754_v28  ;;  %vm4149_vm15 = vweird.f32 %v11906_v56  ;;  %vm4150_vm1 = vweird.f32 %v11956_v9 }
 0x7ed   : > { %8499 = vrcp.f32 %v12030_v37  ;;  %v4228_v44 = vand.u32 2147483647, %v12030_v37  ;;  %v3848_v59 = vsel %vm3836_vm10, %v3842_v38, %v3830_v30  ;;  %v3828_v62 = vsub.f32 1.0, %v3822_v8  ;;  %vm4151_vm14 = vmor %vm4149_vm15, %vm4150_vm1 }
 0x7ee   : > { %8501 = vrcp.f32 %v12035_v52  ;;  %vm12066_vm3 = vcmp.eq.f32.partialorder %v4153_v33, 8.507059e+37  ;;  %vm4224_vm5 = vweird.f32 %v12030_v37  ;;  %v3860_v50 = vadd.f32 1.0, %v3848_v59 }
 0x7ef   : > { %v3766_v49 = vmul.f32 %v3760_v11, %v12017_v55  ;;  %v4156_v22 = vor.u32 1.1754944e-38, %v4155_v5  ;;  %v4230_v4 = vand.u32 2147483648, %v12030_v37  ;;  %v3840_v16 = vsub.f32 0.0, %v3828_v62 }
 0x7f0   : > { %v4148_v39 = vadd.f32 %v11956_v9, %v4147_v40  ;;  %vm12075_vm7 = vcmp.eq.f32.partialorder %v4228_v44, 8.507059e+37  ;;  %v3866_v30 = vmul.f32 %v3860_v50, %v11969_v20  ;;  %v4183_v33 = vand.u32 2147483647, %v11920_v53  ;;  %v12108_v50 = vld [vmem:[#allocation18 + $0x8] sm:$0xff] }
 0x7f1   : > { %v7869_v6 = vadd.f32 -0.28449672, %v3766_v49  ;;  %v3846_v40 = vsel %vm3834_vm11, %v3840_v16, %v3828_v62  ;;  %v4185_v38 = vand.u32 2147483648, %v11920_v53  ;;  %vm4179_vm9 = vweird.f32 %v11920_v53  ;;  %vm12103_vm11 = vmor %vm4209_vm13, %vm4210_vm12  ;;  %7929 = vmatmul.msk.f32.gmra.mxu2 %vm4396_vm4, %v12108_v50 }
 0x7f2   : > { %v4152_v8 = vsel %vm4151_vm14, %v11956_v9, %v4148_v39  ;;  %4464 = vmatpush.msra.mxu0 %v3866_v30  ;;  %v3858_v20 = vadd.f32 1.0, %v3846_v40  ;;  %vm4180_vm10 = vweird.f32 %v11966_v10  ;;  %v4231_v59 = vor.u32 1.1754944e-38, %v4230_v4 }
 0x7f3   : > { %v8500_v43 = vpop.eup %8499  ;;  %v3778_v44 = vmul.f32 %v7869_v6, %v12017_v55  ;;  %v12094_v11 = vsel %vm12066_vm3, %v4156_v22, %v4152_v8  ;;  %v4208_v49 = vadd.f32 %v11984_v32, %v4207_v29  ;;  %v4178_v4 = vadd.f32 %v11966_v10, %v12038_v3  ;;  %vm4181_vm1 = vmor %vm4179_vm9, %vm4180_vm10 }
 0x7f4   : > { %v4220_v51 = vmul.f32 %v8500_v43, %v12030_v37  ;;  %v12085_v28 = vpop.eup %8501  ;;  %vm4225_vm2 = vweird.f32 %v8500_v43  ;;  %v4234_v14 = vmul.f32 1.0614054, %v12094_v11  ;;  %v3864_v62 = vmul.f32 %v3858_v20, %v11951_v42 }
 0x7f5   : > { %v3784_v46 = vadd.f32 0.2548296, %v3778_v44  ;;  %vm12114_vm15 = vmor %vm4224_vm5, %vm4225_vm2  ;;  %vm4184_vm12 = vcmp.eq.f32.partialorder %v4183_v33, 8.507059e+37  ;;  %v4212_v29 = vsel %vm12103_vm11, %v11984_v32, %v4208_v49  ;;  %vm4214_vm13 = vcmp.eq.f32.partialorder %v4213_v7, 8.507059e+37 }
 0x7f6   : > { %v4221_v5 = vsub.f32 1.0, %v4220_v51  ;;  %v7880_v42 = vadd.f32 -1.4531521, %v4234_v14  ;;  %4465 = vmatpush.msra.mxu0 %v3864_v62  ;;  %v4186_v37 = vor.u32 1.1754944e-38, %v4185_v38  ;;  %v12135_v39 = vsel %vm4214_vm13, %v12046_v54, %v4212_v29  ;;  %v12172_v29 = vld [vmem:[#allocation19] sm:$0xff] }
 0x7f7   : > { %v3790_v16 = vmul.f32 %v3784_v46, %v12017_v55  ;;  %v4182_v55 = vsel %vm4181_vm1, %v11966_v10, %v4178_v4  ;;  %v4238_v53 = vmul.f32 1.0614054, %v12135_v39  ;;  %8503 = vpow2.f32 %v12023_v12 }
 0x7f8   : > { %v4222_v56 = vmul.f32 %v8500_v43, %v4221_v5  ;;  %v4246_v30 = vmul.f32 %v7880_v42, %v12094_v11  ;;  %v12145_v7 = vsel %vm4184_vm12, %v4186_v37, %v4182_v55  ;;  %v4304_v10 = vmul.f32 1.442695, %v12028_v13  ;;  %v12151_v5 = vld [vmem:[#allocation18 + $0x10] sm:$0xff] }
 0x7f9   : > { %v3820_v32 = vmul.f32 %v11981_v48, %v3790_v16  ;;  %v7884_v63 = vadd.f32 -1.4531521, %v4238_v53  ;;  %v4308_v40 = vmul.f32 1.442695, %v12042_v45  ;;  %v4161_v20 = vsub.f32 1.0, %v12057_v24  ;;  %7930 = vmatmul.msk.f32.gmra.mxu2 %vm4396_vm4, %v12151_v5 }
 0x7fa   : > { %v4223_v22 = vadd.f32 %v8500_v43, %v4222_v56  ;;  %v4252_v54 = vadd.f32 1.4214138, %v4246_v30  ;;  %v4299_v44 = vmul.f32 %v4293_v34, %v12013_v27  ;;  %vm3832_vm3 = vcmp.lt.f32.partialorder %v11775_v31, 0.0  ;;  %v12177_v30 = vld [vmem:[#allocation18 + $0x18] sm:$0xff] }
 0x7fb   : > { %v3826_v33 = vsub.f32 1.0, %v3820_v32  ;;  %v4250_v12 = vmul.f32 %v7884_v63, %v12135_v39  ;;  %v4190_v24 = vmul.f32 %v12085_v28, %v12035_v52  ;;  %8505 = vpow2.f32 %v4304_v10 }
 0x7fc   : > { %v4227_v3 = vsel %vm12114_vm15, %v8500_v43, %v4223_v22  ;;  %v4236_v43 = vmul.f32 1.0614054, %v12145_v7  ;;  %v4258_v8 = vmul.f32 %v4252_v54, %v12094_v11  ;;  %v4162_v31 = vmul.f32 %v12032_v26, %v4161_v20 }
 0x7fd   : > { %v12141_v60 = vsel %vm12075_vm7, %v4231_v59, %v4227_v3  ;;  %v3838_v56 = vsub.f32 0.0, %v3826_v33  ;;  %v3850_v59 = vmul.f32 0.5, %v11762_v58  ;;  %v4256_v27 = vadd.f32 1.4214138, %v4250_v12  ;;  %v8504_v22 = vpop.eup %8503 }
 0x7fe   : > { %v4239_v6 = vmul.f32 1.0614054, %v12141_v60  ;;  %v7882_v38 = vadd.f32 -1.4531521, %v4236_v43  ;;  %v7886_v14 = vadd.f32 -0.28449672, %v4258_v8  ;;  %8507 = vpow2.f32 %v4308_v40 }
 0x7ff   : > { %v3844_v9 = vsel %vm3832_vm3, %v3838_v56, %v3826_v33  ;;  %v4310_v51 = vmul.f32 1.442695, %v4299_v44  ;;  %v4262_v4 = vmul.f32 %v4256_v27, %v12135_v39  ;;  %v4170_v3 = vand.u32 2147483648, %v11976_v35 }
 0x800   : > { %v7885_v48 = vadd.f32 -1.4531521, %v4239_v6  ;;  %v4248_v45 = vmul.f32 %v7882_v38, %v12145_v7  ;;  %v3856_v62 = vadd.f32 1.0, %v3844_v9  ;;  %v4270_v49 = vmul.f32 %v7886_v14, %v12094_v11 }
 0x801   : > { %v4289_v55 = vsub.f32 0.0, %v11935_v41  ;;  %v7890_v32 = vadd.f32 -0.28449672, %v4262_v4  ;;  %v4191_v53 = vsub.f32 1.0, %v4190_v24  ;;  %8509 = vpow2.f32 %v4310_v51  ;;  %7931 = vmatmul.msk.f32.gmra.mxu2 %vm4396_vm4, %v12177_v30  ;;  %v8506_v38 = vpop.eup %8505 }
 0x802   : > { %v4251_v13 = vmul.f32 %v7885_v48, %v12141_v60  ;;  %v4254_v46 = vadd.f32 1.4214138, %v4248_v45  ;;  %v3862_v16 = vmul.f32 %v3856_v62, %v3850_v59  ;;  %v4276_v37 = vadd.f32 0.2548296, %v4270_v49  ;;  %v12205_v59 = vld [vmem:[#allocation19 + $0x8] sm:$0xff]  ;;  %v12210_v49 = vld [vmem:[#allocation18 + $0x20] sm:$0xff] }
 0x803   : > { %v4274_v10 = vmul.f32 %v7890_v32, %v12135_v39  ;;  %vm4165_vm5 = vweird.f32 %v12032_v26  ;;  %v4168_v33 = vand.u32 2147483647, %v11976_v35  ;;  %v12191_v8 = vmul.f32 0.5, %v11856_v57 }
 0x804   : > { %v4257_v34 = vadd.f32 1.4214138, %v4251_v13  ;;  %v4260_v58 = vmul.f32 %v4254_v46, %v12145_v7  ;;  %4466 = vmatpush.msra.mxu0 %v3862_v16  ;;  %v4282_v54 = vmul.f32 %v4276_v37, %v12094_v11  ;;  %v4163_v11 = vadd.f32 %v12032_v26, %v4162_v31  ;;  %v8508_v14 = vpop.eup %8507 }
 0x805   : > { %7892 = vmatmul.msk.f32.vlgmr.msra.gmra.mxu0 %vm4396_vm4, %v12172_v29  ;;  %vm4164_vm7 = vweird.f32 %v11976_v35  ;;  %v4295_v20 = vmul.f32 %v4289_v55, %v11935_v41  ;;  %v4280_v44 = vadd.f32 0.2548296, %v4274_v10  ;;  %vm4324_vm14 = vcmp.lt.f32.partialorder %v11843_v23, 0.0 }
 0x806   : > { %v4263_v42 = vmul.f32 %v4257_v34, %v12141_v60  ;;  %v7888_v43 = vadd.f32 -0.28449672, %v4260_v58  ;;  %v4312_v48 = vmul.f32 %v8504_v22, %v4282_v54  ;;  %vm4328_vm2 = vcmp.lt.f32.partialorder %v11868_v47, 0.0  ;;  %vm4166_vm9 = vmor %vm4164_vm7, %vm4165_vm5 }
 0x807   : > { %v4171_v56 = vor.u32 1.1754944e-38, %v4170_v3  ;;  %v4192_v12 = vmul.f32 %v12085_v28, %v4191_v53  ;;  %vm4326_vm10 = vcmp.lt.f32.partialorder %v11850_v2, 0.0  ;;  %v4286_v57 = vmul.f32 %v4280_v44, %v12135_v39  ;;  %v8510_v62 = vpop.eup %8509  ;;  %v12236_v44 = vld [vmem:[#allocation18 + $0x28] sm:$0xff] }
 0x808   : > { %v7891_v6 = vadd.f32 -0.28449672, %v4263_v42  ;;  %v4272_v40 = vmul.f32 %v7888_v43, %v12145_v7  ;;  %v4318_v35 = vsub.f32 1.0, %v4312_v48  ;;  %v4167_v41 = vsel %vm4166_vm9, %v12032_v26, %v4163_v11 }
 0x809   : > { %vm4169_vm11 = vcmp.eq.f32.partialorder %v4168_v33, 8.507059e+37  ;;  %v4200_v24 = vand.u32 2147483648, %v12035_v52  ;;  %v4316_v46 = vmul.f32 %v8508_v14, %v4286_v57  ;;  %vm4195_vm15 = vweird.f32 %v12085_v28  ;;  %7932 = vmatmul.msk.f32.gmra.mxu2 %vm4396_vm4, %v12210_v49 }
 0x80a   : > { %v4275_v63 = vmul.f32 %v7891_v6, %v12141_v60  ;;  %v4278_v45 = vadd.f32 0.2548296, %v4272_v40  ;;  %v12208_v34 = vsel %vm4169_vm11, %v4171_v56, %v4167_v41  ;;  %v4198_v39 = vand.u32 2147483647, %v12035_v52 }
 0x80b   : > { %v4235_v26 = vmul.f32 1.0614054, %v12208_v34  ;;  %v4302_v22 = vmul.f32 1.442695, %v4295_v20  ;;  %vm4194_vm12 = vweird.f32 %v12035_v52  ;;  %v4330_v51 = vsub.f32 0.0, %v4318_v35 }
 0x80c   : > { %v4281_v13 = vadd.f32 0.2548296, %v4275_v63  ;;  %v4284_v27 = vmul.f32 %v4278_v45, %v12145_v7  ;;  %v4322_v7 = vsub.f32 1.0, %v4316_v46  ;;  %v4193_v4 = vadd.f32 %v12085_v28, %v4192_v12  ;;  %vm4196_vm13 = vmor %vm4194_vm12, %vm4195_vm15 }
 0x80d   : > { %7893 = vmatmul.msk.f32.gmra.mxu0 %vm4396_vm4, %v12205_v59  ;;  %v7881_v42 = vadd.f32 -1.4531521, %v4235_v26  ;;  %v4201_v16 = vor.u32 1.1754944e-38, %v4200_v24  ;;  %v4291_v58 = vsub.f32 0.0, %v11989_v1  ;;  %vm4199_vm1 = vcmp.eq.f32.partialorder %v4198_v39, 8.507059e+37 }
 0x80e   : > { %v4287_v9 = vmul.f32 %v4281_v13, %v12141_v60  ;;  %v4314_v31 = vmul.f32 %v8506_v38, %v4284_v27  ;;  %v4334_v52 = vsub.f32 0.0, %v4322_v7  ;;  %v4197_v55 = vsel %vm4196_vm13, %v12085_v28, %v4193_v4  ;;  %v12232_v28 = vld [vmem:[#allocation19 + $0x10] sm:$0xff]  ;;  %v4381_v27 = vld [vmem:[#allocation19 + $0x18] sm:$0xff]  ;;  %v4382_v4 = vld [vmem:[#allocation19 + $0x20] sm:$0xff] }
 0x80f   : > { %v4247_v32 = vmul.f32 %v7881_v42, %v12208_v34  ;;  %vm4329_vm3 = vcmp.lt.f32.partialorder %v12002_v18, 0.0  ;;  %v4202_v43 = vsel %vm4199_vm1, %v4201_v16, %v4197_v55  ;;  %v4336_v10 = vsel %vm4324_vm14, %v4330_v51, %v4318_v35  ;;  %v4383_v55 = vld [vmem:[#allocation19 + $0x28] sm:$0xff] }
 0x810   : > { %v4317_v60 = vmul.f32 %v8510_v62, %v4287_v9  ;;  %v4320_v3 = vsub.f32 1.0, %v4314_v31  ;;  %v4340_v54 = vsel %vm4328_vm2, %v4334_v52, %v4322_v7  ;;  %v4237_v33 = vmul.f32 1.0614054, %v4202_v43  ;;  %v4366_v62 = vld [vmem:[#allocation18 + $0x30] sm:$0xff] }
 0x811   : > { %v4253_v63 = vadd.f32 1.4214138, %v4247_v32  ;;  %v4347_v48 = vmul.f32 0.5, %v11978_v25  ;;  %v4352_v11 = vadd.f32 1.0, %v4340_v54  ;;  %v4344_v23 = vmul.f32 0.5, %v11824_v0  ;;  %7933 = vmatmul.msk.f32.gmra.mxu2 %vm4396_vm4, %v12236_v44  ;;  %v4388_v54 = vld [vmem:[#allocation19 + $0x50] sm:$0xff] }
 0x812   : > { %v4323_v37 = vsub.f32 1.0, %v4317_v60  ;;  %v4332_v6 = vsub.f32 0.0, %v4320_v3  ;;  %v7883_v47 = vadd.f32 -1.4531521, %v4237_v33  ;;  %v4297_v12 = vmul.f32 %v4291_v58, %v11989_v1  ;;  %v4389_v33 = vld [vmem:[#allocation19 + $0x58] sm:$0xff] }
 0x813   : > { %v4259_v56 = vmul.f32 %v4253_v63, %v12208_v34  ;;  %v4358_v13 = vmul.f32 %v4352_v11, %v12191_v8  ;;  %v4348_v25 = vadd.f32 1.0, %v4336_v10  ;;  %v4342_v57 = vmul.f32 0.5, %v11817_v36  ;;  %v4373_v10 = vld [vmem:[#allocation18 + $0x68] sm:$0xff]  ;;  %v4374_v63 = vld [vmem:[#allocation18 + $0x70] sm:$0xff]  ;;  %v4376_v11 = vld [vmem:[#allocation18 + $0x80] sm:$0xff] }
 0x814   : > { %v4335_v53 = vsub.f32 0.0, %v4323_v37  ;;  %v4338_v18 = vsel %vm4326_vm10, %v4332_v6, %v4320_v3  ;;  %v4249_v2 = vmul.f32 %v7883_v47, %v4202_v43  ;;  %8511 = vpow2.f32 %v4302_v22  ;;  %v4393_v47 = vld [vmem:[#allocation19 + $0x78] sm:$0xff] }
 0x815   : > { %v4350_v20 = vadd.f32 1.0, %v4338_v18  ;;  %7894 = vmatmul.msk.f32.gmra.mxu0 %vm4396_vm4, %v12232_v28  ;;  %v7887_v14 = vadd.f32 -0.28449672, %v4259_v56  ;;  %4731 = vmatpush.msrb.mxu3 %v4358_v13  ;;  %v4306_v8 = vmul.f32 1.442695, %v4297_v12  ;;  %v4354_v41 = vmul.f32 %v4348_v25, %v4342_v57  ;;  %v4394_v12 = vld [vmem:[#allocation19 + $0x80] sm:$0xff] }
 0x816   : > { %v4341_v40 = vsel %vm4329_vm3, %v4335_v53, %v4323_v37  ;;  %v4255_v0 = vadd.f32 1.4214138, %v4249_v2  ;;  %vm4325_vm5 = vcmp.lt.f32.partialorder %v11910_v15, 0.0  ;;  %vm4327_vm7 = vcmp.lt.f32.partialorder %v11963_v21, 0.0  ;;  %v4369_v21 = vld [vmem:[#allocation18 + $0x48] sm:$0xff]  ;;  %v4395_v2 = vld [vmem:[#allocation19 + $0x88] sm:$0xff] }
 0x817   : > { %v4353_v38 = vadd.f32 1.0, %v4341_v40  ;;  %v4356_v35 = vmul.f32 %v4350_v20, %v4344_v23  ;;  %v4271_v1 = vmul.f32 %v7887_v14, %v12208_v34  ;;  %8513 = vpow2.f32 %v4306_v8  ;;  %v4390_v40 = vld [vmem:[#allocation19 + $0x60] sm:$0xff]  ;;  %v4377_v20 = vld [vmem:[#allocation18 + $0x88] sm:$0xff] }
 0x818   : > { %v4261_v24 = vmul.f32 %v4255_v0, %v4202_v43  ;;  %v4345_v52 = vmul.f32 0.5, %v11943_v61  ;;  %v4343_v6 = vmul.f32 0.5, %v11891_v17  ;;  %v4384_v61 = vld [vmem:[#allocation19 + $0x30] sm:$0xff]  ;;  %v4385_v17 = vld [vmem:[#allocation19 + $0x38] sm:$0xff]  ;;  %vm4897_vm14 = vcmask 31744  }
 0x819   : > { %v4359_v45 = vmul.f32 %v4353_v38, %v4347_v48  ;;  %4732 = vmatpush.msrb.mxu3 %v4356_v35  ;;  %v4277_v9 = vadd.f32 0.2548296, %v4271_v1  ;;  %7934 = vmatmul.msk.f32.gmra.mxu2 %vm4396_vm4, %v4366_v62  ;;  %v4375_v48 = vld [vmem:[#allocation18 + $0x78] sm:$0xff]  ;;  %v4392_v38 = vld [vmem:[#allocation19 + $0x70] sm:$0xff]  ;;  %vm12363_vm2 = vmneg %vm4897_vm14 }
 0x81a   : > { %v7889_v36 = vadd.f32 -0.28449672, %v4261_v24  ;;  %v8512_v39 = vpop.eup %8511  ;;  %v5024_v24 = vld [vmem:[#allocation21 + $0xf0] sm:$0xff] }
 0x81b   : > { %4535 = vmatpush.msra.mxu1 %v4359_v45  ;;  %4733 = vmatpush.msrb.mxu3 %v4354_v41  ;;  %v4283_v46 = vmul.f32 %v4277_v9, %v12208_v34 }
 0x81c   : > { %7946 = vmatmul.msk.f32.vlgmr.msrb.gmra.mxu3 %vm4396_vm4, %v11945_v19  ;;  %v4273_v26 = vmul.f32 %v7889_v36, %v4202_v43  ;;  %v4367_v19 = vld [vmem:[#allocation18 + $0x38] sm:$0xff]  ;;  %5216 = vmatpush.msrb.mxu0 %v5024_v24  ;;  %v5022_v36 = vld [vmem:[#allocation21 + $0xe0] sm:$0xff] }
 0x81d   : > { %7895 = vmatmul.msk.f32.gmra.mxu0 %vm4396_vm4, %v4381_v27  ;;  %v4313_v22 = vmul.f32 %v8512_v39, %v4283_v46  ;;  %v8514_v51 = vpop.eup %8513 }
 0x81e   : > { %v4279_v60 = vadd.f32 0.2548296, %v4273_v26  ;;  %5217 = vmatpush.msrb.mxu0 %v5022_v36  ;;  %v5018_v26 = vld [vmem:[#allocation21 + $0xc0] sm:$0xff] }
 0x81f   : > { %v4319_v31 = vsub.f32 1.0, %v4313_v22  ;;  %v5016_v22 = vld [vmem:[#allocation21 + $0xb0] sm:$0xff] }
 0x820   : > { %v4285_v7 = vmul.f32 %v4279_v60, %v4202_v43 }
 0x821   : > { %v4331_v16 = vsub.f32 0.0, %v4319_v31  ;;  %7935 = vmatmul.msk.f32.gmra.mxu2 %vm4396_vm4, %v4367_v19 }
 0x822   : > { %v4315_v42 = vmul.f32 %v8514_v51, %v4285_v7  ;;  %v5012_v7 = vld [vmem:[#allocation21 + $0x90] sm:$0xff] }
 0x823   : > { %v4337_v37 = vsel %vm4325_vm5, %v4331_v16, %v4319_v31  ;;  %v5014_v31 = vld [vmem:[#allocation21 + $0xa0] sm:$0xff] }
 0x824   : > { %7947 = vmatmul.msk.f32.gmra.mxu3 %vm4396_vm4, %v12108_v50  ;;  %v4321_v34 = vsub.f32 1.0, %v4315_v42  ;;  %v4349_v53 = vadd.f32 1.0, %v4337_v37  ;;  %v4368_v50 = vld [vmem:[#allocation18 + $0x40] sm:$0xff]  ;;  %v5004_v37 = vld [vmem:[#allocation21 + $0x50] sm:$0xff] }
 0x825   : > { %7896 = vmatmul.msk.f32.gmra.mxu0 %vm4396_vm4, %v4382_v4  ;;  %v5010_v42 = vld [vmem:[#allocation21 + $0x80] sm:$0xff] }
 0x826   : > { %v4333_v58 = vsub.f32 0.0, %v4321_v34  ;;  %v4355_v15 = vmul.f32 %v4349_v53, %v4343_v6  ;;  %v5002_v53 = vld [vmem:[#allocation21 + $0x40] sm:$0xff] }
 0x828   : > { %v4339_v3 = vsel %vm4327_vm7, %v4333_v58, %v4321_v34  ;;  %v5006_v58 = vld [vmem:[#allocation21 + $0x60] sm:$0xff] }
 0x829   : > { %v4351_v32 = vadd.f32 1.0, %v4339_v3  ;;  %7936 = vmatmul.msk.f32.gmra.mxu2 %vm4396_vm4, %v4368_v50 }
 0x82b   : > { %v4357_v43 = vmul.f32 %v4351_v32, %v4345_v52 }
 0x82c   : > { %7948 = vmatmul.msk.f32.gmra.mxu3 %vm4396_vm4, %v12151_v5  ;;  %v4370_v5 = vld [vmem:[#allocation18 + $0x50] sm:$0xff] }
 0x82d   : > { %7897 = vmatmul.msk.f32.gmra.mxu0 %vm4396_vm4, %v4383_v55  ;;  %4536 = vmatpush.msra.mxu1 %v4357_v43  ;;  %v5000_v43 = vld [vmem:[#allocation21 + $0x30] sm:$0xff] }
 0x82f   : > { %4537 = vmatpush.msra.mxu1 %v4355_v15 }
 0x830   : > { %7910 = vmatmul.msk.f32.vlgmr.msra.gmra.mxu1 %vm4396_vm4, %v12172_v29  ;;  %v4386_v29 = vld [vmem:[#allocation19 + $0x40] sm:$0xff] }
 0x831   : > { %7937 = vmatmul.msk.f32.gmra.mxu2 %vm4396_vm4, %v4369_v21 }
 0x834   : > { %7949 = vmatmul.msk.f32.gmra.mxu3 %vm4396_vm4, %v12177_v30  ;;  %v4371_v30 = vld [vmem:[#allocation18 + $0x58] sm:$0xff] }
 0x835   : > { %7898 = vmatmul.msk.f32.gmra.mxu0 %vm4396_vm4, %v4384_v61 }
 0x838   : > { %7911 = vmatmul.msk.f32.gmra.mxu1 %vm4396_vm4, %v12205_v59  ;;  %v4387_v59 = vld [vmem:[#allocation19 + $0x48] sm:$0xff] }
 0x839   : > { %7938 = vmatmul.msk.f32.gmra.mxu2 %vm4396_vm4, %v4370_v5 }
 0x83c   : > { %7950 = vmatmul.msk.f32.gmra.mxu3 %vm4396_vm4, %v12210_v49  ;;  %v4372_v49 = vld [vmem:[#allocation18 + $0x60] sm:$0xff] }
 0x83d   : > { %7899 = vmatmul.msk.f32.gmra.mxu0 %vm4396_vm4, %v4385_v17 }
 0x840   : > { %7912 = vmatmul.msk.f32.gmra.mxu1 %vm4396_vm4, %v12232_v28  ;;  %v4391_v28 = vld [vmem:[#allocation19 + $0x68] sm:$0xff] }
 0x841   : > { %7939 = vmatmul.msk.f32.gmra.mxu2 %vm4396_vm4, %v4371_v30 }
 0x844   : > { %7951 = vmatmul.msk.f32.gmra.mxu3 %vm4396_vm4, %v12236_v44 }
 0x845   : > { %7900 = vmatmul.msk.f32.gmra.mxu0 %vm4396_vm4, %v4386_v29 }
 0x848   : > { %7913 = vmatmul.msk.f32.gmra.mxu1 %vm4396_vm4, %v4381_v27 }
 0x849   : > { %7940 = vmatmul.msk.f32.gmra.mxu2 %vm4396_vm4, %v4372_v49 }
 0x84c   : > { %7952 = vmatmul.msk.f32.gmra.mxu3 %vm4396_vm4, %v4366_v62  ;;  %v5020_v62 = vld [vmem:[#allocation21 + $0xd0] sm:$0xff] }
 0x84d   : > { %7901 = vmatmul.msk.f32.gmra.mxu0 %vm4396_vm4, %v4387_v59 }
 0x84e   : > { %5218 = vmatpush.msrb.mxu0 %v5020_v62 }
 0x850   : > { %7914 = vmatmul.msk.f32.gmra.mxu1 %vm4396_vm4, %v4382_v4  ;;  %5219 = vmatpush.msrb.mxu0 %v5018_v26 }
 0x851   : > { %7941 = vmatmul.msk.f32.gmra.mxu2 %vm4396_vm4, %v4373_v10 }
 0x852   : > { %5220 = vmatpush.msrb.mxu0 %v5016_v22 }
 0x854   : > { %7953 = vmatmul.msk.f32.gmra.mxu3 %vm4396_vm4, %v4367_v19  ;;  %5221 = vmatpush.msrb.mxu0 %v5014_v31  ;;  %v5008_v19 = vld [vmem:[#allocation21 + $0x70] sm:$0xff] }
 0x855   : > { %7902 = vmatmul.msk.f32.gmra.mxu0 %vm4396_vm4, %v4388_v54 }
 0x856   : > { %5222 = vmatpush.msrb.mxu0 %v5012_v7 }
 0x858   : > { %7915 = vmatmul.msk.f32.gmra.mxu1 %vm4396_vm4, %v4383_v55  ;;  %5223 = vmatpush.msrb.mxu0 %v5010_v42 }
 0x859   : > { %7942 = vmatmul.msk.f32.gmra.mxu2 %vm4396_vm4, %v4374_v63 }
 0x85a   : > { %5224 = vmatpush.msrb.mxu0 %v5008_v19 }
 0x85c   : > { %7954 = vmatmul.msk.f32.gmra.mxu3 %vm4396_vm4, %v4368_v50  ;;  %5225 = vmatpush.msrb.mxu0 %v5006_v58 }
 0x85d   : > { %7903 = vmatmul.msk.f32.gmra.mxu0 %vm4396_vm4, %v4389_v33 }
 0x85e   : > { %5226 = vmatpush.msrb.mxu0 %v5004_v37 }
 0x860   : > { %7916 = vmatmul.msk.f32.gmra.mxu1 %vm4396_vm4, %v4384_v61  ;;  %v4664_v18 = vpop.f32.mrf.mxu2  ;;  %5227 = vmatpush.msrb.mxu0 %v5002_v53  ;;  %v4998_v61 = vld [vmem:[#allocation21 + $0x20] sm:$0xff] }
 0x861   : > { %7943 = vmatmul.msk.f32.gmra.mxu2 %vm4396_vm4, %v4375_v48 }
 0x862   : > { %5228 = vmatpush.msrb.mxu0 %v5000_v43 }
 0x864   : > { %7955 = vmatmul.msk.f32.gmra.mxu3 %vm4396_vm4, %v4369_v21  ;;  %v4996_v21 = vld [vmem:[#allocation21 + $0x10] sm:$0xff]  ;;  %5229 = vmatpush.msrb.mxu0 %v4998_v61 }
 0x865   : > { %7904 = vmatmul.msk.f32.gmra.mxu0 %vm4396_vm4, %v4390_v40 }
 0x866   : > { %5230 = vmatpush.msrb.mxu0 %v4996_v21 }
 0x868   : > { %7917 = vmatmul.msk.f32.gmra.mxu1 %vm4396_vm4, %v4385_v17 }
 0x869   : > { %7944 = vmatmul.msk.f32.gmra.mxu2 %vm4396_vm4, %v4376_v11 }
 0x86c   : > { %7956 = vmatmul.msk.f32.gmra.mxu3 %vm4396_vm4, %v4370_v5 }
 0x86d   : > { %7905 = vmatmul.msk.f32.gmra.mxu0 %vm4396_vm4, %v4391_v28 }
 0x870   : > { %7918 = vmatmul.msk.f32.gmra.mxu1 %vm4396_vm4, %v4386_v29 }
 0x871   : > { %7945 = vmatmul.msk.f32.gmra.mxu2 %vm4396_vm4, %v4377_v20 }
 0x874   : > { %7957 = vmatmul.msk.f32.gmra.mxu3 %vm4396_vm4, %v4371_v30  ;;  %v4667_v44 = vpop.f32.mrf.mxu2  ;;  %v4994_v30 = vld [vmem:[#allocation21] sm:$0xff] }
 0x875   : > { %7906 = vmatmul.msk.f32.gmra.mxu0 %vm4396_vm4, %v4392_v38 }
 0x876   : > { %5231 = vmatpush.msrb.mxu0 %v4994_v30 }
 0x878   : > { %7919 = vmatmul.msk.f32.gmra.mxu1 %vm4396_vm4, %v4387_v59 }
 0x87c   : > { %7958 = vmatmul.msk.f32.gmra.mxu3 %vm4396_vm4, %v4372_v49  ;;  %v4670_v56 = vpop.f32.mrf.mxu2 }
 0x87d   : > { %7907 = vmatmul.msk.f32.gmra.mxu0 %vm4396_vm4, %v4393_v47 }
 0x880   : > { %7920 = vmatmul.msk.f32.gmra.mxu1 %vm4396_vm4, %v4388_v54 }
 0x882   : > { %v4468_v23 = vpop.f32.mrf.mxu0 }
 0x883   : > { %v4665_v13 = vadd.f32 %v4664_v18, %v4468_v23 }
 0x884   : > { %7959 = vmatmul.msk.f32.gmra.mxu3 %vm4396_vm4, %v4373_v10  ;;  %v12315_v25 = vpop.f32.mrf.mxu2 }
 0x885   : > { %7908 = vmatmul.msk.f32.gmra.mxu0 %vm4396_vm4, %v4394_v12  ;;  %4825 = vrot.lane.b32.xlu2 %v4665_v13, %s9175_s3 }
 0x888   : > { %7921 = vmatmul.msk.f32.gmra.mxu1 %vm4396_vm4, %v4389_v33 }
 0x88a   : > { %v4471_v45 = vpop.f32.mrf.mxu0 }
 0x88b   : > { %v4668_v14 = vadd.f32 %v4667_v44, %v4471_v45 }
 0x88c   : > { %7960 = vmatmul.msk.f32.gmra.mxu3 %vm4396_vm4, %v4374_v63  ;;  %v12321_v57 = vpop.f32.mrf.mxu2 }
 0x88d   : > { %7909 = vmatmul.msk.f32.gmra.mxu0 %vm4396_vm4, %v4395_v2  ;;  %4829 = vrot.lane.b32.xlu1 %v4668_v14, %s9175_s3 }
 0x890   : > { %7922 = vmatmul.msk.f32.gmra.mxu1 %vm4396_vm4, %v4390_v40 }
 0x892   : > { %v4474_v35 = vpop.f32.mrf.mxu0 }
 0x893   : > { %v4671_v0 = vadd.f32 %v4670_v56, %v4474_v35 }
 0x894   : > { %7961 = vmatmul.msk.f32.gmra.mxu3 %vm4396_vm4, %v4375_v48  ;;  %v12326_v1 = vpop.f32.mrf.mxu2 }
 0x895   : > { %4833 = vrot.lane.b32.xlu2 %v4671_v0, %s9175_s3 }
 0x898   : > { %7923 = vmatmul.msk.f32.gmra.mxu1 %vm4396_vm4, %v4391_v28 }
 0x89a   : > { %v12328_v8 = vpop.f32.mrf.mxu0 }
 0x89c   : > { %7962 = vmatmul.msk.f32.gmra.mxu3 %vm4396_vm4, %v4376_v11  ;;  %v12332_v9 = vpop.f32.mrf.mxu2 }
 0x89f   : > { %v4735_v41 = vpop.f32.mrf.mxu3 }
 0x8a0   : > { %7924 = vmatmul.msk.f32.gmra.mxu1 %vm4396_vm4, %v4392_v38 }
 0x8a2   : > { %v12334_v27 = vpop.f32.mrf.mxu0 }
 0x8a4   : > { %7963 = vmatmul.msk.f32.gmra.mxu3 %vm4396_vm4, %v4377_v20  ;;  %v12338_v39 = vpop.f32.mrf.mxu2 }
 0x8a7   : > { %v4738_v46 = vpop.f32.mrf.mxu3 }
 0x8a8   : > { %7925 = vmatmul.msk.f32.gmra.mxu1 %vm4396_vm4, %v4393_v47 }
 0x8aa   : > { %v12340_v60 = vpop.f32.mrf.mxu0 }
 0x8ac   : > { %v12343_v16 = vpop.f32.mrf.mxu2 }
 0x8ad   : > { %v4539_v51 = vpop.f32.mrf.mxu1 }
 0x8ae   : > { %v4736_v55 = vadd.f32 %v4735_v41, %v4539_v51 }
 0x8af   : > { %v4741_v4 = vpop.f32.mrf.mxu3 }
 0x8b0   : > { %7926 = vmatmul.msk.f32.gmra.mxu1 %vm4396_vm4, %v4394_v12 }
 0x8b2   : > { %v4486_v34 = vpop.f32.mrf.mxu0 }
 0x8b3   : > { %v4683_v13 = vadd.f32 %v12332_v9, %v4486_v34 }
 0x8b4   : > { %v12346_v6 = vpop.f32.mrf.mxu2 }
 0x8b5   : > { %v4542_v3 = vpop.f32.mrf.mxu1 }
 0x8b6   : > { %v4739_v32 = vadd.f32 %v4738_v46, %v4542_v3 }
 0x8b7   : > { %v4744_v52 = vpop.f32.mrf.mxu3 }
 0x8b8   : > { %v8349_v50 = vpack.i.bf16 %v4739_v32, %v4736_v55  ;;  %7927 = vmatmul.msk.f32.gmra.mxu1 %vm4396_vm4, %v4395_v2 }
 0x8ba   : > { %v4489_v15 = vpop.f32.mrf.mxu0  ;;  %8350 = vrot.lane.b32.xlu0 %v8349_v50, %s9175_s3 }
 0x8bb   : > { %v4686_v62 = vadd.f32 %v12338_v39, %v4489_v15 }
 0x8bc   : > { %v12351_v29 = vpop.f32.mrf.mxu2 }
 0x8bd   : > { %v4545_v17 = vpop.f32.mrf.mxu1 }
 0x8be   : > { %v4742_v10 = vadd.f32 %v4741_v4, %v4545_v17 }
 0x8bf   : > { %v12349_v5 = vpop.f32.mrf.mxu3 }
 0x8c2   : > { %v4492_v59 = vpop.f32.mrf.mxu0 }
 0x8c3   : > { %v4689_v4 = vadd.f32 %v12343_v16, %v4492_v59 }
 0x8c4   : > { %v12356_v48 = vpop.f32.mrf.mxu2 }
 0x8c5   : > { %v4548_v49 = vpop.f32.mrf.mxu1 }
 0x8c6   : > { %v4745_v33 = vadd.f32 %v4744_v52, %v4548_v49 }
 0x8c7   : > { %v12353_v54 = vpop.f32.mrf.mxu3 }
 0x8c8   : > { %v8354_v63 = vpack.i.bf16 %v4745_v33, %v4742_v10 }
 0x8ca   : > { %v4495_v40 = vpop.f32.mrf.mxu0  ;;  %8355 = vrot.lane.b32.xlu0 %v8354_v63, %s9175_s3 }
 0x8cb   : > { %v4692_v3 = vadd.f32 %v12346_v6, %v4495_v40 }
 0x8cc   : > { %v4700_v38 = vpop.f32.mrf.mxu2 }
 0x8cd   : > { %v12358_v28 = vpop.f32.mrf.mxu1 }
 0x8cf   : > { %v4753_v11 = vpop.f32.mrf.mxu3 }
 0x8d2   : > { %v4498_v18 = vpop.f32.mrf.mxu0 }
 0x8d3   : > { %v4695_v15 = vadd.f32 %v12351_v29, %v4498_v18 }
 0x8d4   : > { %v4703_v14 = vpop.f32.mrf.mxu2 }
 0x8d5   : > { %v12360_v20 = vpop.f32.mrf.mxu1 }
 0x8d7   : > { %v4756_v44 = vpop.f32.mrf.mxu3 }
 0x8da   : > { %v4501_v47 = vpop.f32.mrf.mxu0 }
 0x8db   : > { %v4698_v10 = vadd.f32 %v12356_v48, %v4501_v47 }
 0x8dc   : > { %v4706_v22 = vpop.f32.mrf.mxu2 }
 0x8dd   : > { %v4557_v23 = vpop.f32.mrf.mxu1 }
 0x8de   : > { %v4754_v45 = vadd.f32 %v4753_v11, %v4557_v23 }
 0x8df   : > { %v4759_v12 = vpop.f32.mrf.mxu3  ;;  %v12368_v2 = vpop.permute.xlu2 %4825 }
 0x8e0   : > { %7965 = vmatmul.msk.f32.vlgmr.msrb.gmra.mxu0 %vm12363_vm2, %v12368_v2  ;;  %v8359_v35 = vpack.i.bf16 %v4754_v45, %v4683_v13 }
 0x8e2   : > { %v4504_v0 = vpop.f32.mrf.mxu0  ;;  %8360 = vrot.lane.b32.xlu2 %v8359_v35, %s9175_s3 }
 0x8e3   : > { %v4701_v41 = vadd.f32 %v4700_v38, %v4504_v0 }
 0x8e4   : > { %v4709_v39 = vpop.f32.mrf.mxu2 }
 0x8e5   : > { %4873 = vrot.lane.b32.xlu0 %v4701_v41, %s9175_s3  ;;  %v4560_v24 = vpop.f32.mrf.mxu1 }
 0x8e6   : > { %v4757_v9 = vadd.f32 %v4756_v44, %v4560_v24 }
 0x8e7   : > { %v4762_v36 = vpop.f32.mrf.mxu3 }
 0x8e8   : > { %v8364_v46 = vpack.i.bf16 %v4757_v9, %v4686_v62 }
 0x8ea   : > { %v4507_v26 = vpop.f32.mrf.mxu0  ;;  %8365 = vrot.lane.b32.xlu2 %v8364_v46, %s9175_s3 }
 0x8eb   : > { %v4704_v31 = vadd.f32 %v4703_v14, %v4507_v26 }
 0x8ec   : > { %v4712_v43 = vpop.f32.mrf.mxu2 }
 0x8ed   : > { %4877 = vrot.lane.b32.xlu0 %v4704_v31, %s9175_s3  ;;  %v4563_v7 = vpop.f32.mrf.mxu1 }
 0x8ee   : > { %v4760_v42 = vadd.f32 %v4759_v12, %v4563_v7 }
 0x8ef   : > { %v4765_v51 = vpop.f32.mrf.mxu3  ;;  %v12393_v33 = vpop.permute.xlu2 %4833 }
 0x8f0   : > { %v8369_v19 = vpack.i.bf16 %v4760_v42, %v4689_v4  ;;  %15556 = vst [vmem:[#allocation125_spill] sm:$0xff] %v12393_v33 }
 0x8f2   : > { %v4510_v34 = vpop.f32.mrf.mxu0  ;;  %8370 = vrot.lane.b32.xlu2 %v8369_v19, %s9175_s3 }
 0x8f3   : > { %v4707_v58 = vadd.f32 %v4706_v22, %v4510_v34 }
 0x8f4   : > { %v4715_v63 = vpop.f32.mrf.mxu2 }
 0x8f5   : > { %4881 = vrot.lane.b32.xlu0 %v4707_v58, %s9175_s3  ;;  %v4566_v37 = vpop.f32.mrf.mxu1 }
 0x8f6   : > { %v4763_v52 = vadd.f32 %v4762_v36, %v4566_v37 }
 0x8f7   : > { %v4768_v55 = vpop.f32.mrf.mxu3 }
 0x8f8   : > { %v8374_v32 = vpack.i.bf16 %v4763_v52, %v4692_v3 }
 0x8fa   : > { %v4513_v53 = vpop.f32.mrf.mxu0  ;;  %8375 = vrot.lane.b32.xlu2 %v8374_v32, %s9175_s3 }
 0x8fb   : > { %v4710_v50 = vadd.f32 %v4709_v39, %v4513_v53 }
 0x8fd   : > { %4885 = vrot.lane.b32.xlu0 %v4710_v50, %s9175_s3  ;;  %v4569_v16 = vpop.f32.mrf.mxu1 }
 0x8fe   : > { %v4766_v61 = vadd.f32 %v4765_v51, %v4569_v16 }
 0x8ff   : > { %v12385_v21 = vpop.permute.xlu1 %4829  ;;  %v4771_v30 = vpop.f32.mrf.mxu3 }
 0x900   : > { %15555 = vst [vmem:[#allocation124_spill] sm:$0xff] %v12385_v21  ;;  %7967 = vmatmul.msk.f32.gmra.mxu0 %vm12363_vm2, %v12385_v21  ;;  %v8379_v6 = vpack.i.bf16 %v4766_v61, %v4695_v15 }
 0x902   : > { %v4516_v17 = vpop.f32.mrf.mxu0  ;;  %8380 = vrot.lane.b32.xlu2 %v8379_v6, %s9175_s3 }
 0x903   : > { %v4713_v59 = vadd.f32 %v4712_v43, %v4516_v17 }
 0x905   : > { %4889 = vrot.lane.b32.xlu0 %v4713_v59, %s9175_s3  ;;  %v4572_v49 = vpop.f32.mrf.mxu1 }
 0x906   : > { %v4769_v29 = vadd.f32 %v4768_v55, %v4572_v49 }
 0x907   : > { %v4774_v38 = vpop.f32.mrf.mxu3 }
 0x908   : > { %7969 = vmatmul.msk.f32.gmra.mxu0 %vm12363_vm2, %v12393_v33  ;;  %v8384_v40 = vpack.i.bf16 %v4769_v29, %v4698_v10 }
 0x90a   : > { %v4519_v11 = vpop.f32.mrf.mxu0  ;;  %8385 = vrot.lane.b32.xlu2 %v8384_v40, %s9175_s3 }
 0x90b   : > { %v4716_v18 = vadd.f32 %v4715_v63, %v4519_v11 }
 0x90d   : > { %4893 = vrot.lane.b32.xlu1 %v4716_v18, %s9175_s3  ;;  %v4575_v44 = vpop.f32.mrf.mxu1  ;;  %v12463_v18 = vld [vmem:[#allocation21 + $0x2f0] sm:$0xff] }
 0x90e   : > { %v4772_v23 = vadd.f32 %v4771_v30, %v4575_v44  ;;  %5286 = vmatpush.msra.mxu2 %v12463_v18 }
 0x90f   : > { %v4777_v47 = vpop.f32.mrf.mxu3 }
 0x915   : > { %4875 = vrot.lane.b32.xlu1 %v4772_v23, %s9175_s3  ;;  %v4578_v48 = vpop.f32.mrf.mxu1 }
 0x916   : > { %v4775_v12 = vadd.f32 %v4774_v38, %v4578_v48  ;;  %v12470_v48 = vld [vmem:[#allocation21 + $0x320] sm:$0xff] }
 0x917   : > { %v4780_v45 = vpop.f32.mrf.mxu3  ;;  %5334 = vmatpush.msra.mxu3 %v12470_v48 }
 0x91d   : > { %4879 = vrot.lane.b32.xlu1 %v4775_v12, %s9175_s3  ;;  %v4581_v13 = vpop.f32.mrf.mxu1  ;;  %v12476_v12 = vld [vmem:[#allocation21 + $0x1e0] sm:$0xff] }
 0x91e   : > { %v4778_v14 = vadd.f32 %v4777_v47, %v4581_v13  ;;  %v12474_v47 = vld [vmem:[#allocation21 + $0x1f0] sm:$0xff]  ;;  %v12478_v13 = vld [vmem:[#allocation21 + $0x2e0] sm:$0xff] }
 0x91f   : > { %v4783_v41 = vpop.f32.mrf.mxu3  ;;  %5251 = vmatpush.msrb.mxu1 %v12474_v47  ;;  %5287 = vmatpush.msra.mxu2 %v12478_v13 }
 0x921   : > { %5252 = vmatpush.msrb.mxu1 %v12476_v12 }
 0x925   : > { %4883 = vrot.lane.b32.xlu1 %v4778_v14, %s9175_s3  ;;  %v4584_v35 = vpop.f32.mrf.mxu1  ;;  %v4677_v14 = vadd.f32 %v12321_v57, %v12334_v27  ;;  %v12505_v57 = vld [vmem:[#allocation21 + $0x1a0] sm:$0xff] }
 0x926   : > { %v4781_v0 = vadd.f32 %v4780_v45, %v4584_v35  ;;  %v12482_v45 = vld [vmem:[#allocation21 + $0x1d0] sm:$0xff]  ;;  %v12507_v27 = vld [vmem:[#allocation21 + $0x2a0] sm:$0xff] }
 0x927   : > { %v4786_v62 = vpop.f32.mrf.mxu3  ;;  %5253 = vmatpush.msrb.mxu1 %v12482_v45 }
 0x92c   : > { %v12419_v58 = vpop.permute.xlu0 %8350 }
 0x92d   : > { %4887 = vrot.lane.b32.xlu1 %v4781_v0, %s9175_s3  ;;  %v4587_v24 = vpop.f32.mrf.mxu1  ;;  %15557 = vst [vmem:[#allocation126_spill] sm:$0xff] %v12419_v58  ;;  %v12490_v0 = vld [vmem:[#allocation21 + $0x2d0] sm:$0xff] }
 0x92e   : > { %v4784_v36 = vadd.f32 %v4783_v41, %v4587_v24  ;;  %v12492_v41 = vld [vmem:[#allocation21 + $0x1c0] sm:$0xff]  ;;  %5288 = vmatpush.msra.mxu2 %v12490_v0 }
 0x92f   : > { %5254 = vmatpush.msrb.mxu1 %v12492_v41  ;;  %v12497_v24 = vld [vmem:[#allocation21 + $0x2c0] sm:$0xff] }
 0x930   : > { %5289 = vmatpush.msra.mxu2 %v12497_v24 }
 0x934   : > { %v15675_v56 = vld [vmem:[#allocation126_spill] sm:$0xff] }
 0x935   : > { %4891 = vrot.lane.b32.xlu1 %v4784_v36, %s9175_s3  ;;  %v4590_v9 = vpop.f32.mrf.mxu1  ;;  %v12499_v36 = vld [vmem:[#allocation21 + $0x1b0] sm:$0xff] }
 0x936   : > { %v4787_v46 = vadd.f32 %v4786_v62, %v4590_v9  ;;  %v12501_v62 = vld [vmem:[#allocation21 + $0x2b0] sm:$0xff]  ;;  %5255 = vmatpush.msrb.mxu1 %v12499_v36 }
 0x937   : > { %v12509_v9 = vld [vmem:[#allocation21 + $0x190] sm:$0xff]  ;;  %5290 = vmatpush.msra.mxu2 %v12501_v62 }
 0x938   : > { %4895 = vrot.lane.b32.xlu0 %v4787_v46, %s9175_s3  ;;  %5256 = vmatpush.msrb.mxu1 %v12505_v57 }
 0x939   : > { %5291 = vmatpush.msra.mxu2 %v12507_v27 }
 0x93a   : > { %5257 = vmatpush.msrb.mxu1 %v12509_v9 }
 0x93c   : > { %v12406_v26 = vpop.permute.xlu2 %8360  ;;  %v12426_v52 = vpop.permute.xlu0 %8355 }
 0x93d   : > { %v8363_v22 = vunpack.i.h.bf16 %v12406_v26  ;;  %v8362_v31 = vunpack.i.l.bf16 %v12406_v26  ;;  %15558 = vst [vmem:[#allocation48_spill] sm:$0xff] %v12426_v52 }
 0x93f   : > { %v4964_v7 = vsel %vm4897_vm14, 0.0, %v8362_v31  ;;  %v4904_v51 = vsel %vm4897_vm14, %v8362_v31, %v8363_v22  ;;  %v12517_v31 = vld [vmem:[#allocation21 + $0x290] sm:$0xff] }
 0x940   : > { %v8389_v4 = vpack.i.bf16 %v4904_v51, %v4964_v7  ;;  %v12519_v7 = vld [vmem:[#allocation21 + $0x180] sm:$0xff]  ;;  %5292 = vmatpush.msra.mxu2 %v12517_v31 }
 0x941   : > { %5258 = vmatpush.msrb.mxu1 %v12519_v7 }
 0x942   : > { %8390 = vrot.lane.b32.xlu0 %v8389_v4, %s9174_s20 }
 0x944   : > { %v12415_v42 = vpop.permute.xlu2 %8365 }
 0x945   : > { %v8368_v19 = vunpack.i.h.bf16 %v12415_v42  ;;  %v8367_v34 = vunpack.i.l.bf16 %v12415_v42  ;;  %v12601_v42 = vld [vmem:[#allocation21 + $0x200] sm:$0xff] }
 0x947   : > { %v4965_v39 = vsel %vm4897_vm14, 0.0, %v8367_v34  ;;  %v4905_v37 = vsel %vm4897_vm14, %v8367_v34, %v8368_v19 }
 0x948   : > { %v8394_v3 = vpack.i.bf16 %v4905_v37, %v4965_v39  ;;  %v12532_v37 = vld [vmem:[#allocation21 + $0x280] sm:$0xff] }
 0x949   : > { %5293 = vmatpush.msra.mxu2 %v12532_v37 }
 0x94a   : > { %8395 = vrot.lane.b32.xlu1 %v8394_v3, %s9174_s20  ;;  %v12534_v3 = vld [vmem:[#allocation21 + $0x170] sm:$0xff] }
 0x94b   : > { %5259 = vmatpush.msrb.mxu1 %v12534_v3 }
 0x94c   : > { %v12432_v53 = vpop.permute.xlu2 %8370 }
 0x94d   : > { %v15037_v16 = vunpack.i.h.bf16 %v12432_v53  ;;  %v8372_v43 = vunpack.i.l.bf16 %v12432_v53 }
 0x94f   : > { %v4966_v6 = vsel %vm4897_vm14, 0.0, %v8372_v43  ;;  %v4906_v17 = vsel %vm4897_vm14, %v8372_v43, %v15037_v16  ;;  %v12538_v43 = vld [vmem:[#allocation21 + $0x160] sm:$0xff] }
 0x950   : > { %v8399_v59 = vpack.i.bf16 %v4906_v17, %v4966_v6  ;;  %v12546_v6 = vld [vmem:[#allocation21 + $0x260] sm:$0xff]  ;;  %v12548_v17 = vld [vmem:[#allocation21 + $0x150] sm:$0xff]  ;;  %5260 = vmatpush.msrb.mxu1 %v12538_v43 }
 0x952   : > { %5261 = vmatpush.msrb.mxu1 %v12548_v17 }
 0x954   : > { %v12442_v61 = vpop.permute.xlu2 %8375 }
 0x955   : > { %v15036_v51 = vunpack.i.h.bf16 %v12442_v61  ;;  %v8377_v4 = vunpack.i.l.bf16 %v12442_v61 }
 0x957   : > { %v12428_v55 = vpop.permute.xlu0 %4873 }
 0x958   : > { %v4970_v32 = vsel %vm4897_vm14, 0.0, %v12428_v55 }
 0x959   : > { %5151 = vrot.lane.b32.xlu2 %v4970_v32, %s9173_s19  ;;  %v12536_v32 = vld [vmem:[#allocation21 + $0x270] sm:$0xff] }
 0x95a   : > { %5294 = vmatpush.msra.mxu2 %v12536_v32 }
 0x95c   : > { %v12454_v10 = vpop.permute.xlu2 %8380  ;;  %5295 = vmatpush.msra.mxu2 %v12546_v6 }
 0x95d   : > { %v8383_v63 = vunpack.i.h.bf16 %v12454_v10  ;;  %v8382_v40 = vunpack.i.l.bf16 %v12454_v10 }
 0x95f   : > { %v12435_v50 = vpop.permute.xlu0 %4877  ;;  %v4968_v38 = vsel %vm4897_vm14, 0.0, %v8382_v40  ;;  %v4908_v44 = vsel %vm4897_vm14, %v8382_v40, %v8383_v63 }
 0x960   : > { %v4971_v15 = vsel %vm4897_vm14, 0.0, %v12435_v50  ;;  %v8409_v23 = vpack.i.bf16 %v4908_v44, %v4968_v38  ;;  %v12563_v44 = vld [vmem:[#allocation21 + $0x140] sm:$0xff] }
 0x961   : > { %5155 = vrot.lane.b32.xlu2 %v4971_v15, %s9173_s19  ;;  %v4967_v15 = vsel %vm4897_vm14, 0.0, %v8377_v4  ;;  %5262 = vmatpush.msrb.mxu1 %v12563_v44 }
 0x967   : > { %v12448_v30 = vpop.permute.xlu0 %4881 }
 0x968   : > { %v4972_v49 = vsel %vm4897_vm14, 0.0, %v12448_v30 }
 0x969   : > { %8400 = vrot.lane.b32.xlu2 %v8399_v59, %s9174_s20  ;;  %5159 = vrot.lane.b32.xlu0 %v4972_v49, %s9173_s19  ;;  %v4751_v59 = vadd.f32 %v12353_v54, %v12360_v20  ;;  %v12569_v54 = vld [vmem:[#allocation21 + $0x240] sm:$0xff]  ;;  %v12571_v20 = vld [vmem:[#allocation21 + $0x130] sm:$0xff] }
 0x96a   : > { %5263 = vmatpush.msrb.mxu1 %v12571_v20 }
 0x96f   : > { %v12456_v29 = vpop.permute.xlu0 %4885 }
 0x970   : > { %v4973_v11 = vsel %vm4897_vm14, 0.0, %v12456_v29 }
 0x971   : > { %5163 = vrot.lane.b32.xlu2 %v4973_v11, %s9173_s19  ;;  %v12556_v11 = vld [vmem:[#allocation21 + $0x250] sm:$0xff] }
 0x972   : > { %5296 = vmatpush.msra.mxu2 %v12556_v11 }
 0x974   : > { %5297 = vmatpush.msra.mxu2 %v12569_v54 }
 0x979   : > { %8410 = vrot.lane.b32.xlu2 %v8409_v23, %s9174_s20  ;;  %v12577_v23 = vld [vmem:[#allocation21 + $0x120] sm:$0xff] }
 0x97a   : > { %15559 = vst [vmem:[#allocation40_spill] sm:$0xff] %v12577_v23  ;;  %5264 = vmatpush.msrb.mxu1 %v12577_v23  ;;  %v12932_v23 = vld [vmem:[#allocation21 + $0x148] sm:$0xff] }
 0x97b   : > { %15616 = vst [vmem:[#allocation103_spill] sm:$0xff] %v12932_v23 }
 0x97f   : > { %v12487_v35 = vpop.permute.xlu1 %4893 }
 0x980   : > { %v4975_v34 = vsel %vm4897_vm14, 0.0, %v12487_v35 }
 0x981   : > { %4841 = vrot.lane.b32.xlu2 %v4677_v14, %s9175_s3  ;;  %v12580_v14 = vld [vmem:[#allocation21 + $0x220] sm:$0xff] }
 0x987   : > { %v12513_v46 = vpop.permute.xlu1 %4875 }
 0x988   : > { %v4910_v39 = vsel %vm4897_vm14, %v12428_v55, %v12513_v46  ;;  %v4907_v55 = vsel %vm4897_vm14, %v8377_v4, %v15036_v51  ;;  %v4890_v4 = vpop.permute.xlu0 %4889  ;;  %v12619_v51 = vpop.permute.xlu2 %8385 }
 0x989   : > { %5171 = vrot.lane.b32.xlu2 %v4975_v34, %s9173_s19  ;;  %5153 = vrot.lane.b32.xlu1 %v4910_v39, %s9173_s19  ;;  %v8404_v40 = vpack.i.bf16 %v4907_v55, %v4967_v15  ;;  %v4983_v39 = vsel %vm4897_vm14, %v8368_v19, 0.0  ;;  %v12590_v55 = vld [vmem:[#allocation21 + $0x110] sm:$0xff]  ;;  %v4674_v19 = vadd.f32 %v12315_v25, %v12328_v8  ;;  %v4748_v25 = vadd.f32 %v12349_v5, %v12358_v28 }
 0x98a   : > { %15560 = vst [vmem:[#allocation71_spill] sm:$0xff] %v12590_v55  ;;  %5265 = vmatpush.msrb.mxu1 %v12590_v55  ;;  %v12898_v55 = vld [vmem:[#allocation21 + $0x48] sm:$0xff] }
 0x98f   : > { %v12554_v49 = vpop.permute.xlu1 %4879 }
 0x990   : > { %v4911_v38 = vsel %vm4897_vm14, %v12435_v50, %v12554_v49  ;;  %v12574_v50 = vld [vmem:[#allocation21 + $0x230] sm:$0xff] }
 0x991   : > { %4847 = vrot.lane.b32.xlu2 %v4751_v59, %s9175_s3  ;;  %8405 = vrot.lane.b32.xlu1 %v8404_v40, %s9174_s20  ;;  %v12592_v59 = vld [vmem:[#allocation21 + $0x210] sm:$0xff]  ;;  %v4974_v40 = vsel %vm4897_vm14, 0.0, %v4890_v4 }
 0x992   : > { %5157 = vrot.lane.b32.xlu0 %v4911_v38, %s9173_s19  ;;  %5298 = vmatpush.msra.mxu2 %v12574_v50  ;;  %v12597_v38 = vld [vmem:[#allocation21 + $0x100] sm:$0xff] }
 0x993   : > { %15561 = vst [vmem:[#allocation41_spill] sm:$0xff] %v12597_v38  ;;  %5266 = vmatpush.msrb.mxu1 %v12597_v38 }
 0x994   : > { %5299 = vmatpush.msra.mxu2 %v12580_v14 }
 0x996   : > { %5300 = vmatpush.msra.mxu2 %v12592_v59 }
 0x997   : > { %v4884_v34 = vpop.permute.xlu1 %4883 }
 0x998   : > { %v4912_v15 = vsel %vm4897_vm14, %v12448_v30, %v4884_v34  ;;  %5301 = vmatpush.msra.mxu2 %v12601_v42 }
 0x999   : > { %5984 = vrot.lane.b32.xlu2 %v4983_v39, %s9174_s20  ;;  %5161 = vrot.lane.b32.xlu1 %v4912_v15, %s9173_s19  ;;  %v4990_v39 = vsel %vm4897_vm14, %v4884_v34, 0.0  ;;  %v15039_v34 = vunpack.i.h.bf16 %v12619_v51 }
 0x99a   : > { %5167 = vrot.lane.b32.xlu0 %v4974_v40, %s9173_s19  ;;  %v12617_v40 = vld [vmem:[#allocation21 + $0x310] sm:$0xff] }
 0x99b   : > { %5335 = vmatpush.msra.mxu3 %v12617_v40 }
 0x99f   : > { %v12608_v30 = vpop.permute.xlu1 %4887 }
 0x9a0   : > { %v4913_v15 = vsel %vm4897_vm14, %v12456_v29, %v12608_v30  ;;  %v8387_v29 = vunpack.i.l.bf16 %v12619_v51 }
 0x9a1   : > { %6022 = vrot.lane.b32.xlu2 %v4990_v39, %s9173_s19  ;;  %4837 = vrot.lane.b32.xlu1 %v4674_v19, %s9175_s3  ;;  %v4986_v19 = vsel %vm4897_vm14, %v8383_v63, 0.0 }
 0x9a2   : > { %5165 = vrot.lane.b32.xlu0 %v4913_v15, %s9173_s19  ;;  %v4969_v15 = vsel %vm4897_vm14, 0.0, %v8387_v29  ;;  %v4909_v5 = vsel %vm4897_vm14, %v8387_v29, %v15039_v34 }
 0x9a3   : > { %v8414_v10 = vpack.i.bf16 %v4909_v5, %v4969_v15  ;;  %v4680_v15 = vadd.f32 %v12326_v1, %v12340_v60  ;;  %v8353_v60 = vunpack.i.h.bf16 %v12419_v58 }
 0x9a7   : > { %v4892_v8 = vpop.permute.xlu1 %4891 }
 0x9a8   : > { %v4914_v39 = vsel %vm4897_vm14, %v4890_v4, %v4892_v8  ;;  %v15038_v4 = vunpack.i.l.bf16 %v12419_v58  ;;  %v12777_v58 = vld [vmem:[#allocation21 + $0x1e8] sm:$0xff] }
 0x9a9   : > { %5990 = vrot.lane.b32.xlu2 %v4986_v19, %s9174_s20  ;;  %5169 = vrot.lane.b32.xlu1 %v4914_v39, %s9173_s19  ;;  %15582 = vst [vmem:[#allocation46_spill] sm:$0xff] %v12777_v58 }
 0x9aa   : > { %4843 = vrot.lane.b32.xlu0 %v4748_v25, %s9175_s3  ;;  %v4896_v28 = vpop.permute.xlu0 %4895 }
 0x9ab   : > { %v4993_v16 = vsel %vm4897_vm14, %v4896_v28, 0.0  ;;  %v4915_v63 = vsel %vm4897_vm14, %v12487_v35, %v4896_v28  ;;  %v12654_v35 = vsel %vm4897_vm14, %v12368_v2, %v15038_v4  ;;  %v4982_v28 = vsel %vm4897_vm14, %v8363_v22, 0.0 }
 0x9ac   : > { %15563 = vst [vmem:[#allocation73_spill] sm:$0xff] %v12654_v35  ;;  %v12680_v22 = vsel %vm4897_vm14, %v12385_v21, %v8353_v60  ;;  %v12875_v21 = vld [vmem:[#allocation21 + $0x178] sm:$0xff] }
 0x9ad   : > { %15564 = vst [vmem:[#allocation52_spill] sm:$0xff] %v12680_v22 }
 0x9ae   : > { %15607 = vst [vmem:[#allocation84_spill] sm:$0xff] %v12875_v21 }
 0x9b1   : > { %8415 = vrot.lane.b32.xlu1 %v8414_v10, %s9174_s20  ;;  %6028 = vrot.lane.b32.xlu2 %v4993_v16, %s9173_s19 }
 0x9b2   : > { %5173 = vrot.lane.b32.xlu0 %v4915_v63, %s9173_s19 }
 0x9b3   : > { %v12644_v25 = vpop.permute.xlu2 %5151 }
 0x9b4   : > { %v8391_v19 = vpop.permute.xlu0 %8390 }
 0x9b5   : > { %v12646_v39 = vunpack.i.h.bf16 %v8391_v19  ;;  %v8392_v29 = vunpack.i.l.bf16 %v8391_v19 }
 0x9b7   : > { %15562 = vst [vmem:[#allocation37_spill] sm:$0xff] %v12646_v39  ;;  %v5127_v16 = vsel %vm3198_vm6, %v8392_v29, %v12646_v39  ;;  %v12660_v5 = vsel %vm3198_vm6, %v12654_v35, %v8392_v29  ;;  %v4988_v29 = vsel %vm4897_vm14, %v12513_v46, 0.0  ;;  %v15044_v46 = vunpack.i.l.bf16 %v12426_v52  ;;  %v12779_v39 = vld [vmem:[#allocation21 + $0x2b8] sm:$0xff] }
 0x9b8   : > { %5267 = vmatmul.f32.vlgmr.msrb.gmra.mxu1 %v12660_v5  ;;  %v12669_v1 = vsel %vm1963_vm0, %v5127_v16, %v12644_v25  ;;  %v4977_v35 = vsel %vm4897_vm14, %v8353_v60, 0.0  ;;  %15583 = vst [vmem:[#allocation44_spill] sm:$0xff] %v12779_v39 }
 0x9b9   : > { %4845 = vrot.lane.b32.xlu1 %v4680_v15, %s9175_s3  ;;  %5302 = vmatmul.f32.vlgmr.msra.gmra.mxu2 %v12669_v1 }
 0x9ba   : > { %5982 = vrot.lane.b32.xlu0 %v4982_v28, %s9174_s20  ;;  %v4989_v28 = vsel %vm4897_vm14, %v12554_v49, 0.0  ;;  %v15567_v49 = vunpack.i.h.bf16 %v12432_v53 }
 0x9bb   : > { %v12674_v10 = vpop.permute.xlu2 %5155 }
 0x9bc   : > { %v8396_v63 = vpop.permute.xlu1 %8395 }
 0x9bd   : > { %v12676_v19 = vunpack.i.h.bf16 %v8396_v63  ;;  %v8397_v26 = vunpack.i.l.bf16 %v8396_v63 }
 0x9bf   : > { %v12686_v15 = vsel %vm3198_vm6, %v12680_v22, %v8397_v26  ;;  %v5128_v16 = vsel %vm3198_vm6, %v8397_v26, %v12676_v19  ;;  %v12705_v26 = vsel %vm4897_vm14, %v12393_v33, %v15044_v46  ;;  %v12723_v53 = vsel %vm3198_vm6, %v4977_v35, %v12676_v19  ;;  %v12766_v46 = vld [vmem:[#allocation21 + $0xe8] sm:$0xff] }
 0x9c0   : > { %15565 = vst [vmem:[#allocation42_spill] sm:$0xff] %v12686_v15  ;;  %5270 = vmatmul.f32.gmra.mxu1 %v12686_v15  ;;  %v12696_v63 = vsel %vm1963_vm0, %v5128_v16, %v12674_v10  ;;  %v15572_v35 = vunpack.i.h.bf16 %v12619_v51  ;;  %v12754_v51 = vld [vmem:[#allocation21 + $0x2f8] sm:$0xff]  ;;  %v12786_v33 = vld [vmem:[#allocation21 + $0xc8] sm:$0xff] }
 0x9c1   : > { %6018 = vrot.lane.b32.xlu1 %v4988_v29, %s9173_s19  ;;  %5305 = vmatmul.f32.gmra.mxu2 %v12696_v63  ;;  %15566 = vst [vmem:[#allocation68_spill] sm:$0xff] %v12705_v26  ;;  %v4984_v29 = vsel %vm4897_vm14, %v15567_v49, 0.0  ;;  %v4991_v49 = vsel %vm4897_vm14, %v12608_v30, 0.0 }
 0x9c2   : > { %6020 = vrot.lane.b32.xlu0 %v4989_v28, %s9173_s19  ;;  %v15569_v28 = vunpack.i.h.bf16 %v12442_v61  ;;  %15570 = vst [vmem:[#allocation38_spill] sm:$0xff] %v12723_v53  ;;  %v12730_v61 = vld [vmem:[#allocation21 + $0x300] sm:$0xff]  ;;  %5426 = vmatpush.msrb.mxu2 %v12754_v51  ;;  %v12772_v53 = vld [vmem:[#allocation21 + $0x2c8] sm:$0xff] }
 0x9c3   : > { %v8401_v4 = vpop.permute.xlu2 %8400  ;;  %5336 = vmatpush.msra.mxu3 %v12730_v61  ;;  %15574 = vst [vmem:[#allocation45_spill] sm:$0xff] %v12754_v51 }
 0x9c4   : > { %v8402_v34 = vunpack.i.l.bf16 %v8401_v4  ;;  %v4985_v22 = vsel %vm4897_vm14, %v15569_v28, 0.0  ;;  %v12733_v60 = vunpack.i.h.bf16 %v8401_v4  ;;  %v4987_v28 = vsel %vm4897_vm14, %v15572_v35, 0.0  ;;  %v12756_v35 = vld [vmem:[#allocation21 + $0x2e8] sm:$0xff]  ;;  %15578 = vst [vmem:[#allocation56_spill] sm:$0xff] %v12766_v46 }
 0x9c5   : > { %15575 = vst [vmem:[#allocation75_spill] sm:$0xff] %v12756_v35  ;;  %5427 = vmatpush.msrb.mxu2 %v12756_v35 }
 0x9c6   : > { %v12712_v16 = vsel %vm3198_vm6, %v12705_v26, %v8402_v34  ;;  %15571 = vst [vmem:[#allocation70_spill] sm:$0xff] %v12733_v60  ;;  %v12770_v26 = vld [vmem:[#allocation21 + $0x1f8] sm:$0xff] }
 0x9c7   : > { %15568 = vst [vmem:[#allocation49_spill] sm:$0xff] %v12712_v16  ;;  %5391 = vmatpush.msra.mxu1 %v12770_v26 }
 0x9c8   : > { %5273 = vmatmul.f32.gmra.mxu1 %v12712_v16  ;;  %15579 = vst [vmem:[#allocation53_spill] sm:$0xff] %v12770_v26  ;;  %v12783_v16 = vld [vmem:[#allocation21 + $0x1d8] sm:$0xff]  ;;  %v12792_v26 = vld [vmem:[#allocation21 + $0x2a8] sm:$0xff] }
 0x9c9   : > { %5986 = vrot.lane.b32.xlu1 %v4984_v29, %s9174_s20  ;;  %v4992_v29 = vsel %vm4897_vm14, %v4892_v8, 0.0  ;;  %v5129_v8 = vsel %vm3198_vm6, %v8402_v34, %v12733_v60  ;;  %v12762_v34 = vld [vmem:[#allocation21 + $0xf8] sm:$0xff]  ;;  %15580 = vst [vmem:[#allocation50_spill] sm:$0xff] %v12772_v53  ;;  %5392 = vmatpush.msra.mxu1 %v12777_v58 }
 0x9ca   : > { %5988 = vrot.lane.b32.xlu0 %v4985_v22, %s9174_s20  ;;  %15576 = vst [vmem:[#allocation55_spill] sm:$0xff] %v12762_v34  ;;  %5356 = vmatpush.msra.mxu0 %v12762_v34  ;;  %v12775_v60 = vld [vmem:[#allocation21 + $0xd8] sm:$0xff] }
 0x9cb   : > { %v12735_v22 = vpop.permute.xlu2 %5163  ;;  %15581 = vst [vmem:[#allocation51_spill] sm:$0xff] %v12775_v60  ;;  %5393 = vmatpush.msra.mxu1 %v12783_v16  ;;  %v12804_v58 = vld [vmem:[#allocation21 + $0xb8] sm:$0xff] }
 0x9cc   : > { %5357 = vmatpush.msra.mxu0 %v12766_v46  ;;  %15584 = vst [vmem:[#allocation59_spill] sm:$0xff] %v12783_v16  ;;  %v12816_v16 = vld [vmem:[#allocation21 + $0x288] sm:$0xff]  ;;  %v12832_v46 = vld [vmem:[#allocation21 + $0x198] sm:$0xff] }
 0x9cd   : > { %15585 = vst [vmem:[#allocation60_spill] sm:$0xff] %v12786_v33  ;;  %v12896_v34 = vld [vmem:[#allocation21 + $0x238] sm:$0xff] }
 0x9ce   : > { %5358 = vmatpush.msra.mxu0 %v12775_v60  ;;  %15587 = vst [vmem:[#allocation61_spill] sm:$0xff] %v12792_v26  ;;  %v12806_v60 = vld [vmem:[#allocation21 + $0x1c8] sm:$0xff] }
 0x9cf   : > { %15588 = vst [vmem:[#allocation47_spill] sm:$0xff] %v12804_v58  ;;  %5394 = vmatpush.msra.mxu1 %v12806_v60 }
 0x9d0   : > { %5359 = vmatpush.msra.mxu0 %v12786_v33  ;;  %15589 = vst [vmem:[#allocation57_spill] sm:$0xff] %v12806_v60  ;;  %v12823_v33 = vld [vmem:[#allocation21 + $0x1a8] sm:$0xff] }
 0x9d1   : > { %6024 = vrot.lane.b32.xlu1 %v4991_v49, %s9173_s19  ;;  %15593 = vst [vmem:[#allocation62_spill] sm:$0xff] %v12816_v16  ;;  %v12830_v60 = vld [vmem:[#allocation21 + $0x88] sm:$0xff] }
 0x9d2   : > { %6026 = vrot.lane.b32.xlu0 %v4992_v29, %s9173_s19  ;;  %5360 = vmatpush.msra.mxu0 %v12804_v58  ;;  %15595 = vst [vmem:[#allocation67_spill] sm:$0xff] %v12823_v33  ;;  %v12827_v58 = vld [vmem:[#allocation21 + $0x278] sm:$0xff]  ;;  %s14768_s19 = scalar_lea.vmem %s15782_s2, %s8115_s21 }
 0x9d3   : > { %v12750_v4 = vpop.permute.xlu2 %8410  ;;  %15596 = vst [vmem:[#allocation69_spill] sm:$0xff] %v12827_v58 }
 0x9d4   : > { %15597 = vst [vmem:[#allocation66_spill] sm:$0xff] %v12830_v60 }
 0x9d5   : > { %15598 = vst [vmem:[#allocation64_spill] sm:$0xff] %v12832_v46 }
 0x9d9   : > { %5992 = vrot.lane.b32.xlu1 %v4987_v28, %s9174_s20 }
 0x9db   : > { %v12741_v30 = vpop.permute.xlu0 %5159  ;;  %v12752_v29 = vpop.permute.xlu2 %4841 }
 0x9dc   : > { %v12747_v49 = vsel %vm1963_vm0, %v5129_v8, %v12741_v30  ;;  %v12764_v8 = vld [vmem:[#allocation21 + $0x2d8] sm:$0xff] }
 0x9dd   : > { %15573 = vst [vmem:[#allocation43_spill] sm:$0xff] %v12747_v49  ;;  %5308 = vmatmul.f32.gmra.mxu2 %v12747_v49 }
 0x9de   : > { %15577 = vst [vmem:[#allocation39_spill] sm:$0xff] %v12764_v8  ;;  %5428 = vmatpush.msrb.mxu2 %v12764_v8 }
 0x9e0   : > { %5429 = vmatpush.msrb.mxu2 %v12772_v53 }
 0x9e2   : > { %5430 = vmatpush.msrb.mxu2 %v12779_v39  ;;  %v12808_v39 = vld [vmem:[#allocation21 + $0x298] sm:$0xff] }
 0x9e3   : > { %v12760_v28 = vpop.permute.xlu2 %5171  ;;  %15590 = vst [vmem:[#allocation54_spill] sm:$0xff] %v12808_v39 }
 0x9e4   : > { %5431 = vmatpush.msrb.mxu2 %v12792_v26  ;;  %v12821_v26 = vld [vmem:[#allocation21 + $0x98] sm:$0xff] }
 0x9e5   : > { %15594 = vst [vmem:[#allocation58_spill] sm:$0xff] %v12821_v26 }
 0x9e6   : > { %5432 = vmatpush.msrb.mxu2 %v12808_v39  ;;  %v12838_v39 = vld [vmem:[#allocation21 + $0x268] sm:$0xff] }
 0x9e7   : > { %15599 = vst [vmem:[#allocation78_spill] sm:$0xff] %v12838_v39 }
 0x9e8   : > { %5433 = vmatpush.msrb.mxu2 %v12816_v16 }
 0x9ea   : > { %5434 = vmatpush.msrb.mxu2 %v12827_v58  ;;  %v12861_v58 = vld [vmem:[#allocation21 + $0x78] sm:$0xff] }
 0x9eb   : > { %v12818_v53 = vpop.permute.xlu2 %4847  ;;  %15602 = vst [vmem:[#allocation88_spill] sm:$0xff] %v12861_v58 }
 0x9ec   : > { %5435 = vmatpush.msrb.mxu2 %v12838_v39  ;;  %v12880_v39 = vld [vmem:[#allocation21 + $0x328] sm:$0xff] }
 0x9ed   : > { %5474 = vmatpush.msrb.mxu3 %v12880_v39 }
 0x9fb   : > { %v12788_v49 = vpop.permute.xlu1 %5153 }
 0x9fc   : > { %15586 = vst [vmem:[#allocation127_spill] sm:$0xff] %v12788_v49  ;;  %v12797_v15 = vsel %vm1963_vm0, %v12644_v25, %v12788_v49  ;;  %v12812_v25 = vld [vmem:[#allocation21 + $0xa8] sm:$0xff]  ;;  %v12814_v49 = vld [vmem:[#allocation21 + $0x1b8] sm:$0xff] }
 0x9fd   : > { %7976 = vmatmul.msk.f32.vlgmr.msra.gmra.mxu3 %vm4396_vm4, %v12797_v15  ;;  %15591 = vst [vmem:[#allocation63_spill] sm:$0xff] %v12812_v25  ;;  %5361 = vmatpush.msra.mxu0 %v12812_v25 }
 0x9fe   : > { %15592 = vst [vmem:[#allocation65_spill] sm:$0xff] %v12814_v49  ;;  %5395 = vmatpush.msra.mxu1 %v12814_v49 }
 0x9ff   : > { %5362 = vmatpush.msra.mxu0 %v12821_v26  ;;  %v12863_v26 = vld [vmem:[#allocation21 + $0x188] sm:$0xff] }
 0xa00   : > { %5396 = vmatpush.msra.mxu1 %v12823_v33  ;;  %15603 = vst [vmem:[#allocation72_spill] sm:$0xff] %v12863_v26 }
 0xa01   : > { %5363 = vmatpush.msra.mxu0 %v12830_v60 }
 0xa02   : > { %5397 = vmatpush.msra.mxu1 %v12832_v46  ;;  %v12873_v46 = vld [vmem:[#allocation21 + $0x68] sm:$0xff] }
 0xa03   : > { %v12834_v8 = vpop.permute.xlu1 %8405  ;;  %5364 = vmatpush.msra.mxu0 %v12861_v58  ;;  %15606 = vst [vmem:[#allocation74_spill] sm:$0xff] %v12873_v46  ;;  %v12888_v58 = vld [vmem:[#allocation21 + $0x318] sm:$0xff] }
 0xa04   : > { %v12841_v25 = vunpack.i.h.bf16 %v12834_v8  ;;  %v15082_v49 = vunpack.i.l.bf16 %v12834_v8  ;;  %v12844_v38 = vpop.permute.xlu0 %5157  ;;  %5398 = vmatpush.msra.mxu1 %v12863_v26  ;;  %v12891_v26 = vunpack.i.h.bf16 %v12750_v4  ;;  %5475 = vmatpush.msrb.mxu3 %v12888_v58 }
 0xa05   : > { %15601 = vst [vmem:[#allocation77_spill] sm:$0xff] %v12844_v38  ;;  %v12850_v16 = vsel %vm1963_vm0, %v12674_v10, %v12844_v38  ;;  %v12865_v10 = vld [vmem:[#allocation21 + $0x258] sm:$0xff]  ;;  %5365 = vmatpush.msra.mxu0 %v12873_v46 }
 0xa06   : > { %15600 = vst [vmem:[#allocation76_spill] sm:$0xff] %v12841_v25  ;;  %7977 = vmatmul.msk.f32.gmra.mxu3 %vm4396_vm4, %v12850_v16  ;;  %v5130_v33 = vsel %vm3198_vm6, %v15082_v49, %v12841_v25  ;;  %v12878_v49 = vld [vmem:[#allocation21 + $0x248] sm:$0xff]  ;;  %v12882_v25 = vld [vmem:[#allocation21 + $0x58] sm:$0xff]  ;;  %5436 = vmatpush.msrb.mxu2 %v12865_v10 }
 0xa07   : > { %15604 = vst [vmem:[#allocation89_spill] sm:$0xff] %v12865_v10  ;;  %v12869_v60 = vsel %vm1963_vm0, %v5130_v33, %v12735_v22  ;;  %v12886_v33 = vld [vmem:[#allocation21 + $0x168] sm:$0xff]  ;;  %5399 = vmatpush.msra.mxu1 %v12875_v21  ;;  %5366 = vmatpush.msra.mxu0 %v12882_v25  ;;  %v12904_v46 = vld [vmem:[#allocation21 + $0x158] sm:$0xff] }
 0xa08   : > { %15605 = vst [vmem:[#allocation95_spill] sm:$0xff] %v12869_v60  ;;  %5311 = vmatmul.f32.gmra.mxu2 %v12869_v60  ;;  %v5985_v60 = vpop.permute.xlu2 %5984  ;;  %v12915_v21 = vld [vmem:[#allocation21 + $0x228] sm:$0xff] }
 0xa09   : > { %15608 = vst [vmem:[#allocation92_spill] sm:$0xff] %v12878_v49  ;;  %5437 = vmatpush.msrb.mxu2 %v12878_v49  ;;  %5400 = vmatpush.msra.mxu1 %v12886_v33  ;;  %v5995_v49 = vsel %vm3198_vm6, %v12676_v19, %v5985_v60 }
 0xa0a   : > { %15609 = vst [vmem:[#allocation79_spill] sm:$0xff] %v12882_v25  ;;  %5367 = vmatpush.msra.mxu0 %v12898_v55  ;;  %v12930_v25 = vld [vmem:[#allocation21 + $0x38] sm:$0xff]  ;;  %v12936_v19 = vsel %vm1963_vm0, %v5995_v49, %v12844_v38  ;;  %v12952_v49 = vld [vmem:[#allocation21 + $0x208] sm:$0xff] }
 0xa0b   : > { %15610 = vst [vmem:[#allocation83_spill] sm:$0xff] %v12886_v33  ;;  %v12900_v10 = vpop.permute.xlu1 %5161  ;;  %5438 = vmatpush.msrb.mxu2 %v12896_v34  ;;  %5401 = vmatpush.msra.mxu1 %v12904_v46  ;;  %v12928_v33 = vld [vmem:[#allocation21 + $0x308] sm:$0xff] }
 0xa0c   : > { %15611 = vst [vmem:[#allocation86_spill] sm:$0xff] %v12891_v26  ;;  %v12906_v51 = vpop.permute.xlu0 %5167  ;;  %v12911_v35 = vsel %vm1963_vm0, %v12741_v30, %v12900_v10  ;;  %v15615_v30 = vunpack.i.l.bf16 %v12750_v4  ;;  %5476 = vmatpush.msrb.mxu3 %v12928_v33  ;;  %5368 = vmatpush.msra.mxu0 %v12930_v25  ;;  %v12960_v38 = vld [vmem:[#allocation21 + $0x128] sm:$0xff] }
 0xa0d   : > { %15612 = vst [vmem:[#allocation98_spill] sm:$0xff] %v12900_v10  ;;  %5439 = vmatpush.msrb.mxu2 %v12915_v21  ;;  %5402 = vmatpush.msra.mxu1 %v12932_v23 }
 0xa0e   : > { %15613 = vst [vmem:[#allocation81_spill] sm:$0xff] %v12904_v46  ;;  %7978 = vmatmul.msk.f32.gmra.mxu3 %vm4396_vm4, %v12911_v35  ;;  %v5131_v10 = vsel %vm3198_vm6, %v15615_v30, %v12891_v26  ;;  %v12944_v30 = vld [vmem:[#allocation21 + $0x218] sm:$0xff]  ;;  %v12946_v26 = vld [vmem:[#allocation21 + $0x28] sm:$0xff] }
 0xa0f   : > { %15614 = vst [vmem:[#allocation91_spill] sm:$0xff] %v12915_v21  ;;  %v12940_v60 = vsel %vm1963_vm0, %v5131_v10, %v12906_v51  ;;  %v12950_v46 = vld [vmem:[#allocation21 + $0x138] sm:$0xff]  ;;  %5440 = vmatpush.msrb.mxu2 %v12944_v30  ;;  %v15113_v10 = vunpack.i.h.bf16 %v12426_v52  ;;  %5369 = vmatpush.msra.mxu0 %v12946_v26 }
 0xa10   : > { %15617 = vst [vmem:[#allocation101_spill] sm:$0xff] %v12936_v19  ;;  %5314 = vmatmul.f32.gmra.mxu2 %v12940_v60  ;;  %v12958_v19 = vld [vmem:[#allocation21 + $0x18] sm:$0xff]  ;;  %6184 = vmatpush.msra.mxu3 %v12470_v48 }
 0xa11   : > { %15618 = vst [vmem:[#allocation107_spill] sm:$0xff] %v12944_v30  ;;  %5403 = vmatpush.msra.mxu1 %v12950_v46  ;;  %5441 = vmatpush.msrb.mxu2 %v12952_v49  ;;  %v12980_v48 = vld [vmem:[#allocation21 + $0x118] sm:$0xff] }
 0xa12   : > { %15619 = vst [vmem:[#allocation93_spill] sm:$0xff] %v12946_v26  ;;  %v12978_v26 = vld [vmem:[#allocation21 + $0x8] sm:$0xff]  ;;  %5370 = vmatpush.msra.mxu0 %v12958_v19  ;;  %6185 = vmatpush.msra.mxu3 %v12617_v40  ;;  %v15623_v40 = vunpack.i.l.bf16 %v12750_v4 }
 0xa13   : > { %15620 = vst [vmem:[#allocation100_spill] sm:$0xff] %v12952_v49  ;;  %v12963_v21 = vpop.permute.xlu1 %4837  ;;  %6136 = vmatpush.msra.mxu2 %v12463_v18  ;;  %5404 = vmatpush.msra.mxu1 %v12960_v38  ;;  %v12999_v18 = vld [vmem:[#allocation21 + $0x108] sm:$0xff] }
 0xa14   : > { %v12971_v30 = vsel %vm4897_vm14, %v12963_v21, %v15113_v10  ;;  %v12973_v23 = vpop.permute.xlu0 %5165  ;;  %7971 = vmatmul.msk.f32.gmra.mxu0 %vm12363_vm2, %v12963_v21  ;;  %v15622_v10 = vunpack.i.l.bf16 %v12834_v8  ;;  %v8612_v8 = vld [vmem:[#allocation21 + $0xe0] sm:$0xff]  ;;  %6186 = vmatpush.msra.mxu3 %v12730_v61 }
 0xa15   : > { %15621 = vst [vmem:[#allocation85_spill] sm:$0xff] %v12971_v30  ;;  %v12986_v52 = vsel %vm1963_vm0, %v12735_v22, %v12973_v23  ;;  %5371 = vmatpush.msra.mxu0 %v12978_v26  ;;  %5405 = vmatpush.msra.mxu1 %v12980_v48  ;;  %v8611_v22 = vld [vmem:[#allocation21 + $0xf0] sm:$0xff] }
 0xa16   : > { %v12992_v49 = vsel %vm3198_vm6, %v12971_v30, %v15622_v10  ;;  %7979 = vmatmul.msk.f32.gmra.mxu3 %vm4396_vm4, %v12986_v52  ;;  %6137 = vmatpush.msra.mxu2 %v12478_v13 }
 0xa17   : > { %5276 = vmatmul.f32.gmra.mxu1 %v12992_v49  ;;  %6066 = vmatpush.msrb.mxu0 %v8611_v22 }
 0xa18   : > { %5406 = vmatpush.msra.mxu1 %v12999_v18  ;;  %6138 = vmatpush.msra.mxu2 %v12490_v0 }
 0xa19   : > { %6067 = vmatpush.msrb.mxu0 %v8612_v8 }
 0xa1a   : > { %6101 = vmatpush.msrb.mxu1 %v12474_v47  ;;  %6139 = vmatpush.msra.mxu2 %v12497_v24  ;;  %v8613_v47 = vld [vmem:[#allocation21 + $0xd0] sm:$0xff]  ;;  %v8614_v24 = vld [vmem:[#allocation21 + $0xc0] sm:$0xff] }
 0xa1b   : > { %v13007_v10 = vpop.permute.xlu1 %5169  ;;  %6068 = vmatpush.msrb.mxu0 %v8613_v47 }
 0xa1c   : > { %v13011_v30 = vpop.permute.xlu0 %4843  ;;  %7973 = vmatmul.msk.f32.gmra.mxu0 %vm12363_vm2, %v12752_v29  ;;  %v13019_v13 = vsel %vm1963_vm0, %v12906_v51, %v13007_v10  ;;  %6102 = vmatpush.msrb.mxu1 %v12476_v12  ;;  %v8615_v12 = vld [vmem:[#allocation21 + $0xb0] sm:$0xff]  ;;  %v8616_v51 = vld [vmem:[#allocation21 + $0xa0] sm:$0xff] }
 0xa1d   : > { %v13025_v0 = vsel %vm4897_vm14, %v12752_v29, %v13011_v30  ;;  %6140 = vmatpush.msra.mxu2 %v12501_v62  ;;  %6069 = vmatpush.msrb.mxu0 %v8614_v24  ;;  %v15637_v24 = vld [vmem:[#allocation51_spill] sm:$0xff] }
 0xa1e   : > { %7980 = vmatmul.msk.f32.gmra.mxu3 %vm4396_vm4, %v13019_v13  ;;  %v13034_v61 = vsel %vm3198_vm6, %v13025_v0, %v15623_v40  ;;  %6103 = vmatpush.msrb.mxu1 %v12482_v45  ;;  %v15636_v40 = vld [vmem:[#allocation43_spill] sm:$0xff] }
 0xa1f   : > { %5279 = vmatmul.f32.gmra.mxu1 %v13034_v61  ;;  %6141 = vmatpush.msra.mxu2 %v12507_v27 }
 0xa20   : > { %6070 = vmatpush.msrb.mxu0 %v8615_v12  ;;  %6104 = vmatpush.msrb.mxu1 %v12492_v41  ;;  %v8617_v41 = vld [vmem:[#allocation21 + $0x90] sm:$0xff] }
 0xa21   : > { %6142 = vmatpush.msra.mxu2 %v12517_v31  ;;  %v8618_v31 = vld [vmem:[#allocation21 + $0x80] sm:$0xff] }
 0xa22   : > { %6071 = vmatpush.msrb.mxu0 %v8616_v51  ;;  %6105 = vmatpush.msrb.mxu1 %v12499_v36  ;;  %v15639_v51 = vld [vmem:[#allocation44_spill] sm:$0xff] }
 0xa23   : > { %v8416_v4 = vpop.permute.xlu1 %8415  ;;  %6143 = vmatpush.msra.mxu2 %v12532_v37  ;;  %v8619_v37 = vld [vmem:[#allocation21 + $0x70] sm:$0xff] }
 0xa24   : > { %v13042_v22 = vunpack.i.h.bf16 %v8416_v4  ;;  %v8417_v62 = vunpack.i.l.bf16 %v8416_v4  ;;  %v13044_v8 = vpop.permute.xlu0 %5173  ;;  %6072 = vmatpush.msrb.mxu0 %v8617_v41  ;;  %6106 = vmatpush.msrb.mxu1 %v12505_v57  ;;  %v8620_v57 = vld [vmem:[#allocation21 + $0x60] sm:$0xff]  ;;  %v15641_v41 = vld [vmem:[#allocation59_spill] sm:$0xff] }
 0xa25   : > { %v13051_v45 = vsel %vm1963_vm0, %v12760_v28, %v13044_v8  ;;  %6144 = vmatpush.msra.mxu2 %v12536_v32  ;;  %v15638_v4 = vld [vmem:[#allocation46_spill] sm:$0xff] }
 0xa26   : > { %7981 = vmatmul.msk.f32.gmra.mxu3 %vm4396_vm4, %v13051_v45  ;;  %v5132_v27 = vsel %vm3198_vm6, %v8417_v62, %v13042_v22  ;;  %6073 = vmatpush.msrb.mxu0 %v8618_v31 }
 0xa27   : > { %v13060_v36 = vsel %vm1963_vm0, %v5132_v27, %v12760_v28  ;;  %6107 = vmatpush.msrb.mxu1 %v12509_v9  ;;  %6145 = vmatpush.msra.mxu2 %v12546_v6  ;;  %v8621_v6 = vld [vmem:[#allocation21 + $0x50] sm:$0xff]  ;;  %v15634_v28 = vld [vmem:[#allocation53_spill] sm:$0xff] }
 0xa28   : > { %5317 = vmatmul.f32.gmra.mxu2 %v13060_v36  ;;  %6074 = vmatpush.msrb.mxu0 %v8619_v37  ;;  %v15643_v27 = vld [vmem:[#allocation76_spill] sm:$0xff]  ;;  %v15644_v37 = vld [vmem:[#allocation125_spill] sm:$0xff] }
 0xa29   : > { %6108 = vmatpush.msrb.mxu1 %v12519_v7  ;;  %6146 = vmatpush.msra.mxu2 %v12556_v11  ;;  %v4981_v11 = vsel %vm4897_vm14, %v12818_v53, 0.0 }
 0xa2a   : > { %6075 = vmatpush.msrb.mxu0 %v8620_v57  ;;  %v15645_v57 = vld [vmem:[#allocation47_spill] sm:$0xff] }
 0xa2b   : > { %v13067_v47 = vpop.permute.xlu1 %4845  ;;  %6109 = vmatpush.msrb.mxu1 %v12534_v3  ;;  %6147 = vmatpush.msra.mxu2 %v12569_v54  ;;  %v8622_v3 = vld [vmem:[#allocation21 + $0x40] sm:$0xff]  ;;  %v13096_v54 = vsel %vm3198_vm6, %v4981_v11, %v13042_v22 }
 0xa2c   : > { %v13073_v32 = vsel %vm4897_vm14, %v13067_v47, %v12818_v53  ;;  %7975 = vmatmul.msk.f32.gmra.mxu0 %vm12363_vm2, %v13067_v47  ;;  %v13079_v9 = vpop.permute.xlu0 %5982  ;;  %v15647_v11 = vld [vmem:[#allocation49_spill] sm:$0xff] }
 0xa2d   : > { %v13083_v7 = vsel %vm3198_vm6, %v13073_v32, %v8417_v62  ;;  %6076 = vmatpush.msrb.mxu0 %v8621_v6  ;;  %6110 = vmatpush.msrb.mxu1 %v12538_v43  ;;  %v8624_v43 = vld [vmem:[#allocation21 + $0x20] sm:$0xff]  ;;  %v15640_v62 = vld [vmem:[#allocation60_spill] sm:$0xff] }
 0xa2e   : > { %7994 = vmatmul.msk.f32.vlgmr.msrb.gmra.mxu3 %vm4396_vm4, %v12797_v15  ;;  %5282 = vmatmul.f32.gmra.mxu1 %v13083_v7  ;;  %v8623_v15 = vld [vmem:[#allocation21 + $0x30] sm:$0xff]  ;;  %v15646_v6 = vld [vmem:[#allocation57_spill] sm:$0xff] }
 0xa2f   : > { %6148 = vmatpush.msra.mxu2 %v12574_v50  ;;  %6077 = vmatpush.msrb.mxu0 %v8622_v3  ;;  %v15625_v50 = vld [vmem:[#allocation45_spill] sm:$0xff] }
 0xa30   : > { %5442 = vmatmul.f32.vlgmr.msrb.gmra.mxu2 %v12669_v1  ;;  %6111 = vmatpush.msrb.mxu1 %v12548_v17  ;;  %v15631_v1 = vld [vmem:[#allocation39_spill] sm:$0xff] }
 0xa31   : > { %6149 = vmatpush.msra.mxu2 %v12580_v14  ;;  %6078 = vmatpush.msrb.mxu0 %v8623_v15  ;;  %v15627_v14 = vld [vmem:[#allocation55_spill] sm:$0xff] }
 0xa32   : > { %6324 = vmatpush.msrb.mxu3 %v12880_v39  ;;  %6112 = vmatpush.msrb.mxu1 %v12563_v44  ;;  %v8625_v44 = vld [vmem:[#allocation21 + $0x10] sm:$0xff] }
 0xa33   : > { %v13101_v53 = vpop.permute.xlu1 %6018  ;;  %6150 = vmatpush.msra.mxu2 %v12592_v59  ;;  %6079 = vmatpush.msrb.mxu0 %v8624_v43  ;;  %v15628_v59 = vld [vmem:[#allocation75_spill] sm:$0xff]  ;;  %v15629_v39 = vld [vmem:[#allocation124_spill] sm:$0xff]  ;;  %v15648_v43 = vld [vmem:[#allocation54_spill] sm:$0xff] }
 0xa34   : > { %7983 = vmatmul.msk.f32.vlgmr.msra.gmra.mxu0 %vm12363_vm2, %v12368_v2  ;;  %6325 = vmatpush.msrb.mxu3 %v12888_v58  ;;  %v13113_v17 = vpop.permute.xlu0 %6020  ;;  %v15624_v2 = vld [vmem:[#allocation40_spill] sm:$0xff]  ;;  %v8626_v58 = vld [vmem:[#allocation21] sm:$0xff] }
 0xa35   : > { %6113 = vmatpush.msrb.mxu1 %v12571_v20  ;;  %6151 = vmatpush.msra.mxu2 %v12601_v42  ;;  %v15626_v20 = vld [vmem:[#allocation71_spill] sm:$0xff]  ;;  %v15630_v42 = vld [vmem:[#allocation41_spill] sm:$0xff] }
 0xa36   : > { %7995 = vmatmul.msk.f32.gmra.mxu3 %vm4396_vm4, %v12850_v16  ;;  %5407 = vmatmul.f32.vlgmr.msra.gmra.mxu1 %v12660_v5  ;;  %v15633_v16 = vld [vmem:[#allocation42_spill] sm:$0xff] }
 0xa37   : > { %6080 = vmatpush.msrb.mxu0 %v8625_v44  ;;  %6114 = vmatpush.msrb.mxu1 %v15624_v2  ;;  %v15649_v44 = vld [vmem:[#allocation63_spill] sm:$0xff] }
 0xa38   : > { %5445 = vmatmul.f32.gmra.mxu2 %v12696_v63  ;;  %6326 = vmatpush.msrb.mxu3 %v12928_v33  ;;  %v15632_v63 = vld [vmem:[#allocation56_spill] sm:$0xff]  ;;  %v15635_v33 = vld [vmem:[#allocation50_spill] sm:$0xff]  ;;  %v15650_v2 = vld [vmem:[#allocation95_spill] sm:$0xff] }
 0xa39   : > { %6081 = vmatpush.msrb.mxu0 %v8626_v58  ;;  %6276 = vmatpush.msrb.mxu2 %v15625_v50  ;;  %v15651_v58 = vld [vmem:[#allocation65_spill] sm:$0xff]  ;;  %v15652_v50 = vld [vmem:[#allocation62_spill] sm:$0xff] }
 0xa3a   : > { %6115 = vmatpush.msrb.mxu1 %v15626_v20  ;;  %v15653_v20 = vld [vmem:[#allocation58_spill] sm:$0xff] }
 0xa3b   : > { %6206 = vmatpush.msra.mxu0 %v15627_v14  ;;  %6277 = vmatpush.msrb.mxu2 %v15628_v59  ;;  %v13127_v5 = vpop.permute.xlu1 %5986  ;;  %v15655_v14 = vld [vmem:[#allocation69_spill] sm:$0xff]  ;;  %v15656_v59 = vld [vmem:[#allocation66_spill] sm:$0xff] }
 0xa3c   : > { %7985 = vmatmul.msk.f32.gmra.mxu0 %vm12363_vm2, %v15629_v39  ;;  %6116 = vmatpush.msrb.mxu1 %v15630_v42  ;;  %v5989_v12 = vpop.permute.xlu0 %5988  ;;  %v15657_v39 = vld [vmem:[#allocation64_spill] sm:$0xff]  ;;  %v15658_v42 = vld [vmem:[#allocation78_spill] sm:$0xff] }
 0xa3d   : > { %6278 = vmatpush.msrb.mxu2 %v15631_v1  ;;  %6207 = vmatpush.msra.mxu0 %v15632_v63  ;;  %v5997_v31 = vsel %vm3198_vm6, %v15643_v27, %v5989_v12  ;;  %v15659_v1 = vld [vmem:[#allocation88_spill] sm:$0xff]  ;;  %v15666_v12 = vld [vmem:[#allocation83_spill] sm:$0xff] }
 0xa3e   : > { %7996 = vmatmul.msk.f32.gmra.mxu3 %vm4396_vm4, %v12911_v35  ;;  %5410 = vmatmul.f32.gmra.mxu1 %v15633_v16  ;;  %v15642_v35 = vld [vmem:[#allocation61_spill] sm:$0xff]  ;;  %v13157_v15 = vsel %vm1963_vm0, %v5997_v31, %v12973_v23  ;;  %v15660_v63 = vld [vmem:[#allocation72_spill] sm:$0xff] }
 0xa3f   : > { %6241 = vmatpush.msra.mxu1 %v15634_v28  ;;  %6279 = vmatpush.msrb.mxu2 %v15635_v33  ;;  %v15661_v16 = vld [vmem:[#allocation89_spill] sm:$0xff]  ;;  %v15662_v28 = vld [vmem:[#allocation74_spill] sm:$0xff]  ;;  %v15663_v33 = vld [vmem:[#allocation84_spill] sm:$0xff] }
 0xa40   : > { %5448 = vmatmul.f32.gmra.mxu2 %v15636_v40  ;;  %6208 = vmatpush.msra.mxu0 %v15637_v24  ;;  %v15664_v40 = vld [vmem:[#allocation92_spill] sm:$0xff]  ;;  %v15665_v24 = vld [vmem:[#allocation79_spill] sm:$0xff] }
 0xa41   : > { %6242 = vmatpush.msra.mxu1 %v15638_v4  ;;  %6280 = vmatpush.msrb.mxu2 %v15639_v51 }
 0xa42   : > { %6209 = vmatpush.msra.mxu0 %v15640_v62  ;;  %v15681_v62 = vld [vmem:[#allocation52_spill] sm:$0xff] }
 0xa43   : > { %6243 = vmatpush.msra.mxu1 %v15641_v41  ;;  %6281 = vmatpush.msrb.mxu2 %v15642_v35  ;;  %v13153_v3 = vpop.permute.xlu1 %6024  ;;  %v15683_v35 = vld [vmem:[#allocation38_spill] sm:$0xff] }
 0xa44   : > { %7987 = vmatmul.msk.f32.gmra.mxu0 %vm12363_vm2, %v15644_v37  ;;  %v15684_v37 = vld [vmem:[#allocation48_spill] sm:$0xff] }
 0xa45   : > { %6210 = vmatpush.msra.mxu0 %v15645_v57  ;;  %6244 = vmatpush.msra.mxu1 %v15646_v6  ;;  %v15685_v57 = vunpack.i.l.bf16 %v15684_v37  ;;  %v15686_v6 = vld [vmem:[#allocation68_spill] sm:$0xff] }
 0xa46   : > { %7997 = vmatmul.msk.f32.gmra.mxu3 %vm4396_vm4, %v12986_v52  ;;  %5413 = vmatmul.f32.gmra.mxu1 %v15647_v11  ;;  %v15654_v52 = vld [vmem:[#allocation67_spill] sm:$0xff]  ;;  %v13272_v11 = vsel %vm1963_vm0, %v12973_v23, %v13153_v3  ;;  %v15688_v3 = vld [vmem:[#allocation85_spill] sm:$0xff] }
 0xa47   : > { %6282 = vmatpush.msrb.mxu2 %v15648_v43  ;;  %6211 = vmatpush.msra.mxu0 %v15649_v44  ;;  %v5233_v44 = vpop.f32.mrf.mxu0 }
 0xa48   : > { %5451 = vmatmul.f32.gmra.mxu2 %v15650_v2  ;;  %6245 = vmatpush.msra.mxu1 %v15651_v58  ;;  %v5268_v2 = vpop.f32.mrf.mxu1  ;;  %v6027_v58 = vpop.permute.xlu0 %6026 }
 0xa49   : > { %6283 = vmatpush.msrb.mxu2 %v15652_v50  ;;  %6212 = vmatpush.msra.mxu0 %v15653_v20  ;;  %v5303_v20 = vpop.f32.mrf.mxu2 }
 0xa4a   : > { %6246 = vmatpush.msra.mxu1 %v15654_v52  ;;  %v15687_v52 = vunpack.i.h.bf16 %v15684_v37 }
 0xa4b   : > { %6284 = vmatpush.msrb.mxu2 %v15655_v14  ;;  %6213 = vmatpush.msra.mxu0 %v15656_v59  ;;  %v13288_v14 = vsel %vm1963_vm0, %v13007_v10, %v6027_v58 }
 0xa4c   : > { %7989 = vmatmul.msk.f32.gmra.mxu0 %vm12363_vm2, %v12963_v21  ;;  %6247 = vmatpush.msra.mxu1 %v15657_v39  ;;  %v5993_v21 = vpop.permute.xlu1 %5992  ;;  %v4979_v23 = vsel %vm4897_vm14, %v15687_v52, 0.0  ;;  %v15689_v39 = vld [vmem:[#allocation86_spill] sm:$0xff] }
 0xa4d   : > { %6285 = vmatpush.msrb.mxu2 %v15658_v42  ;;  %6214 = vmatpush.msra.mxu0 %v15659_v1  ;;  %v13292_v59 = vsel %vm3198_vm6, %v4979_v23, %v15643_v27  ;;  %v4980_v27 = vsel %vm4897_vm14, %v13011_v30, 0.0 }
 0xa4e   : > { %7998 = vmatmul.msk.f32.gmra.mxu3 %vm4396_vm4, %v13019_v13  ;;  %5416 = vmatmul.f32.gmra.mxu1 %v12992_v49  ;;  %v5999_v49 = vsel %vm3198_vm6, %v13042_v22, %v5993_v21  ;;  %v15671_v22 = vld [vmem:[#allocation93_spill] sm:$0xff]  ;;  %v13306_v21 = vld [vmem:[#allocation22] sm:$0x3] }
 0xa4f   : > { %6248 = vmatpush.msra.mxu1 %v15660_v63  ;;  %6286 = vmatpush.msrb.mxu2 %v15661_v16  ;;  %v13198_v13 = vsel %vm1963_vm0, %v5999_v49, %v13044_v8  ;;  %v5236_v1 = vpop.f32.mrf.mxu0 }
 0xa50   : > { %5454 = vmatmul.f32.gmra.mxu2 %v12940_v60  ;;  %6215 = vmatpush.msra.mxu0 %v15662_v28  ;;  %v15667_v60 = vld [vmem:[#allocation81_spill] sm:$0xff]  ;;  %v5271_v28 = vpop.f32.mrf.mxu1 }
 0xa51   : > { %6249 = vmatpush.msra.mxu1 %v15663_v33  ;;  %6287 = vmatpush.msrb.mxu2 %v15664_v40  ;;  %v5306_v40 = vpop.f32.mrf.mxu2 }
 0xa52   : > { %6216 = vmatpush.msra.mxu0 %v15665_v24 }
 0xa53   : > { %6250 = vmatpush.msra.mxu1 %v15666_v12  ;;  %6288 = vmatpush.msrb.mxu2 %v12896_v34  ;;  %v15668_v34 = vld [vmem:[#allocation91_spill] sm:$0xff]  ;;  %v13318_v12 = vperm.slane %v13306_v21, 0 }
 0xa54   : > { %7991 = vmatmul.msk.f32.gmra.mxu0 %vm12363_vm2, %v12752_v29  ;;  %v15669_v29 = vld [vmem:[#allocation103_spill] sm:$0xff] }
 0xa55   : > { %6217 = vmatpush.msra.mxu0 %v12898_v55  ;;  %6251 = vmatpush.msra.mxu1 %v15667_v60  ;;  %v15670_v55 = vld [vmem:[#allocation107_spill] sm:$0xff]  ;;  %v5237_v30 = vadd.f32 %v5236_v1, %v13318_v12 }
 0xa56   : > { %7999 = vmatmul.msk.f32.gmra.mxu3 %vm4396_vm4, %v13051_v45  ;;  %5419 = vmatmul.f32.gmra.mxu1 %v13034_v61  ;;  %v15672_v45 = vld [vmem:[#allocation100_spill] sm:$0xff]  ;;  %v15673_v61 = vld [vmem:[#allocation37_spill] sm:$0xff] }
 0xa57   : > { %6289 = vmatpush.msrb.mxu2 %v15668_v34  ;;  %6218 = vmatpush.msra.mxu0 %v12930_v25  ;;  %v5994_v4 = vsel %vm3198_vm6, %v15673_v61, %v13079_v9  ;;  %v15674_v25 = vld [vmem:[#allocation127_spill] sm:$0xff]  ;;  %v5239_v49 = vpop.f32.mrf.mxu0  ;;  %v5272_v34 = vadd.f32 %v5271_v28, %v5237_v30 }
 0xa58   : > { %5457 = vmatmul.f32.gmra.mxu2 %v13060_v36  ;;  %6252 = vmatpush.msra.mxu1 %v15669_v29  ;;  %v13219_v36 = vsel %vm1963_vm0, %v15674_v25, %v13101_v53  ;;  %v15680_v53 = vld [vmem:[#allocation70_spill] sm:$0xff]  ;;  %v5274_v29 = vpop.f32.mrf.mxu1 }
 0xa59   : > { %6290 = vmatpush.msrb.mxu2 %v15670_v55  ;;  %6219 = vmatpush.msra.mxu0 %v15671_v22  ;;  %v5996_v51 = vsel %vm3198_vm6, %v15680_v53, %v13127_v5  ;;  %v4978_v5 = vsel %vm4897_vm14, %v15685_v57, 0.0  ;;  %v5240_v55 = vadd.f32 %v5239_v49, %v13318_v12 }
 0xa5a   : > { %6253 = vmatpush.msra.mxu1 %v12950_v46  ;;  %v13227_v46 = vsel %vm1963_vm0, %v5994_v4, %v15674_v25  ;;  %v13276_v43 = vsel %vm3198_vm6, %v4978_v5, %v15680_v53 }
 0xa5b   : > { %6291 = vmatpush.msrb.mxu2 %v15672_v45  ;;  %6220 = vmatpush.msra.mxu0 %v12958_v19  ;;  %v5307_v45 = vadd.f32 %v5306_v40, %v5272_v34  ;;  %v5275_v25 = vadd.f32 %v5274_v29, %v5240_v55 }
 0xa5c   : > { %7993 = vmatmul.msk.f32.gmra.mxu0 %vm12363_vm2, %v13067_v47  ;;  %6254 = vmatpush.msra.mxu1 %v12960_v38  ;;  %v15676_v38 = vunpack.i.l.bf16 %v15675_v56  ;;  %v15678_v47 = vld [vmem:[#allocation77_spill] sm:$0xff] }
 0xa5d   : > { %6221 = vmatpush.msra.mxu0 %v12978_v26  ;;  %v15677_v26 = vld [vmem:[#allocation73_spill] sm:$0xff]  ;;  %v13239_v9 = vsel %vm1963_vm0, %v15678_v47, %v13113_v17  ;;  %v15682_v17 = vld [vmem:[#allocation98_spill] sm:$0xff] }
 0xa5e   : > { %8024 = vmatmul.msk.f32.vlgmr.msra.gmra.mxu3 %vm4396_vm4, %v13219_v36  ;;  %5422 = vmatmul.f32.gmra.mxu1 %v13083_v7  ;;  %v4976_v19 = vsel %vm4897_vm14, %v15676_v38, 0.0  ;;  %v13262_v31 = vsel %vm1963_vm0, %v5996_v51, %v15682_v17 }
 0xa5f   : > { %6255 = vmatpush.msra.mxu1 %v12980_v48  ;;  %v13243_v7 = vsel %vm3198_vm6, %v4976_v19, %v15673_v61  ;;  %v15679_v48 = vld [vmem:[#allocation101_spill] sm:$0xff] }
 0xa60   : > { %6152 = vmatmul.f32.vlgmr.msra.gmra.mxu2 %v13227_v46  ;;  %v5309_v61 = vpop.f32.mrf.mxu2 }
 0xa61   : > { %6256 = vmatpush.msra.mxu1 %v12999_v18  ;;  %v6023_v18 = vpop.permute.xlu2 %6022  ;;  %v5310_v38 = vadd.f32 %v5309_v61, %v5275_v25 }
 0xa62   : > { %v13255_v41 = vsel %vm1963_vm0, %v15682_v17, %v6023_v18 }
 0xa64   : > { %6082 = vmatmul.f32.vlgmr.msrb.gmra.mxu0 %v15677_v26 }
 0xa66   : > { %8025 = vmatmul.msk.f32.gmra.mxu3 %vm4396_vm4, %v13239_v9  ;;  %6117 = vmatmul.f32.vlgmr.msrb.gmra.mxu1 %v13243_v7 }
 0xa68   : > { %6155 = vmatmul.f32.gmra.mxu2 %v15679_v48 }
 0xa69   : > { %v5991_v50 = vpop.permute.xlu2 %5990 }
 0xa6a   : > { %v5998_v42 = vsel %vm3198_vm6, %v15689_v39, %v5991_v50 }
 0xa6b   : > { %v13301_v63 = vsel %vm1963_vm0, %v5998_v42, %v13007_v10  ;;  %v13315_v10 = vsel %vm3198_vm6, %v4980_v27, %v15689_v39 }
 0xa6c   : > { %6085 = vmatmul.f32.gmra.mxu0 %v15681_v62 }
 0xa6e   : > { %8026 = vmatmul.msk.f32.gmra.mxu3 %vm4396_vm4, %v13255_v41  ;;  %6120 = vmatmul.f32.gmra.mxu1 %v15683_v35 }
 0xa70   : > { %6158 = vmatmul.f32.gmra.mxu2 %v13262_v31 }
 0xa71   : > { %v6029_v33 = vpop.permute.xlu2 %6028 }
 0xa72   : > { %v13311_v24 = vsel %vm1963_vm0, %v13044_v8, %v6029_v33  ;;  %v5234_v8 = vadd.f32 %v5233_v44, %v13318_v12 }
 0xa74   : > { %6088 = vmatmul.f32.gmra.mxu0 %v15686_v6  ;;  %v5269_v22 = vadd.f32 %v5268_v2, %v5234_v8 }
 0xa76   : > { %8027 = vmatmul.msk.f32.gmra.mxu3 %vm4396_vm4, %v13272_v11  ;;  %6123 = vmatmul.f32.gmra.mxu1 %v13276_v43  ;;  %v5304_v4 = vadd.f32 %v5303_v20, %v5269_v22 }
 0xa78   : > { %6161 = vmatmul.f32.gmra.mxu2 %v13157_v15 }
 0xa7c   : > { %6091 = vmatmul.f32.gmra.mxu0 %v15688_v3 }
 0xa7e   : > { %8028 = vmatmul.msk.f32.gmra.mxu3 %vm4396_vm4, %v13288_v14  ;;  %6126 = vmatmul.f32.gmra.mxu1 %v13292_v59 }
 0xa80   : > { %v5338_v16 = vpop.f32.mrf.mxu3  ;;  %6164 = vmatmul.f32.gmra.mxu2 %v13301_v63 }
 0xa81   : > { %v13333_v19 = vadd.f32 %v5338_v16, %v5304_v4 }
 0xa84   : > { %6094 = vmatmul.f32.gmra.mxu0 %v13025_v0 }
 0xa86   : > { %8029 = vmatmul.msk.f32.gmra.mxu3 %vm4396_vm4, %v13311_v24  ;;  %6129 = vmatmul.f32.gmra.mxu1 %v13315_v10 }
 0xa88   : > { %6167 = vmatmul.f32.gmra.mxu2 %v13198_v13 }
 0xa89   : > { %v5341_v60 = vpop.f32.mrf.mxu3 }
 0xa8a   : > { %v13331_v56 = vadd.f32 %v5341_v60, %v5307_v45 }
 0xa8b   : > { %v5312_v57 = vpop.f32.mrf.mxu2 }
 0xa8c   : > { %6097 = vmatmul.f32.gmra.mxu0 %v13073_v32  ;;  %v13339_v51 = vmul.f32 0.70710677, %v13331_v56 }
 0xa8e   : > { %8030 = vmatmul.msk.f32.vlgmr.msrb.gmra.mxu3 %vm4396_vm4, %v13219_v36  ;;  %6132 = vmatmul.f32.gmra.mxu1 %v13096_v54  ;;  %v13343_v36 = vmul.f32 0.70710677, %v13333_v19  ;;  %v13353_v44 = vand.u32 2147483647, %v13339_v51 }
 0xa90   : > { %6292 = vmatmul.f32.vlgmr.msrb.gmra.mxu2 %v13227_v46  ;;  %v13359_v50 = vand.u32 2147483647, %v13343_v36 }
 0xa91   : > { %v5344_v47 = vpop.f32.mrf.mxu3  ;;  %v5242_v18 = vpop.f32.mrf.mxu0 }
 0xa92   : > { %v13336_v53 = vadd.f32 %v5344_v47, %v5310_v38  ;;  %v5243_v17 = vadd.f32 %v5242_v18, %v13318_v12  ;;  %v5520_v39 = vmul.f32 0.3275911, %v13359_v50 }
 0xa93   : > { %v5315_v33 = vpop.f32.mrf.mxu2 }
 0xa94   : > { %v5277_v37 = vpop.f32.mrf.mxu1  ;;  %6222 = vmatmul.f32.vlgmr.msra.gmra.mxu0 %v15677_v26  ;;  %v13347_v5 = vmul.f32 0.70710677, %v13336_v53  ;;  %v13382_v40 = vadd.f32 1.0, %v5520_v39 }
 0xa95   : > { %v5278_v46 = vadd.f32 %v5277_v37, %v5243_v17  ;;  %v5832_v17 = vsub.f32 0.0, %v13359_v50 }
 0xa96   : > { %8031 = vmatmul.msk.f32.gmra.mxu3 %vm4396_vm4, %v13239_v9  ;;  %6257 = vmatmul.f32.vlgmr.msra.gmra.mxu1 %v13243_v7  ;;  %v13356_v2 = vand.u32 2147483647, %v13347_v5  ;;  %v5522_v7 = vmul.f32 0.3275911, %v13353_v44  ;;  %vm5549_vm0 = vweird.f32 %v13382_v40 }
 0xa97   : > { %v5313_v58 = vadd.f32 %v5312_v57, %v5278_v46 }
 0xa98   : > { %6295 = vmatmul.f32.gmra.mxu2 %v15679_v48  ;;  %v5524_v52 = vmul.f32 0.3275911, %v13356_v2  ;;  %v13380_v27 = vadd.f32 1.0, %v5522_v7 }
 0xa99   : > { %v5347_v26 = vpop.f32.mrf.mxu3  ;;  %v5245_v20 = vpop.f32.mrf.mxu0 }
 0xa9a   : > { %v13363_v23 = vadd.f32 %v5347_v26, %v5313_v58  ;;  %v5246_v9 = vadd.f32 %v5245_v20, %v13318_v12  ;;  %v13372_v16 = vadd.f32 1.0, %v5524_v52  ;;  %v5555_v26 = vand.u32 2147483648, %v13382_v40 }
 0xa9b   : > { %vm5579_vm6 = vweird.f32 %v13380_v27 }
 0xa9c   : > { %v13369_v42 = vmul.f32 0.70710677, %v13363_v23  ;;  %v5280_v1 = vpop.f32.mrf.mxu1  ;;  %6225 = vmatmul.f32.gmra.mxu0 %v15681_v62  ;;  %8515 = vrcp.f32 %v13372_v16  ;;  %vm5609_vm10 = vweird.f32 %v13372_v16 }
 0xa9d   : > { %v5281_v28 = vadd.f32 %v5280_v1, %v5246_v9  ;;  %8517 = vrcp.f32 %v13380_v27  ;;  %v13445_v9 = vmul.f32 %v5832_v17, %v13359_v50  ;;  %v13459_v50 = vor.u32 1.1754944e-38, %v5555_v26 }
 0xa9e   : > { %v13375_v48 = vand.u32 2147483647, %v13369_v42  ;;  %8032 = vmatmul.msk.f32.gmra.mxu3 %vm4396_vm4, %v13255_v41  ;;  %6260 = vmatmul.f32.gmra.mxu1 %v15683_v35  ;;  %8519 = vrcp.f32 %v13382_v40 }
 0xa9f   : > { %v5316_v49 = vadd.f32 %v5315_v33, %v5281_v28 }
 0xaa0   : > { %v5526_v30 = vmul.f32 0.3275911, %v13375_v48  ;;  %6298 = vmatmul.f32.gmra.mxu2 %v13262_v31 }
 0xaa1   : > { %v5350_v62 = vpop.f32.mrf.mxu3 }
 0xaa2   : > { %v13387_v60 = vadd.f32 %v5350_v62, %v5316_v49  ;;  %v13390_v41 = vadd.f32 1.0, %v5526_v30  ;;  %v13404_v8 = vpop.eup %8515  ;;  %v5834_v49 = vsub.f32 0.0, %v13353_v44  ;;  %v5585_v62 = vand.u32 2147483648, %v13380_v27 }
 0xaa3   : > { %v13407_v34 = vpop.eup %8517  ;;  %vm5610_vm11 = vweird.f32 %v13404_v8 }
 0xaa4   : > { %6228 = vmatmul.f32.gmra.mxu0 %v15686_v6  ;;  %v13395_v35 = vmul.f32 0.70710677, %v13387_v60  ;;  %8521 = vrcp.f32 %v13390_v41  ;;  %v13410_v22 = vpop.eup %8519  ;;  %vm13495_vm12 = vmor %vm5609_vm10, %vm5610_vm11  ;;  %vm5639_vm13 = vweird.f32 %v13390_v41 }
 0xaa5   : > { %v5545_v47 = vmul.f32 %v13410_v22, %v13382_v40  ;;  %vm5550_vm9 = vweird.f32 %v13410_v22 }
 0xaa6   : > { %8033 = vmatmul.msk.f32.gmra.mxu3 %vm4396_vm4, %v13272_v11  ;;  %6263 = vmatmul.f32.gmra.mxu1 %v13276_v43  ;;  %v13402_v31 = vand.u32 2147483647, %v13395_v35  ;;  %v5605_v43 = vmul.f32 %v13404_v8, %v13372_v16  ;;  %vm13529_vm3 = vmor %vm5549_vm0, %vm5550_vm9 }
 0xaa7   : > { %v5546_v58 = vsub.f32 1.0, %v5545_v47 }
 0xaa8   : > { %6301 = vmatmul.f32.gmra.mxu2 %v13157_v15  ;;  %v5528_v6 = vmul.f32 0.3275911, %v13402_v31  ;;  %v5575_v15 = vmul.f32 %v13407_v34, %v13380_v27  ;;  %v5606_v37 = vsub.f32 1.0, %v5605_v43 }
 0xaa9   : > { %v5353_v29 = vpop.f32.mrf.mxu3  ;;  %v5248_v55 = vpop.f32.mrf.mxu0  ;;  %v5547_v30 = vmul.f32 %v13410_v22, %v5546_v58 }
 0xaaa   : > { %v5249_v11 = vadd.f32 %v5248_v55, %v13318_v12  ;;  %v13415_v45 = vadd.f32 1.0, %v5528_v6  ;;  %v13420_v38 = vpop.eup %8521  ;;  %v5576_v57 = vsub.f32 1.0, %v5575_v15  ;;  %v5607_v7 = vmul.f32 %v13404_v8, %v5606_v37 }
 0xaab   : > { %v5283_v61 = vpop.f32.mrf.mxu1  ;;  %v5318_v4 = vpop.f32.mrf.mxu2  ;;  %v5613_v15 = vand.u32 2147483647, %v13372_v16  ;;  %v5548_v47 = vadd.f32 %v13410_v22, %v5547_v30  ;;  %vm5640_vm15 = vweird.f32 %v13420_v38 }
 0xaac   : > { %v5284_v25 = vadd.f32 %v5283_v61, %v5249_v11  ;;  %6231 = vmatmul.f32.gmra.mxu0 %v15688_v3  ;;  %8523 = vrcp.f32 %v13415_v45  ;;  %v5635_v3 = vmul.f32 %v13420_v38, %v13390_v41  ;;  %v5577_v1 = vmul.f32 %v13407_v34, %v5576_v57  ;;  %vm5641_vm5 = vmor %vm5639_vm13, %vm5640_vm15 }
 0xaad   : > { %v5608_v55 = vadd.f32 %v13404_v8, %v5607_v7  ;;  %v5553_v7 = vand.u32 2147483647, %v13382_v40  ;;  %vm5614_vm7 = vcmp.eq.f32.partialorder %v5613_v15, 8.507059e+37  ;;  %v5675_v30 = vand.u32 2147483648, %v13415_v45 }
 0xaae   : > { %v5319_v18 = vadd.f32 %v5318_v4, %v5284_v25  ;;  %8034 = vmatmul.msk.f32.gmra.mxu3 %vm4396_vm4, %v13288_v14  ;;  %6266 = vmatmul.f32.gmra.mxu1 %v13292_v59  ;;  %v5636_v28 = vsub.f32 1.0, %v5635_v3  ;;  %v5583_v25 = vand.u32 2147483647, %v13380_v27  ;;  %vm5669_vm9 = vweird.f32 %v13415_v45 }
 0xaaf   : > { %v5612_v26 = vsel %vm13495_vm12, %v13404_v8, %v5608_v55  ;;  %vm5554_vm0 = vcmp.eq.f32.partialorder %v5553_v7, 8.507059e+37  ;;  %v13581_v7 = vmul.f32 0.5, %v13333_v19 }
 0xab0   : > { %v13431_v46 = vadd.f32 %v5353_v29, %v5319_v18  ;;  %6304 = vmatmul.f32.gmra.mxu2 %v13301_v63  ;;  %v5637_v11 = vmul.f32 %v13420_v38, %v5636_v28  ;;  %v5586_v18 = vor.u32 1.1754944e-38, %v5585_v62  ;;  %vm5584_vm14 = vcmp.eq.f32.partialorder %v5583_v25, 8.507059e+37 }
 0xab1   : > { %v13435_v20 = vpop.f32.mrf.mxu3  ;;  %v13437_v52 = vpop.f32.mrf.mxu0  ;;  %v5836_v25 = vsub.f32 0.0, %v13356_v2 }
 0xab2   : > { %v13440_v14 = vmul.f32 0.70710677, %v13431_v46  ;;  %v13442_v59 = vpop.eup %8523 }
 0xab3   : > { %v13448_v39 = vpop.f32.mrf.mxu1  ;;  %v13450_v63 = vpop.f32.mrf.mxu2  ;;  %v5665_v6 = vmul.f32 %v13442_v59, %v13415_v45 }
 0xab4   : > { %v13455_v33 = vand.u32 2147483647, %v13440_v14  ;;  %6234 = vmatmul.f32.gmra.mxu0 %v13025_v0  ;;  %v5615_v0 = vand.u32 2147483648, %v13372_v16 }
 0xab5   : > { %v5666_v17 = vsub.f32 1.0, %v5665_v6 }
 0xab6   : > { %v5530_v29 = vmul.f32 0.3275911, %v13455_v33  ;;  %8035 = vmatmul.msk.f32.gmra.mxu3 %vm4396_vm4, %v13311_v24  ;;  %6269 = vmatmul.f32.gmra.mxu1 %v13315_v10  ;;  %v5578_v24 = vadd.f32 %v13407_v34, %v5577_v1  ;;  %vm5580_vm4 = vweird.f32 %v13407_v34  ;;  %v5645_v10 = vand.u32 2147483648, %v13390_v41 }
 0xab7   : > { %v5616_v57 = vor.u32 1.1754944e-38, %v5615_v0  ;;  %vm13511_vm1 = vmor %vm5579_vm6, %vm5580_vm4  ;;  %v5638_v1 = vadd.f32 %v13420_v38, %v5637_v11  ;;  %vm5670_vm6 = vweird.f32 %v13442_v59 }
 0xab8   : > { %v13476_v43 = vadd.f32 1.0, %v5530_v29  ;;  %6307 = vmatmul.f32.gmra.mxu2 %v13198_v13  ;;  %v5643_v13 = vand.u32 2147483647, %v13390_v41  ;;  %v13518_v41 = vperm.slane %v13306_v21, 1  ;;  %v5582_v8 = vsel %vm13511_vm1, %v13407_v34, %v5578_v24  ;;  %vm5671_vm10 = vmor %vm5669_vm9, %vm5670_vm6 }
 0xab9   : > { %v13482_v61 = vpop.f32.mrf.mxu3  ;;  %v13484_v4 = vpop.f32.mrf.mxu0  ;;  %v5646_v28 = vor.u32 1.1754944e-38, %v5645_v10  ;;  %v5667_v21 = vmul.f32 %v13442_v59, %v5666_v17  ;;  %v5642_v40 = vsel %vm5641_vm5, %v13420_v38, %v5638_v1  ;;  %v13541_v34 = vsel %vm5614_vm7, %v5616_v57, %v5612_v26 }
 0xaba   : > { %8525 = vrcp.f32 %v13476_v43  ;;  %vm5644_vm2 = vcmp.eq.f32.partialorder %v5643_v13, 8.507059e+37  ;;  %v13546_v6 = vsel %vm5584_vm14, %v5586_v18, %v5582_v8  ;;  %v5374_v29 = vadd.f32 %v13437_v52, %v13518_v41 }
 0xabb   : > { %v13500_v3 = vpop.f32.mrf.mxu1  ;;  %v13502_v58 = vpop.f32.mrf.mxu2  ;;  %v13544_v62 = vsel %vm5644_vm2, %v5646_v28, %v5642_v40  ;;  %v5856_v38 = vmul.f32 1.442695, %v13445_v9  ;;  %v5728_v11 = vmul.f32 1.0614054, %v13541_v34  ;;  %v5846_v52 = vmul.f32 %v5834_v49, %v13353_v44 }
 0xabc   : > { %6237 = vmatmul.f32.gmra.mxu0 %v13073_v32  ;;  %v5552_v32 = vsel %vm13529_vm3, %v13410_v22, %v5548_v47  ;;  %v5673_v22 = vand.u32 2147483647, %v13415_v45  ;;  %v5668_v15 = vadd.f32 %v13442_v59, %v5667_v21  ;;  %v5726_v9 = vmul.f32 1.0614054, %v13546_v6 }
 0xabd   : > { %v13558_v24 = vsel %vm5554_vm0, %v13459_v50, %v5552_v32  ;;  %v5838_v47 = vsub.f32 0.0, %v13375_v48  ;;  %v5676_v18 = vor.u32 1.1754944e-38, %v5675_v30  ;;  %v5409_v37 = vadd.f32 %v13448_v39, %v5374_v29 }
 0xabe   : > { %6272 = vmatmul.f32.gmra.mxu1 %v13096_v54  ;;  %v5730_v54 = vmul.f32 1.0614054, %v13544_v62  ;;  %v5672_v44 = vsel %vm5671_vm10, %v13442_v59, %v5668_v15  ;;  %vm5674_vm11 = vcmp.eq.f32.partialorder %v5673_v22, 8.507059e+37  ;;  %v5724_v45 = vmul.f32 1.0614054, %v13558_v24 }
 0xabf   : > { %v13578_v26 = vsel %vm5674_vm11, %v5676_v18, %v5672_v44  ;;  %v8004_v16 = vadd.f32 -1.4531521, %v5728_v11  ;;  %v5860_v1 = vmul.f32 1.442695, %v5846_v52  ;;  %v8002_v8 = vadd.f32 -1.4531521, %v5726_v9 }
 0xac0   : > { %v13560_v10 = vpop.eup %8525  ;;  %v8006_v13 = vadd.f32 -1.4531521, %v5730_v54  ;;  %8527 = vpow2.f32 %v5856_v38  ;;  %v5848_v39 = vmul.f32 %v5836_v25, %v13356_v2  ;;  %v5732_v59 = vmul.f32 1.0614054, %v13578_v26 }
 0xac1   : > { %v13554_v0 = vpop.f32.mrf.mxu3  ;;  %v5379_v55 = vpop.f32.mrf.mxu0  ;;  %v5695_v49 = vmul.f32 %v13560_v10, %v13476_v43  ;;  %v5850_v28 = vmul.f32 %v5838_v47, %v13375_v48  ;;  %v5444_v32 = vadd.f32 %v13450_v63, %v5409_v37  ;;  %v5377_v21 = vadd.f32 %v13484_v4, %v13518_v41 }
 0xac2   : > { %v5380_v57 = vadd.f32 %v5379_v55, %v13518_v41  ;;  %v5754_v27 = vmul.f32 %v8006_v13, %v13544_v62  ;;  %v8000_v40 = vadd.f32 -1.4531521, %v5724_v45  ;;  %v8008_v54 = vadd.f32 -1.4531521, %v5732_v59 }
 0xac3   : > { %v5414_v17 = vpop.f32.mrf.mxu1  ;;  %v5449_v50 = vpop.f32.mrf.mxu2  ;;  %v5696_v30 = vsub.f32 1.0, %v5695_v49  ;;  %v5752_v2 = vmul.f32 %v8004_v16, %v13541_v34  ;;  %8529 = vpow2.f32 %v5860_v1  ;;  %v13594_v38 = vmul.f32 0.5, %v13331_v56 }
 0xac4   : > { %v5415_v19 = vadd.f32 %v5414_v17, %v5380_v57  ;;  %v5840_v48 = vsub.f32 0.0, %v13402_v31  ;;  %v5750_v63 = vmul.f32 %v8002_v8, %v13546_v6  ;;  %v5864_v55 = vmul.f32 1.442695, %v5848_v39 }
 0xac5   : > { %v5756_v15 = vmul.f32 %v8008_v54, %v13578_v26  ;;  %v5766_v9 = vadd.f32 1.4214138, %v5754_v27  ;;  %v5868_v25 = vmul.f32 1.442695, %v5850_v28  ;;  %v13601_v47 = vadd.f32 %v13435_v20, %v5444_v32 }
 0xac6   : > { %v5412_v18 = vadd.f32 %v13500_v3, %v5377_v21  ;;  %v5748_v56 = vmul.f32 %v8000_v40, %v13558_v24  ;;  %v13605_v17 = vpop.eup %8527  ;;  %v5697_v13 = vmul.f32 %v13560_v10, %v5696_v30  ;;  %v5450_v37 = vadd.f32 %v5449_v50, %v5415_v19 }
 0xac7   : > { %v5768_v44 = vadd.f32 1.4214138, %v5756_v15  ;;  %v5764_v45 = vadd.f32 1.4214138, %v5752_v2  ;;  %v5852_v49 = vmul.f32 %v5840_v48, %v13402_v31  ;;  %v5703_v57 = vand.u32 2147483647, %v13476_v43 }
 0xac8   : > { %v5705_v16 = vand.u32 2147483648, %v13476_v43  ;;  %v5762_v1 = vadd.f32 1.4214138, %v5750_v63  ;;  %vm5700_vm4 = vweird.f32 %v13560_v10  ;;  %v5778_v8 = vmul.f32 %v5766_v9, %v13544_v62 }
 0xac9   : > { %v13590_v29 = vpop.f32.mrf.mxu3  ;;  %v5382_v22 = vpop.f32.mrf.mxu0  ;;  %v5780_v3 = vmul.f32 %v5768_v44, %v13578_v26  ;;  %vm5699_vm15 = vweird.f32 %v13476_v43  ;;  %v13618_v50 = vmul.f32 0.70710677, %v13601_v47  ;;  %v5447_v31 = vadd.f32 %v13502_v58, %v5412_v18 }
 0xaca   : > { %v5383_v4 = vadd.f32 %v5382_v22, %v13518_v41  ;;  %v13614_v39 = vpop.eup %8529  ;;  %v5760_v59 = vadd.f32 1.4214138, %v5748_v56  ;;  %v13622_v27 = vadd.f32 %v13554_v0, %v5450_v37  ;;  %v5698_v21 = vadd.f32 %v13560_v10, %v5697_v13  ;;  %vm5701_vm12 = vmor %vm5699_vm15, %vm5700_vm4 }
 0xacb   : > { %v5417_v11 = vpop.f32.mrf.mxu1  ;;  %v5452_v52 = vpop.f32.mrf.mxu2  ;;  %15696 = vst [vmem:[#allocation109_spill] sm:$0xff] %v13618_v50  ;;  %v8020_v40 = vadd.f32 -0.28449672, %v5780_v3  ;;  %v5776_v30 = vmul.f32 %v5764_v45, %v13541_v34  ;;  %v5706_v43 = vor.u32 1.1754944e-38, %v5705_v16  ;;  %v5842_v19 = vsub.f32 0.0, %v13455_v33 }
 0xacc   : > { %v5418_v20 = vadd.f32 %v5417_v11, %v5383_v4  ;;  %vm5704_vm13 = vcmp.eq.f32.partialorder %v5703_v57, 8.507059e+37  ;;  %v5774_v58 = vmul.f32 %v5762_v1, %v13546_v6  ;;  %v5702_v48 = vsel %vm5701_vm12, %v13560_v10, %v5698_v21 }
 0xacd   : > { %v8018_v63 = vadd.f32 -0.28449672, %v5778_v8  ;;  %v13635_v4 = vand.u32 2147483647, %v13618_v50  ;;  %v13638_v11 = vadd.f32 %v13482_v61, %v5447_v31  ;;  %v13640_v15 = vsel %vm5704_vm13, %v5706_v43, %v5702_v48 }
 0xace   : > { %v5453_v22 = vadd.f32 %v5452_v52, %v5418_v20  ;;  %v5772_v9 = vmul.f32 %v5760_v59, %v13558_v24  ;;  %v13644_v18 = vmul.f32 0.70710677, %v13622_v27  ;;  %v5734_v52 = vmul.f32 1.0614054, %v13640_v15 }
 0xacf   : > { %v5804_v56 = vmul.f32 %v8020_v40, %v13578_v26  ;;  %v8016_v13 = vadd.f32 -0.28449672, %v5776_v30  ;;  %8531 = vpow2.f32 %v5864_v55  ;;  %v5872_v10 = vmul.f32 1.442695, %v5852_v49 }
 0xad0   : > { %15697 = vst [vmem:[#allocation104_spill] sm:$0xff] %v13644_v18  ;;  %v5854_v37 = vmul.f32 %v5842_v19, %v13455_v33  ;;  %v8014_v44 = vadd.f32 -0.28449672, %v5774_v58  ;;  %v13650_v61 = vadd.f32 %v13590_v29, %v5453_v22  ;;  %v8010_v57 = vadd.f32 -1.4531521, %v5734_v52 }
 0xad1   : > { %v13624_v28 = vpop.f32.mrf.mxu3  ;;  %v5385_v32 = vpop.f32.mrf.mxu0  ;;  %v5802_v16 = vmul.f32 %v8018_v63, %v13544_v62  ;;  %8533 = vpow2.f32 %v5868_v25  ;;  %v5521_v1 = vmul.f32 0.3275911, %v13635_v4  ;;  %v13655_v20 = vmul.f32 0.70710677, %v13638_v11 }
 0xad2   : > { %v5386_v0 = vadd.f32 %v5385_v32, %v13518_v41  ;;  %v8012_v3 = vadd.f32 -0.28449672, %v5772_v9  ;;  %v13658_v55 = vand.u32 2147483647, %v13644_v18  ;;  %v5758_v8 = vmul.f32 %v8010_v57, %v13640_v15 }
 0xad3   : > { %v5420_v54 = vpop.f32.mrf.mxu1  ;;  %v5455_v2 = vpop.f32.mrf.mxu2  ;;  %15698 = vst [vmem:[#allocation90_spill] sm:$0xff] %v13655_v20  ;;  %v5816_v29 = vadd.f32 0.2548296, %v5804_v56  ;;  %v5800_v31 = vmul.f32 %v8016_v13, %v13541_v34  ;;  %8535 = vpow2.f32 %v5872_v10  ;;  %v5876_v59 = vmul.f32 1.442695, %v5854_v37 }
 0xad4   : > { %v5421_v45 = vadd.f32 %v5420_v54, %v5386_v0  ;;  %v5798_v32 = vmul.f32 %v8014_v44, %v13546_v6  ;;  %v13665_v21 = vmul.f32 0.70710677, %v13650_v61  ;;  %v5770_v19 = vadd.f32 1.4214138, %v5758_v8 }
 0xad5   : > { %v5814_v58 = vadd.f32 0.2548296, %v5802_v16  ;;  %v8532_v22 = vpop.eup %8531  ;;  %v13667_v0 = vadd.f32 1.0, %v5521_v1  ;;  %v13670_v54 = vand.u32 2147483647, %v13655_v20  ;;  %v5796_v63 = vmul.f32 %v8012_v3, %v13558_v24 }
 0xad6   : > { %v5456_v40 = vadd.f32 %v5455_v2, %v5421_v45  ;;  %v5525_v9 = vmul.f32 0.3275911, %v13658_v55  ;;  %v5782_v52 = vmul.f32 %v5770_v19, %v13640_v15  ;;  %v5828_v56 = vmul.f32 %v5816_v29, %v13578_v26 }
 0xad7   : > { %15699 = vst [vmem:[#allocation80_spill] sm:$0xff] %v13667_v0  ;;  %v5812_v2 = vadd.f32 0.2548296, %v5800_v31  ;;  %v8534_v13 = vpop.eup %8533  ;;  %v13677_v10 = vmul.f32 0.5, %v13336_v53  ;;  %8537 = vpow2.f32 %v5876_v59  ;;  %v5833_v37 = vsub.f32 0.0, %v13635_v4 }
 0xad8   : > { %v5810_v44 = vadd.f32 0.2548296, %v5798_v32  ;;  %v13681_v45 = vand.u32 2147483647, %v13665_v21  ;;  %v13684_v57 = vadd.f32 %v13624_v28, %v5456_v40  ;;  %v8022_v16 = vadd.f32 -0.28449672, %v5782_v52 }
 0xad9   : > { %v5493_v49 = vpop.f32.mrf.mxu3  ;;  %v5388_v33 = vpop.f32.mrf.mxu0  ;;  %v5826_v1 = vmul.f32 %v5814_v58, %v13544_v62  ;;  %8539 = vrcp.f32 %v13667_v0  ;;  %v5523_v26 = vmul.f32 0.3275911, %v13670_v54  ;;  %v13689_v8 = vadd.f32 1.0, %v5525_v9 }
 0xada   : > { %v5389_v25 = vadd.f32 %v5388_v33, %v13518_v41  ;;  %v8536_v3 = vpop.eup %8535  ;;  %v5808_v33 = vadd.f32 0.2548296, %v5796_v63  ;;  %v5806_v59 = vmul.f32 %v8022_v16, %v13640_v15  ;;  %v5824_v28 = vmul.f32 %v5812_v2, %v13541_v34 }
 0xadb   : > { %v5423_v30 = vpop.f32.mrf.mxu1  ;;  %v5458_v43 = vpop.f32.mrf.mxu2  ;;  %v13698_v62 = vmul.f32 0.5, %v13363_v23  ;;  %v13701_v32 = vmul.f32 0.5, %v13387_v60  ;;  %v5845_v40 = vmul.f32 %v5833_v37, %v13635_v4  ;;  %v13707_v19 = vmul.f32 0.70710677, %v13684_v57 }
 0xadc   : > { %v5424_v48 = vadd.f32 %v5423_v30, %v5389_v25  ;;  %v13694_v25 = vmul.f32 %v8536_v3, %v5828_v56  ;;  %v5822_v30 = vmul.f32 %v5810_v44, %v13546_v6  ;;  %v5818_v63 = vadd.f32 0.2548296, %v5806_v59 }
 0xadd   : > { %v5886_v34 = vmul.f32 %v8534_v13, %v5826_v1  ;;  %v8538_v9 = vpop.eup %8537  ;;  %vm5912_vm1 = vcmp.lt.f32.partialorder %v13395_v35, 0.0  ;;  %v13713_v23 = vmul.f32 0.5, %v13431_v46  ;;  %v13715_v60 = vadd.f32 1.0, %v5523_v26 }
 0xade   : > { %v5459_v53 = vadd.f32 %v5458_v43, %v5424_v48  ;;  %v5527_v43 = vmul.f32 0.3275911, %v13681_v45  ;;  %v5820_v6 = vmul.f32 %v5808_v33, %v13558_v24  ;;  %8541 = vrcp.f32 %v13689_v8 }
 0xadf   : > { %v5830_v52 = vmul.f32 %v5818_v63, %v13640_v15  ;;  %v5900_v56 = vsub.f32 1.0, %v13694_v25  ;;  %v5884_v2 = vmul.f32 %v8532_v22, %v5824_v28  ;;  %v13723_v13 = vpop.eup %8539  ;;  %vm5910_vm3 = vcmp.lt.f32.partialorder %v13369_v42, 0.0 }
 0xae0   : > { %v13717_v4 = vadd.f32 %v5493_v49, %v5459_v53  ;;  %vm5914_vm5 = vcmp.lt.f32.partialorder %v13440_v14, 0.0  ;;  %v5858_v46 = vmul.f32 1.442695, %v5845_v40  ;;  %v5835_v37 = vsub.f32 0.0, %v13670_v54 }
 0xae1   : > { %v13691_v29 = vpop.f32.mrf.mxu3  ;;  %v6083_v31 = vpop.f32.mrf.mxu0  ;;  %v13729_v49 = vmul.f32 %v13614_v39, %v5822_v30  ;;  %v13731_v24 = vadd.f32 1.0, %v5527_v43  ;;  %v13734_v44 = vand.u32 2147483647, %v13707_v19  ;;  %v5890_v15 = vmul.f32 %v8538_v9, %v5830_v52 }
 0xae2   : > { %v5898_v16 = vsub.f32 1.0, %v5886_v34  ;;  %vm5908_vm7 = vcmp.lt.f32.partialorder %v13347_v5, 0.0  ;;  %v13738_v22 = vmul.f32 0.5, %v13601_v47  ;;  %8543 = vrcp.f32 %v13715_v60 }
 0xae3   : > { %v6118_v58 = vpop.f32.mrf.mxu1  ;;  %v13709_v48 = vpop.f32.mrf.mxu2  ;;  %v13742_v1 = vmul.f32 0.70710677, %v13717_v4  ;;  %v13745_v39 = vmul.f32 %v13605_v17, %v5820_v6  ;;  %v5560_v3 = vmul.f32 %v13723_v13, %v13667_v0  ;;  %v5902_v53 = vsub.f32 1.0, %v5890_v15 }
 0xae4   : > { %15700 = vst [vmem:[#allocation111_spill] sm:$0xff] %v13738_v22  ;;  %v5924_v59 = vsub.f32 0.0, %v5900_v56  ;;  %v5896_v25 = vsub.f32 1.0, %v5884_v2  ;;  %vm5906_vm14 = vcmp.lt.f32.partialorder %v13339_v51, 0.0  ;;  %8545 = vpow2.f32 %v5858_v46  ;;  %v13759_v40 = vpop.eup %8541 }
 0xae5   : > { %v5847_v47 = vmul.f32 %v5835_v37, %v13670_v54  ;;  %v13756_v28 = vmul.f32 0.5, %v13638_v11  ;;  %v6084_v17 = vadd.f32 %v6083_v31, %v13318_v12  ;;  %8547 = vrcp.f32 %v13731_v24 }
 0xae6   : > { %v5529_v30 = vmul.f32 0.3275911, %v13734_v44  ;;  %v5922_v34 = vsub.f32 0.0, %v5898_v16  ;;  %v5894_v9 = vsub.f32 1.0, %v13729_v49  ;;  %vm5904_vm2 = vcmp.lt.f32.partialorder %v13343_v36, 0.0 }
 0xae7   : > { %15701 = vst [vmem:[#allocation113_spill] sm:$0xff] %v13756_v28  ;;  %v5837_v11 = vsub.f32 0.0, %v13658_v55  ;;  %v13771_v54 = vmul.f32 0.5, %v13622_v27  ;;  %v13774_v31 = vand.u32 2147483647, %v13742_v1  ;;  %v5926_v6 = vsub.f32 0.0, %v5902_v53 }
 0xae8   : > { %v5561_v52 = vsub.f32 1.0, %v5560_v3  ;;  %v5936_v2 = vsel %vm5912_vm1, %v5924_v59, %v5900_v56  ;;  %v5920_v46 = vsub.f32 0.0, %v5896_v25  ;;  %v5892_v37 = vsub.f32 1.0, %v13745_v39  ;;  %v13779_v15 = vpop.eup %8543 }
 0xae9   : > { %v13749_v26 = vpop.f32.mrf.mxu3  ;;  %v13751_v33 = vpop.f32.mrf.mxu0  ;;  %15702 = vst [vmem:[#allocation97_spill] sm:$0xff] %v13771_v54  ;;  %v5620_v49 = vmul.f32 %v13759_v40, %v13689_v8  ;;  %v5839_v22 = vsub.f32 0.0, %v13681_v45  ;;  %v6119_v27 = vadd.f32 %v6118_v58, %v6084_v17  ;;  %v5938_v50 = vsel %vm5914_vm5, %v5926_v6, %v5902_v53 }
 0xaea   : > { %v13786_v28 = vadd.f32 1.0, %v5529_v30  ;;  %v5962_v3 = vadd.f32 1.0, %v5938_v50  ;;  %v5934_v35 = vsel %vm5910_vm3, %v5922_v34, %v5898_v16  ;;  %v5918_v56 = vsub.f32 0.0, %v5894_v9  ;;  %v13790_v59 = vpop.eup %8545 }
 0xaeb   : > { %v13763_v43 = vpop.f32.mrf.mxu1  ;;  %v13765_v63 = vpop.f32.mrf.mxu2  ;;  %v5862_v39 = vmul.f32 1.442695, %v5847_v47  ;;  %v5849_v54 = vmul.f32 %v5837_v11, %v13658_v55  ;;  %v5531_v20 = vmul.f32 0.3275911, %v13774_v31  ;;  %v5960_v0 = vadd.f32 1.0, %v5936_v2 }
 0xaec   : > { %v13794_v18 = vpop.eup %8547  ;;  %v5590_v14 = vmul.f32 %v13779_v15, %v13715_v60  ;;  %v5841_v58 = vsub.f32 0.0, %v13734_v44  ;;  %v5932_v42 = vsel %vm5908_vm7, %v5920_v46, %v5896_v25  ;;  %v5916_v53 = vsub.f32 0.0, %v5892_v37 }
 0xaed   : > { %v13806_v55 = vmul.f32 %v13723_v13, %v5561_v52  ;;  %v6154_v47 = vadd.f32 %v13709_v48, %v6119_v27  ;;  %v5974_v17 = vmul.f32 %v5962_v3, %v13713_v23  ;;  %v5958_v30 = vadd.f32 1.0, %v5934_v35 }
 0xaee   : > { %v5621_v34 = vsub.f32 1.0, %v5620_v49  ;;  %v5851_v11 = vmul.f32 %v5839_v22, %v13681_v45  ;;  %8549 = vrcp.f32 %v13786_v28  ;;  %v5930_v5 = vsel %vm5906_vm14, %v5918_v56, %v5894_v9 }
 0xaef   : > { %v5650_v52 = vmul.f32 %v13794_v18, %v13731_v24  ;;  %v13820_v2 = vadd.f32 1.0, %v5531_v20  ;;  %7052 = vmatpush.msra.mxu2 %v5974_v17  ;;  %v5972_v48 = vmul.f32 %v5960_v0, %v13701_v32  ;;  %v5956_v23 = vadd.f32 1.0, %v5932_v42 }
 0xaf0   : > { %v5591_v46 = vsub.f32 1.0, %v5590_v14  ;;  %v5866_v45 = vmul.f32 1.442695, %v5849_v54  ;;  %v5853_v22 = vmul.f32 %v5841_v58, %v13734_v44  ;;  %v5928_v51 = vsel %vm5904_vm2, %v5916_v53, %v5892_v37 }
 0xaf1   : > { %v13801_v50 = vpop.f32.mrf.mxu3  ;;  %v13803_v16 = vpop.f32.mrf.mxu0  ;;  %v13827_v9 = vadd.f32 %v13691_v29, %v6154_v47  ;;  %v6087_v49 = vadd.f32 %v13751_v33, %v13318_v12  ;;  %7053 = vmatpush.msra.mxu2 %v5972_v48  ;;  %v5970_v20 = vmul.f32 %v5958_v30, %v13698_v62  ;;  %v5954_v27 = vadd.f32 1.0, %v5930_v5 }
 0xaf2   : > { %8551 = vpow2.f32 %v5862_v39  ;;  %v5622_v0 = vmul.f32 %v13759_v40, %v5621_v34  ;;  %v5870_v32 = vmul.f32 1.442695, %v5851_v11  ;;  %v13834_v54 = vmul.f32 0.5, %v13650_v61 }
 0xaf3   : > { %v13814_v25 = vpop.f32.mrf.mxu1  ;;  %v13816_v6 = vpop.f32.mrf.mxu2  ;;  %v5651_v44 = vsub.f32 1.0, %v5650_v52  ;;  %8553 = vrcp.f32 %v13820_v2  ;;  %7054 = vmatpush.msra.mxu2 %v5970_v20  ;;  %v5968_v36 = vmul.f32 %v5956_v23, %v13677_v10  ;;  %v5952_v29 = vadd.f32 1.0, %v5928_v51 }
 0xaf4   : > { %v13838_v37 = vpop.eup %8549  ;;  %v13841_v33 = vmul.f32 %v13779_v15, %v5591_v46  ;;  %8555 = vpow2.f32 %v5866_v45  ;;  %v5874_v62 = vmul.f32 1.442695, %v5853_v22  ;;  %v5843_v3 = vsub.f32 0.0, %v13774_v31 }
 0xaf5   : > { %v13849_v56 = vmul.f32 0.70710677, %v13827_v9  ;;  %v6122_v39 = vadd.f32 %v13763_v43, %v6087_v49  ;;  %7055 = vmatpush.msra.mxu2 %v5968_v36  ;;  %v5966_v10 = vmul.f32 %v5954_v27, %v13594_v38  ;;  %v5630_v14 = vand.u32 2147483648, %v13689_v8 }
 0xaf6   : > { %v13855_v58 = vmul.f32 0.5, %v13684_v57  ;;  %v5623_v47 = vadd.f32 %v13759_v40, %v5622_v0  ;;  %vm5625_vm0 = vweird.f32 %v13759_v40  ;;  %v5628_v17 = vand.u32 2147483647, %v13689_v8 }
 0xaf7   : > { %v5652_v43 = vmul.f32 %v13794_v18, %v5651_v44  ;;  %8557 = vpow2.f32 %v5870_v32  ;;  %v5680_v38 = vmul.f32 %v13838_v37, %v13786_v28  ;;  %7056 = vmatpush.msra.mxu2 %v5966_v10  ;;  %v5964_v57 = vmul.f32 %v5952_v29, %v13581_v7 }
 0xaf8   : > { %v13868_v30 = vpop.eup %8551  ;;  %8559 = vpow2.f32 %v5874_v62  ;;  %v5855_v34 = vmul.f32 %v5843_v3, %v13774_v31  ;;  %v13872_v11 = vmul.f32 0.5, %v13717_v4  ;;  %vm5624_vm6 = vweird.f32 %v13689_v8 }
 0xaf9   : > { %v13844_v35 = vpop.f32.mrf.mxu3  ;;  %v13846_v61 = vpop.f32.mrf.mxu0  ;;  %v13878_v52 = vand.u32 2147483647, %v13849_v56  ;;  %v6157_v48 = vadd.f32 %v13765_v63, %v6122_v39  ;;  %7057 = vmatpush.msra.mxu2 %v5964_v57  ;;  %v5660_v7 = vand.u32 2147483648, %v13731_v24  ;;  %vm5626_vm9 = vmor %vm5624_vm6, %vm5625_vm0  ;;  %v5631_v23 = vor.u32 1.1754944e-38, %v5630_v14 }
 0xafa   : > { %v13875_v5 = vpop.eup %8553  ;;  %vm5655_vm10 = vweird.f32 %v13794_v18  ;;  %v5658_v8 = vand.u32 2147483647, %v13731_v24  ;;  %v5627_v4 = vsel %vm5626_vm9, %v13759_v40, %v5623_v47  ;;  %vm5629_vm11 = vcmp.eq.f32.partialorder %v5628_v17, 8.507059e+37 }
 0xafb   : > { %v13857_v42 = vpop.f32.mrf.mxu1  ;;  %v13859_v53 = vpop.f32.mrf.mxu2  ;;  %v5681_v46 = vsub.f32 1.0, %v5680_v38  ;;  %v5720_v45 = vand.u32 2147483648, %v13820_v2  ;;  %v5653_v63 = vadd.f32 %v13794_v18, %v5652_v43  ;;  %v13891_v22 = vsel %vm5629_vm11, %v5631_v23, %v5627_v4 }
 0xafc   : > { %v13884_v31 = vpop.eup %8555  ;;  %v5710_v51 = vmul.f32 %v13875_v5, %v13820_v2  ;;  %v5878_v49 = vmul.f32 1.442695, %v5855_v34  ;;  %vm5654_vm4 = vweird.f32 %v13731_v24  ;;  %v5729_v27 = vmul.f32 1.0614054, %v13891_v22 }
 0xafd   : > { %v13899_v0 = vpop.eup %8557  ;;  %v5718_v40 = vand.u32 2147483647, %v13820_v2  ;;  %v6370_v32 = vmul.f32 0.3275911, %v13878_v52  ;;  %vm5656_vm15 = vmor %vm5654_vm4, %vm5655_vm10  ;;  %v5661_v36 = vor.u32 1.1754944e-38, %v5660_v7  ;;  %vm5594_vm12 = vweird.f32 %v13715_v60 }
 0xafe   : > { %v13908_v29 = vpop.eup %8559  ;;  %v13911_v24 = vadd.f32 %v13749_v26, %v6157_v48  ;;  %v6090_v62 = vadd.f32 %v13803_v16, %v13318_v12  ;;  %v5657_v10 = vsel %vm5656_vm15, %v13794_v18, %v5653_v63  ;;  %vm5659_vm13 = vcmp.eq.f32.partialorder %v5658_v8, 8.507059e+37 }
 0xaff   : > { %v5682_v14 = vmul.f32 %v13838_v37, %v5681_v46  ;;  %v13922_v47 = vmul.f32 0.5, %v13827_v9  ;;  %v13924_v17 = vsel %vm5659_vm13, %v5661_v36, %v5657_v10  ;;  %v8005_v43 = vadd.f32 -1.4531521, %v5729_v27 }
 0xb00   : > { %v5711_v26 = vsub.f32 1.0, %v5710_v51  ;;  %v5721_v38 = vor.u32 1.1754944e-38, %v5720_v45  ;;  %8561 = vpow2.f32 %v5878_v49  ;;  %v5690_v16 = vand.u32 2147483648, %v13786_v28 }
 0xb01   : > { %v13895_v20 = vpop.f32.mrf.mxu0  ;;  %v13903_v44 = vpop.f32.mrf.mxu3  ;;  %15703 = vst [vmem:[#allocation117_spill] sm:$0xff] %v13922_v47  ;;  %vm5714_vm1 = vweird.f32 %v13820_v2  ;;  %vm5685_vm3 = vweird.f32 %v13838_v37  ;;  %v5688_v18 = vand.u32 2147483647, %v13786_v28  ;;  %v5731_v57 = vmul.f32 1.0614054, %v13924_v17 }
 0xb02   : > { %v5753_v34 = vmul.f32 %v8005_v43, %v13891_v22  ;;  %v13932_v9 = vadd.f32 1.0, %v6370_v32  ;;  %v13935_v48 = vmul.f32 0.70710677, %v13911_v24  ;;  %v6125_v7 = vadd.f32 %v13814_v25, %v6090_v62 }
 0xb03   : > { %v13915_v3 = vpop.f32.mrf.mxu1  ;;  %v13917_v39 = vpop.f32.mrf.mxu2  ;;  %v5593_v23 = vadd.f32 %v13779_v15, %v13841_v33  ;;  %v5683_v8 = vadd.f32 %v13838_v37, %v5682_v14  ;;  %vm5684_vm5 = vweird.f32 %v13786_v28  ;;  %vm5595_vm7 = vweird.f32 %v13779_v15 }
 0xb04   : > { %v5600_v4 = vand.u32 2147483648, %v13715_v60  ;;  %v6093_v46 = vadd.f32 %v13846_v61, %v13318_v12  ;;  %vm5686_vm14 = vmor %vm5684_vm5, %vm5685_vm3  ;;  %v5691_v63 = vor.u32 1.1754944e-38, %v5690_v16  ;;  %v8007_v51 = vadd.f32 -1.4531521, %v5731_v57 }
 0xb05   : > { %v5765_v49 = vadd.f32 1.4214138, %v5753_v34  ;;  %v5712_v25 = vmul.f32 %v13875_v5, %v5711_v26  ;;  %v5687_v33 = vsel %vm5686_vm14, %v13838_v37, %v5683_v8  ;;  %vm5689_vm2 = vcmp.eq.f32.partialorder %v5688_v18, 8.507059e+37  ;;  %vm13960_vm0 = vmor %vm5594_vm12, %vm5595_vm7 }
 0xb06   : > { %v5598_v27 = vand.u32 2147483647, %v13715_v60  ;;  %v13949_v28 = vpop.eup %8561  ;;  %8563 = vrcp.f32 %v13932_v9  ;;  %v6682_v32 = vsub.f32 0.0, %v13878_v52  ;;  %v13954_v10 = vsel %vm5689_vm2, %v5691_v63, %v5687_v33 }
 0xb07   : > { %vm5715_vm6 = vweird.f32 %v13875_v5  ;;  %v6160_v14 = vadd.f32 %v13816_v6, %v6125_v7  ;;  %v5733_v43 = vmul.f32 1.0614054, %v13954_v10  ;;  %v5597_v26 = vsel %vm13960_vm0, %v13779_v15, %v5593_v23 }
 0xb08   : > { %v6128_v16 = vadd.f32 %v13857_v42, %v6093_v46  ;;  %v5755_v57 = vmul.f32 %v8007_v51, %v13924_v17  ;;  %v5777_v60 = vmul.f32 %v5765_v49, %v13891_v22  ;;  %v5601_v34 = vor.u32 1.1754944e-38, %v5600_v4  ;;  %vm5716_vm10 = vmor %vm5714_vm1, %vm5715_vm6 }
 0xb09   : > { %v6098_v45 = vpop.f32.mrf.mxu0  ;;  %v6203_v18 = vpop.f32.mrf.mxu3  ;;  %v6360_v8 = vand.u32 2147483647, %v13935_v48  ;;  %v5713_v6 = vadd.f32 %v13875_v5, %v5712_v25  ;;  %vm5599_vm9 = vcmp.eq.f32.partialorder %v5598_v27, 8.507059e+37  ;;  %v8009_v7 = vadd.f32 -1.4531521, %v5733_v43 }
 0xb0a   : > { %v6099_v61 = vadd.f32 %v6098_v45, %v13318_v12  ;;  %v6096_v45 = vadd.f32 %v13895_v20, %v13318_v12  ;;  %v5767_v42 = vadd.f32 1.4214138, %v5755_v57  ;;  %v13979_v23 = vsel %vm5599_vm9, %v5601_v34, %v5597_v26 }
 0xb0b   : > { %v6133_v36 = vpop.f32.mrf.mxu1  ;;  %v6168_v62 = vpop.f32.mrf.mxu2  ;;  %v6694_v46 = vmul.f32 %v6682_v32, %v13878_v52  ;;  %v13983_v4 = vadd.f32 %v13801_v50, %v6160_v14  ;;  %v5717_v63 = vsel %vm5716_vm10, %v13875_v5, %v5713_v6  ;;  %vm5719_vm11 = vcmp.eq.f32.partialorder %v5718_v40, 8.507059e+37 }
 0xb0c   : > { %v6134_v15 = vadd.f32 %v6133_v36, %v6099_v61  ;;  %v13988_v12 = vpop.eup %8563  ;;  %v6163_v20 = vadd.f32 %v13859_v53, %v6128_v16  ;;  %v13991_v49 = vsel %vm5719_vm11, %v5721_v38, %v5717_v63  ;;  %v5757_v25 = vmul.f32 %v8009_v7, %v13954_v10 }
 0xb0d   : > { %v8017_v33 = vadd.f32 -0.28449672, %v5777_v60  ;;  %v6372_v27 = vmul.f32 0.3275911, %v6360_v8  ;;  %v6131_v52 = vadd.f32 %v13915_v3, %v6096_v45  ;;  %v5779_v50 = vmul.f32 %v5767_v42, %v13924_v17 }
 0xb0e   : > { %v5727_v5 = vmul.f32 1.0614054, %v13979_v23  ;;  %v6169_v32 = vadd.f32 %v6168_v62, %v6134_v15  ;;  %v5735_v61 = vmul.f32 1.0614054, %v13991_v49  ;;  %v5769_v53 = vadd.f32 1.4214138, %v5757_v25 }
 0xb0f   : > { %v14001_v38 = vmul.f32 %v13988_v12, %v13932_v9  ;;  %v6706_v36 = vmul.f32 1.442695, %v6694_v46  ;;  %v6684_v37 = vsub.f32 0.0, %v6360_v8  ;;  %v14004_v14 = vmul.f32 0.70710677, %v13983_v4 }
 0xb10   : > { %v14007_v3 = vadd.f32 %v13844_v35, %v6163_v20  ;;  %v8011_v62 = vadd.f32 -1.4531521, %v5735_v61  ;;  %v5781_v26 = vmul.f32 %v5769_v53, %v13954_v10  ;;  %v5801_v16 = vmul.f32 %v8017_v33, %v13891_v22 }
 0xb11   : > { %v6223_v51 = vpop.f32.mrf.mxu0  ;;  %v14011_v57 = vadd.f32 1.0, %v6372_v27  ;;  %v6166_v60 = vadd.f32 %v13917_v39, %v6131_v52  ;;  %v8019_v34 = vadd.f32 -0.28449672, %v5779_v50  ;;  %v8003_v45 = vadd.f32 -1.4531521, %v5727_v5  ;;  %v6328_v15 = vpop.f32.mrf.mxu3 }
 0xb12   : > { %v6224_v2 = vadd.f32 %v6223_v51, %v13518_v41  ;;  %v14014_v6 = vadd.f32 %v6203_v18, %v6169_v32  ;;  %v5759_v42 = vmul.f32 %v8011_v62, %v13991_v49  ;;  %v8021_v35 = vadd.f32 -0.28449672, %v5781_v26 }
 0xb13   : > { %v6258_v40 = vpop.f32.mrf.mxu1  ;;  %v6293_v43 = vpop.f32.mrf.mxu2  ;;  %8565 = vpow2.f32 %v6706_v36  ;;  %v6696_v46 = vmul.f32 %v6684_v37, %v6360_v8  ;;  %v14018_v63 = vmul.f32 0.5, %v13911_v24  ;;  %v6362_v20 = vand.u32 2147483647, %v14004_v14 }
 0xb14   : > { %v6259_v7 = vadd.f32 %v6258_v40, %v6224_v2  ;;  %v14022_v51 = vmul.f32 0.70710677, %v14007_v3  ;;  %v5771_v39 = vadd.f32 1.4214138, %v5759_v42  ;;  %v5805_v18 = vmul.f32 %v8021_v35, %v13954_v10 }
 0xb15   : > { %15706 = vst [vmem:[#allocation82_spill] sm:$0xff] %v14018_v63  ;;  %v5813_v33 = vadd.f32 0.2548296, %v5801_v16  ;;  %v6396_v27 = vsub.f32 1.0, %v14001_v38  ;;  %8567 = vrcp.f32 %v14011_v57  ;;  %v5803_v52 = vmul.f32 %v8019_v34, %v13924_v17 }
 0xb16   : > { %v14030_v24 = vadd.f32 %v13723_v13, %v13806_v55  ;;  %v14033_v8 = vadd.f32 %v13903_v44, %v6166_v60  ;;  %v14036_v50 = vmul.f32 0.70710677, %v14014_v6  ;;  %v6294_v5 = vadd.f32 %v6293_v43, %v6259_v7 }
 0xb17   : > { %v5751_v2 = vmul.f32 %v8003_v45, %v13979_v23  ;;  %v6710_v40 = vmul.f32 1.442695, %v6696_v46  ;;  %v5783_v61 = vmul.f32 %v5771_v39, %v13991_v49  ;;  %v5817_v38 = vadd.f32 0.2548296, %v5805_v18 }
 0xb18   : > { %v6374_v36 = vmul.f32 0.3275911, %v6362_v20  ;;  %v6686_v37 = vsub.f32 0.0, %v6362_v20  ;;  %v14042_v55 = vand.u32 2147483647, %v14022_v51  ;;  %v5825_v44 = vmul.f32 %v5813_v33, %v13891_v22 }
 0xb19   : > { %v6226_v25 = vpop.f32.mrf.mxu0  ;;  %v14045_v62 = vpop.eup %8565  ;;  %v8023_v26 = vadd.f32 -0.28449672, %v5783_v61  ;;  %v5829_v43 = vmul.f32 %v5817_v38, %v13954_v10  ;;  %v5815_v60 = vadd.f32 0.2548296, %v5803_v52  ;;  %v14049_v34 = vmul.f32 0.70710677, %v14033_v8 }
 0xb1a   : > { %v6227_v53 = vadd.f32 %v6226_v25, %v13518_v41  ;;  %v14052_v45 = vand.u32 2147483647, %v14036_v50  ;;  %v14054_v7 = vadd.f32 %v6328_v15, %v6294_v5  ;;  %v5763_v35 = vadd.f32 1.4214138, %v5751_v2  ;;  %v6331_v52 = vpop.f32.mrf.mxu3 }
 0xb1b   : > { %v6261_v32 = vpop.f32.mrf.mxu1  ;;  %v6296_v42 = vpop.f32.mrf.mxu2  ;;  %vm5913_vm4 = vcmp.lt.f32.partialorder %v13707_v19, 0.0  ;;  %v5807_v22 = vmul.f32 %v8023_v26, %v13991_v49  ;;  %v5889_v10 = vmul.f32 %v13908_v29, %v5829_v43  ;;  %v5827_v25 = vmul.f32 %v5815_v60, %v13924_v17  ;;  %v15712_v43 = vld [vmem:[#allocation80_spill] sm:$0xff]  ;;  %v15716_v19 = vld [vmem:[#allocation90_spill] sm:$0xff] }
 0xb1c   : > { %v6262_v16 = vadd.f32 %v6261_v32, %v6227_v53  ;;  %15707 = vst [vmem:[#allocation115_spill] sm:$0xff] %v14054_v7  ;;  %v14056_v46 = vpop.eup %8567  ;;  %v6698_v18 = vmul.f32 %v6686_v37, %v6362_v20  ;;  %v14063_v33 = vmul.f32 0.5, %v13983_v4  ;;  %v6376_v15 = vmul.f32 0.3275911, %v14042_v55 }
 0xb1d   : > { %v5885_v5 = vmul.f32 %v13884_v31, %v5825_v44  ;;  %v5819_v32 = vadd.f32 0.2548296, %v5807_v22  ;;  %v5901_v2 = vsub.f32 1.0, %v5889_v10  ;;  %v5887_v53 = vmul.f32 %v13899_v0, %v5827_v25  ;;  %v15710_v31 = vld [vmem:[#allocation104_spill] sm:$0xff] }
 0xb1e   : > { %v6297_v39 = vadd.f32 %v6296_v42, %v6262_v16  ;;  %15708 = vst [vmem:[#allocation119_spill] sm:$0xff] %v14063_v33  ;;  %vm5911_vm15 = vcmp.lt.f32.partialorder %v13665_v21, 0.0  ;;  %vm5915_vm12 = vcmp.lt.f32.partialorder %v13742_v1, 0.0  ;;  %v14072_v29 = vadd.f32 1.0, %v6374_v36 }
 0xb1f   : > { %v14075_v17 = vand.u32 2147483647, %v14049_v34  ;;  %v6380_v4 = vmul.f32 0.3275911, %v14052_v45  ;;  %v5775_v20 = vmul.f32 %v5763_v35, %v13979_v23  ;;  %vm5909_vm13 = vcmp.lt.f32.partialorder %v15710_v31, 0.0 }
 0xb20   : > { %v14067_v61 = vadd.f32 %v6331_v52, %v6297_v39  ;;  %v14081_v38 = vmul.f32 %v13988_v12, %v6396_v27  ;;  %8569 = vpow2.f32 %v6710_v40  ;;  %v14084_v0 = vmul.f32 0.70710677, %v14054_v7 }
 0xb21   : > { %v5831_v37 = vmul.f32 %v5819_v32, %v13991_v49  ;;  %v5925_v36 = vsub.f32 0.0, %v5901_v2  ;;  %v5899_v44 = vsub.f32 1.0, %v5887_v53  ;;  %v5897_v26 = vsub.f32 1.0, %v5885_v5  ;;  %v6229_v22 = vpop.f32.mrf.mxu0 }
 0xb22   : > { %15709 = vst [vmem:[#allocation94_spill] sm:$0xff] %v14067_v61  ;;  %vm5564_vm1 = vweird.f32 %v15712_v43  ;;  %v14088_v16 = vmul.f32 1.442695, %v6698_v18  ;;  %v14090_v60 = vadd.f32 1.0, %v6376_v15  ;;  %v14094_v27 = vmul.f32 0.70710677, %v14067_v61 }
 0xb23   : > { %15711 = vst [vmem:[#allocation87_spill] sm:$0xff] %v14084_v0  ;;  %v5891_v42 = vmul.f32 %v13949_v28, %v5831_v37  ;;  %8571 = vrcp.f32 %v14072_v29  ;;  %v6378_v40 = vmul.f32 0.3275911, %v14075_v17  ;;  %v14098_v35 = vadd.f32 1.0, %v6380_v4 }
 0xb24   : > { %15713 = vst [vmem:[#allocation128_spill] sm:$0xff] %v14094_v27  ;;  %v8015_v49 = vadd.f32 -0.28449672, %v5775_v20  ;;  %v14102_v10 = vmul.f32 %v14056_v46, %v14011_v57  ;;  %v14105_v39 = vand.u32 2147483647, %v14084_v0  ;;  %v5923_v28 = vsub.f32 0.0, %v5899_v44 }
 0xb25   : > { %v5903_v25 = vsub.f32 1.0, %v5891_v42  ;;  %v14108_v18 = vmul.f32 0.5, %v14007_v3  ;;  %v5937_v15 = vsel %vm5913_vm4, %v5925_v36, %v5901_v2  ;;  %v5921_v52 = vsub.f32 0.0, %v5897_v26 }
 0xb26   : > { %15714 = vst [vmem:[#allocation105_spill] sm:$0xff] %v14105_v39  ;;  %v5799_v5 = vmul.f32 %v8015_v49, %v13979_v23  ;;  %v14113_v32 = vpop.eup %8569  ;;  %8573 = vrcp.f32 %v14090_v60  ;;  %v6688_v53 = vsub.f32 0.0, %v14042_v55  ;;  %v14118_v20 = vand.u32 2147483647, %v14094_v27 }
 0xb27   : > { %v5927_v4 = vsub.f32 0.0, %v5903_v25  ;;  %v14120_v37 = vadd.f32 1.0, %v6378_v40  ;;  %8575 = vrcp.f32 %v14098_v35  ;;  %vm5565_vm3 = vweird.f32 %v13723_v13 }
 0xb28   : > { %15715 = vst [vmem:[#allocation106_spill] sm:$0xff] %v14118_v20  ;;  %v5811_v3 = vadd.f32 0.2548296, %v5799_v5  ;;  %vm5907_vm5 = vcmp.lt.f32.partialorder %v15716_v19, 0.0  ;;  %v6371_v2 = vmul.f32 0.3275911, %v14105_v39  ;;  %v5935_v49 = vsel %vm5911_vm15, %v5923_v28, %v5899_v44  ;;  %v6334_v5 = vpop.f32.mrf.mxu3  ;;  %vm14140_vm7 = vmor %vm5564_vm1, %vm5565_vm3 }
 0xb29   : > { %v5939_v36 = vsel %vm5915_vm12, %v5927_v4, %v5903_v25  ;;  %v5961_v42 = vadd.f32 1.0, %v5937_v15  ;;  %v14130_v7 = vpop.eup %8571  ;;  %v5933_v0 = vsel %vm5909_vm13, %v5921_v52, %v5897_v26  ;;  %v6230_v27 = vadd.f32 %v6229_v22, %v13518_v41 }
 0xb2a   : > { %v5963_v40 = vadd.f32 1.0, %v5939_v36  ;;  %v5823_v61 = vmul.f32 %v5811_v3, %v13979_v23  ;;  %v6690_v39 = vsub.f32 0.0, %v14075_v17  ;;  %v6373_v1 = vmul.f32 0.3275911, %v14118_v20  ;;  %v6264_v3 = vpop.f32.mrf.mxu1 }
 0xb2b   : > { %v5568_v44 = vand.u32 2147483647, %v15712_v43  ;;  %v5570_v31 = vand.u32 2147483648, %v15712_v43  ;;  %v5959_v25 = vadd.f32 1.0, %v5935_v49  ;;  %v5567_v22 = vsel %vm14140_vm7, %v13723_v13, %v14030_v24  ;;  %v6299_v43 = vpop.f32.mrf.mxu2  ;;  %v6232_v49 = vpop.f32.mrf.mxu0 }
 0xb2c   : > { %v5975_v26 = vmul.f32 %v5963_v40, %v13872_v11  ;;  %v5883_v23 = vmul.f32 %v13868_v30, %v5823_v61  ;;  %v14152_v28 = vpop.eup %8573  ;;  %8577 = vrcp.f32 %v14120_v37  ;;  %v14155_v15 = vadd.f32 1.0, %v6371_v2 }
 0xb2d   : > { %v5957_v52 = vadd.f32 1.0, %v5933_v0  ;;  %v5571_v4 = vor.u32 1.1754944e-38, %v5570_v31  ;;  %v14157_v36 = vpop.eup %8575  ;;  %v5973_v30 = vmul.f32 %v5961_v42, %v13855_v58  ;;  %vm5569_vm14 = vcmp.eq.f32.partialorder %v5568_v44, 8.507059e+37 }
 0xb2e   : > { %15719 = vst [vmem:[#allocation102_spill] sm:$0xff] %v14155_v15  ;;  %6901 = vmatpush.msrb.mxu0 %v5975_v26  ;;  %v5895_v11 = vsub.f32 1.0, %v5883_v23  ;;  %v6265_v61 = vadd.f32 %v6264_v3, %v6230_v27  ;;  %v6426_v13 = vsub.f32 1.0, %v14102_v10  ;;  %v6700_v24 = vmul.f32 %v6688_v53, %v14042_v55  ;;  %v15720_v10 = vld [vmem:[#allocation97_spill] sm:$0xff] }
 0xb2f   : > { %v14162_v40 = vadd.f32 1.0, %v6373_v1  ;;  %v14164_v2 = vsel %vm5569_vm14, %v5571_v4, %v5567_v22  ;;  %v5971_v0 = vmul.f32 %v5959_v25, %v13834_v54  ;;  %v6455_v58 = vmul.f32 %v14130_v7, %v14072_v29 }
 0xb30   : > { %6902 = vmatpush.msrb.mxu0 %v5973_v30  ;;  %v5919_v21 = vsub.f32 0.0, %v5895_v11  ;;  %v5725_v31 = vmul.f32 1.0614054, %v14164_v2  ;;  %v6300_v26 = vadd.f32 %v6299_v43, %v6265_v61  ;;  %v6702_v27 = vmul.f32 %v6690_v39, %v14075_v17  ;;  %v6337_v22 = vpop.f32.mrf.mxu3  ;;  %v15723_v43 = vld [vmem:[#allocation113_spill] sm:$0xff] }
 0xb31   : > { %8579 = vrcp.f32 %v14155_v15  ;;  %v5969_v55 = vmul.f32 %v5957_v52, %v15720_v10  ;;  %v6233_v54 = vadd.f32 %v6232_v49, %v13518_v41  ;;  %v6718_v25 = vmul.f32 1.442695, %v6700_v24 }
 0xb32   : > { %6903 = vmatpush.msrb.mxu0 %v5971_v0  ;;  %v5931_v53 = vsel %vm5907_vm5, %v5919_v21, %v5895_v11  ;;  %v8001_v42 = vadd.f32 -1.4531521, %v5725_v31  ;;  %v14175_v1 = vadd.f32 %v6334_v5, %v6300_v26  ;;  %v14178_v44 = vpop.eup %8577  ;;  %v6545_v23 = vmul.f32 %v14157_v36, %v14098_v35  ;;  %v6267_v11 = vpop.f32.mrf.mxu1 }
 0xb33   : > { %8581 = vrcp.f32 %v14162_v40  ;;  %v5955_v17 = vadd.f32 1.0, %v5931_v53  ;;  %v6485_v39 = vmul.f32 %v14152_v28, %v14090_v60  ;;  %v6456_v52 = vsub.f32 1.0, %v6455_v58  ;;  %v6302_v61 = vpop.f32.mrf.mxu2  ;;  %v6235_v21 = vpop.f32.mrf.mxu0 }
 0xb34   : > { %15721 = vst [vmem:[#allocation96_spill] sm:$0xff] %v14175_v1  ;;  %8583 = vpow2.f32 %v14088_v16  ;;  %6904 = vmatpush.msrb.mxu0 %v5969_v55  ;;  %v5749_v19 = vmul.f32 %v8001_v42, %v14164_v2  ;;  %v14188_v5 = vmul.f32 0.70710677, %v14175_v1  ;;  %v6722_v4 = vmul.f32 1.442695, %v6702_v27 }
 0xb35   : > { %v6692_v3 = vsub.f32 0.0, %v14052_v45  ;;  %v5967_v30 = vmul.f32 %v5955_v17, %v15723_v43  ;;  %v14193_v16 = vmul.f32 %v14056_v46, %v6426_v13  ;;  %v6268_v0 = vadd.f32 %v6267_v11, %v6233_v54 }
 0xb36   : > { %15722 = vst [vmem:[#allocation108_spill] sm:$0xff] %v14188_v5  ;;  %v5761_v49 = vadd.f32 1.4214138, %v5749_v19  ;;  %v14196_v24 = vand.u32 2147483647, %v14188_v5  ;;  %8585 = vpow2.f32 %v6718_v25  ;;  %v6515_v26 = vmul.f32 %v14178_v44, %v14120_v37 }
 0xb37   : > { %v14198_v31 = vpop.eup %8579  ;;  %v14203_v58 = vmul.f32 0.5, %v14033_v8  ;;  %v6546_v27 = vsub.f32 1.0, %v6545_v23  ;;  %6905 = vmatpush.msrb.mxu0 %v5967_v30  ;;  %v6486_v10 = vsub.f32 1.0, %v6485_v39  ;;  %v6303_v53 = vadd.f32 %v6302_v61, %v6268_v0 }
 0xb38   : > { %15724 = vst [vmem:[#allocation114_spill] sm:$0xff] %v14198_v31  ;;  %v5773_v13 = vmul.f32 %v5761_v49, %v14164_v2  ;;  %v6375_v55 = vmul.f32 0.3275911, %v14196_v24  ;;  %v14210_v54 = vmul.f32 %v14130_v7, %v6456_v52  ;;  %8587 = vpow2.f32 %v6722_v4 }
 0xb39   : > { %v14207_v42 = vpop.eup %8581  ;;  %v6704_v25 = vmul.f32 %v6692_v3, %v14052_v45  ;;  %v14214_v17 = vmul.f32 0.5, %v14014_v6  ;;  %v6555_v23 = vand.u32 2147483648, %v14098_v35  ;;  %v14221_v43 = vadd.f32 %v6337_v22, %v6303_v53 }
 0xb3a   : > { %v14216_v8 = vpop.eup %8583  ;;  %v8013_v39 = vadd.f32 -0.28449672, %v5773_v13  ;;  %v14219_v19 = vadd.f32 1.0, %v6375_v55  ;;  %v6516_v30 = vsub.f32 1.0, %v6515_v26  ;;  %v6547_v11 = vmul.f32 %v14157_v36, %v6546_v27 }
 0xb3b   : > { %15725 = vst [vmem:[#allocation110_spill] sm:$0xff] %v14221_v43  ;;  %v6410_v52 = vmul.f32 %v14198_v31, %v14155_v15  ;;  %v6236_v45 = vadd.f32 %v6235_v21, %v13518_v41  ;;  %v14228_v6 = vmul.f32 %v14152_v28, %v6486_v10  ;;  %v6440_v4 = vmul.f32 %v14207_v42, %v14162_v40  ;;  %v6270_v21 = vpop.f32.mrf.mxu1  ;;  %v6305_v26 = vpop.f32.mrf.mxu2 }
 0xb3c   : > { %v5797_v3 = vmul.f32 %v8013_v39, %v14164_v2  ;;  %v14234_v61 = vmul.f32 0.70710677, %v14221_v43  ;;  %v14236_v22 = vpop.eup %8585  ;;  %vm6550_vm2 = vweird.f32 %v14157_v36  ;;  %v6553_v49 = vand.u32 2147483647, %v14098_v35  ;;  %v6238_v55 = vpop.f32.mrf.mxu0  ;;  %v15727_v39 = vld [vmem:[#allocation109_spill] sm:$0xff] }
 0xb3d   : > { %v6726_v0 = vmul.f32 1.442695, %v6704_v25  ;;  %8589 = vrcp.f32 %v14219_v19  ;;  %vm6549_vm0 = vweird.f32 %v14098_v35  ;;  %v6556_v27 = vor.u32 1.1754944e-38, %v6555_v23  ;;  %v6340_v43 = vpop.f32.mrf.mxu3 }
 0xb3e   : > { %15726 = vst [vmem:[#allocation118_spill] sm:$0xff] %v14234_v61  ;;  %v5809_v10 = vadd.f32 0.2548296, %v5797_v3  ;;  %v6365_v13 = vand.u32 2147483647, %v14234_v61  ;;  %v14243_v53 = vpop.eup %8587  ;;  %vm5905_vm6 = vcmp.lt.f32.partialorder %v15727_v39, 0.0  ;;  %v6517_v1 = vmul.f32 %v14178_v44, %v6516_v30  ;;  %vm6551_vm9 = vmor %vm6549_vm0, %vm6550_vm2 }
 0xb3f   : > { %v6411_v5 = vsub.f32 1.0, %v6410_v52  ;;  %v6271_v25 = vadd.f32 %v6270_v21, %v6236_v45  ;;  %v6548_v47 = vadd.f32 %v14157_v36, %v6547_v11  ;;  %v6441_v35 = vsub.f32 1.0, %v6440_v4 }
 0xb40   : > { %v5821_v23 = vmul.f32 %v5809_v10, %v14164_v2  ;;  %v6687_v3 = vsub.f32 0.0, %v14196_v24  ;;  %v6377_v61 = vmul.f32 0.3275911, %v6365_v13  ;;  %v6239_v15 = vadd.f32 %v6238_v55, %v13518_v41 }
 0xb41   : > { %v6306_v63 = vadd.f32 %v6305_v26, %v6271_v25  ;;  %v6552_v33 = vsel %vm6551_vm9, %v14157_v36, %v6548_v47  ;;  %vm6554_vm10 = vcmp.eq.f32.partialorder %v6553_v49, 8.507059e+37  ;;  %v6689_v11 = vsub.f32 0.0, %v6365_v13 }
 0xb42   : > { %v5881_v30 = vmul.f32 %v13790_v59, %v5821_v23  ;;  %v14255_v52 = vadd.f32 1.0, %v6377_v61  ;;  %v14257_v45 = vsel %vm6554_vm10, %v6556_v27, %v6552_v33  ;;  %8591 = vpow2.f32 %v6726_v0 }
 0xb43   : > { %v14259_v21 = vpop.eup %8589  ;;  %v14262_v4 = vadd.f32 %v6340_v43, %v6306_v63  ;;  %v6584_v26 = vmul.f32 1.0614054, %v14257_v45  ;;  %v14266_v41 = vmul.f32 %v14198_v31, %v6411_v5  ;;  %v14269_v47 = vmul.f32 %v14207_v42, %v6441_v35  ;;  %v6273_v61 = vpop.f32.mrf.mxu1 }
 0xb44   : > { %v5893_v59 = vsub.f32 1.0, %v5881_v30  ;;  %8593 = vrcp.f32 %v14255_v52  ;;  %v14273_v33 = vmul.f32 %v6687_v3, %v14196_v24  ;;  %v6405_v43 = vand.u32 2147483648, %v13932_v9  ;;  %v6308_v55 = vpop.f32.mrf.mxu2 }
 0xb45   : > { %15728 = vst [vmem:[#allocation112_spill] sm:$0xff] %v14262_v4  ;;  %v14276_v36 = vmul.f32 0.70710677, %v14262_v4  ;;  %v8046_v63 = vadd.f32 -1.4531521, %v6584_v26  ;;  %v6470_v5 = vmul.f32 %v14259_v21, %v14219_v19  ;;  %v6701_v0 = vmul.f32 %v6689_v11, %v6365_v13  ;;  %v6343_v26 = vpop.f32.mrf.mxu3 }
 0xb46   : > { %15729 = vst [vmem:[#allocation120_spill] sm:$0xff] %v14266_v41  ;;  %v5917_v49 = vsub.f32 0.0, %v5893_v59  ;;  %v6274_v27 = vadd.f32 %v6273_v61, %v6239_v15  ;;  %v6518_v24 = vadd.f32 %v14178_v44, %v6517_v1  ;;  %vm6520_vm11 = vweird.f32 %v14178_v44 }
 0xb47   : > { %15730 = vst [vmem:[#allocation99_spill] sm:$0xff] %v14273_v33  ;;  %v6367_v10 = vand.u32 2147483647, %v14276_v36  ;;  %v6608_v25 = vmul.f32 %v8046_v63, %v14257_v45  ;;  %vm6519_vm4 = vweird.f32 %v14120_v37  ;;  %v6523_v3 = vand.u32 2147483647, %v14120_v37 }
 0xb48   : > { %15731 = vst [vmem:[#allocation116_spill] sm:$0xff] %v14276_v36  ;;  %v5929_v35 = vsel %vm5905_vm6, %v5917_v49, %v5893_v59  ;;  %v6309_v23 = vadd.f32 %v6308_v55, %v6274_v27  ;;  %v14289_v30 = vpop.eup %8591  ;;  %v6471_v1 = vsub.f32 1.0, %v6470_v5  ;;  %vm14293_vm15 = vmor %vm6519_vm4, %vm6520_vm11  ;;  %v6525_v39 = vand.u32 2147483648, %v14120_v37  ;;  %v15734_v49 = vld [vmem:[#allocation111_spill] sm:$0xff] }
 0xb49   : > { %v5953_v15 = vadd.f32 1.0, %v5929_v35  ;;  %v6379_v13 = vmul.f32 0.3275911, %v6367_v10  ;;  %v6691_v11 = vsub.f32 0.0, %v6367_v10  ;;  %v6620_v61 = vadd.f32 1.4214138, %v6608_v25 }
 0xb4a   : > { %v14291_v63 = vpop.eup %8593  ;;  %v6344_v2 = vadd.f32 %v6343_v26, %v6309_v23  ;;  %v6522_v5 = vsel %vm14293_vm15, %v14178_v44, %v6518_v24  ;;  %v6526_v26 = vor.u32 1.1754944e-38, %v6525_v39  ;;  %v14310_v33 = vor.u32 1.1754944e-38, %v6405_v43 }
 0xb4b   : > { %v5965_v27 = vmul.f32 %v5953_v15, %v15734_v49  ;;  %v6500_v55 = vmul.f32 %v14291_v63, %v14255_v52  ;;  %v14302_v35 = vadd.f32 1.0, %v6379_v13  ;;  %v6632_v23 = vmul.f32 %v6620_v61, %v14257_v45 }
 0xb4c   : > { %v14307_v25 = vmul.f32 0.70710677, %v6344_v2  ;;  %v14312_v37 = vmul.f32 1.442695, %v6701_v0  ;;  %v6703_v15 = vmul.f32 %v6691_v11, %v6367_v10  ;;  %vm6524_vm12 = vcmp.eq.f32.partialorder %v6523_v3, 8.507059e+37 }
 0xb4d   : > { %6906 = vmatpush.msrb.mxu0 %v5965_v27  ;;  %8595 = vrcp.f32 %v14302_v35  ;;  %v6501_v13 = vsub.f32 1.0, %v6500_v55  ;;  %v8058_v59 = vadd.f32 -0.28449672, %v6632_v23  ;;  %v14316_v4 = vsel %vm6524_vm12, %v6526_v26, %v6522_v5 }
 0xb4e   : > { %15735 = vst [vmem:[#allocation121_spill] sm:$0xff] %v14312_v37  ;;  %v6369_v49 = vand.u32 2147483647, %v14307_v25  ;;  %v14319_v44 = vmul.f32 %v14259_v21, %v6471_v1  ;;  %v14321_v24 = vmul.f32 0.5, %v6344_v2  ;;  %v6582_v43 = vmul.f32 1.0614054, %v14316_v4 }
 0xb4f   : > { %v6488_v0 = vadd.f32 %v14152_v28, %v14228_v6  ;;  %v6656_v10 = vmul.f32 %v8058_v59, %v14257_v45  ;;  %vm6490_vm13 = vweird.f32 %v14152_v28  ;;  %vm6489_vm1 = vweird.f32 %v14090_v60 }
 0xb50   : > { %v6381_v61 = vmul.f32 0.3275911, %v6369_v49  ;;  %v6693_v39 = vsub.f32 0.0, %v6369_v49  ;;  %v8044_v3 = vadd.f32 -1.4531521, %v6582_v43  ;;  %v6495_v1 = vand.u32 2147483648, %v14090_v60  ;;  %vm14338_vm3 = vmor %vm6489_vm1, %vm6490_vm13 }
 0xb51   : > { %v6493_v11 = vand.u32 2147483647, %v14090_v60  ;;  %v14332_v2 = vmul.f32 %v14291_v63, %v6501_v13  ;;  %v14334_v27 = vmul.f32 1.442695, %v6703_v15  ;;  %v6668_v6 = vadd.f32 0.2548296, %v6656_v10 }
 0xb52   : > { %v14336_v55 = vadd.f32 1.0, %v6381_v61  ;;  %vm6429_vm5 = vweird.f32 %v14011_v57  ;;  %v6705_v23 = vmul.f32 %v6693_v39, %v6369_v49  ;;  %v6606_v26 = vmul.f32 %v8044_v3, %v14316_v4 }
 0xb53   : > { %v14343_v59 = vpop.eup %8595  ;;  %v6492_v60 = vsel %vm14338_vm3, %v14152_v28, %v6488_v0  ;;  %vm6459_vm7 = vweird.f32 %v14072_v29  ;;  %vm6764_vm14 = vcmp.lt.f32.partialorder %v14036_v50, 0.0  ;;  %v6496_v13 = vor.u32 1.1754944e-38, %v6495_v1 }
 0xb54   : > { %v6530_v15 = vmul.f32 %v14343_v59, %v14302_v35  ;;  %8597 = vrcp.f32 %v14336_v55  ;;  %vm6460_vm2 = vweird.f32 %v14130_v7  ;;  %v6570_v49 = vand.u32 2147483648, %v14336_v55 }
 0xb55   : > { %v6680_v43 = vmul.f32 %v6668_v6, %v14257_v45  ;;  %v6618_v61 = vadd.f32 1.4214138, %v6606_v26  ;;  %vm6494_vm0 = vcmp.eq.f32.partialorder %v6493_v11, 8.507059e+37  ;;  %v6568_v28 = vand.u32 2147483647, %v14336_v55  ;;  %vm14369_vm6 = vmor %vm6459_vm7, %vm6460_vm2 }
 0xb56   : > { %v14358_v0 = vsel %vm6494_vm0, %v6496_v13, %v6492_v60  ;;  %v6458_v39 = vadd.f32 %v14130_v7, %v14210_v54  ;;  %v6463_v10 = vand.u32 2147483647, %v14072_v29  ;;  %v6531_v3 = vsub.f32 1.0, %v6530_v15 }
 0xb57   : > { %v14363_v5 = vmul.f32 1.442695, %v6705_v23  ;;  %v6740_v1 = vmul.f32 %v14289_v30, %v6680_v43  ;;  %v6630_v36 = vmul.f32 %v6618_v61, %v14316_v4  ;;  %v6571_v11 = vor.u32 1.1754944e-38, %v6570_v49 }
 0xb58   : > { %v6580_v6 = vmul.f32 1.0614054, %v14358_v0  ;;  %v6462_v54 = vsel %vm14369_vm6, %v14130_v7, %v6458_v39  ;;  %vm14377_vm9 = vcmp.eq.f32.partialorder %v6463_v10, 8.507059e+37  ;;  %vm6399_vm10 = vweird.f32 %v13932_v9 }
 0xb59   : > { %vm6564_vm11 = vweird.f32 %v14336_v55  ;;  %v6752_v30 = vsub.f32 1.0, %v6740_v1  ;;  %v8056_v26 = vadd.f32 -0.28449672, %v6630_v36  ;;  %v6465_v60 = vand.u32 2147483648, %v14072_v29 }
 0xb5a   : > { %v6428_v15 = vadd.f32 %v14056_v46, %v14193_v16  ;;  %v8598_v13 = vpop.eup %8597  ;;  %v8042_v49 = vadd.f32 -1.4531521, %v6580_v6  ;;  %vm6430_vm4 = vweird.f32 %v14056_v46  ;;  %v6433_v7 = vand.u32 2147483647, %v14011_v57 }
 0xb5b   : > { %v6435_v43 = vand.u32 2147483648, %v14011_v57  ;;  %v15742_v61 = vand.u32 2147483647, %v13932_v9  ;;  %v6560_v36 = vmul.f32 %v8598_v13, %v14336_v55  ;;  %vm6565_vm12 = vweird.f32 %v8598_v13  ;;  %vm14399_vm13 = vmor %vm6429_vm5, %vm6430_vm4 }
 0xb5c   : > { %v6776_v29 = vsub.f32 0.0, %v6752_v30  ;;  %v6654_v16 = vmul.f32 %v8056_v26, %v14316_v4  ;;  %v6604_v1 = vmul.f32 %v8042_v49, %v14358_v0  ;;  %v6466_v45 = vor.u32 1.1754944e-38, %v6465_v60 }
 0xb5d   : > { %vm14391_vm15 = vcmp.eq.f32.partialorder %v15742_v61, 8.507059e+37  ;;  %v6432_v6 = vsel %vm14399_vm13, %v14056_v46, %v6428_v15  ;;  %vm6434_vm1 = vcmp.eq.f32.partialorder %v6433_v7, 8.507059e+37  ;;  %v6561_v61 = vsub.f32 1.0, %v6560_v36 }
 0xb5e   : > { %v6788_v20 = vsel %vm6764_vm14, %v6776_v29, %v6752_v30  ;;  %v6666_v37 = vadd.f32 0.2548296, %v6654_v16  ;;  %v6436_v26 = vor.u32 1.1754944e-38, %v6435_v43  ;;  %vm6762_vm3 = vcmp.lt.f32.partialorder %v14049_v34, 0.0  ;;  %vm6566_vm14 = vmor %vm6564_vm11, %vm6565_vm12 }
 0xb5f   : > { %v6812_v57 = vadd.f32 1.0, %v6788_v20  ;;  %v6616_v31 = vadd.f32 1.4214138, %v6604_v1  ;;  %v14412_v41 = vsel %vm14377_vm9, %v6466_v45, %v6462_v54  ;;  %v6398_v60 = vadd.f32 %v13988_v12, %v14081_v38 }
 0xb60   : > { %v6562_v49 = vmul.f32 %v8598_v13, %v6561_v61  ;;  %v6678_v46 = vmul.f32 %v6666_v37, %v14316_v4  ;;  %v6578_v15 = vmul.f32 1.0614054, %v14412_v41  ;;  %v14418_v50 = vsel %vm6434_vm1, %v6436_v26, %v6432_v6 }
 0xb61   : > { %v6824_v30 = vmul.f32 %v6812_v57, %v14214_v17  ;;  %v6628_v7 = vmul.f32 %v6616_v31, %v14358_v0  ;;  %v6576_v20 = vmul.f32 1.0614054, %v14418_v50  ;;  %vm6400_vm5 = vweird.f32 %v13988_v12 }
 0xb62   : > { %v6532_v54 = vmul.f32 %v14343_v59, %v6531_v3  ;;  %v6738_v23 = vmul.f32 %v14243_v53, %v6678_v46  ;;  %v8040_v38 = vadd.f32 -1.4531521, %v6578_v15  ;;  %vm6401_vm7 = vmor %vm6399_vm10, %vm6400_vm5  ;;  %v6563_v37 = vadd.f32 %v8598_v13, %v6562_v49 }
 0xb63   : > { %7108 = vmatpush.msra.mxu3 %v6824_v30  ;;  %v8054_v17 = vadd.f32 -0.28449672, %v6628_v7  ;;  %v8038_v31 = vadd.f32 -1.4531521, %v6576_v20  ;;  %v6402_v4 = vsel %vm6401_vm7, %v13988_v12, %v6398_v60  ;;  %vm6569_vm2 = vcmp.eq.f32.partialorder %v6568_v28, 8.507059e+37 }
 0xb64   : > { %v6750_v43 = vsub.f32 1.0, %v6738_v23  ;;  %v6602_v3 = vmul.f32 %v8040_v38, %v14412_v41  ;;  %v14436_v53 = vsel %vm14391_vm15, %v14310_v33, %v6402_v4  ;;  %v6567_v9 = vsel %vm6566_vm14, %v8598_v13, %v6563_v37 }
 0xb65   : > { %v6652_v36 = vmul.f32 %v8054_v17, %v14358_v0  ;;  %v6600_v55 = vmul.f32 %v8038_v31, %v14418_v50  ;;  %v6574_v29 = vmul.f32 1.0614054, %v14436_v53  ;;  %v14441_v16 = vsel %vm6569_vm2, %v6571_v11, %v6567_v9 }
 0xb66   : > { %8599 = vpow2.f32 %v14334_v27  ;;  %v6774_v12 = vsub.f32 0.0, %v6750_v43  ;;  %v6614_v28 = vadd.f32 1.4214138, %v6602_v3  ;;  %v6585_v10 = vmul.f32 1.0614054, %v14441_v16 }
 0xb67   : > { %v6664_v1 = vadd.f32 0.2548296, %v6652_v36  ;;  %v6612_v45 = vadd.f32 1.4214138, %v6600_v55  ;;  %v8036_v39 = vadd.f32 -1.4531521, %v6574_v29  ;;  %v6533_v33 = vadd.f32 %v14343_v59, %v6532_v54 }
 0xb68   : > { %vm6760_vm0 = vcmp.lt.f32.partialorder %v14022_v51, 0.0  ;;  %v6786_v13 = vsel %vm6762_vm3, %v6774_v12, %v6750_v43  ;;  %v6626_v6 = vmul.f32 %v6614_v28, %v14412_v41  ;;  %v8047_v11 = vadd.f32 -1.4531521, %v6585_v10 }
 0xb69   : > { %vm6535_vm6 = vweird.f32 %v14343_v59  ;;  %v6810_v27 = vadd.f32 1.0, %v6786_v13  ;;  %v6676_v61 = vmul.f32 %v6664_v1, %v14358_v0  ;;  %v6624_v26 = vmul.f32 %v6612_v45, %v14418_v50 }
 0xb6a   : > { %v6598_v57 = vmul.f32 %v8036_v39, %v14436_v53  ;;  %v8052_v60 = vadd.f32 -0.28449672, %v6626_v6  ;;  %v6609_v49 = vmul.f32 %v8047_v11, %v14441_v16  ;;  %vm6534_vm9 = vweird.f32 %v14302_v35 }
 0xb6b   : > { %v6538_v34 = vand.u32 2147483647, %v14302_v35  ;;  %v6822_v46 = vmul.f32 %v6810_v27, %v14203_v58  ;;  %v6736_v15 = vmul.f32 %v14236_v22, %v6676_v61  ;;  %v8050_v30 = vadd.f32 -0.28449672, %v6624_v26  ;;  %vm14465_vm10 = vmor %vm6534_vm9, %vm6535_vm6 }
 0xb6c   : > { %v6610_v7 = vadd.f32 1.4214138, %v6598_v57  ;;  %v14459_v20 = vpop.eup %8599  ;;  %8601 = vpow2.f32 %v14363_v5  ;;  %v6650_v0 = vmul.f32 %v8052_v60, %v14412_v41  ;;  %v6621_v54 = vadd.f32 1.4214138, %v6609_v49 }
 0xb6d   : > { %v6540_v38 = vand.u32 2147483648, %v14302_v35  ;;  %7109 = vmatpush.msra.mxu3 %v6822_v46  ;;  %v6748_v58 = vsub.f32 1.0, %v6736_v15  ;;  %v6648_v22 = vmul.f32 %v8050_v30, %v14418_v50  ;;  %v6537_v5 = vsel %vm14465_vm10, %v14343_v59, %v6533_v33 }
 0xb6e   : > { %v6622_v37 = vmul.f32 %v6610_v7, %v14436_v53  ;;  %v6662_v17 = vadd.f32 0.2548296, %v6650_v0  ;;  %v6633_v31 = vmul.f32 %v6621_v54, %v14441_v16  ;;  %vm6539_vm11 = vcmp.eq.f32.partialorder %v6538_v34, 8.507059e+37 }
 0xb6f   : > { %v6541_v4 = vor.u32 1.1754944e-38, %v6540_v38  ;;  %vm6758_vm4 = vcmp.lt.f32.partialorder %v14004_v14, 0.0  ;;  %v6772_v43 = vsub.f32 0.0, %v6748_v58  ;;  %v6660_v3 = vadd.f32 0.2548296, %v6648_v22  ;;  %v15751_v14 = vld [vmem:[#allocation119_spill] sm:$0xff] }
 0xb70   : > { %v8048_v35 = vadd.f32 -0.28449672, %v6622_v37  ;;  %v6503_v9 = vadd.f32 %v14291_v63, %v14332_v2  ;;  %vm6756_vm15 = vcmp.lt.f32.partialorder %v13935_v48, 0.0  ;;  %v6674_v36 = vmul.f32 %v6662_v17, %v14412_v41  ;;  %v15755_v17 = vld [vmem:[#allocation82_spill] sm:$0xff] }
 0xb71   : > { %v8059_v55 = vadd.f32 -0.28449672, %v6633_v31  ;;  %v14481_v29 = vsel %vm6539_vm11, %v6541_v4, %v6537_v5  ;;  %vm6505_vm12 = vweird.f32 %v14291_v63  ;;  %v6784_v59 = vsel %vm6760_vm0, %v6772_v43, %v6748_v58  ;;  %v15754_v5 = vld [vmem:[#allocation102_spill] sm:$0xff] }
 0xb72   : > { %v6672_v12 = vmul.f32 %v6660_v3, %v14418_v50  ;;  %v6646_v28 = vmul.f32 %v8048_v35, %v14436_v53  ;;  %v6583_v10 = vmul.f32 1.0614054, %v14481_v29  ;;  %v8602_v1 = vpop.eup %8601  ;;  %v6808_v2 = vadd.f32 1.0, %v6784_v59 }
 0xb73   : > { %v6734_v45 = vmul.f32 %v14216_v8, %v6674_v36  ;;  %v6657_v41 = vmul.f32 %v8059_v55, %v14441_v16  ;;  %vm6504_vm13 = vweird.f32 %v14255_v52  ;;  %v6508_v51 = vand.u32 2147483647, %v14255_v52  ;;  %v15762_v8 = vld [vmem:[#allocation114_spill] sm:$0xff] }
 0xb74   : > { %v6732_v39 = vmul.f32 %v14113_v32, %v6672_v12  ;;  %v6658_v33 = vadd.f32 0.2548296, %v6646_v28  ;;  %v8045_v13 = vadd.f32 -1.4531521, %v6583_v10  ;;  %vm6754_vm1 = vcmp.lt.f32.partialorder %v13849_v56, 0.0  ;;  %vm14498_vm3 = vmor %vm6504_vm13, %vm6505_vm12 }
 0xb75   : > { %v6820_v50 = vmul.f32 %v6808_v2, %v14108_v18  ;;  %v6746_v6 = vsub.f32 1.0, %v6734_v45  ;;  %v6669_v11 = vadd.f32 0.2548296, %v6657_v41  ;;  %v6510_v27 = vand.u32 2147483648, %v14255_v52  ;;  %v15758_v2 = vld [vmem:[#allocation117_spill] sm:$0xff] }
 0xb76   : > { %vm6765_vm5 = vcmp.lt.f32.partialorder %v14307_v25, 0.0  ;;  %v6744_v32 = vsub.f32 1.0, %v6732_v39  ;;  %v6670_v61 = vmul.f32 %v6658_v33, %v14436_v53  ;;  %v6607_v26 = vmul.f32 %v8045_v13, %v14481_v29 }
 0xb77   : > { %v6507_v18 = vsel %vm14498_vm3, %v14291_v63, %v6503_v9  ;;  %7110 = vmatpush.msra.mxu3 %v6820_v50  ;;  %v6770_v57 = vsub.f32 0.0, %v6746_v6  ;;  %v6681_v60 = vmul.f32 %v6669_v11, %v14441_v16  ;;  %vm6509_vm7 = vcmp.eq.f32.partialorder %v6508_v51, 8.507059e+37 }
 0xb78   : > { %v6511_v49 = vor.u32 1.1754944e-38, %v6510_v27  ;;  %v6768_v34 = vsub.f32 0.0, %v6744_v32  ;;  %v6730_v52 = vmul.f32 %v14045_v62, %v6670_v61  ;;  %v6619_v46 = vadd.f32 1.4214138, %v6607_v26 }
 0xb79   : > { %v6473_v15 = vadd.f32 %v14259_v21, %v14319_v44  ;;  %vm6444_vm14 = vweird.f32 %v14162_v40  ;;  %v6782_v53 = vsel %vm6758_vm4, %v6770_v57, %v6746_v6  ;;  %v6741_v30 = vmul.f32 %v8602_v1, %v6681_v60  ;;  %v15765_v57 = vld [vmem:[#allocation121_spill] sm:$0xff] }
 0xb7a   : > { %v14516_v63 = vsel %vm6509_vm7, %v6511_v49, %v6507_v18  ;;  %vm6474_vm2 = vweird.f32 %v14219_v19  ;;  %v6806_v16 = vadd.f32 1.0, %v6782_v53  ;;  %v6780_v7 = vsel %vm6756_vm15, %v6768_v34, %v6744_v32  ;;  %v15766_v34 = vld [vmem:[#allocation105_spill] sm:$0xff] }
 0xb7b   : > { %v6742_v0 = vsub.f32 1.0, %v6730_v52  ;;  %v6631_v62 = vmul.f32 %v6619_v46, %v14481_v29  ;;  %v6804_v54 = vadd.f32 1.0, %v6780_v7  ;;  %v6753_v23 = vsub.f32 1.0, %v6741_v30  ;;  %v6826_v30 = vld [vmem:[#allocation24] sm:$0xff]  ;;  %v15768_v7 = vld [vmem:[#allocation106_spill] sm:$0xff] }
 0xb7c   : > { %v6581_v44 = vmul.f32 1.0614054, %v14516_v63  ;;  %vm6475_vm0 = vweird.f32 %v14259_v21  ;;  %v6818_v38 = vmul.f32 %v6806_v16, %v15751_v14  ;;  %v6478_v48 = vand.u32 2147483647, %v14219_v19  ;;  %v14594_v16 = vld [vmem:[%s15767_s29] sm:$0xff]  ;;  %8086 = vmatmul.msk.f32.vlgmr.msra.gmra.mxu2 %vm3412_vm8, %v6826_v30 }
 0xb7d   : > { %v6766_v58 = vsub.f32 0.0, %v6742_v0  ;;  %v8057_v22 = vadd.f32 -0.28449672, %v6631_v62  ;;  %vm14525_vm6 = vmor %vm6474_vm2, %vm6475_vm0  ;;  %vm6414_vm9 = vweird.f32 %v15754_v5  ;;  %v6816_v31 = vmul.f32 %v6804_v54, %v15755_v17  ;;  %8060 = vmatmul.msk.f32.vlgmr.msrb.gmra.mxu0 %vm3412_vm8, %v14594_v16 }
 0xb7e   : > { %v6777_v4 = vsub.f32 0.0, %v6753_v23  ;;  %v8043_v43 = vadd.f32 -1.4531521, %v6581_v44  ;;  %v6477_v3 = vsel %vm14525_vm6, %v14259_v21, %v6473_v15  ;;  %7111 = vmatpush.msra.mxu3 %v6818_v38  ;;  %vm14538_vm10 = vcmp.eq.f32.partialorder %v6478_v48, 8.507059e+37  ;;  %v15770_v44 = vld [vmem:[#allocation116_spill] sm:$0xff] }
 0xb7f   : > { %v6778_v35 = vsel %vm6754_vm1, %v6766_v58, %v6742_v0  ;;  %v6655_v9 = vmul.f32 %v8057_v22, %v14481_v29  ;;  %v6480_v55 = vand.u32 2147483648, %v14219_v19  ;;  %vm6445_vm11 = vweird.f32 %v14207_v42  ;;  %v15771_v22 = vld [vmem:[#allocation99_spill] sm:$0xff] }
 0xb80   : > { %v6802_v59 = vadd.f32 1.0, %v6778_v35  ;;  %v6789_v12 = vsel %vm6765_vm5, %v6777_v4, %v6753_v23  ;;  %v6605_v28 = vmul.f32 %v8043_v43, %v14516_v63  ;;  %7112 = vmatpush.msra.mxu3 %v6816_v31  ;;  %v6443_v1 = vadd.f32 %v14207_v42, %v14269_v47  ;;  %vm14552_vm4 = vmor %vm6444_vm14, %vm6445_vm11  ;;  %v15772_v31 = vld [vmem:[#allocation112_spill] sm:$0xff] }
 0xb81   : > { %v6813_v21 = vadd.f32 1.0, %v6789_v12  ;;  %v6667_v56 = vadd.f32 0.2548296, %v6655_v9  ;;  %v6481_v10 = vor.u32 1.1754944e-38, %v6480_v55  ;;  %v6448_v25 = vand.u32 2147483647, %v14162_v40 }
 0xb82   : > { %v6814_v45 = vmul.f32 %v6802_v59, %v15758_v2  ;;  %v6617_v41 = vadd.f32 1.4214138, %v6605_v28  ;;  %v6450_v39 = vand.u32 2147483648, %v14162_v40  ;;  %v6447_v51 = vsel %vm14552_vm4, %v14207_v42, %v6443_v1 }
 0xb83   : > { %v6825_v33 = vmul.f32 %v6813_v21, %v14321_v24  ;;  %v6679_v13 = vmul.f32 %v6667_v56, %v14481_v29  ;;  %v14562_v47 = vsel %vm14538_vm10, %v6481_v10, %v6477_v3  ;;  %v6418_v40 = vand.u32 2147483647, %v15754_v5  ;;  %v15761_v29 = vld [vmem:[#allocation120_spill] sm:$0xff]  ;;  %v6827_v10 = vld [vmem:[#allocation24 + $0x8] sm:$0xff] }
 0xb84   : > { %7113 = vmatpush.msra.mxu3 %v6814_v45  ;;  %v6629_v50 = vmul.f32 %v6617_v41, %v14516_v63  ;;  %v6579_v6 = vmul.f32 1.0614054, %v14562_v47  ;;  %v6451_v11 = vor.u32 1.1754944e-38, %v6450_v39  ;;  %vm6449_vm15 = vcmp.eq.f32.partialorder %v6448_v25, 8.507059e+37  ;;  %8087 = vmatmul.msk.f32.gmra.mxu2 %vm3412_vm8, %v6827_v10 }
 0xb85   : > { %6957 = vmatpush.msrb.mxu1 %v6825_v33  ;;  %v6739_v24 = vmul.f32 %v14459_v20, %v6679_v13  ;;  %v6413_v27 = vadd.f32 %v15762_v8, %v15761_v29  ;;  %vm6415_vm12 = vweird.f32 %v15762_v8  ;;  %v6420_v18 = vand.u32 2147483648, %v15754_v5  ;;  %8099 = vmatmul.msk.f32.vlgmr.msra.gmra.mxu3 %vm3412_vm8, %v6826_v30  ;;  %v15774_v29 = vld [vmem:[#allocation110_spill] sm:$0xff] }
 0xb86   : > { %v8055_v32 = vadd.f32 -0.28449672, %v6629_v50  ;;  %v8041_v61 = vadd.f32 -1.4531521, %v6579_v6  ;;  %v14574_v42 = vsel %vm6449_vm15, %v6451_v11, %v6447_v51  ;;  %vm14578_vm13 = vmor %vm6414_vm9, %vm6415_vm12  ;;  %8603 = vpow2.f32 %v15765_v57  ;;  %v15773_v51 = vld [vmem:[#allocation118_spill] sm:$0xff] }
 0xb87   : > { %v6751_v20 = vsub.f32 1.0, %v6739_v24  ;;  %v6577_v60 = vmul.f32 1.0614054, %v14574_v42  ;;  %v6417_v49 = vsel %vm14578_vm13, %v15762_v8, %v6413_v27  ;;  %v6683_v52 = vsub.f32 0.0, %v15766_v34 }
 0xb88   : > { %v6653_v46 = vmul.f32 %v8055_v32, %v14516_v63  ;;  %v6603_v15 = vmul.f32 %v8041_v61, %v14562_v47  ;;  %v6421_v53 = vor.u32 1.1754944e-38, %v6420_v18  ;;  %v15769_v0 = vsub.f32 0.0, %v15768_v7  ;;  %v6828_v18 = vld [vmem:[#allocation24 + $0x10] sm:$0xff] }
 0xb89   : > { %v6775_v54 = vsub.f32 0.0, %v6751_v20  ;;  %v8039_v23 = vadd.f32 -1.4531521, %v6577_v60  ;;  %vm6419_vm1 = vcmp.eq.f32.partialorder %v6418_v40, 8.507059e+37  ;;  %vm6763_vm3 = vcmp.lt.f32.partialorder %v15770_v44, 0.0 }
 0xb8a   : > { %v6697_v62 = vmul.f32 %v15769_v0, %v15768_v7  ;;  %v6665_v14 = vadd.f32 0.2548296, %v6653_v46  ;;  %v6615_v38 = vadd.f32 1.4214138, %v6603_v15  ;;  %v14602_v58 = vsel %vm6419_vm1, %v6421_v53, %v6417_v49  ;;  %v14635_v49 = vld [vmem:[%s15767_s29 + $0x10] sm:$0xff]  ;;  %v7185_v15 = vld [vmem:[#allocation25 + $0xf8] sm:$0xff] }
 0xb8b   : > { %v6716_v37 = vmul.f32 1.442695, %v15771_v22  ;;  %v6787_v48 = vsel %vm6763_vm3, %v6775_v54, %v6751_v20  ;;  %v6601_v5 = vmul.f32 %v8039_v23, %v14574_v42  ;;  %v6575_v17 = vmul.f32 1.0614054, %v14602_v58  ;;  %7336 = vmatpush.msrb.mxu2 %v7185_v15  ;;  %v15776_v54 = vld [vmem:[#allocation96_spill] sm:$0xff]  ;;  %v7172_v15 = vld [vmem:[#allocation25 + $0x90] sm:$0xff] }
 0xb8c   : > { %v6799_v4 = vmul.f32 0.5, %v15772_v31  ;;  %v6811_v43 = vadd.f32 1.0, %v6787_v48  ;;  %v6677_v3 = vmul.f32 %v6665_v14, %v14516_v63  ;;  %v6627_v35 = vmul.f32 %v6615_v38, %v14562_v47  ;;  %v8604_v9 = vpop.eup %8603  ;;  %v14618_v63 = vld [vmem:[%s15767_s29 + $0x8] sm:$0xff]  ;;  %8088 = vmatmul.msk.f32.gmra.mxu2 %vm3412_vm8, %v6828_v18  ;;  %v14648_v31 = vld [vmem:[%s15767_s29 + $0x18] sm:$0xff] }
 0xb8d   : > { %v6695_v36 = vmul.f32 %v6683_v52, %v15766_v34  ;;  %v6613_v55 = vadd.f32 1.4214138, %v6601_v5  ;;  %v8037_v59 = vadd.f32 -1.4531521, %v6575_v17  ;;  %v6712_v12 = vmul.f32 1.442695, %v6697_v62  ;;  %8100 = vmatmul.msk.f32.gmra.mxu3 %vm3412_vm8, %v6827_v10  ;;  %8061 = vmatmul.msk.f32.gmra.mxu0 %vm3412_vm8, %v14618_v63 }
 0xb8e   : > { %v6823_v28 = vmul.f32 %v6811_v43, %v6799_v4  ;;  %v6737_v21 = vmul.f32 %v8604_v9, %v6677_v3  ;;  %v8053_v56 = vadd.f32 -0.28449672, %v6627_v35  ;;  %8605 = vpow2.f32 %v6716_v37  ;;  %v15777_v22 = vld [vmem:[#allocation128_spill] sm:$0xff]  ;;  %v6829_v37 = vld [vmem:[#allocation24 + $0x18] sm:$0xff] }
 0xb8f   : > { %v6625_v1 = vmul.f32 %v6613_v55, %v14574_v42  ;;  %v6599_v2 = vmul.f32 %v8037_v59, %v14602_v58  ;;  %v6708_v39 = vmul.f32 1.442695, %v6695_v36  ;;  %8607 = vpow2.f32 %v6712_v12  ;;  %v7217_v35 = vld [vmem:[#allocation25 + $0x1f8] sm:$0xff]  ;;  %v7184_v9 = vld [vmem:[#allocation25 + $0xf0] sm:$0xff]  ;;  %v7183_v59 = vld [vmem:[#allocation25 + $0xe8] sm:$0xff] }
 0xb90   : > { %6958 = vmatpush.msrb.mxu1 %v6823_v28  ;;  %v6749_v45 = vsub.f32 1.0, %v6737_v21  ;;  %v6651_v41 = vmul.f32 %v8053_v56, %v14562_v47  ;;  %vm6761_vm5 = vcmp.lt.f32.partialorder %v15773_v51, 0.0  ;;  %v6797_v8 = vmul.f32 0.5, %v15774_v29  ;;  %v15779_v36 = vld [vmem:[#allocation87_spill] sm:$0xff]  ;;  %7392 = vmatpush.msrb.mxu3 %v7217_v35  ;;  %v7215_v28 = vld [vmem:[#allocation25 + $0x1e8] sm:$0xff]  ;;  %v7177_v29 = vld [vmem:[#allocation25 + $0xb8] sm:$0xff] }
 0xb91   : > { %v8051_v19 = vadd.f32 -0.28449672, %v6625_v1  ;;  %v6611_v25 = vadd.f32 1.4214138, %v6599_v2  ;;  %8609 = vpow2.f32 %v6708_v39  ;;  %v6795_v23 = vmul.f32 0.5, %v15776_v54  ;;  %7224 = vmatpush.msra.mxu0 %v7184_v9  ;;  %v15780_v21 = vld [vmem:[#allocation115_spill] sm:$0xff]  ;;  %7337 = vmatpush.msrb.mxu2 %v7183_v59 }
 0xb92   : > { %v6773_v33 = vsub.f32 0.0, %v6749_v45  ;;  %v6663_v13 = vadd.f32 0.2548296, %v6651_v41  ;;  %vm6757_vm14 = vcmp.lt.f32.partialorder %v15777_v22, 0.0  ;;  %vm6755_vm2 = vcmp.lt.f32.partialorder %v15779_v36, 0.0  ;;  %7393 = vmatpush.msrb.mxu3 %v7215_v28  ;;  %v6830_v2 = vld [vmem:[#allocation24 + $0x20] sm:$0xff] }
 0xb93   : > { %v6649_v50 = vmul.f32 %v8051_v19, %v14574_v42  ;;  %v6623_v6 = vmul.f32 %v6611_v25, %v14602_v58  ;;  %v6791_v56 = vmul.f32 0.5, %v15780_v21  ;;  %v7216_v41 = vld [vmem:[#allocation25 + $0x1f0] sm:$0xff]  ;;  %v7182_v19 = vld [vmem:[#allocation25 + $0xe0] sm:$0xff]  ;;  %v7181_v25 = vld [vmem:[#allocation25 + $0xd8] sm:$0xff] }
 0xb94   : > { %v6785_v11 = vsel %vm6761_vm5, %v6773_v33, %v6749_v45  ;;  %v6675_v40 = vmul.f32 %v6663_v13, %v14562_v47  ;;  %v8606_v24 = vpop.eup %8605  ;;  %8089 = vmatmul.msk.f32.gmra.mxu2 %vm3412_vm8, %v6829_v37  ;;  %v14660_v45 = vld [vmem:[%s15767_s29 + $0x20] sm:$0xff]  ;;  %v7214_v39 = vld [vmem:[#allocation25 + $0x1e0] sm:$0xff]  ;;  %v7213_v33 = vld [vmem:[#allocation25 + $0x1d8] sm:$0xff]  ;;  %7225 = vmatpush.msra.mxu0 %v7182_v19 }
 0xb95   : > { %v6809_v27 = vadd.f32 1.0, %v6785_v11  ;;  %v6661_v32 = vadd.f32 0.2548296, %v6649_v50  ;;  %v8049_v61 = vadd.f32 -0.28449672, %v6623_v6  ;;  %v8608_v47 = vpop.eup %8607  ;;  %8101 = vmatmul.msk.f32.gmra.mxu3 %vm3412_vm8, %v6828_v18  ;;  %8062 = vmatmul.msk.f32.gmra.mxu0 %vm3412_vm8, %v14635_v49  ;;  %v6831_v13 = vld [vmem:[#allocation24 + $0x28] sm:$0xff] }
 0xb96   : > { %v6735_v26 = vmul.f32 %v8606_v24, %v6675_v40  ;;  %7338 = vmatpush.msrb.mxu2 %v7181_v25  ;;  %7394 = vmatpush.msrb.mxu3 %v7213_v33  ;;  %v7180_v51 = vld [vmem:[#allocation25 + $0xd0] sm:$0xff]  ;;  %v7179_v50 = vld [vmem:[#allocation25 + $0xc8] sm:$0xff]  ;;  %v7178_v24 = vld [vmem:[#allocation25 + $0xc0] sm:$0xff] }
 0xb97   : > { %v6821_v57 = vmul.f32 %v6809_v27, %v6797_v8  ;;  %v6673_v20 = vmul.f32 %v6661_v32, %v14574_v42  ;;  %v6647_v60 = vmul.f32 %v8049_v61, %v14602_v58  ;;  %v15775_v42 = vld [vmem:[#allocation108_spill] sm:$0xff]  ;;  %v8610_v0 = vpop.eup %8609  ;;  %v7212_v6 = vld [vmem:[#allocation25 + $0x1d0] sm:$0xff]  ;;  %v7211_v11 = vld [vmem:[#allocation25 + $0x1c8] sm:$0xff]  ;;  %7226 = vmatpush.msra.mxu0 %v7180_v51 }
 0xb98   : > { %v6747_v34 = vsub.f32 1.0, %v6735_v26  ;;  %vm6759_vm7 = vcmp.lt.f32.partialorder %v15775_v42, 0.0  ;;  %7339 = vmatpush.msrb.mxu2 %v7179_v50  ;;  %7395 = vmatpush.msrb.mxu3 %v7211_v11  ;;  %v6832_v40 = vld [vmem:[#allocation24 + $0x30] sm:$0xff]  ;;  %v7210_v8 = vld [vmem:[#allocation25 + $0x1c0] sm:$0xff]  ;;  %v7209_v27 = vld [vmem:[#allocation25 + $0x1b8] sm:$0xff] }
 0xb99   : > { %6959 = vmatpush.msrb.mxu1 %v6821_v57  ;;  %v6733_v52 = vmul.f32 %v8608_v47, %v6673_v20  ;;  %v6659_v46 = vadd.f32 0.2548296, %v6647_v60  ;;  %7227 = vmatpush.msra.mxu0 %v7178_v24  ;;  %v7176_v32 = vld [vmem:[#allocation25 + $0xb0] sm:$0xff]  ;;  %v7175_v61 = vld [vmem:[#allocation25 + $0xa8] sm:$0xff]  ;;  %v7174_v60 = vld [vmem:[#allocation25 + $0xa0] sm:$0xff] }
 0xb9a   : > { %v6771_v53 = vsub.f32 0.0, %v6747_v34  ;;  %7340 = vmatpush.msrb.mxu2 %v7177_v29  ;;  %7396 = vmatpush.msrb.mxu3 %v7209_v27  ;;  %v6833_v26 = vld [vmem:[#allocation24 + $0x38] sm:$0xff]  ;;  %v14693_v18 = vld [vmem:[%s15767_s29 + $0x38] sm:$0xff]  ;;  %v7206_v47 = vld [vmem:[#allocation25 + $0x1a0] sm:$0xff] }
 0xb9b   : > { %v6745_v30 = vsub.f32 1.0, %v6733_v52  ;;  %v6671_v7 = vmul.f32 %v6659_v46, %v14602_v58  ;;  %v15778_v58 = vld [vmem:[#allocation94_spill] sm:$0xff]  ;;  %7228 = vmatpush.msra.mxu0 %v7176_v32  ;;  %v7208_v57 = vld [vmem:[#allocation25 + $0x1b0] sm:$0xff]  ;;  %v6834_v52 = vld [vmem:[#allocation24 + $0x40] sm:$0xff] }
 0xb9c   : > { %v6783_v62 = vsel %vm6759_vm7, %v6771_v53, %v6747_v34  ;;  %v6793_v4 = vmul.f32 0.5, %v15778_v58  ;;  %8090 = vmatmul.msk.f32.gmra.mxu2 %vm3412_vm8, %v6830_v2  ;;  %v7207_v20 = vld [vmem:[#allocation25 + $0x1a8] sm:$0xff]  ;;  %v7205_v34 = vld [vmem:[#allocation25 + $0x198] sm:$0xff]  ;;  %v14704_v46 = vld [vmem:[%s15767_s29 + $0x40] sm:$0xff] }
 0xb9d   : > { %v6807_v44 = vadd.f32 1.0, %v6783_v62  ;;  %v6769_v14 = vsub.f32 0.0, %v6745_v30  ;;  %v6731_v38 = vmul.f32 %v8610_v0, %v6671_v7  ;;  %8102 = vmatmul.msk.f32.gmra.mxu3 %vm3412_vm8, %v6829_v37  ;;  %8063 = vmatmul.msk.f32.gmra.mxu0 %vm3412_vm8, %v14648_v31  ;;  %v7171_v53 = vld [vmem:[#allocation25 + $0x88] sm:$0xff]  ;;  %v7204_v42 = vld [vmem:[#allocation25 + $0x190] sm:$0xff]  ;;  %v6835_v7 = vld [vmem:[#allocation24 + $0x48] sm:$0xff] }
 0xb9e   : > { %7341 = vmatpush.msrb.mxu2 %v7175_v61  ;;  %7397 = vmatpush.msrb.mxu3 %v7207_v20  ;;  %v14715_v0 = vld [vmem:[%s15767_s29 + $0x48] sm:$0xff]  ;;  %v7170_v62 = vld [vmem:[#allocation25 + $0x80] sm:$0xff]  ;;  %v7168_v22 = vld [vmem:[#allocation25 + $0x70] sm:$0xff] }
 0xb9f   : > { %v6819_v48 = vmul.f32 %v6807_v44, %v6795_v23  ;;  %v6781_v5 = vsel %vm6757_vm14, %v6769_v14, %v6745_v30  ;;  %v6743_v17 = vsub.f32 1.0, %v6731_v38  ;;  %7229 = vmatpush.msra.mxu0 %v7174_v60  ;;  %v7203_v30 = vld [vmem:[#allocation25 + $0x188] sm:$0xff]  ;;  %v7169_v54 = vld [vmem:[#allocation25 + $0x78] sm:$0xff]  ;;  %v7202_v23 = vld [vmem:[#allocation25 + $0x180] sm:$0xff] }
 0xba0   : > { %v6805_v43 = vadd.f32 1.0, %v6781_v5  ;;  %7398 = vmatpush.msrb.mxu3 %v7205_v34  ;;  %v7201_v44 = vld [vmem:[#allocation25 + $0x178] sm:$0xff]  ;;  %v6836_v14 = vld [vmem:[#allocation24 + $0x50] sm:$0xff]  ;;  %v14726_v38 = vld [vmem:[%s15767_s29 + $0x50] sm:$0xff] }
 0xba1   : > { %6960 = vmatpush.msrb.mxu1 %v6819_v48  ;;  %v6767_v3 = vsub.f32 0.0, %v6743_v17  ;;  %7230 = vmatpush.msra.mxu0 %v7172_v15  ;;  %v7167_v37 = vld [vmem:[#allocation25 + $0x68] sm:$0xff]  ;;  %v7200_v48 = vld [vmem:[#allocation25 + $0x170] sm:$0xff]  ;;  %v7162_v28 = vld [vmem:[#allocation25 + $0x40] sm:$0xff] }
 0xba2   : > { %v6817_v55 = vmul.f32 %v6805_v43, %v6793_v4  ;;  %7399 = vmatpush.msrb.mxu3 %v7203_v30  ;;  %v7199_v5 = vld [vmem:[#allocation25 + $0x168] sm:$0xff]  ;;  %v6837_v58 = vld [vmem:[#allocation24 + $0x58] sm:$0xff]  ;;  %v7198_v43 = vld [vmem:[#allocation25 + $0x160] sm:$0xff] }
 0xba3   : > { %v6779_v12 = vsel %vm6755_vm2, %v6767_v3, %v6743_v17  ;;  %7231 = vmatpush.msra.mxu0 %v7170_v62  ;;  %v7166_v17 = vld [vmem:[#allocation25 + $0x60] sm:$0xff]  ;;  %v6850_v4 = vld [vmem:[%s15767_s29 + $0x58] sm:$0xff]  ;;  %v7197_v3 = vld [vmem:[#allocation25 + $0x158] sm:$0xff] }
 0xba4   : > { %6961 = vmatpush.msrb.mxu1 %v6817_v55  ;;  %v6803_v10 = vadd.f32 1.0, %v6779_v12  ;;  %8091 = vmatmul.msk.f32.gmra.mxu2 %vm3412_vm8, %v6831_v13  ;;  %v7164_v35 = vld [vmem:[#allocation25 + $0x50] sm:$0xff]  ;;  %v7163_v9 = vld [vmem:[#allocation25 + $0x48] sm:$0xff]  ;;  %v6838_v55 = vld [vmem:[#allocation24 + $0x60] sm:$0xf] }
 0xba5   : > { %8103 = vmatmul.msk.f32.gmra.mxu3 %vm3412_vm8, %v6830_v2  ;;  %8064 = vmatmul.msk.f32.gmra.mxu0 %vm3412_vm8, %v14660_v45  ;;  %v7196_v36 = vld [vmem:[#allocation25 + $0x150] sm:$0xff]  ;;  %v7195_v12 = vld [vmem:[#allocation25 + $0x148] sm:$0xff]  ;;  %v7161_v21 = vld [vmem:[#allocation25 + $0x38] sm:$0xff] }
 0xba6   : > { %v6815_v1 = vmul.f32 %v6803_v10, %v6791_v56  ;;  %7400 = vmatpush.msrb.mxu3 %v7201_v44  ;;  %7232 = vmatpush.msra.mxu0 %v7168_v22  ;;  %v6851_v59 = vld [vmem:[%s15767_s29 + $0x60] sm:$0xf]  ;;  %v7194_v56 = vld [vmem:[#allocation25 + $0x140] sm:$0xff]  ;;  %v7193_v10 = vld [vmem:[#allocation25 + $0x138] sm:$0xff] }
 0xba7   : > { %v7159_v2 = vld [vmem:[#allocation25 + $0x28] sm:$0xff]  ;;  %v7158_v19 = vld [vmem:[#allocation25 + $0x20] sm:$0xff]  ;;  %v7157_v25 = vld [vmem:[#allocation25 + $0x18] sm:$0xff] }
 0xba8   : > { %6962 = vmatpush.msrb.mxu1 %v6815_v1  ;;  %7401 = vmatpush.msrb.mxu3 %v7199_v5  ;;  %v7160_v1 = vld [vmem:[#allocation25 + $0x30] sm:$0xff]  ;;  %v7189_v33 = vld [vmem:[#allocation25 + $0x118] sm:$0xff]  ;;  %v7187_v50 = vld [vmem:[#allocation25 + $0x108] sm:$0xff] }
 0xba9   : > { %8073 = vmatmul.msk.f32.vlgmr.msrb.gmra.mxu1 %vm3412_vm8, %v14594_v16  ;;  %v14671_v16 = vld [vmem:[%s15767_s29 + $0x28] sm:$0xff]  ;;  %7233 = vmatpush.msra.mxu0 %v7166_v17  ;;  %v7188_v51 = vld [vmem:[#allocation25 + $0x110] sm:$0xff]  ;;  %v7154_v11 = vld [vmem:[#allocation25] sm:$0xff] }
 0xbaa   : > { %7280 = vmatpush.msra.mxu1 %v7216_v41  ;;  %7402 = vmatpush.msrb.mxu3 %v7197_v3  ;;  %v7191_v41 = vld [vmem:[#allocation25 + $0x128] sm:$0xff] }
 0xbab   : > { %7234 = vmatpush.msra.mxu0 %v7164_v35 }
 0xbac   : > { %7281 = vmatpush.msra.mxu1 %v7214_v39  ;;  %8092 = vmatmul.msk.f32.gmra.mxu2 %vm3412_vm8, %v6832_v40  ;;  %v7190_v39 = vld [vmem:[#allocation25 + $0x120] sm:$0xff] }
 0xbad   : > { %8104 = vmatmul.msk.f32.gmra.mxu3 %vm3412_vm8, %v6831_v13  ;;  %8065 = vmatmul.msk.f32.gmra.mxu0 %vm3412_vm8, %v14671_v16  ;;  %v7156_v13 = vld [vmem:[#allocation25 + $0x10] sm:$0xff] }
 0xbae   : > { %7282 = vmatpush.msra.mxu1 %v7212_v6  ;;  %7403 = vmatpush.msrb.mxu3 %v7195_v12 }
 0xbaf   : > { %7235 = vmatpush.msra.mxu0 %v7162_v28 }
 0xbb0   : > { %7283 = vmatpush.msra.mxu1 %v7210_v8  ;;  %7404 = vmatpush.msrb.mxu3 %v7193_v10 }
 0xbb1   : > { %8074 = vmatmul.msk.f32.gmra.mxu1 %vm3412_vm8, %v14618_v63  ;;  %v14682_v63 = vld [vmem:[%s15767_s29 + $0x30] sm:$0xff]  ;;  %7236 = vmatpush.msra.mxu0 %v7160_v1 }
 0xbb2   : > { %7284 = vmatpush.msra.mxu1 %v7208_v57  ;;  %7405 = vmatpush.msrb.mxu3 %v7191_v41 }
 0xbb3   : > { %7237 = vmatpush.msra.mxu0 %v7158_v19 }
 0xbb4   : > { %8093 = vmatmul.msk.f32.gmra.mxu2 %vm3412_vm8, %v6833_v26  ;;  %7285 = vmatpush.msra.mxu1 %v7206_v47 }
 0xbb5   : > { %8105 = vmatmul.msk.f32.gmra.mxu3 %vm3412_vm8, %v6832_v40  ;;  %8066 = vmatmul.msk.f32.gmra.mxu0 %vm3412_vm8, %v14682_v63  ;;  %v7186_v40 = vld [vmem:[#allocation25 + $0x100] sm:$0xff] }
 0xbb6   : > { %7286 = vmatpush.msra.mxu1 %v7204_v42  ;;  %7406 = vmatpush.msrb.mxu3 %v7189_v33 }
 0xbb7   : > { %7238 = vmatpush.msra.mxu0 %v7156_v13 }
 0xbb8   : > { %7287 = vmatpush.msra.mxu1 %v7202_v23  ;;  %7407 = vmatpush.msrb.mxu3 %v7187_v50 }
 0xbb9   : > { %8075 = vmatmul.msk.f32.gmra.mxu1 %vm3412_vm8, %v14635_v49  ;;  %v7173_v49 = vld [vmem:[#allocation25 + $0x98] sm:$0xff]  ;;  %7239 = vmatpush.msra.mxu0 %v7154_v11 }
 0xbba   : > { %7342 = vmatpush.msrb.mxu2 %v7173_v49  ;;  %7288 = vmatpush.msra.mxu1 %v7200_v48 }
 0xbbc   : > { %8094 = vmatmul.msk.f32.gmra.mxu2 %vm3412_vm8, %v6834_v52  ;;  %7289 = vmatpush.msra.mxu1 %v7198_v43 }
 0xbbd   : > { %8106 = vmatmul.msk.f32.gmra.mxu3 %vm3412_vm8, %v6833_v26  ;;  %8067 = vmatmul.msk.f32.gmra.mxu0 %vm3412_vm8, %v14693_v18 }
 0xbbe   : > { %7343 = vmatpush.msrb.mxu2 %v7171_v53  ;;  %7290 = vmatpush.msra.mxu1 %v7196_v36 }
 0xbc0   : > { %7344 = vmatpush.msrb.mxu2 %v7169_v54  ;;  %7291 = vmatpush.msra.mxu1 %v7194_v56 }
 0xbc1   : > { %8076 = vmatmul.msk.f32.gmra.mxu1 %vm3412_vm8, %v14648_v31  ;;  %v7165_v31 = vld [vmem:[#allocation25 + $0x58] sm:$0xff] }
 0xbc2   : > { %7345 = vmatpush.msrb.mxu2 %v7167_v37 }
 0xbc4   : > { %8095 = vmatmul.msk.f32.gmra.mxu2 %vm3412_vm8, %v6835_v7 }
 0xbc5   : > { %8107 = vmatmul.msk.f32.gmra.mxu3 %vm3412_vm8, %v6834_v52  ;;  %8068 = vmatmul.msk.f32.gmra.mxu0 %vm3412_vm8, %v14704_v46 }
 0xbc6   : > { %7346 = vmatpush.msrb.mxu2 %v7165_v31 }
 0xbc8   : > { %7347 = vmatpush.msrb.mxu2 %v7163_v9 }
 0xbc9   : > { %8077 = vmatmul.msk.f32.gmra.mxu1 %vm3412_vm8, %v14660_v45  ;;  %v7192_v45 = vld [vmem:[#allocation25 + $0x130] sm:$0xff] }
 0xbca   : > { %7348 = vmatpush.msrb.mxu2 %v7161_v21  ;;  %7292 = vmatpush.msra.mxu1 %v7192_v45 }
 0xbcc   : > { %8096 = vmatmul.msk.f32.gmra.mxu2 %vm3412_vm8, %v6836_v14  ;;  %7293 = vmatpush.msra.mxu1 %v7190_v39 }
 0xbcd   : > { %8108 = vmatmul.msk.f32.gmra.mxu3 %vm3412_vm8, %v6835_v7  ;;  %8069 = vmatmul.msk.f32.gmra.mxu0 %vm3412_vm8, %v14715_v0 }
 0xbce   : > { %7349 = vmatpush.msrb.mxu2 %v7159_v2  ;;  %7294 = vmatpush.msra.mxu1 %v7188_v51 }
 0xbd0   : > { %7350 = vmatpush.msrb.mxu2 %v7157_v25  ;;  %7295 = vmatpush.msra.mxu1 %v7186_v40 }
 0xbd1   : > { %8078 = vmatmul.msk.f32.gmra.mxu1 %vm3412_vm8, %v14671_v16  ;;  %v7155_v16 = vld [vmem:[#allocation25 + $0x8] sm:$0xff] }
 0xbd2   : > { %7351 = vmatpush.msrb.mxu2 %v7155_v16 }
 0xbd4   : > { %8097 = vmatmul.msk.f32.gmra.mxu2 %vm3412_vm8, %v6837_v58 }
 0xbd5   : > { %8109 = vmatmul.msk.f32.gmra.mxu3 %vm3412_vm8, %v6836_v14  ;;  %8070 = vmatmul.msk.f32.gmra.mxu0 %vm3412_vm8, %v14726_v38 }
 0xbd9   : > { %8079 = vmatmul.msk.f32.gmra.mxu1 %vm3412_vm8, %v14682_v63 }
 0xbdc   : > { %8098 = vmatmul.msk.f32.gmra.mxu2 %vm3412_vm8, %v6838_v55 }
 0xbdd   : > { %8110 = vmatmul.msk.f32.gmra.mxu3 %vm3412_vm8, %v6837_v58  ;;  %8071 = vmatmul.msk.f32.gmra.mxu0 %vm3412_vm8, %v6850_v4 }
 0xbe1   : > { %8080 = vmatmul.msk.f32.gmra.mxu1 %vm3412_vm8, %v14693_v18 }
 0xbe5   : > { %8111 = vmatmul.msk.f32.gmra.mxu3 %vm3412_vm8, %v6838_v55  ;;  %8072 = vmatmul.msk.f32.gmra.mxu0 %vm3412_vm8, %v6851_v59 }
 0xbe9   : > { %8081 = vmatmul.msk.f32.gmra.mxu1 %vm3412_vm8, %v14704_v46 }
 0xbf1   : > { %8082 = vmatmul.msk.f32.gmra.mxu1 %vm3412_vm8, %v14715_v0 }
 0xbf9   : > { %8083 = vmatmul.msk.f32.gmra.mxu1 %vm3412_vm8, %v14726_v38 }
 0xbfa   : > { %v6908_v6 = vpop.f32.mrf.mxu0 }
 0xbff   : > { %v7059_v63 = vpop.f32.mrf.mxu2 }
 0xc00   : > { %v7060_v29 = vadd.f32 %v7059_v63, %v6908_v6 }
 0xc01   : > { %8084 = vmatmul.msk.f32.gmra.mxu1 %vm3412_vm8, %v6850_v4 }
 0xc02   : > { %7240 = vmatmul.f32.vlgmr.msra.gmra.mxu0 %v7060_v29  ;;  %7352 = vmatmul.f32.vlgmr.msrb.gmra.mxu2 %v7060_v29 }
 0xc07   : > { %v7062_v27 = vpop.f32.mrf.mxu2 }
 0xc08   : > { %v7115_v24 = vpop.f32.mrf.mxu3 }
 0xc09   : > { %8085 = vmatmul.msk.f32.gmra.mxu1 %vm3412_vm8, %v6851_v59 }
 0xc0a   : > { %v6911_v8 = vpop.f32.mrf.mxu0 }
 0xc0b   : > { %v7063_v32 = vadd.f32 %v7062_v27, %v6911_v8 }
 0xc0d   : > { %7243 = vmatmul.f32.gmra.mxu0 %v7063_v32  ;;  %7355 = vmatmul.f32.gmra.mxu2 %v7063_v32 }
 0xc0f   : > { %v7065_v18 = vpop.f32.mrf.mxu2 }
 0xc10   : > { %v7118_v61 = vpop.f32.mrf.mxu3 }
 0xc12   : > { %v6914_v26 = vpop.f32.mrf.mxu0 }
 0xc13   : > { %v7066_v57 = vadd.f32 %v7065_v18, %v6914_v26 }
 0xc15   : > { %7246 = vmatmul.f32.gmra.mxu0 %v7066_v57  ;;  %7358 = vmatmul.f32.gmra.mxu2 %v7066_v57 }
 0xc17   : > { %v7068_v49 = vpop.f32.mrf.mxu2 }
 0xc18   : > { %v7121_v60 = vpop.f32.mrf.mxu3 }
 0xc1a   : > { %v6917_v20 = vpop.f32.mrf.mxu0 }
 0xc1b   : > { %v7069_v47 = vadd.f32 %v7068_v49, %v6917_v20 }
 0xc1d   : > { %7249 = vmatmul.f32.gmra.mxu0 %v7069_v47  ;;  %7361 = vmatmul.f32.gmra.mxu2 %v7069_v47 }
 0xc1f   : > { %v7071_v53 = vpop.f32.mrf.mxu2 }
 0xc20   : > { %v7124_v15 = vpop.f32.mrf.mxu3 }
 0xc22   : > { %v6920_v46 = vpop.f32.mrf.mxu0 }
 0xc23   : > { %v7072_v42 = vadd.f32 %v7071_v53, %v6920_v46 }
 0xc25   : > { %7252 = vmatmul.f32.gmra.mxu0 %v7072_v42  ;;  %7364 = vmatmul.f32.gmra.mxu2 %v7072_v42 }
 0xc26   : > { %v6964_v34 = vpop.f32.mrf.mxu1 }
 0xc27   : > { %v7116_v52 = vadd.f32 %v7115_v24, %v6964_v34  ;;  %v7074_v54 = vpop.f32.mrf.mxu2 }
 0xc28   : > { %v7127_v62 = vpop.f32.mrf.mxu3 }
 0xc29   : > { %7296 = vmatmul.f32.vlgmr.msra.gmra.mxu1 %v7116_v52  ;;  %7408 = vmatmul.f32.vlgmr.msrb.gmra.mxu3 %v7116_v52 }
 0xc2a   : > { %v6923_v0 = vpop.f32.mrf.mxu0 }
 0xc2b   : > { %v7075_v23 = vadd.f32 %v7074_v54, %v6923_v0 }
 0xc2d   : > { %7255 = vmatmul.f32.gmra.mxu0 %v7075_v23  ;;  %7367 = vmatmul.f32.gmra.mxu2 %v7075_v23 }
 0xc2e   : > { %v6967_v30 = vpop.f32.mrf.mxu1 }
 0xc2f   : > { %v7119_v7 = vadd.f32 %v7118_v61, %v6967_v30  ;;  %v7077_v22 = vpop.f32.mrf.mxu2 }
 0xc30   : > { %v7130_v5 = vpop.f32.mrf.mxu3 }
 0xc31   : > { %7299 = vmatmul.f32.gmra.mxu1 %v7119_v7  ;;  %7411 = vmatmul.f32.gmra.mxu3 %v7119_v7 }
 0xc32   : > { %v6926_v38 = vpop.f32.mrf.mxu0 }
 0xc33   : > { %v7078_v37 = vadd.f32 %v7077_v22, %v6926_v38 }
 0xc35   : > { %7258 = vmatmul.f32.gmra.mxu0 %v7078_v37  ;;  %7370 = vmatmul.f32.gmra.mxu2 %v7078_v37 }
 0xc36   : > { %v6970_v44 = vpop.f32.mrf.mxu1 }
 0xc37   : > { %v7122_v14 = vadd.f32 %v7121_v60, %v6970_v44  ;;  %v7080_v58 = vpop.f32.mrf.mxu2 }
 0xc38   : > { %v7133_v9 = vpop.f32.mrf.mxu3 }
 0xc39   : > { %7302 = vmatmul.f32.gmra.mxu1 %v7122_v14  ;;  %7414 = vmatmul.f32.gmra.mxu3 %v7122_v14 }
 0xc3a   : > { %v6929_v31 = vpop.f32.mrf.mxu0 }
 0xc3b   : > { %v7081_v4 = vadd.f32 %v7080_v58, %v6929_v31 }
 0xc3d   : > { %7261 = vmatmul.f32.gmra.mxu0 %v7081_v4  ;;  %7373 = vmatmul.f32.gmra.mxu2 %v7081_v4 }
 0xc3e   : > { %v6973_v48 = vpop.f32.mrf.mxu1 }
 0xc3f   : > { %v7125_v17 = vadd.f32 %v7124_v15, %v6973_v48  ;;  %v7083_v36 = vpop.f32.mrf.mxu2  ;;  %v7218_v15 = vld [vmem:[%s15781_s7] sm:$0x3] }
 0xc40   : > { %v7136_v21 = vpop.f32.mrf.mxu3  ;;  %v14759_v42 = vperm.slane %v7218_v15, 0  ;;  %v14763_v0 = vperm.slane %v7218_v15, 1 }
 0xc41   : > { %7305 = vmatmul.f32.gmra.mxu1 %v7125_v17  ;;  %7417 = vmatmul.f32.gmra.mxu3 %v7125_v17 }
 0xc42   : > { %v6932_v35 = vpop.f32.mrf.mxu0 }
 0xc43   : > { %v7084_v55 = vadd.f32 %v7083_v36, %v6932_v35 }
 0xc45   : > { %7264 = vmatmul.f32.gmra.mxu0 %v7084_v55  ;;  %7376 = vmatmul.f32.gmra.mxu2 %v7084_v55 }
 0xc46   : > { %v6976_v43 = vpop.f32.mrf.mxu1 }
 0xc47   : > { %v7128_v3 = vadd.f32 %v7127_v62, %v6976_v43  ;;  %v7086_v56 = vpop.f32.mrf.mxu2 }
 0xc48   : > { %v7139_v41 = vpop.f32.mrf.mxu3 }
 0xc49   : > { %7308 = vmatmul.f32.gmra.mxu1 %v7128_v3  ;;  %7420 = vmatmul.f32.gmra.mxu3 %v7128_v3 }
 0xc4a   : > { %v6935_v28 = vpop.f32.mrf.mxu0 }
 0xc4b   : > { %v7087_v10 = vadd.f32 %v7086_v56, %v6935_v28 }
 0xc4d   : > { %7267 = vmatmul.f32.gmra.mxu0 %v7087_v10  ;;  %7379 = vmatmul.f32.gmra.mxu2 %v7087_v10 }
 0xc4e   : > { %v6979_v59 = vpop.f32.mrf.mxu1 }
 0xc4f   : > { %v7131_v12 = vadd.f32 %v7130_v5, %v6979_v59  ;;  %v7089_v19 = vpop.f32.mrf.mxu2 }
 0xc50   : > { %v7142_v6 = vpop.f32.mrf.mxu3 }
 0xc51   : > { %7311 = vmatmul.f32.gmra.mxu1 %v7131_v12  ;;  %7423 = vmatmul.f32.gmra.mxu3 %v7131_v12 }
 0xc52   : > { %v6938_v45 = vpop.f32.mrf.mxu0 }
 0xc53   : > { %v7090_v25 = vadd.f32 %v7089_v19, %v6938_v45 }
 0xc55   : > { %7270 = vmatmul.f32.gmra.mxu0 %v7090_v25  ;;  %7382 = vmatmul.f32.gmra.mxu2 %v7090_v25 }
 0xc56   : > { %v6982_v1 = vpop.f32.mrf.mxu1 }
 0xc57   : > { %v7134_v2 = vadd.f32 %v7133_v9, %v6982_v1  ;;  %v7092_v16 = vpop.f32.mrf.mxu2 }
 0xc58   : > { %v7145_v27 = vpop.f32.mrf.mxu3 }
 0xc59   : > { %7314 = vmatmul.f32.gmra.mxu1 %v7134_v2  ;;  %7426 = vmatmul.f32.gmra.mxu3 %v7134_v2 }
 0xc5a   : > { %v6941_v13 = vpop.f32.mrf.mxu0 }
 0xc5b   : > { %v7093_v51 = vadd.f32 %v7092_v16, %v6941_v13 }
 0xc5d   : > { %7273 = vmatmul.f32.gmra.mxu0 %v7093_v51  ;;  %7385 = vmatmul.f32.gmra.mxu2 %v7093_v51 }
 0xc5e   : > { %v6985_v39 = vpop.f32.mrf.mxu1 }
 0xc5f   : > { %v7137_v33 = vadd.f32 %v7136_v21, %v6985_v39  ;;  %v7095_v63 = vpop.f32.mrf.mxu2 }
 0xc60   : > { %v7148_v26 = vpop.f32.mrf.mxu3 }
 0xc61   : > { %7317 = vmatmul.f32.gmra.mxu1 %v7137_v33  ;;  %7429 = vmatmul.f32.gmra.mxu3 %v7137_v33 }
 0xc62   : > { %v6944_v40 = vpop.f32.mrf.mxu0 }
 0xc63   : > { %v7096_v24 = vadd.f32 %v7095_v63, %v6944_v40 }
 0xc65   : > { %7276 = vmatmul.f32.gmra.mxu0 %v7096_v24  ;;  %7388 = vmatmul.f32.gmra.mxu2 %v7096_v24 }
 0xc66   : > { %v6988_v50 = vpop.f32.mrf.mxu1 }
 0xc67   : > { %v7140_v11 = vadd.f32 %v7139_v41, %v6988_v50 }
 0xc68   : > { %v7151_v20 = vpop.f32.mrf.mxu3 }
 0xc69   : > { %7320 = vmatmul.f32.gmra.mxu1 %v7140_v11  ;;  %7432 = vmatmul.f32.gmra.mxu3 %v7140_v11 }
 0xc6e   : > { %v6991_v29 = vpop.f32.mrf.mxu1 }
 0xc6f   : > { %v7143_v8 = vadd.f32 %v7142_v6, %v6991_v29 }
 0xc71   : > { %7323 = vmatmul.f32.gmra.mxu1 %v7143_v8  ;;  %7435 = vmatmul.f32.gmra.mxu3 %v7143_v8 }
 0xc76   : > { %v6994_v32 = vpop.f32.mrf.mxu1 }
 0xc77   : > { %v7146_v61 = vadd.f32 %v7145_v27, %v6994_v32 }
 0xc79   : > { %7326 = vmatmul.f32.gmra.mxu1 %v7146_v61  ;;  %7438 = vmatmul.f32.gmra.mxu3 %v7146_v61 }
 0xc7e   : > { %v6997_v18 = vpop.f32.mrf.mxu1 }
 0xc7f   : > { %v7149_v57 = vadd.f32 %v7148_v26, %v6997_v18  ;;  %v7241_v47 = vpop.f32.mrf.mxu0 }
 0xc80   : > { %v7242_v7 = vadd.f32 %v7241_v47, %v14759_v42 }
 0xc81   : > { %7329 = vmatmul.f32.gmra.mxu1 %v7149_v57  ;;  %7441 = vmatmul.f32.gmra.mxu3 %v7149_v57 }
 0xc85   : > { %v7353_v34 = vpop.f32.mrf.mxu2 }
 0xc86   : > { %v7000_v60 = vpop.f32.mrf.mxu1  ;;  %v7354_v44 = vadd.f32 %v7353_v34, %v14763_v0 }
 0xc87   : > { %v7152_v49 = vadd.f32 %v7151_v20, %v7000_v60 }
 0xc89   : > { %7332 = vmatmul.f32.gmra.mxu1 %v7152_v49  ;;  %7444 = vmatmul.f32.gmra.mxu3 %v7152_v49 }
 0xc8a   : > { %v7244_v52 = vpop.f32.mrf.mxu0 }
 0xc8b   : > { %v7245_v14 = vadd.f32 %v7244_v52, %v14759_v42 }
 0xc90   : > { %v7356_v46 = vpop.f32.mrf.mxu2 }
 0xc91   : > { %v7357_v31 = vadd.f32 %v7356_v46, %v14763_v0 }
 0xc92   : > { %v7247_v53 = vpop.f32.mrf.mxu0 }
 0xc93   : > { %v7248_v58 = vadd.f32 %v7247_v53, %v14759_v42 }
 0xc98   : > { %v7359_v30 = vpop.f32.mrf.mxu2 }
 0xc99   : > { %v7360_v36 = vadd.f32 %v7359_v30, %v14763_v0 }
 0xc9a   : > { %v7250_v54 = vpop.f32.mrf.mxu0 }
 0xc9b   : > { %v7251_v59 = vadd.f32 %v7250_v54, %v14759_v42 }
 0xca0   : > { %v7362_v22 = vpop.f32.mrf.mxu2 }
 0xca1   : > { %v7363_v1 = vadd.f32 %v7362_v22, %v14763_v0 }
 0xca2   : > { %v7253_v17 = vpop.f32.mrf.mxu0 }
 0xca3   : > { %v7254_v2 = vadd.f32 %v7253_v17, %v14759_v42 }
 0xca6   : > { %v7297_v62 = vpop.f32.mrf.mxu1 }
 0xca7   : > { %v7298_v23 = vadd.f32 %v7297_v62, %v7242_v7 }
 0xca8   : > { %v7365_v35 = vpop.f32.mrf.mxu2 }
 0xca9   : > { %7448 = vst [vmem:[%s14768_s19] sm:$0xff] %v7298_v23  ;;  %v7366_v33 = vadd.f32 %v7365_v35, %v14763_v0 }
 0xcaa   : > { %v7256_v55 = vpop.f32.mrf.mxu0 }
 0xcab   : > { %v7257_v16 = vadd.f32 %v7256_v55, %v14759_v42 }
 0xcac   : > { %v7409_v38 = vpop.f32.mrf.mxu3 }
 0xcad   : > { %v7410_v37 = vadd.f32 %v7409_v38, %v7354_v44 }
 0xcae   : > { %v7300_v48 = vpop.f32.mrf.mxu1 }
 0xcaf   : > { %7449 = vst [vmem:[%s14768_s19 + $0x8] sm:$0xff] %v7410_v37  ;;  %v7301_v5 = vadd.f32 %v7300_v48, %v7245_v14 }
 0xcb0   : > { %v7368_v10 = vpop.f32.mrf.mxu2 }
 0xcb1   : > { %7450 = vst [vmem:[%s14768_s19 + $0x10] sm:$0xff] %v7301_v5  ;;  %v7369_v63 = vadd.f32 %v7368_v10, %v14763_v0 }
 0xcb2   : > { %v7259_v41 = vpop.f32.mrf.mxu0 }
 0xcb3   : > { %v7260_v24 = vadd.f32 %v7259_v41, %v14759_v42 }
 0xcb4   : > { %v7412_v4 = vpop.f32.mrf.mxu3 }
 0xcb5   : > { %v7413_v43 = vadd.f32 %v7412_v4, %v7357_v31 }
 0xcb6   : > { %v7303_v3 = vpop.f32.mrf.mxu1 }
 0xcb7   : > { %7451 = vst [vmem:[%s14768_s19 + $0x18] sm:$0xff] %v7413_v43  ;;  %v7304_v9 = vadd.f32 %v7303_v3, %v7248_v58 }
 0xcb8   : > { %v7371_v13 = vpop.f32.mrf.mxu2 }
 0xcb9   : > { %7452 = vst [vmem:[%s14768_s19 + $0x20] sm:$0xff] %v7304_v9  ;;  %v7372_v18 = vadd.f32 %v7371_v13, %v14763_v0 }
 0xcba   : > { %v7262_v11 = vpop.f32.mrf.mxu0 }
 0xcbb   : > { %v7263_v57 = vadd.f32 %v7262_v11, %v14759_v42 }
 0xcbc   : > { %v7415_v12 = vpop.f32.mrf.mxu3 }
 0xcbd   : > { %v7416_v28 = vadd.f32 %v7415_v12, %v7360_v36 }
 0xcbe   : > { %v7306_v21 = vpop.f32.mrf.mxu1 }
 0xcbf   : > { %7453 = vst [vmem:[%s14768_s19 + $0x28] sm:$0xff] %v7416_v28  ;;  %v7307_v56 = vadd.f32 %v7306_v21, %v7251_v59 }
 0xcc0   : > { %v7374_v8 = vpop.f32.mrf.mxu2 }
 0xcc1   : > { %7454 = vst [vmem:[%s14768_s19 + $0x30] sm:$0xff] %v7307_v56  ;;  %v7375_v52 = vadd.f32 %v7374_v8, %v14763_v0 }
 0xcc2   : > { %v7265_v26 = vpop.f32.mrf.mxu0 }
 0xcc3   : > { %v7266_v15 = vadd.f32 %v7265_v26, %v14759_v42 }
 0xcc4   : > { %v7418_v45 = vpop.f32.mrf.mxu3 }
 0xcc5   : > { %v7419_v19 = vadd.f32 %v7418_v45, %v7363_v1 }
 0xcc6   : > { %v7309_v25 = vpop.f32.mrf.mxu1 }
 0xcc7   : > { %7455 = vst [vmem:[%s14768_s19 + $0x38] sm:$0xff] %v7419_v19  ;;  %v7310_v39 = vadd.f32 %v7309_v25, %v7254_v2 }
 0xcc8   : > { %v7377_v47 = vpop.f32.mrf.mxu2 }
 0xcc9   : > { %7456 = vst [vmem:[%s14768_s19 + $0x40] sm:$0xff] %v7310_v39  ;;  %v7378_v23 = vadd.f32 %v7377_v47, %v14763_v0 }
 0xcca   : > { %v7268_v46 = vpop.f32.mrf.mxu0 }
 0xccb   : > { %v7269_v44 = vadd.f32 %v7268_v46, %v14759_v42 }
 0xccc   : > { %v7421_v51 = vpop.f32.mrf.mxu3 }
 0xccd   : > { %v7422_v50 = vadd.f32 %v7421_v51, %v7366_v33 }
 0xcce   : > { %v7312_v6 = vpop.f32.mrf.mxu1 }
 0xccf   : > { %7457 = vst [vmem:[%s14768_s19 + $0x48] sm:$0xff] %v7422_v50  ;;  %v7313_v40 = vadd.f32 %v7312_v6, %v7257_v16 }
 0xcd0   : > { %v7380_v54 = vpop.f32.mrf.mxu2 }
 0xcd1   : > { %7458 = vst [vmem:[%s14768_s19 + $0x50] sm:$0xff] %v7313_v40  ;;  %v7381_v5 = vadd.f32 %v7380_v54, %v14763_v0 }
 0xcd2   : > { %v7271_v38 = vpop.f32.mrf.mxu0 }
 0xcd3   : > { %v7272_v31 = vadd.f32 %v7271_v38, %v14759_v42 }
 0xcd4   : > { %v7424_v29 = vpop.f32.mrf.mxu3 }
 0xcd5   : > { %v7425_v27 = vadd.f32 %v7424_v29, %v7369_v63 }
 0xcd6   : > { %v7315_v32 = vpop.f32.mrf.mxu1 }
 0xcd7   : > { %7459 = vst [vmem:[%s14768_s19 + $0x58] sm:$0xff] %v7425_v27  ;;  %v7316_v61 = vadd.f32 %v7315_v32, %v7260_v24 }
 0xcd8   : > { %v7383_v17 = vpop.f32.mrf.mxu2 }
 0xcd9   : > { %7460 = vst [vmem:[%s14768_s19 + $0x60] sm:$0xff] %v7316_v61  ;;  %v7384_v9 = vadd.f32 %v7383_v17, %v14763_v0 }
 0xcda   : > { %v7274_v3 = vpop.f32.mrf.mxu0 }
 0xcdb   : > { %v7275_v36 = vadd.f32 %v7274_v3, %v14759_v42 }
 0xcdc   : > { %v7427_v20 = vpop.f32.mrf.mxu3 }
 0xcdd   : > { %v7428_v60 = vadd.f32 %v7427_v20, %v7372_v18 }
 0xcde   : > { %v7318_v49 = vpop.f32.mrf.mxu1 }
 0xcdf   : > { %7461 = vst [vmem:[%s14768_s19 + $0x68] sm:$0xff] %v7428_v60  ;;  %v7319_v34 = vadd.f32 %v7318_v49, %v7263_v57 }
 0xce0   : > { %v7386_v59 = vpop.f32.mrf.mxu2 }
 0xce1   : > { %7462 = vst [vmem:[%s14768_s19 + $0x70] sm:$0xff] %v7319_v34  ;;  %v7387_v10 = vadd.f32 %v7386_v59, %v14763_v0 }
 0xce2   : > { %v7277_v56 = vpop.f32.mrf.mxu0 }
 0xce3   : > { %v7278_v1 = vadd.f32 %v7277_v56, %v14759_v42 }
 0xce4   : > { %v7430_v53 = vpop.f32.mrf.mxu3 }
 0xce5   : > { %v7431_v30 = vadd.f32 %v7430_v53, %v7375_v52 }
 0xce6   : > { %v7321_v7 = vpop.f32.mrf.mxu1 }
 0xce7   : > { %7463 = vst [vmem:[%s14768_s19 + $0x78] sm:$0xff] %v7431_v30  ;;  %v7322_v62 = vadd.f32 %v7321_v7, %v7266_v15 }
 0xce8   : > { %v7389_v19 = vpop.f32.mrf.mxu2 }
 0xce9   : > { %7464 = vst [vmem:[%s14768_s19 + $0x80] sm:$0xff] %v7322_v62  ;;  %v7390_v39 = vadd.f32 %v7389_v19, %v14763_v0 }
 0xcec   : > { %v7433_v14 = vpop.f32.mrf.mxu3 }
 0xced   : > { %v7434_v22 = vadd.f32 %v7433_v14, %v7378_v23 }
 0xcee   : > { %v7324_v37 = vpop.f32.mrf.mxu1 }
 0xcef   : > { %7465 = vst [vmem:[%s14768_s19 + $0x88] sm:$0xff] %v7434_v22  ;;  %v7325_v48 = vadd.f32 %v7324_v37, %v7269_v44 }
 0xcf1   : > { %7466 = vst [vmem:[%s14768_s19 + $0x90] sm:$0xff] %v7325_v48 }
 0xcf4   : > { %v7436_v58 = vpop.f32.mrf.mxu3 }
 0xcf5   : > { %v7437_v4 = vadd.f32 %v7436_v58, %v7381_v5 }
 0xcf6   : > { %v7327_v43 = vpop.f32.mrf.mxu1 }
 0xcf7   : > { %7467 = vst [vmem:[%s14768_s19 + $0x98] sm:$0xff] %v7437_v4  ;;  %v7328_v35 = vadd.f32 %v7327_v43, %v7272_v31 }
 0xcf9   : > { %7468 = vst [vmem:[%s14768_s19 + $0xa0] sm:$0xff] %v7328_v35 }
 0xcfc   : > { %v7439_v55 = vpop.f32.mrf.mxu3 }
 0xcfd   : > { %v7440_v12 = vadd.f32 %v7439_v55, %v7384_v9 }
 0xcfe   : > { %v7330_v28 = vpop.f32.mrf.mxu1 }
 0xcff   : > { %7469 = vst [vmem:[%s14768_s19 + $0xa8] sm:$0xff] %v7440_v12  ;;  %v7331_v21 = vadd.f32 %v7330_v28, %v7275_v36 }
 0xd01   : > { %7470 = vst [vmem:[%s14768_s19 + $0xb0] sm:$0xff] %v7331_v21 }
 0xd04   : > { %v7442_v2 = vpop.f32.mrf.mxu3 }
 0xd05   : > { %v7443_v45 = vadd.f32 %v7442_v2, %v7387_v10 }
 0xd06   : > { %v7333_v41 = vpop.f32.mrf.mxu1 }
 0xd07   : > { %7471 = vst [vmem:[%s14768_s19 + $0xb8] sm:$0xff] %v7443_v45  ;;  %v7334_v25 = vadd.f32 %v7333_v41, %v7278_v1 }
 0xd09   : > { %7472 = vst [vmem:[%s14768_s19 + $0xc0] sm:$0xf] %v7334_v25 }
 0xd0c   : > { %v7445_v33 = vpop.f32.mrf.mxu3 }
 0xd0d   : > { %v7446_v13 = vadd.f32 %v7445_v33, %v7390_v39 }
 0xd0f   : > { %7473 = vst [vmem:[%s14768_s19 + $0xc8] sm:$0xf] %v7446_v13 }
 0xd10 PF: > { %s15783_s25 = sld [smem:[#allocation36_spill]] }
 0xd16   : > { %s39_s1 = sadd.s32 1, %s15783_s25  }
 0xd17   : > { %p36_p7 = scmp.ge.s32.totalorder %s39_s1, 4  }
 0xd19   :  { %38 = sbr.rel (!%p36_p7) target bundleno = 20 (0x14), region = 195 }
 0xd1e   :  { %7495 = vsyncpa [#allocation3], 1 }
 0xd1f   :  { %7497 = vsyncpa [#allocation3 + $0x1], 1 }
 0xd20   :  { %7498 = vsyncpa [#allocation5], 1 }
 0xd21   :  { %7499 = vsyncpa [#allocation8], 1 }
 0xd22   :  { %7500 = vsyncpa [#allocation11], 1 }
 0xd23   :  { %7501 = vsyncpa [#allocation14], 1 }
 0xd24   :  { %7502 = vsyncpa [#allocation17], 1 }
 0xd25   :  { %7503 = vsyncpa [#allocation20], 1 }
 0xd26   :  { %7504 = vsyncpa [#allocation23], 1 }
 0xd27   :  { %7505 = vsyncpa [#allocation26], 1 }

</bundles_post_ra>
